<compile_context>
chip_gen: v5e
topology: v5e:2x2
jax: 0.10.0
libtpu: 0.0.40
codegen_flags: <defaults>
</compile_context>

<pallas_src>
import functools

import jax
import jax.numpy as jnp
from jax import lax
from jax.experimental import pallas as pl
from jax.experimental.pallas import tpu as pltpu


# ---------------------------------------------------------------------------
# conv_h:  out_h = depthwise3x3_s1( relu(bn(h)) ) + h      (NHWC layout)
# ---------------------------------------------------------------------------
def _conv_h_kernel(hpad_ref, mask_ref, scale_ref, shift_ref, w_ref, o_ref, *, H, W):
    hp = hpad_ref[0]                                        # (H+2, W+2, C), raw, zero padded
    a = jnp.maximum(hp * scale_ref[...] + shift_ref[...], 0.0) * mask_ref[...]
    C = hp.shape[-1]
    acc = jnp.zeros((H, W, C), jnp.float32)
    for ky in range(3):
        for kx in range(3):
            acc = acc + a[ky:ky + H, kx:kx + W, :] * w_ref[3 * ky + kx]
    o_ref[0] = acc + hp[1:1 + H, 1:1 + W, :]                # residual uses raw h


def _conv_h(h_nhwc, scale, shift, w_taps):
    N, H, W, C = h_nhwc.shape
    hpad = jnp.pad(h_nhwc, ((0, 0), (1, 1), (1, 1), (0, 0)))
    mask = jnp.pad(jnp.ones((H, W, 1), jnp.float32), ((1, 1), (1, 1), (0, 0)))
    kern = functools.partial(_conv_h_kernel, H=H, W=W)
    return pl.pallas_call(
        kern,
        out_shape=jax.ShapeDtypeStruct((N, H, W, C), jnp.float32),
        grid_spec=pltpu.PrefetchScalarGridSpec(
            num_scalar_prefetch=0,
            grid=(N,),
            in_specs=[
                pl.BlockSpec((1, H + 2, W + 2, C), lambda n: (n, 0, 0, 0)),
                pl.BlockSpec((H + 2, W + 2, 1), lambda n: (0, 0, 0)),
                pl.BlockSpec((1, C), lambda n: (0, 0)),
                pl.BlockSpec((1, C), lambda n: (0, 0)),
                pl.BlockSpec((9, 1, C), lambda n: (0, 0, 0)),
            ],
            out_specs=pl.BlockSpec((1, H, W, C), lambda n: (n, 0, 0, 0)),
        ),
        compiler_params=pltpu.CompilerParams(dimension_semantics=("parallel",)),
    )(hpad, mask, scale.reshape(1, C), shift.reshape(1, C), w_taps)


# ---------------------------------------------------------------------------
# conv_s: two depthwise 3x3 stride-2 BasicConvs.
# Stride-2 is handled by even/odd phase splitting in the wrapper so the kernel
# only does static, stride-1 window reads.  Phase p_ab[i, j] = pad[2i+a, 2j+b].
# ---------------------------------------------------------------------------
def _dw_s2_taps(p00, p01, p10, p11, w_ref, Ho, Wo):
    def sl(t, r, c):
        return t[r:r + Ho, c:c + Wo, :]
    acc = sl(p00, 0, 0) * w_ref[0]
    acc = acc + sl(p01, 0, 0) * w_ref[1]
    acc = acc + sl(p00, 0, 1) * w_ref[2]
    acc = acc + sl(p10, 0, 0) * w_ref[3]
    acc = acc + sl(p11, 0, 0) * w_ref[4]
    acc = acc + sl(p10, 0, 1) * w_ref[5]
    acc = acc + sl(p00, 1, 0) * w_ref[6]
    acc = acc + sl(p01, 1, 0) * w_ref[7]
    acc = acc + sl(p00, 1, 1) * w_ref[8]
    return acc


def _conv_s1_kernel(p_ref, m_ref, sci_ref, shi_ref, w_ref, sco_ref, sho_ref,
                    o_ref, *, Ho, Wo):
    # input activation (BN+ReLU of stage 1), masked so padding stays zero
    act = [jnp.maximum(p_ref[i] * sci_ref[...] + shi_ref[...], 0.0) * m_ref[i]
           for i in range(4)]
    acc = _dw_s2_taps(act[0], act[1], act[2], act[3], w_ref, Ho, Wo)
    # fused: BN+ReLU of the *next* BasicConv (stage 2 input activation)
    o_ref[0] = jnp.maximum(acc * sco_ref[...] + sho_ref[...], 0.0)


def _conv_s2_kernel(p_ref, w_ref, o_ref, *, Ho, Wo):
    o_ref[0] = _dw_s2_taps(p_ref[0], p_ref[1], p_ref[2], p_ref[3], w_ref, Ho, Wo)


def _phase_stack(xpad):
    # xpad: (N, 2*Ho+2, 2*Wo+2, C) -> (N*4, Ho+1, Wo+1, C), phase order 00,01,10,11
    n = xpad.shape[0]
    ph = jnp.stack([xpad[:, a::2, b::2, :] for a in (0, 1) for b in (0, 1)], axis=1)
    return ph.reshape((n * 4,) + ph.shape[2:])


def _conv_s(s_nhwc, s1_scale, s1_shift, ws1_taps, s2_scale, s2_shift, ws2_taps):
    N, H2, W2, C = s_nhwc.shape
    Hm, Wm = H2 // 2, W2 // 2
    Ho, Wo = Hm // 2, Wm // 2

    # ---- stage 1 ----
    ph1 = _phase_stack(jnp.pad(s_nhwc, ((0, 0), (1, 1), (1, 1), (0, 0))))
    m = jnp.pad(jnp.ones((H2, W2, 1), jnp.float32), ((1, 1), (1, 1), (0, 0)))
    m1 = jnp.stack([m[a::2, b::2, :] for a in (0, 1) for b in (0, 1)], axis=0)
    Hp, Wp = Hm + 1, Wm + 1
    k1 = functools.partial(_conv_s1_kernel, Ho=Hm, Wo=Wm)
    u = pl.pallas_call(
        k1,
        out_shape=jax.ShapeDtypeStruct((N, Hm, Wm, C), jnp.float32),
        grid_spec=pltpu.PrefetchScalarGridSpec(
            num_scalar_prefetch=0,
            grid=(N,),
            in_specs=[
                pl.BlockSpec((4, Hp, Wp, C), lambda n: (n, 0, 0, 0)),
                pl.BlockSpec((4, Hp, Wp, 1), lambda n: (0, 0, 0, 0)),
                pl.BlockSpec((1, C), lambda n: (0, 0)),
                pl.BlockSpec((1, C), lambda n: (0, 0)),
                pl.BlockSpec((9, 1, C), lambda n: (0, 0, 0)),
                pl.BlockSpec((1, C), lambda n: (0, 0)),
                pl.BlockSpec((1, C), lambda n: (0, 0)),
            ],
            out_specs=pl.BlockSpec((1, Hm, Wm, C), lambda n: (n, 0, 0, 0)),
        ),
        compiler_params=pltpu.CompilerParams(dimension_semantics=("parallel",)),
    )(ph1, m1, s1_scale.reshape(1, C), s1_shift.reshape(1, C), ws1_taps,
      s2_scale.reshape(1, C), s2_shift.reshape(1, C))

    # ---- stage 2 (input already activated; zero pad is correct) ----
    ph2 = _phase_stack(jnp.pad(u, ((0, 0), (1, 1), (1, 1), (0, 0))))
    Hp2, Wp2 = Ho + 1, Wo + 1
    k2 = functools.partial(_conv_s2_kernel, Ho=Ho, Wo=Wo)
    out_s = pl.pallas_call(
        k2,
        out_shape=jax.ShapeDtypeStruct((N, Ho, Wo, C), jnp.float32),
        grid_spec=pltpu.PrefetchScalarGridSpec(
            num_scalar_prefetch=0,
            grid=(N,),
            in_specs=[
                pl.BlockSpec((4, Hp2, Wp2, C), lambda n: (n, 0, 0, 0)),
                pl.BlockSpec((9, 1, C), lambda n: (0, 0, 0)),
            ],
            out_specs=pl.BlockSpec((1, Ho, Wo, C), lambda n: (n, 0, 0, 0)),
        ),
        compiler_params=pltpu.CompilerParams(dimension_semantics=("parallel",)),
    )(ph2, ws2_taps)
    return out_s


# ---------------------------------------------------------------------------
# conv1_1x1: relu(bn1(xcat)) -> 1x1 conv -> fused relu(bn2(.))
# Lane-dense (C, H*W) layout: pixels on the 128-lane axis, straight from NCHW.
# ---------------------------------------------------------------------------
def _conv1_kernel(x_ref, sc1_ref, sh1_ref, w1_ref, sc2_ref, sh2_ref, o_ref):
    a = jnp.maximum(x_ref[0] * sc1_ref[...] + sh1_ref[...], 0.0)        # (Ct, M)
    y = jnp.dot(w1_ref[...], a, preferred_element_type=jnp.float32)     # (C1, M)
    o_ref[0] = jnp.maximum(y * sc2_ref[...] + sh2_ref[...], 0.0)


def _conv1(xcat_cm, sc1, sh1, w1, sc2, sh2):
    N, Ct, M = xcat_cm.shape
    C1 = w1.shape[0]
    return pl.pallas_call(
        _conv1_kernel,
        out_shape=jax.ShapeDtypeStruct((N, C1, M), jnp.float32),
        grid_spec=pltpu.PrefetchScalarGridSpec(
            num_scalar_prefetch=0,
            grid=(N,),
            in_specs=[
                pl.BlockSpec((1, Ct, M), lambda n: (n, 0, 0)),
                pl.BlockSpec((Ct, 1), lambda n: (0, 0)),
                pl.BlockSpec((Ct, 1), lambda n: (0, 0)),
                pl.BlockSpec((C1, Ct), lambda n: (0, 0)),
                pl.BlockSpec((C1, 1), lambda n: (0, 0)),
                pl.BlockSpec((C1, 1), lambda n: (0, 0)),
            ],
            out_specs=pl.BlockSpec((1, C1, M), lambda n: (n, 0, 0)),
        ),
        compiler_params=pltpu.CompilerParams(dimension_semantics=("parallel",)),
    )(xcat_cm, sc1, sh1, w1, sc2, sh2)


# ---------------------------------------------------------------------------
# conv2_3x3 (stride 2) as a single K-concatenated matmul + out_s residual
# + fused SE epilogue (gap -> fc1 -> relu -> fc2 -> sigmoid -> x + x*gate).
# ---------------------------------------------------------------------------
def _conv2_se_kernel(*refs, has_s):
    if has_s:
        (zcol_ref, w2_ref, outs_ref, f1w_ref, f1b_ref, f2w_ref, f2b_ref, o_ref) = refs
    else:
        (zcol_ref, w2_ref, f1w_ref, f1b_ref, f2w_ref, f2b_ref, o_ref) = refs
        outs_ref = None
    y = jnp.dot(w2_ref[...], zcol_ref[0], preferred_element_type=jnp.float32)  # (Co, Mo)
    if outs_ref is not None:
        y = y + outs_ref[0]
    g = jnp.mean(y, axis=1, keepdims=True)                                     # (Co, 1)
    t = jnp.maximum(
        jnp.dot(f1w_ref[...], g, preferred_element_type=jnp.float32) + f1b_ref[...], 0.0)
    z = jnp.dot(f2w_ref[...], t, preferred_element_type=jnp.float32) + f2b_ref[...]
    gate = 1.0 / (1.0 + jnp.exp(-z))                                           # (Co, 1)
    o_ref[0] = y + y * gate


def _conv2_se(zcol, w2cat, outs_cm, f1w, f1b, f2w, f2b):
    N, K, Mo = zcol.shape
    Co = w2cat.shape[0]
    C4 = f1w.shape[0]
    has_s = outs_cm is not None
    in_specs = [
        pl.BlockSpec((1, K, Mo), lambda n: (n, 0, 0)),
        pl.BlockSpec((Co, K), lambda n: (0, 0)),
    ]
    args = [zcol, w2cat]
    if has_s:
        in_specs.append(pl.BlockSpec((1, Co, Mo), lambda n: (n, 0, 0)))
        args.append(outs_cm)
    in_specs += [
        pl.BlockSpec((C4, Co), lambda n: (0, 0)),
        pl.BlockSpec((C4, 1), lambda n: (0, 0)),
        pl.BlockSpec((Co, C4), lambda n: (0, 0)),
        pl.BlockSpec((Co, 1), lambda n: (0, 0)),
    ]
    args += [f1w, f1b.reshape(C4, 1), f2w, f2b.reshape(Co, 1)]
    return pl.pallas_call(
        functools.partial(_conv2_se_kernel, has_s=has_s),
        out_shape=jax.ShapeDtypeStruct((N, Co, Mo), jnp.float32),
        grid_spec=pltpu.PrefetchScalarGridSpec(
            num_scalar_prefetch=0,
            grid=(N,),
            in_specs=in_specs,
            out_specs=pl.BlockSpec((1, Co, Mo), lambda n: (n, 0, 0)),
        ),
        compiler_params=pltpu.CompilerParams(dimension_semantics=("parallel",)),
    )(*args)


# ---------------------------------------------------------------------------
# Forward wrapper
# ---------------------------------------------------------------------------
def _dw_taps(w):
    # PyTorch depthwise weight (C, 1, 3, 3) -> (9, 1, C) tap table, k = 3*ky + kx.
    c = w.shape[0]
    return jnp.transpose(w[:, 0, :, :], (1, 2, 0)).reshape(9, 1, c)


def transition_forward(params, s, x, h):
    """Pallas implementation of Transition.forward(s, x, h) (inference-mode BN)."""
    N, C_in, H, W = x.shape
    M = H * W

    # --- h branch: out_h = dwconv3x3_s1(relu(bn(h))) + h; concat on channels ---
    if h is not None:
        Cm = h.shape[1]
        ph = params["h"]
        h_nhwc = jnp.transpose(h, (0, 2, 3, 1))
        out_h = _conv_h(h_nhwc, ph["scale"], ph["shift"], _dw_taps(ph["w"]))
        out_h_cm = jnp.transpose(out_h, (0, 3, 1, 2)).reshape(N, Cm, M)
        xcat = jnp.concatenate([x.reshape(N, C_in, M), out_h_cm], axis=1)
    else:
        xcat = x.reshape(N, C_in, M)
    Ct = xcat.shape[1]

    # --- conv1_1x1 (+ fused bn2/relu) in lane-dense (C, H*W) layout ---
    C1 = params["w1"].shape[0]
    z1 = _conv1(xcat,
                params["bn1_scale"].reshape(Ct, 1), params["bn1_shift"].reshape(Ct, 1),
                params["w1"],
                params["bn2_scale"].reshape(C1, 1), params["bn2_shift"].reshape(C1, 1))

    # --- im2col (stride-2 3x3) in XLA; the conv itself is one MXU dot ---
    Ho, Wo = H // 2, W // 2
    z1p = jnp.pad(z1.reshape(N, C1, H, W), ((0, 0), (0, 0), (1, 1), (1, 1)))
    taps = [z1p[:, :, ky:ky + 2 * Ho:2, kx:kx + 2 * Wo:2].reshape(N, C1, Ho * Wo)
            for ky in range(3) for kx in range(3)]
    zcol = jnp.concatenate(taps, axis=1)                           # (N, 9*C1, Ho*Wo)
    C_out = params["w2"].shape[0]
    w2cat = jnp.transpose(params["w2"], (0, 2, 3, 1)).reshape(C_out, 9 * C1)

    # --- s branch: conv_s = two depthwise stride-2 BasicConvs ---
    if s is not None:
        s_nhwc = jnp.transpose(s, (0, 2, 3, 1))
        out_s = _conv_s(s_nhwc,
                        params["s1_scale"], params["s1_shift"], _dw_taps(params["ws1"]),
                        params["s2_scale"], params["s2_shift"], _dw_taps(params["ws2"]))
        out_s_cm = jnp.transpose(out_s, (0, 3, 1, 2)).reshape(N, C_out, Ho * Wo)
    else:
        out_s_cm = None

    out_cm = _conv2_se(zcol, w2cat, out_s_cm,
                       params["fc1_w"], params["fc1_b"], params["fc2_w"], params["fc2_b"])
    return out_cm.reshape(N, C_out, Ho, Wo)


# ---------------------------------------------------------------------------
# Pure-JAX reference (lax.conv) for correctness checking
# ---------------------------------------------------------------------------
def transition_ref(params, s, x, h):
    def bn_relu(t, sc, sh):
        return jnp.maximum(t * sc[None, :, None, None] + sh[None, :, None, None], 0.0)

    def conv(t, w, stride, pad, groups):
        return lax.conv_general_dilated(
            t, w, (stride, stride), ((pad, pad), (pad, pad)),
            dimension_numbers=("NCHW", "OIHW", "NCHW"),
            feature_group_count=groups)

    if h is not None:
        ph = params["h"]
        out_h = conv(bn_relu(h, ph["scale"], ph["shift"]), ph["w"], 1, 1, h.shape[1]) + h
        x = jnp.concatenate([x, out_h], axis=1)
    t = bn_relu(x, params["bn1_scale"], params["bn1_shift"])
    y1 = conv(t, params["w1"][:, :, None, None], 1, 0, 1)
    t = bn_relu(y1, params["bn2_scale"], params["bn2_shift"])
    y2 = conv(t, params["w2"], 2, 1, 1)
    if s is not None:
        c = s.shape[1]
        u = conv(bn_relu(s, params["s1_scale"], params["s1_shift"]), params["ws1"], 2, 1, c)
        out_s = conv(bn_relu(u, params["s2_scale"], params["s2_shift"]), params["ws2"], 2, 1, c)
        y2 = y2 + out_s
    g = jnp.mean(y2, axis=(2, 3), keepdims=True)
    tse = jnp.maximum(
        jnp.einsum("oc,nchw->nohw", params["fc1_w"], g)
        + params["fc1_b"][None, :, None, None], 0.0)
    gate = jax.nn.sigmoid(
        jnp.einsum("oc,nchw->nohw", params["fc2_w"], tse)
        + params["fc2_b"][None, :, None, None])
    return y2 + y2 * gate


# ---------------------------------------------------------------------------
# Deterministic parameter initialisation (BN folded to scale/shift)
# ---------------------------------------------------------------------------
def init_transition_params(key, c_in, c_mid, c_out):
    c_tot = c_in + c_mid
    reduce_c = (c_tot - c_out) // 2
    c1 = c_tot - reduce_c
    c4 = c_out // 4
    eps = 1e-5
    ks = iter(jax.random.split(key, 32))

    def bn(c):
        gamma = jax.random.uniform(next(ks), (c,), jnp.float32, 0.5, 1.5)
        beta = 0.1 * jax.random.normal(next(ks), (c,), jnp.float32)
        mean = 0.1 * jax.random.normal(next(ks), (c,), jnp.float32)
        var = jax.random.uniform(next(ks), (c,), jnp.float32, 0.5, 1.5)
        scale = gamma / jnp.sqrt(var + eps)
        shift = beta - mean * scale
        return scale, shift

    def convw(shape, fan_in):
        return jax.random.normal(next(ks), shape, jnp.float32) / jnp.sqrt(jnp.float32(fan_in))

    p = {}
    if c_mid > 0:
        sc, sh = bn(c_mid)
        p["h"] = dict(scale=sc, shift=sh, w=convw((c_mid, 1, 3, 3), 9))
    p["bn1_scale"], p["bn1_shift"] = bn(c_tot)
    p["w1"] = convw((c1, c_tot), c_tot)
    p["bn2_scale"], p["bn2_shift"] = bn(c1)
    p["w2"] = convw((c_out, c1, 3, 3), c1 * 9)
    p["s1_scale"], p["s1_shift"] = bn(c_out)
    p["ws1"] = convw((c_out, 1, 3, 3), 9)
    p["s2_scale"], p["s2_shift"] = bn(c_out)
    p["ws2"] = convw((c_out, 1, 3, 3), 9)
    p["fc1_w"] = convw((c4, c_out), c_out)
    p["fc1_b"] = 0.1 * jax.random.normal(next(ks), (c4,), jnp.float32)
    p["fc2_w"] = convw((c_out, c4), c4)
    p["fc2_b"] = 0.1 * jax.random.normal(next(ks), (c_out,), jnp.float32)
    return p


if __name__ == "__main__":
    N, C_in, C_mid, C_out, H, W = 2, 32, 32, 32, 16, 16

    key = jax.random.PRNGKey(0)
    kp, kx, ks_, kh = jax.random.split(key, 4)
    params = init_transition_params(kp, C_in, C_mid, C_out)
    x = jax.random.normal(kx, (N, C_in, H, W), jnp.float32)
    s = jax.random.normal(ks_, (N, C_out, 2 * H, 2 * W), jnp.float32)
    h = jax.random.normal(kh, (N, C_mid, H, W), jnp.float32)

    out = jax.jit(transition_forward)(params, s, x, h)
    out = jax.block_until_ready(out)

    ref = transition_ref(params, s, x, h)
    assert out.shape == ref.shape == (N, C_out, H // 2, W // 2), out.shape
    assert jnp.allclose(out, ref, atol=5e-2, rtol=5e-2), float(jnp.max(jnp.abs(out - ref)))

    print("KERNEL_OK")
</pallas_src>

<mosaic_0001>
module attributes {stable_mosaic.version = 11 : i64} {
  func.func @_conv_s1_kernel(%arg0: i32, %arg1: memref<4x17x17x32xf32, #tpu.memory_space<vmem>>, %arg2: memref<4x17x17x1xf32, #tpu.memory_space<vmem>>, %arg3: memref<1x32xf32, #tpu.memory_space<vmem>>, %arg4: memref<1x32xf32, #tpu.memory_space<vmem>>, %arg5: memref<9x1x32xf32, #tpu.memory_space<vmem>>, %arg6: memref<1x32xf32, #tpu.memory_space<vmem>>, %arg7: memref<1x32xf32, #tpu.memory_space<vmem>>, %arg8: memref<1x16x16x32xf32, #tpu.memory_space<vmem>>) attributes {dimension_semantics = [#tpu.dimension_semantics<parallel>], iteration_bounds = array<i64: 2>, scalar_prefetch = 0 : i64, scratch_operands = 0 : i64, tpu.core_type = #tpu.core_type<tc>, window_params = [{transform_indices = @transform_0, window_bounds = array<i64: 4, 17, 17, 32>}, {pipeline_mode = #tpu.pipeline_mode<synchronous>, transform_indices = @transform_1, window_bounds = array<i64: 4, 17, 17, 1>}, {pipeline_mode = #tpu.pipeline_mode<synchronous>, transform_indices = @transform_2, window_bounds = array<i64: 1, 32>}, {pipeline_mode = #tpu.pipeline_mode<synchronous>, transform_indices = @transform_3, window_bounds = array<i64: 1, 32>}, {pipeline_mode = #tpu.pipeline_mode<synchronous>, transform_indices = @transform_4, window_bounds = array<i64: 9, 1, 32>}, {pipeline_mode = #tpu.pipeline_mode<synchronous>, transform_indices = @transform_5, window_bounds = array<i64: 1, 32>}, {pipeline_mode = #tpu.pipeline_mode<synchronous>, transform_indices = @transform_6, window_bounds = array<i64: 1, 32>}, {transform_indices = @transform_7, window_bounds = array<i64: 1, 16, 16, 32>}]} {
    %c0 = arith.constant 0 : index
    %c0_0 = arith.constant 0 : index
    %c0_1 = arith.constant 0 : index
    %c0_2 = arith.constant 0 : index
    %0 = vector.load %arg1[%c0, %c0_0, %c0_1, %c0_2] : memref<4x17x17x32xf32, #tpu.memory_space<vmem>>, vector<1x17x17x32xf32>
    %1 = vector.shape_cast %0 : vector<1x17x17x32xf32> to vector<17x17x32xf32>
    %c0_3 = arith.constant 0 : index
    %c0_4 = arith.constant 0 : index
    %2 = vector.load %arg3[%c0_3, %c0_4] : memref<1x32xf32, #tpu.memory_space<vmem>>, vector<1x32xf32>
    %3 = vector.shape_cast %2 : vector<1x32xf32> to vector<1x1x32xf32>
    %4 = vector.broadcast %3 : vector<1x1x32xf32> to vector<17x17x32xf32>
    %5 = arith.mulf %1, %4 : vector<17x17x32xf32>
    %c0_5 = arith.constant 0 : index
    %c0_6 = arith.constant 0 : index
    %6 = vector.load %arg4[%c0_5, %c0_6] : memref<1x32xf32, #tpu.memory_space<vmem>>, vector<1x32xf32>
    %7 = vector.shape_cast %6 : vector<1x32xf32> to vector<1x1x32xf32>
    %8 = vector.broadcast %7 : vector<1x1x32xf32> to vector<17x17x32xf32>
    %9 = arith.addf %5, %8 : vector<17x17x32xf32>
    %cst = arith.constant 0.000000e+00 : f32
    %10 = vector.broadcast %cst : f32 to vector<17x17x32xf32>
    %11 = arith.maximumf %9, %10 : vector<17x17x32xf32>
    %c0_7 = arith.constant 0 : index
    %c0_8 = arith.constant 0 : index
    %c0_9 = arith.constant 0 : index
    %c0_10 = arith.constant 0 : index
    %12 = vector.load %arg2[%c0_7, %c0_8, %c0_9, %c0_10] : memref<4x17x17x1xf32, #tpu.memory_space<vmem>>, vector<1x17x17x1xf32>
    %13 = vector.shape_cast %12 : vector<1x17x17x1xf32> to vector<17x17x1xf32>
    %14 = vector.broadcast %13 : vector<17x17x1xf32> to vector<17x17x32xf32>
    %15 = arith.mulf %11, %14 : vector<17x17x32xf32>
    %c1 = arith.constant 1 : index
    %c0_11 = arith.constant 0 : index
    %c0_12 = arith.constant 0 : index
    %c0_13 = arith.constant 0 : index
    %16 = vector.load %arg1[%c1, %c0_11, %c0_12, %c0_13] : memref<4x17x17x32xf32, #tpu.memory_space<vmem>>, vector<1x17x17x32xf32>
    %17 = vector.shape_cast %16 : vector<1x17x17x32xf32> to vector<17x17x32xf32>
    %c0_14 = arith.constant 0 : index
    %c0_15 = arith.constant 0 : index
    %18 = vector.load %arg3[%c0_14, %c0_15] : memref<1x32xf32, #tpu.memory_space<vmem>>, vector<1x32xf32>
    %19 = vector.shape_cast %18 : vector<1x32xf32> to vector<1x1x32xf32>
    %20 = vector.broadcast %19 : vector<1x1x32xf32> to vector<17x17x32xf32>
    %21 = arith.mulf %17, %20 : vector<17x17x32xf32>
    %c0_16 = arith.constant 0 : index
    %c0_17 = arith.constant 0 : index
    %22 = vector.load %arg4[%c0_16, %c0_17] : memref<1x32xf32, #tpu.memory_space<vmem>>, vector<1x32xf32>
    %23 = vector.shape_cast %22 : vector<1x32xf32> to vector<1x1x32xf32>
    %24 = vector.broadcast %23 : vector<1x1x32xf32> to vector<17x17x32xf32>
    %25 = arith.addf %21, %24 : vector<17x17x32xf32>
    %cst_18 = arith.constant 0.000000e+00 : f32
    %26 = vector.broadcast %cst_18 : f32 to vector<17x17x32xf32>
    %27 = arith.maximumf %25, %26 : vector<17x17x32xf32>
    %c1_19 = arith.constant 1 : index
    %c0_20 = arith.constant 0 : index
    %c0_21 = arith.constant 0 : index
    %c0_22 = arith.constant 0 : index
    %28 = vector.load %arg2[%c1_19, %c0_20, %c0_21, %c0_22] : memref<4x17x17x1xf32, #tpu.memory_space<vmem>>, vector<1x17x17x1xf32>
    %29 = vector.shape_cast %28 : vector<1x17x17x1xf32> to vector<17x17x1xf32>
    %30 = vector.broadcast %29 : vector<17x17x1xf32> to vector<17x17x32xf32>
    %31 = arith.mulf %27, %30 : vector<17x17x32xf32>
    %c2 = arith.constant 2 : index
    %c0_23 = arith.constant 0 : index
    %c0_24 = arith.constant 0 : index
    %c0_25 = arith.constant 0 : index
    %32 = vector.load %arg1[%c2, %c0_23, %c0_24, %c0_25] : memref<4x17x17x32xf32, #tpu.memory_space<vmem>>, vector<1x17x17x32xf32>
    %33 = vector.shape_cast %32 : vector<1x17x17x32xf32> to vector<17x17x32xf32>
    %c0_26 = arith.constant 0 : index
    %c0_27 = arith.constant 0 : index
    %34 = vector.load %arg3[%c0_26, %c0_27] : memref<1x32xf32, #tpu.memory_space<vmem>>, vector<1x32xf32>
    %35 = vector.shape_cast %34 : vector<1x32xf32> to vector<1x1x32xf32>
    %36 = vector.broadcast %35 : vector<1x1x32xf32> to vector<17x17x32xf32>
    %37 = arith.mulf %33, %36 : vector<17x17x32xf32>
    %c0_28 = arith.constant 0 : index
    %c0_29 = arith.constant 0 : index
    %38 = vector.load %arg4[%c0_28, %c0_29] : memref<1x32xf32, #tpu.memory_space<vmem>>, vector<1x32xf32>
    %39 = vector.shape_cast %38 : vector<1x32xf32> to vector<1x1x32xf32>
    %40 = vector.broadcast %39 : vector<1x1x32xf32> to vector<17x17x32xf32>
    %41 = arith.addf %37, %40 : vector<17x17x32xf32>
    %cst_30 = arith.constant 0.000000e+00 : f32
    %42 = vector.broadcast %cst_30 : f32 to vector<17x17x32xf32>
    %43 = arith.maximumf %41, %42 : vector<17x17x32xf32>
    %c2_31 = arith.constant 2 : index
    %c0_32 = arith.constant 0 : index
    %c0_33 = arith.constant 0 : index
    %c0_34 = arith.constant 0 : index
    %44 = vector.load %arg2[%c2_31, %c0_32, %c0_33, %c0_34] : memref<4x17x17x1xf32, #tpu.memory_space<vmem>>, vector<1x17x17x1xf32>
    %45 = vector.shape_cast %44 : vector<1x17x17x1xf32> to vector<17x17x1xf32>
    %46 = vector.broadcast %45 : vector<17x17x1xf32> to vector<17x17x32xf32>
    %47 = arith.mulf %43, %46 : vector<17x17x32xf32>
    %c3 = arith.constant 3 : index
    %c0_35 = arith.constant 0 : index
    %c0_36 = arith.constant 0 : index
    %c0_37 = arith.constant 0 : index
    %48 = vector.load %arg1[%c3, %c0_35, %c0_36, %c0_37] : memref<4x17x17x32xf32, #tpu.memory_space<vmem>>, vector<1x17x17x32xf32>
    %49 = vector.shape_cast %48 : vector<1x17x17x32xf32> to vector<17x17x32xf32>
    %c0_38 = arith.constant 0 : index
    %c0_39 = arith.constant 0 : index
    %50 = vector.load %arg3[%c0_38, %c0_39] : memref<1x32xf32, #tpu.memory_space<vmem>>, vector<1x32xf32>
    %51 = vector.shape_cast %50 : vector<1x32xf32> to vector<1x1x32xf32>
    %52 = vector.broadcast %51 : vector<1x1x32xf32> to vector<17x17x32xf32>
    %53 = arith.mulf %49, %52 : vector<17x17x32xf32>
    %c0_40 = arith.constant 0 : index
    %c0_41 = arith.constant 0 : index
    %54 = vector.load %arg4[%c0_40, %c0_41] : memref<1x32xf32, #tpu.memory_space<vmem>>, vector<1x32xf32>
    %55 = vector.shape_cast %54 : vector<1x32xf32> to vector<1x1x32xf32>
    %56 = vector.broadcast %55 : vector<1x1x32xf32> to vector<17x17x32xf32>
    %57 = arith.addf %53, %56 : vector<17x17x32xf32>
    %cst_42 = arith.constant 0.000000e+00 : f32
    %58 = vector.broadcast %cst_42 : f32 to vector<17x17x32xf32>
    %59 = arith.maximumf %57, %58 : vector<17x17x32xf32>
    %c3_43 = arith.constant 3 : index
    %c0_44 = arith.constant 0 : index
    %c0_45 = arith.constant 0 : index
    %c0_46 = arith.constant 0 : index
    %60 = vector.load %arg2[%c3_43, %c0_44, %c0_45, %c0_46] : memref<4x17x17x1xf32, #tpu.memory_space<vmem>>, vector<1x17x17x1xf32>
    %61 = vector.shape_cast %60 : vector<1x17x17x1xf32> to vector<17x17x1xf32>
    %62 = vector.broadcast %61 : vector<17x17x1xf32> to vector<17x17x32xf32>
    %63 = arith.mulf %59, %62 : vector<17x17x32xf32>
    %64 = vector.extract_strided_slice %15 {offsets = [0, 0, 0], sizes = [16, 16, 32], strides = [1, 1, 1]} : vector<17x17x32xf32> to vector<16x16x32xf32>
    %c0_47 = arith.constant 0 : index
    %c0_48 = arith.constant 0 : index
    %c0_49 = arith.constant 0 : index
    %65 = vector.load %arg5[%c0_47, %c0_48, %c0_49] : memref<9x1x32xf32, #tpu.memory_space<vmem>>, vector<1x1x32xf32>
    %66 = vector.shape_cast %65 : vector<1x1x32xf32> to vector<1x32xf32>
    %67 = vector.shape_cast %66 : vector<1x32xf32> to vector<1x1x32xf32>
    %68 = vector.broadcast %67 : vector<1x1x32xf32> to vector<16x16x32xf32>
    %69 = arith.mulf %64, %68 : vector<16x16x32xf32>
    %70 = vector.extract_strided_slice %31 {offsets = [0, 0, 0], sizes = [16, 16, 32], strides = [1, 1, 1]} : vector<17x17x32xf32> to vector<16x16x32xf32>
    %c1_50 = arith.constant 1 : index
    %c0_51 = arith.constant 0 : index
    %c0_52 = arith.constant 0 : index
    %71 = vector.load %arg5[%c1_50, %c0_51, %c0_52] : memref<9x1x32xf32, #tpu.memory_space<vmem>>, vector<1x1x32xf32>
    %72 = vector.shape_cast %71 : vector<1x1x32xf32> to vector<1x32xf32>
    %73 = vector.shape_cast %72 : vector<1x32xf32> to vector<1x1x32xf32>
    %74 = vector.broadcast %73 : vector<1x1x32xf32> to vector<16x16x32xf32>
    %75 = arith.mulf %70, %74 : vector<16x16x32xf32>
    %76 = arith.addf %69, %75 : vector<16x16x32xf32>
    %77 = vector.extract_strided_slice %15 {offsets = [0, 1, 0], sizes = [16, 16, 32], strides = [1, 1, 1]} : vector<17x17x32xf32> to vector<16x16x32xf32>
    %c2_53 = arith.constant 2 : index
    %c0_54 = arith.constant 0 : index
    %c0_55 = arith.constant 0 : index
    %78 = vector.load %arg5[%c2_53, %c0_54, %c0_55] : memref<9x1x32xf32, #tpu.memory_space<vmem>>, vector<1x1x32xf32>
    %79 = vector.shape_cast %78 : vector<1x1x32xf32> to vector<1x32xf32>
    %80 = vector.shape_cast %79 : vector<1x32xf32> to vector<1x1x32xf32>
    %81 = vector.broadcast %80 : vector<1x1x32xf32> to vector<16x16x32xf32>
    %82 = arith.mulf %77, %81 : vector<16x16x32xf32>
    %83 = arith.addf %76, %82 : vector<16x16x32xf32>
    %84 = vector.extract_strided_slice %47 {offsets = [0, 0, 0], sizes = [16, 16, 32], strides = [1, 1, 1]} : vector<17x17x32xf32> to vector<16x16x32xf32>
    %c3_56 = arith.constant 3 : index
    %c0_57 = arith.constant 0 : index
    %c0_58 = arith.constant 0 : index
    %85 = vector.load %arg5[%c3_56, %c0_57, %c0_58] : memref<9x1x32xf32, #tpu.memory_space<vmem>>, vector<1x1x32xf32>
    %86 = vector.shape_cast %85 : vector<1x1x32xf32> to vector<1x32xf32>
    %87 = vector.shape_cast %86 : vector<1x32xf32> to vector<1x1x32xf32>
    %88 = vector.broadcast %87 : vector<1x1x32xf32> to vector<16x16x32xf32>
    %89 = arith.mulf %84, %88 : vector<16x16x32xf32>
    %90 = arith.addf %83, %89 : vector<16x16x32xf32>
    %91 = vector.extract_strided_slice %63 {offsets = [0, 0, 0], sizes = [16, 16, 32], strides = [1, 1, 1]} : vector<17x17x32xf32> to vector<16x16x32xf32>
    %c4 = arith.constant 4 : index
    %c0_59 = arith.constant 0 : index
    %c0_60 = arith.constant 0 : index
    %92 = vector.load %arg5[%c4, %c0_59, %c0_60] : memref<9x1x32xf32, #tpu.memory_space<vmem>>, vector<1x1x32xf32>
    %93 = vector.shape_cast %92 : vector<1x1x32xf32> to vector<1x32xf32>
    %94 = vector.shape_cast %93 : vector<1x32xf32> to vector<1x1x32xf32>
    %95 = vector.broadcast %94 : vector<1x1x32xf32> to vector<16x16x32xf32>
    %96 = arith.mulf %91, %95 : vector<16x16x32xf32>
    %97 = arith.addf %90, %96 : vector<16x16x32xf32>
    %98 = vector.extract_strided_slice %47 {offsets = [0, 1, 0], sizes = [16, 16, 32], strides = [1, 1, 1]} : vector<17x17x32xf32> to vector<16x16x32xf32>
    %c5 = arith.constant 5 : index
    %c0_61 = arith.constant 0 : index
    %c0_62 = arith.constant 0 : index
    %99 = vector.load %arg5[%c5, %c0_61, %c0_62] : memref<9x1x32xf32, #tpu.memory_space<vmem>>, vector<1x1x32xf32>
    %100 = vector.shape_cast %99 : vector<1x1x32xf32> to vector<1x32xf32>
    %101 = vector.shape_cast %100 : vector<1x32xf32> to vector<1x1x32xf32>
    %102 = vector.broadcast %101 : vector<1x1x32xf32> to vector<16x16x32xf32>
    %103 = arith.mulf %98, %102 : vector<16x16x32xf32>
    %104 = arith.addf %97, %103 : vector<16x16x32xf32>
    %105 = vector.extract_strided_slice %15 {offsets = [1, 0, 0], sizes = [16, 16, 32], strides = [1, 1, 1]} : vector<17x17x32xf32> to vector<16x16x32xf32>
    %c6 = arith.constant 6 : index
    %c0_63 = arith.constant 0 : index
    %c0_64 = arith.constant 0 : index
    %106 = vector.load %arg5[%c6, %c0_63, %c0_64] : memref<9x1x32xf32, #tpu.memory_space<vmem>>, vector<1x1x32xf32>
    %107 = vector.shape_cast %106 : vector<1x1x32xf32> to vector<1x32xf32>
    %108 = vector.shape_cast %107 : vector<1x32xf32> to vector<1x1x32xf32>
    %109 = vector.broadcast %108 : vector<1x1x32xf32> to vector<16x16x32xf32>
    %110 = arith.mulf %105, %109 : vector<16x16x32xf32>
    %111 = arith.addf %104, %110 : vector<16x16x32xf32>
    %112 = vector.extract_strided_slice %31 {offsets = [1, 0, 0], sizes = [16, 16, 32], strides = [1, 1, 1]} : vector<17x17x32xf32> to vector<16x16x32xf32>
    %c7 = arith.constant 7 : index
    %c0_65 = arith.constant 0 : index
    %c0_66 = arith.constant 0 : index
    %113 = vector.load %arg5[%c7, %c0_65, %c0_66] : memref<9x1x32xf32, #tpu.memory_space<vmem>>, vector<1x1x32xf32>
    %114 = vector.shape_cast %113 : vector<1x1x32xf32> to vector<1x32xf32>
    %115 = vector.shape_cast %114 : vector<1x32xf32> to vector<1x1x32xf32>
    %116 = vector.broadcast %115 : vector<1x1x32xf32> to vector<16x16x32xf32>
    %117 = arith.mulf %112, %116 : vector<16x16x32xf32>
    %118 = arith.addf %111, %117 : vector<16x16x32xf32>
    %119 = vector.extract_strided_slice %15 {offsets = [1, 1, 0], sizes = [16, 16, 32], strides = [1, 1, 1]} : vector<17x17x32xf32> to vector<16x16x32xf32>
    %c8 = arith.constant 8 : index
    %c0_67 = arith.constant 0 : index
    %c0_68 = arith.constant 0 : index
    %120 = vector.load %arg5[%c8, %c0_67, %c0_68] : memref<9x1x32xf32, #tpu.memory_space<vmem>>, vector<1x1x32xf32>
    %121 = vector.shape_cast %120 : vector<1x1x32xf32> to vector<1x32xf32>
    %122 = vector.shape_cast %121 : vector<1x32xf32> to vector<1x1x32xf32>
    %123 = vector.broadcast %122 : vector<1x1x32xf32> to vector<16x16x32xf32>
    %124 = arith.mulf %119, %123 : vector<16x16x32xf32>
    %125 = arith.addf %118, %124 : vector<16x16x32xf32>
    %c0_69 = arith.constant 0 : index
    %c0_70 = arith.constant 0 : index
    %126 = vector.load %arg6[%c0_69, %c0_70] : memref<1x32xf32, #tpu.memory_space<vmem>>, vector<1x32xf32>
    %127 = vector.shape_cast %126 : vector<1x32xf32> to vector<1x1x32xf32>
    %128 = vector.broadcast %127 : vector<1x1x32xf32> to vector<16x16x32xf32>
    %129 = arith.mulf %125, %128 : vector<16x16x32xf32>
    %c0_71 = arith.constant 0 : index
    %c0_72 = arith.constant 0 : index
    %130 = vector.load %arg7[%c0_71, %c0_72] : memref<1x32xf32, #tpu.memory_space<vmem>>, vector<1x32xf32>
    %131 = vector.shape_cast %130 : vector<1x32xf32> to vector<1x1x32xf32>
    %132 = vector.broadcast %131 : vector<1x1x32xf32> to vector<16x16x32xf32>
    %133 = arith.addf %129, %132 : vector<16x16x32xf32>
    %cst_73 = arith.constant 0.000000e+00 : f32
    %134 = vector.broadcast %cst_73 : f32 to vector<16x16x32xf32>
    %135 = arith.maximumf %133, %134 : vector<16x16x32xf32>
    %c0_74 = arith.constant 0 : index
    %c0_75 = arith.constant 0 : index
    %c0_76 = arith.constant 0 : index
    %c0_77 = arith.constant 0 : index
    %136 = vector.load %arg8[%c0_74, %c0_75, %c0_76, %c0_77] : memref<1x16x16x32xf32, #tpu.memory_space<vmem>>, vector<1x16x16x32xf32>
    %137 = vector.shape_cast %136 : vector<1x16x16x32xf32> to vector<16x16x32xf32>
    %138 = vector.shape_cast %135 : vector<16x16x32xf32> to vector<1x16x16x32xf32>
    tpu.vector_store %arg8[%c0_74, %c0_75, %c0_76, %c0_77], %138 {strides = array<i32>} : memref<1x16x16x32xf32, #tpu.memory_space<vmem>>, vector<1x16x16x32xf32>,
    return
  }
  func.func @transform_0(%arg0: i32) -> (i32, i32, i32, i32) {
    %c0_i32 = arith.constant 0 : i32
    %c0_i32_0 = arith.constant 0 : i32
    %c0_i32_1 = arith.constant 0 : i32
    %c0_i32_2 = arith.constant 0 : i32
    return %arg0, %c0_i32, %c0_i32_0, %c0_i32_1 : i32, i32, i32, i32
  }
  func.func @transform_1(%arg0: i32) -> (i32, i32, i32, i32) {
    %c0_i32 = arith.constant 0 : i32
    %c0_i32_0 = arith.constant 0 : i32
    %c0_i32_1 = arith.constant 0 : i32
    %c0_i32_2 = arith.constant 0 : i32
    %c0_i32_3 = arith.constant 0 : i32
    return %c0_i32, %c0_i32_0, %c0_i32_1, %c0_i32_2 : i32, i32, i32, i32
  }
  func.func @transform_2(%arg0: i32) -> (i32, i32) {
    %c0_i32 = arith.constant 0 : i32
    %c0_i32_0 = arith.constant 0 : i32
    %c0_i32_1 = arith.constant 0 : i32
    return %c0_i32, %c0_i32_0 : i32, i32
  }
  func.func @transform_3(%arg0: i32) -> (i32, i32) {
    %c0_i32 = arith.constant 0 : i32
    %c0_i32_0 = arith.constant 0 : i32
    %c0_i32_1 = arith.constant 0 : i32
    return %c0_i32, %c0_i32_0 : i32, i32
  }
  func.func @transform_4(%arg0: i32) -> (i32, i32, i32) {
    %c0_i32 = arith.constant 0 : i32
    %c0_i32_0 = arith.constant 0 : i32
    %c0_i32_1 = arith.constant 0 : i32
    %c0_i32_2 = arith.constant 0 : i32
    return %c0_i32, %c0_i32_0, %c0_i32_1 : i32, i32, i32
  }
  func.func @transform_5(%arg0: i32) -> (i32, i32) {
    %c0_i32 = arith.constant 0 : i32
    %c0_i32_0 = arith.constant 0 : i32
    %c0_i32_1 = arith.constant 0 : i32
    return %c0_i32, %c0_i32_0 : i32, i32
  }
  func.func @transform_6(%arg0: i32) -> (i32, i32) {
    %c0_i32 = arith.constant 0 : i32
    %c0_i32_0 = arith.constant 0 : i32
    %c0_i32_1 = arith.constant 0 : i32
    return %c0_i32, %c0_i32_0 : i32, i32
  }
  func.func @transform_7(%arg0: i32) -> (i32, i32, i32, i32) {
    %c0_i32 = arith.constant 0 : i32
    %c0_i32_0 = arith.constant 0 : i32
    %c0_i32_1 = arith.constant 0 : i32
    %c0_i32_2 = arith.constant 0 : i32
    return %arg0, %c0_i32, %c0_i32_0, %c0_i32_1 : i32, i32, i32, i32
  }
}

module attributes {stable_mosaic.version = 11 : i64} {
  func.func @_conv_s2_kernel(%arg0: i32, %arg1: memref<4x9x9x32xf32, #tpu.memory_space<vmem>>, %arg2: memref<9x1x32xf32, #tpu.memory_space<vmem>>, %arg3: memref<1x8x8x32xf32, #tpu.memory_space<vmem>>) attributes {dimension_semantics = [#tpu.dimension_semantics<parallel>], iteration_bounds = array<i64: 2>, scalar_prefetch = 0 : i64, scratch_operands = 0 : i64, tpu.core_type = #tpu.core_type<tc>, window_params = [{transform_indices = @transform_0, window_bounds = array<i64: 4, 9, 9, 32>}, {pipeline_mode = #tpu.pipeline_mode<synchronous>, transform_indices = @transform_1, window_bounds = array<i64: 9, 1, 32>}, {transform_indices = @transform_2, window_bounds = array<i64: 1, 8, 8, 32>}]} {
    %c0 = arith.constant 0 : index
    %c0_0 = arith.constant 0 : index
    %c0_1 = arith.constant 0 : index
    %c0_2 = arith.constant 0 : index
    %0 = vector.load %arg1[%c0, %c0_0, %c0_1, %c0_2] : memref<4x9x9x32xf32, #tpu.memory_space<vmem>>, vector<1x9x9x32xf32>
    %1 = vector.shape_cast %0 : vector<1x9x9x32xf32> to vector<9x9x32xf32>
    %c1 = arith.constant 1 : index
    %c0_3 = arith.constant 0 : index
    %c0_4 = arith.constant 0 : index
    %c0_5 = arith.constant 0 : index
    %2 = vector.load %arg1[%c1, %c0_3, %c0_4, %c0_5] : memref<4x9x9x32xf32, #tpu.memory_space<vmem>>, vector<1x9x9x32xf32>
    %3 = vector.shape_cast %2 : vector<1x9x9x32xf32> to vector<9x9x32xf32>
    %c2 = arith.constant 2 : index
    %c0_6 = arith.constant 0 : index
    %c0_7 = arith.constant 0 : index
    %c0_8 = arith.constant 0 : index
    %4 = vector.load %arg1[%c2, %c0_6, %c0_7, %c0_8] : memref<4x9x9x32xf32, #tpu.memory_space<vmem>>, vector<1x9x9x32xf32>
    %5 = vector.shape_cast %4 : vector<1x9x9x32xf32> to vector<9x9x32xf32>
    %c3 = arith.constant 3 : index
    %c0_9 = arith.constant 0 : index
    %c0_10 = arith.constant 0 : index
    %c0_11 = arith.constant 0 : index
    %6 = vector.load %arg1[%c3, %c0_9, %c0_10, %c0_11] : memref<4x9x9x32xf32, #tpu.memory_space<vmem>>, vector<1x9x9x32xf32>
    %7 = vector.shape_cast %6 : vector<1x9x9x32xf32> to vector<9x9x32xf32>
    %8 = vector.extract_strided_slice %1 {offsets = [0, 0, 0], sizes = [8, 8, 32], strides = [1, 1, 1]} : vector<9x9x32xf32> to vector<8x8x32xf32>
    %c0_12 = arith.constant 0 : index
    %c0_13 = arith.constant 0 : index
    %c0_14 = arith.constant 0 : index
    %9 = vector.load %arg2[%c0_12, %c0_13, %c0_14] : memref<9x1x32xf32, #tpu.memory_space<vmem>>, vector<1x1x32xf32>
    %10 = vector.shape_cast %9 : vector<1x1x32xf32> to vector<1x32xf32>
    %11 = vector.shape_cast %10 : vector<1x32xf32> to vector<1x1x32xf32>
    %12 = vector.broadcast %11 : vector<1x1x32xf32> to vector<8x8x32xf32>
    %13 = arith.mulf %8, %12 : vector<8x8x32xf32>
    %14 = vector.extract_strided_slice %3 {offsets = [0, 0, 0], sizes = [8, 8, 32], strides = [1, 1, 1]} : vector<9x9x32xf32> to vector<8x8x32xf32>
    %c1_15 = arith.constant 1 : index
    %c0_16 = arith.constant 0 : index
    %c0_17 = arith.constant 0 : index
    %15 = vector.load %arg2[%c1_15, %c0_16, %c0_17] : memref<9x1x32xf32, #tpu.memory_space<vmem>>, vector<1x1x32xf32>
    %16 = vector.shape_cast %15 : vector<1x1x32xf32> to vector<1x32xf32>
    %17 = vector.shape_cast %16 : vector<1x32xf32> to vector<1x1x32xf32>
    %18 = vector.broadcast %17 : vector<1x1x32xf32> to vector<8x8x32xf32>
    %19 = arith.mulf %14, %18 : vector<8x8x32xf32>
    %20 = arith.addf %13, %19 : vector<8x8x32xf32>
    %21 = vector.extract_strided_slice %1 {offsets = [0, 1, 0], sizes = [8, 8, 32], strides = [1, 1, 1]} : vector<9x9x32xf32> to vector<8x8x32xf32>
    %c2_18 = arith.constant 2 : index
    %c0_19 = arith.constant 0 : index
    %c0_20 = arith.constant 0 : index
    %22 = vector.load %arg2[%c2_18, %c0_19, %c0_20] : memref<9x1x32xf32, #tpu.memory_space<vmem>>, vector<1x1x32xf32>
    %23 = vector.shape_cast %22 : vector<1x1x32xf32> to vector<1x32xf32>
    %24 = vector.shape_cast %23 : vector<1x32xf32> to vector<1x1x32xf32>
    %25 = vector.broadcast %24 : vector<1x1x32xf32> to vector<8x8x32xf32>
    %26 = arith.mulf %21, %25 : vector<8x8x32xf32>
    %27 = arith.addf %20, %26 : vector<8x8x32xf32>
    %28 = vector.extract_strided_slice %5 {offsets = [0, 0, 0], sizes = [8, 8, 32], strides = [1, 1, 1]} : vector<9x9x32xf32> to vector<8x8x32xf32>
    %c3_21 = arith.constant 3 : index
    %c0_22 = arith.constant 0 : index
    %c0_23 = arith.constant 0 : index
    %29 = vector.load %arg2[%c3_21, %c0_22, %c0_23] : memref<9x1x32xf32, #tpu.memory_space<vmem>>, vector<1x1x32xf32>
    %30 = vector.shape_cast %29 : vector<1x1x32xf32> to vector<1x32xf32>
    %31 = vector.shape_cast %30 : vector<1x32xf32> to vector<1x1x32xf32>
    %32 = vector.broadcast %31 : vector<1x1x32xf32> to vector<8x8x32xf32>
    %33 = arith.mulf %28, %32 : vector<8x8x32xf32>
    %34 = arith.addf %27, %33 : vector<8x8x32xf32>
    %35 = vector.extract_strided_slice %7 {offsets = [0, 0, 0], sizes = [8, 8, 32], strides = [1, 1, 1]} : vector<9x9x32xf32> to vector<8x8x32xf32>
    %c4 = arith.constant 4 : index
    %c0_24 = arith.constant 0 : index
    %c0_25 = arith.constant 0 : index
    %36 = vector.load %arg2[%c4, %c0_24, %c0_25] : memref<9x1x32xf32, #tpu.memory_space<vmem>>, vector<1x1x32xf32>
    %37 = vector.shape_cast %36 : vector<1x1x32xf32> to vector<1x32xf32>
    %38 = vector.shape_cast %37 : vector<1x32xf32> to vector<1x1x32xf32>
    %39 = vector.broadcast %38 : vector<1x1x32xf32> to vector<8x8x32xf32>
    %40 = arith.mulf %35, %39 : vector<8x8x32xf32>
    %41 = arith.addf %34, %40 : vector<8x8x32xf32>
    %42 = vector.extract_strided_slice %5 {offsets = [0, 1, 0], sizes = [8, 8, 32], strides = [1, 1, 1]} : vector<9x9x32xf32> to vector<8x8x32xf32>
    %c5 = arith.constant 5 : index
    %c0_26 = arith.constant 0 : index
    %c0_27 = arith.constant 0 : index
    %43 = vector.load %arg2[%c5, %c0_26, %c0_27] : memref<9x1x32xf32, #tpu.memory_space<vmem>>, vector<1x1x32xf32>
    %44 = vector.shape_cast %43 : vector<1x1x32xf32> to vector<1x32xf32>
    %45 = vector.shape_cast %44 : vector<1x32xf32> to vector<1x1x32xf32>
    %46 = vector.broadcast %45 : vector<1x1x32xf32> to vector<8x8x32xf32>
    %47 = arith.mulf %42, %46 : vector<8x8x32xf32>
    %48 = arith.addf %41, %47 : vector<8x8x32xf32>
    %49 = vector.extract_strided_slice %1 {offsets = [1, 0, 0], sizes = [8, 8, 32], strides = [1, 1, 1]} : vector<9x9x32xf32> to vector<8x8x32xf32>
    %c6 = arith.constant 6 : index
    %c0_28 = arith.constant 0 : index
    %c0_29 = arith.constant 0 : index
    %50 = vector.load %arg2[%c6, %c0_28, %c0_29] : memref<9x1x32xf32, #tpu.memory_space<vmem>>, vector<1x1x32xf32>
    %51 = vector.shape_cast %50 : vector<1x1x32xf32> to vector<1x32xf32>
    %52 = vector.shape_cast %51 : vector<1x32xf32> to vector<1x1x32xf32>
    %53 = vector.broadcast %52 : vector<1x1x32xf32> to vector<8x8x32xf32>
    %54 = arith.mulf %49, %53 : vector<8x8x32xf32>
    %55 = arith.addf %48, %54 : vector<8x8x32xf32>
    %56 = vector.extract_strided_slice %3 {offsets = [1, 0, 0], sizes = [8, 8, 32], strides = [1, 1, 1]} : vector<9x9x32xf32> to vector<8x8x32xf32>
    %c7 = arith.constant 7 : index
    %c0_30 = arith.constant 0 : index
    %c0_31 = arith.constant 0 : index
    %57 = vector.load %arg2[%c7, %c0_30, %c0_31] : memref<9x1x32xf32, #tpu.memory_space<vmem>>, vector<1x1x32xf32>
    %58 = vector.shape_cast %57 : vector<1x1x32xf32> to vector<1x32xf32>
    %59 = vector.shape_cast %58 : vector<1x32xf32> to vector<1x1x32xf32>
    %60 = vector.broadcast %59 : vector<1x1x32xf32> to vector<8x8x32xf32>
    %61 = arith.mulf %56, %60 : vector<8x8x32xf32>
    %62 = arith.addf %55, %61 : vector<8x8x32xf32>
    %63 = vector.extract_strided_slice %1 {offsets = [1, 1, 0], sizes = [8, 8, 32], strides = [1, 1, 1]} : vector<9x9x32xf32> to vector<8x8x32xf32>
    %c8 = arith.constant 8 : index
    %c0_32 = arith.constant 0 : index
    %c0_33 = arith.constant 0 : index
    %64 = vector.load %arg2[%c8, %c0_32, %c0_33] : memref<9x1x32xf32, #tpu.memory_space<vmem>>, vector<1x1x32xf32>
    %65 = vector.shape_cast %64 : vector<1x1x32xf32> to vector<1x32xf32>
    %66 = vector.shape_cast %65 : vector<1x32xf32> to vector<1x1x32xf32>
    %67 = vector.broadcast %66 : vector<1x1x32xf32> to vector<8x8x32xf32>
    %68 = arith.mulf %63, %67 : vector<8x8x32xf32>
    %69 = arith.addf %62, %68 : vector<8x8x32xf32>
    %c0_34 = arith.constant 0 : index
    %c0_35 = arith.constant 0 : index
    %c0_36 = arith.constant 0 : index
    %c0_37 = arith.constant 0 : index
    %70 = vector.load %arg3[%c0_34, %c0_35, %c0_36, %c0_37] : memref<1x8x8x32xf32, #tpu.memory_space<vmem>>, vector<1x8x8x32xf32>
    %71 = vector.shape_cast %70 : vector<1x8x8x32xf32> to vector<8x8x32xf32>
    %72 = vector.shape_cast %69 : vector<8x8x32xf32> to vector<1x8x8x32xf32>
    tpu.vector_store %arg3[%c0_34, %c0_35, %c0_36, %c0_37], %72 {strides = array<i32>} : memref<1x8x8x32xf32, #tpu.memory_space<vmem>>, vector<1x8x8x32xf32>,
    return
  }
  func.func @transform_0(%arg0: i32) -> (i32, i32, i32, i32) {
    %c0_i32 = arith.constant 0 : i32
    %c0_i32_0 = arith.constant 0 : i32
    %c0_i32_1 = arith.constant 0 : i32
    %c0_i32_2 = arith.constant 0 : i32
    return %arg0, %c0_i32, %c0_i32_0, %c0_i32_1 : i32, i32, i32, i32
  }
  func.func @transform_1(%arg0: i32) -> (i32, i32, i32) {
    %c0_i32 = arith.constant 0 : i32
    %c0_i32_0 = arith.constant 0 : i32
    %c0_i32_1 = arith.constant 0 : i32
    %c0_i32_2 = arith.constant 0 : i32
    return %c0_i32, %c0_i32_0, %c0_i32_1 : i32, i32, i32
  }
  func.func @transform_2(%arg0: i32) -> (i32, i32, i32, i32) {
    %c0_i32 = arith.constant 0 : i32
    %c0_i32_0 = arith.constant 0 : i32
    %c0_i32_1 = arith.constant 0 : i32
    %c0_i32_2 = arith.constant 0 : i32
    return %arg0, %c0_i32, %c0_i32_0, %c0_i32_1 : i32, i32, i32, i32
  }
}

module attributes {stable_mosaic.version = 11 : i64} {
  func.func @_conv_h_kernel(%arg0: i32, %arg1: memref<1x18x18x32xf32, #tpu.memory_space<vmem>>, %arg2: memref<18x18x1xf32, #tpu.memory_space<vmem>>, %arg3: memref<1x32xf32, #tpu.memory_space<vmem>>, %arg4: memref<1x32xf32, #tpu.memory_space<vmem>>, %arg5: memref<9x1x32xf32, #tpu.memory_space<vmem>>, %arg6: memref<1x16x16x32xf32, #tpu.memory_space<vmem>>) attributes {dimension_semantics = [#tpu.dimension_semantics<parallel>], iteration_bounds = array<i64: 2>, scalar_prefetch = 0 : i64, scratch_operands = 0 : i64, tpu.core_type = #tpu.core_type<tc>, window_params = [{transform_indices = @transform_0, window_bounds = array<i64: 1, 18, 18, 32>}, {pipeline_mode = #tpu.pipeline_mode<synchronous>, transform_indices = @transform_1, window_bounds = array<i64: 18, 18, 1>}, {pipeline_mode = #tpu.pipeline_mode<synchronous>, transform_indices = @transform_2, window_bounds = array<i64: 1, 32>}, {pipeline_mode = #tpu.pipeline_mode<synchronous>, transform_indices = @transform_3, window_bounds = array<i64: 1, 32>}, {pipeline_mode = #tpu.pipeline_mode<synchronous>, transform_indices = @transform_4, window_bounds = array<i64: 9, 1, 32>}, {transform_indices = @transform_5, window_bounds = array<i64: 1, 16, 16, 32>}]} {
    %c0 = arith.constant 0 : index
    %c0_0 = arith.constant 0 : index
    %c0_1 = arith.constant 0 : index
    %c0_2 = arith.constant 0 : index
    %0 = vector.load %arg1[%c0, %c0_0, %c0_1, %c0_2] : memref<1x18x18x32xf32, #tpu.memory_space<vmem>>, vector<1x18x18x32xf32>
    %1 = vector.shape_cast %0 : vector<1x18x18x32xf32> to vector<18x18x32xf32>
    %c0_3 = arith.constant 0 : index
    %c0_4 = arith.constant 0 : index
    %2 = vector.load %arg3[%c0_3, %c0_4] : memref<1x32xf32, #tpu.memory_space<vmem>>, vector<1x32xf32>
    %3 = vector.shape_cast %2 : vector<1x32xf32> to vector<1x1x32xf32>
    %4 = vector.broadcast %3 : vector<1x1x32xf32> to vector<18x18x32xf32>
    %5 = arith.mulf %1, %4 : vector<18x18x32xf32>
    %c0_5 = arith.constant 0 : index
    %c0_6 = arith.constant 0 : index
    %6 = vector.load %arg4[%c0_5, %c0_6] : memref<1x32xf32, #tpu.memory_space<vmem>>, vector<1x32xf32>
    %7 = vector.shape_cast %6 : vector<1x32xf32> to vector<1x1x32xf32>
    %8 = vector.broadcast %7 : vector<1x1x32xf32> to vector<18x18x32xf32>
    %9 = arith.addf %5, %8 : vector<18x18x32xf32>
    %cst = arith.constant 0.000000e+00 : f32
    %10 = vector.broadcast %cst : f32 to vector<18x18x32xf32>
    %11 = arith.maximumf %9, %10 : vector<18x18x32xf32>
    %c0_7 = arith.constant 0 : index
    %c0_8 = arith.constant 0 : index
    %c0_9 = arith.constant 0 : index
    %12 = vector.load %arg2[%c0_7, %c0_8, %c0_9] : memref<18x18x1xf32, #tpu.memory_space<vmem>>, vector<18x18x1xf32>
    %13 = vector.broadcast %12 : vector<18x18x1xf32> to vector<18x18x32xf32>
    %14 = arith.mulf %11, %13 : vector<18x18x32xf32>
    %cst_10 = arith.constant 0.000000e+00 : f32
    %15 = vector.broadcast %cst_10 : f32 to vector<16x16x32xf32>
    %16 = vector.extract_strided_slice %14 {offsets = [0, 0, 0], sizes = [16, 16, 32], strides = [1, 1, 1]} : vector<18x18x32xf32> to vector<16x16x32xf32>
    %c0_11 = arith.constant 0 : index
    %c0_12 = arith.constant 0 : index
    %c0_13 = arith.constant 0 : index
    %17 = vector.load %arg5[%c0_11, %c0_12, %c0_13] : memref<9x1x32xf32, #tpu.memory_space<vmem>>, vector<1x1x32xf32>
    %18 = vector.shape_cast %17 : vector<1x1x32xf32> to vector<1x32xf32>
    %19 = vector.shape_cast %18 : vector<1x32xf32> to vector<1x1x32xf32>
    %20 = vector.broadcast %19 : vector<1x1x32xf32> to vector<16x16x32xf32>
    %21 = arith.mulf %16, %20 : vector<16x16x32xf32>
    %22 = arith.addf %15, %21 : vector<16x16x32xf32>
    %23 = vector.extract_strided_slice %14 {offsets = [0, 1, 0], sizes = [16, 16, 32], strides = [1, 1, 1]} : vector<18x18x32xf32> to vector<16x16x32xf32>
    %c1 = arith.constant 1 : index
    %c0_14 = arith.constant 0 : index
    %c0_15 = arith.constant 0 : index
    %24 = vector.load %arg5[%c1, %c0_14, %c0_15] : memref<9x1x32xf32, #tpu.memory_space<vmem>>, vector<1x1x32xf32>
    %25 = vector.shape_cast %24 : vector<1x1x32xf32> to vector<1x32xf32>
    %26 = vector.shape_cast %25 : vector<1x32xf32> to vector<1x1x32xf32>
    %27 = vector.broadcast %26 : vector<1x1x32xf32> to vector<16x16x32xf32>
    %28 = arith.mulf %23, %27 : vector<16x16x32xf32>
    %29 = arith.addf %22, %28 : vector<16x16x32xf32>
    %30 = vector.extract_strided_slice %14 {offsets = [0, 2, 0], sizes = [16, 16, 32], strides = [1, 1, 1]} : vector<18x18x32xf32> to vector<16x16x32xf32>
    %c2 = arith.constant 2 : index
    %c0_16 = arith.constant 0 : index
    %c0_17 = arith.constant 0 : index
    %31 = vector.load %arg5[%c2, %c0_16, %c0_17] : memref<9x1x32xf32, #tpu.memory_space<vmem>>, vector<1x1x32xf32>
    %32 = vector.shape_cast %31 : vector<1x1x32xf32> to vector<1x32xf32>
    %33 = vector.shape_cast %32 : vector<1x32xf32> to vector<1x1x32xf32>
    %34 = vector.broadcast %33 : vector<1x1x32xf32> to vector<16x16x32xf32>
    %35 = arith.mulf %30, %34 : vector<16x16x32xf32>
    %36 = arith.addf %29, %35 : vector<16x16x32xf32>
    %37 = vector.extract_strided_slice %14 {offsets = [1, 0, 0], sizes = [16, 16, 32], strides = [1, 1, 1]} : vector<18x18x32xf32> to vector<16x16x32xf32>
    %c3 = arith.constant 3 : index
    %c0_18 = arith.constant 0 : index
    %c0_19 = arith.constant 0 : index
    %38 = vector.load %arg5[%c3, %c0_18, %c0_19] : memref<9x1x32xf32, #tpu.memory_space<vmem>>, vector<1x1x32xf32>
    %39 = vector.shape_cast %38 : vector<1x1x32xf32> to vector<1x32xf32>
    %40 = vector.shape_cast %39 : vector<1x32xf32> to vector<1x1x32xf32>
    %41 = vector.broadcast %40 : vector<1x1x32xf32> to vector<16x16x32xf32>
    %42 = arith.mulf %37, %41 : vector<16x16x32xf32>
    %43 = arith.addf %36, %42 : vector<16x16x32xf32>
    %44 = vector.extract_strided_slice %14 {offsets = [1, 1, 0], sizes = [16, 16, 32], strides = [1, 1, 1]} : vector<18x18x32xf32> to vector<16x16x32xf32>
    %c4 = arith.constant 4 : index
    %c0_20 = arith.constant 0 : index
    %c0_21 = arith.constant 0 : index
    %45 = vector.load %arg5[%c4, %c0_20, %c0_21] : memref<9x1x32xf32, #tpu.memory_space<vmem>>, vector<1x1x32xf32>
    %46 = vector.shape_cast %45 : vector<1x1x32xf32> to vector<1x32xf32>
    %47 = vector.shape_cast %46 : vector<1x32xf32> to vector<1x1x32xf32>
    %48 = vector.broadcast %47 : vector<1x1x32xf32> to vector<16x16x32xf32>
    %49 = arith.mulf %44, %48 : vector<16x16x32xf32>
    %50 = arith.addf %43, %49 : vector<16x16x32xf32>
    %51 = vector.extract_strided_slice %14 {offsets = [1, 2, 0], sizes = [16, 16, 32], strides = [1, 1, 1]} : vector<18x18x32xf32> to vector<16x16x32xf32>
    %c5 = arith.constant 5 : index
    %c0_22 = arith.constant 0 : index
    %c0_23 = arith.constant 0 : index
    %52 = vector.load %arg5[%c5, %c0_22, %c0_23] : memref<9x1x32xf32, #tpu.memory_space<vmem>>, vector<1x1x32xf32>
    %53 = vector.shape_cast %52 : vector<1x1x32xf32> to vector<1x32xf32>
    %54 = vector.shape_cast %53 : vector<1x32xf32> to vector<1x1x32xf32>
    %55 = vector.broadcast %54 : vector<1x1x32xf32> to vector<16x16x32xf32>
    %56 = arith.mulf %51, %55 : vector<16x16x32xf32>
    %57 = arith.addf %50, %56 : vector<16x16x32xf32>
    %58 = vector.extract_strided_slice %14 {offsets = [2, 0, 0], sizes = [16, 16, 32], strides = [1, 1, 1]} : vector<18x18x32xf32> to vector<16x16x32xf32>
    %c6 = arith.constant 6 : index
    %c0_24 = arith.constant 0 : index
    %c0_25 = arith.constant 0 : index
    %59 = vector.load %arg5[%c6, %c0_24, %c0_25] : memref<9x1x32xf32, #tpu.memory_space<vmem>>, vector<1x1x32xf32>
    %60 = vector.shape_cast %59 : vector<1x1x32xf32> to vector<1x32xf32>
    %61 = vector.shape_cast %60 : vector<1x32xf32> to vector<1x1x32xf32>
    %62 = vector.broadcast %61 : vector<1x1x32xf32> to vector<16x16x32xf32>
    %63 = arith.mulf %58, %62 : vector<16x16x32xf32>
    %64 = arith.addf %57, %63 : vector<16x16x32xf32>
    %65 = vector.extract_strided_slice %14 {offsets = [2, 1, 0], sizes = [16, 16, 32], strides = [1, 1, 1]} : vector<18x18x32xf32> to vector<16x16x32xf32>
    %c7 = arith.constant 7 : index
    %c0_26 = arith.constant 0 : index
    %c0_27 = arith.constant 0 : index
    %66 = vector.load %arg5[%c7, %c0_26, %c0_27] : memref<9x1x32xf32, #tpu.memory_space<vmem>>, vector<1x1x32xf32>
    %67 = vector.shape_cast %66 : vector<1x1x32xf32> to vector<1x32xf32>
    %68 = vector.shape_cast %67 : vector<1x32xf32> to vector<1x1x32xf32>
    %69 = vector.broadcast %68 : vector<1x1x32xf32> to vector<16x16x32xf32>
    %70 = arith.mulf %65, %69 : vector<16x16x32xf32>
    %71 = arith.addf %64, %70 : vector<16x16x32xf32>
    %72 = vector.extract_strided_slice %14 {offsets = [2, 2, 0], sizes = [16, 16, 32], strides = [1, 1, 1]} : vector<18x18x32xf32> to vector<16x16x32xf32>
    %c8 = arith.constant 8 : index
    %c0_28 = arith.constant 0 : index
    %c0_29 = arith.constant 0 : index
    %73 = vector.load %arg5[%c8, %c0_28, %c0_29] : memref<9x1x32xf32, #tpu.memory_space<vmem>>, vector<1x1x32xf32>
    %74 = vector.shape_cast %73 : vector<1x1x32xf32> to vector<1x32xf32>
    %75 = vector.shape_cast %74 : vector<1x32xf32> to vector<1x1x32xf32>
    %76 = vector.broadcast %75 : vector<1x1x32xf32> to vector<16x16x32xf32>
    %77 = arith.mulf %72, %76 : vector<16x16x32xf32>
    %78 = arith.addf %71, %77 : vector<16x16x32xf32>
    %79 = vector.extract_strided_slice %1 {offsets = [1, 1, 0], sizes = [16, 16, 32], strides = [1, 1, 1]} : vector<18x18x32xf32> to vector<16x16x32xf32>
    %80 = arith.addf %78, %79 : vector<16x16x32xf32>
    %c0_30 = arith.constant 0 : index
    %c0_31 = arith.constant 0 : index
    %c0_32 = arith.constant 0 : index
    %c0_33 = arith.constant 0 : index
    %81 = vector.load %arg6[%c0_30, %c0_31, %c0_32, %c0_33] : memref<1x16x16x32xf32, #tpu.memory_space<vmem>>, vector<1x16x16x32xf32>
    %82 = vector.shape_cast %81 : vector<1x16x16x32xf32> to vector<16x16x32xf32>
    %83 = vector.shape_cast %80 : vector<16x16x32xf32> to vector<1x16x16x32xf32>
    tpu.vector_store %arg6[%c0_30, %c0_31, %c0_32, %c0_33], %83 {strides = array<i32>} : memref<1x16x16x32xf32, #tpu.memory_space<vmem>>, vector<1x16x16x32xf32>,
    return
  }
  func.func @transform_0(%arg0: i32) -> (i32, i32, i32, i32) {
    %c0_i32 = arith.constant 0 : i32
    %c0_i32_0 = arith.constant 0 : i32
    %c0_i32_1 = arith.constant 0 : i32
    %c0_i32_2 = arith.constant 0 : i32
    return %arg0, %c0_i32, %c0_i32_0, %c0_i32_1 : i32, i32, i32, i32
  }
  func.func @transform_1(%arg0: i32) -> (i32, i32, i32) {
    %c0_i32 = arith.constant 0 : i32
    %c0_i32_0 = arith.constant 0 : i32
    %c0_i32_1 = arith.constant 0 : i32
    %c0_i32_2 = arith.constant 0 : i32
    return %c0_i32, %c0_i32_0, %c0_i32_1 : i32, i32, i32
  }
  func.func @transform_2(%arg0: i32) -> (i32, i32) {
    %c0_i32 = arith.constant 0 : i32
    %c0_i32_0 = arith.constant 0 : i32
    %c0_i32_1 = arith.constant 0 : i32
    return %c0_i32, %c0_i32_0 : i32, i32
  }
  func.func @transform_3(%arg0: i32) -> (i32, i32) {
    %c0_i32 = arith.constant 0 : i32
    %c0_i32_0 = arith.constant 0 : i32
    %c0_i32_1 = arith.constant 0 : i32
    return %c0_i32, %c0_i32_0 : i32, i32
  }
  func.func @transform_4(%arg0: i32) -> (i32, i32, i32) {
    %c0_i32 = arith.constant 0 : i32
    %c0_i32_0 = arith.constant 0 : i32
    %c0_i32_1 = arith.constant 0 : i32
    %c0_i32_2 = arith.constant 0 : i32
    return %c0_i32, %c0_i32_0, %c0_i32_1 : i32, i32, i32
  }
  func.func @transform_5(%arg0: i32) -> (i32, i32, i32, i32) {
    %c0_i32 = arith.constant 0 : i32
    %c0_i32_0 = arith.constant 0 : i32
    %c0_i32_1 = arith.constant 0 : i32
    %c0_i32_2 = arith.constant 0 : i32
    return %arg0, %c0_i32, %c0_i32_0, %c0_i32_1 : i32, i32, i32, i32
  }
}

module attributes {stable_mosaic.version = 11 : i64} {
  func.func @_conv1_kernel(%arg0: i32, %arg1: memref<1x64x256xf32, #tpu.memory_space<vmem>>, %arg2: memref<64x1xf32, #tpu.memory_space<vmem>>, %arg3: memref<64x1xf32, #tpu.memory_space<vmem>>, %arg4: memref<48x64xf32, #tpu.memory_space<vmem>>, %arg5: memref<48x1xf32, #tpu.memory_space<vmem>>, %arg6: memref<48x1xf32, #tpu.memory_space<vmem>>, %arg7: memref<1x48x256xf32, #tpu.memory_space<vmem>>) attributes {dimension_semantics = [#tpu.dimension_semantics<parallel>], iteration_bounds = array<i64: 2>, scalar_prefetch = 0 : i64, scratch_operands = 0 : i64, tpu.core_type = #tpu.core_type<tc>, window_params = [{transform_indices = @transform_0, window_bounds = array<i64: 1, 64, 256>}, {pipeline_mode = #tpu.pipeline_mode<synchronous>, transform_indices = @transform_1, window_bounds = array<i64: 64, 1>}, {pipeline_mode = #tpu.pipeline_mode<synchronous>, transform_indices = @transform_2, window_bounds = array<i64: 64, 1>}, {pipeline_mode = #tpu.pipeline_mode<synchronous>, transform_indices = @transform_3, window_bounds = array<i64: 48, 64>}, {pipeline_mode = #tpu.pipeline_mode<synchronous>, transform_indices = @transform_4, window_bounds = array<i64: 48, 1>}, {pipeline_mode = #tpu.pipeline_mode<synchronous>, transform_indices = @transform_5, window_bounds = array<i64: 48, 1>}, {transform_indices = @transform_6, window_bounds = array<i64: 1, 48, 256>}]} {
    %c0 = arith.constant 0 : index
    %c0_0 = arith.constant 0 : index
    %c0_1 = arith.constant 0 : index
    %0 = vector.load %arg1[%c0, %c0_0, %c0_1] : memref<1x64x256xf32, #tpu.memory_space<vmem>>, vector<1x64x256xf32>
    %1 = vector.shape_cast %0 : vector<1x64x256xf32> to vector<64x256xf32>
    %c0_2 = arith.constant 0 : index
    %c0_3 = arith.constant 0 : index
    %2 = vector.load %arg2[%c0_2, %c0_3] : memref<64x1xf32, #tpu.memory_space<vmem>>, vector<64x1xf32>
    %3 = vector.broadcast %2 : vector<64x1xf32> to vector<64x256xf32>
    %4 = arith.mulf %1, %3 : vector<64x256xf32>
    %c0_4 = arith.constant 0 : index
    %c0_5 = arith.constant 0 : index
    %5 = vector.load %arg3[%c0_4, %c0_5] : memref<64x1xf32, #tpu.memory_space<vmem>>, vector<64x1xf32>
    %6 = vector.broadcast %5 : vector<64x1xf32> to vector<64x256xf32>
    %7 = arith.addf %4, %6 : vector<64x256xf32>
    %cst = arith.constant 0.000000e+00 : f32
    %8 = vector.broadcast %cst : f32 to vector<64x256xf32>
    %9 = arith.maximumf %7, %8 : vector<64x256xf32>
    %c0_6 = arith.constant 0 : index
    %c0_7 = arith.constant 0 : index
    %10 = vector.load %arg4[%c0_6, %c0_7] : memref<48x64xf32, #tpu.memory_space<vmem>>, vector<48x64xf32>
    %cst_8 = arith.constant dense<0.000000e+00> : vector<48x256xf32>
    %11 = tpu.matmul %10, %9, %cst_8 {dimension_numbers = #tpu.dot_dimension_numbers<[1], [0], [0], [1], [0, 0, 1, 1], [], []>} : vector<48x64xf32>, vector<64x256xf32>, vector<48x256xf32> -> vector<48x256xf32>
    %c0_9 = arith.constant 0 : index
    %c0_10 = arith.constant 0 : index
    %12 = vector.load %arg5[%c0_9, %c0_10] : memref<48x1xf32, #tpu.memory_space<vmem>>, vector<48x1xf32>
    %13 = vector.broadcast %12 : vector<48x1xf32> to vector<48x256xf32>
    %14 = arith.mulf %11, %13 : vector<48x256xf32>
    %c0_11 = arith.constant 0 : index
    %c0_12 = arith.constant 0 : index
    %15 = vector.load %arg6[%c0_11, %c0_12] : memref<48x1xf32, #tpu.memory_space<vmem>>, vector<48x1xf32>
    %16 = vector.broadcast %15 : vector<48x1xf32> to vector<48x256xf32>
    %17 = arith.addf %14, %16 : vector<48x256xf32>
    %cst_13 = arith.constant 0.000000e+00 : f32
    %18 = vector.broadcast %cst_13 : f32 to vector<48x256xf32>
    %19 = arith.maximumf %17, %18 : vector<48x256xf32>
    %c0_14 = arith.constant 0 : index
    %c0_15 = arith.constant 0 : index
    %c0_16 = arith.constant 0 : index
    %20 = vector.load %arg7[%c0_14, %c0_15, %c0_16] : memref<1x48x256xf32, #tpu.memory_space<vmem>>, vector<1x48x256xf32>
    %21 = vector.shape_cast %20 : vector<1x48x256xf32> to vector<48x256xf32>
    %22 = vector.shape_cast %19 : vector<48x256xf32> to vector<1x48x256xf32>
    tpu.vector_store %arg7[%c0_14, %c0_15, %c0_16], %22 {strides = array<i32>} : memref<1x48x256xf32, #tpu.memory_space<vmem>>, vector<1x48x256xf32>,
    return
  }
  func.func @transform_0(%arg0: i32) -> (i32, i32, i32) {
    %c0_i32 = arith.constant 0 : i32
    %c0_i32_0 = arith.constant 0 : i32
    %c0_i32_1 = arith.constant 0 : i32
    return %arg0, %c0_i32, %c0_i32_0 : i32, i32, i32
  }
  func.func @transform_1(%arg0: i32) -> (i32, i32) {
    %c0_i32 = arith.constant 0 : i32
    %c0_i32_0 = arith.constant 0 : i32
    %c0_i32_1 = arith.constant 0 : i32
    return %c0_i32, %c0_i32_0 : i32, i32
  }
  func.func @transform_2(%arg0: i32) -> (i32, i32) {
    %c0_i32 = arith.constant 0 : i32
    %c0_i32_0 = arith.constant 0 : i32
    %c0_i32_1 = arith.constant 0 : i32
    return %c0_i32, %c0_i32_0 : i32, i32
  }
  func.func @transform_3(%arg0: i32) -> (i32, i32) {
    %c0_i32 = arith.constant 0 : i32
    %c0_i32_0 = arith.constant 0 : i32
    %c0_i32_1 = arith.constant 0 : i32
    return %c0_i32, %c0_i32_0 : i32, i32
  }
  func.func @transform_4(%arg0: i32) -> (i32, i32) {
    %c0_i32 = arith.constant 0 : i32
    %c0_i32_0 = arith.constant 0 : i32
    %c0_i32_1 = arith.constant 0 : i32
    return %c0_i32, %c0_i32_0 : i32, i32
  }
  func.func @transform_5(%arg0: i32) -> (i32, i32) {
    %c0_i32 = arith.constant 0 : i32
    %c0_i32_0 = arith.constant 0 : i32
    %c0_i32_1 = arith.constant 0 : i32
    return %c0_i32, %c0_i32_0 : i32, i32
  }
  func.func @transform_6(%arg0: i32) -> (i32, i32, i32) {
    %c0_i32 = arith.constant 0 : i32
    %c0_i32_0 = arith.constant 0 : i32
    %c0_i32_1 = arith.constant 0 : i32
    return %arg0, %c0_i32, %c0_i32_0 : i32, i32, i32
  }
}

module attributes {stable_mosaic.version = 11 : i64} {
  func.func @_conv2_se_kernel(%arg0: i32, %arg1: memref<1x432x64xf32, #tpu.memory_space<vmem>>, %arg2: memref<32x432xf32, #tpu.memory_space<vmem>>, %arg3: memref<1x32x64xf32, #tpu.memory_space<vmem>>, %arg4: memref<8x32xf32, #tpu.memory_space<vmem>>, %arg5: memref<8x1xf32, #tpu.memory_space<vmem>>, %arg6: memref<32x8xf32, #tpu.memory_space<vmem>>, %arg7: memref<32x1xf32, #tpu.memory_space<vmem>>, %arg8: memref<1x32x64xf32, #tpu.memory_space<vmem>>) attributes {dimension_semantics = [#tpu.dimension_semantics<parallel>], iteration_bounds = array<i64: 2>, scalar_prefetch = 0 : i64, scratch_operands = 0 : i64, tpu.core_type = #tpu.core_type<tc>, window_params = [{transform_indices = @transform_0, window_bounds = array<i64: 1, 432, 64>}, {pipeline_mode = #tpu.pipeline_mode<synchronous>, transform_indices = @transform_1, window_bounds = array<i64: 32, 432>}, {transform_indices = @transform_2, window_bounds = array<i64: 1, 32, 64>}, {pipeline_mode = #tpu.pipeline_mode<synchronous>, transform_indices = @transform_3, window_bounds = array<i64: 8, 32>}, {pipeline_mode = #tpu.pipeline_mode<synchronous>, transform_indices = @transform_4, window_bounds = array<i64: 8, 1>}, {pipeline_mode = #tpu.pipeline_mode<synchronous>, transform_indices = @transform_5, window_bounds = array<i64: 32, 8>}, {pipeline_mode = #tpu.pipeline_mode<synchronous>, transform_indices = @transform_6, window_bounds = array<i64: 32, 1>}, {transform_indices = @transform_7, window_bounds = array<i64: 1, 32, 64>}]} {
    %c0 = arith.constant 0 : index
    %c0_0 = arith.constant 0 : index
    %0 = vector.load %arg2[%c0, %c0_0] : memref<32x432xf32, #tpu.memory_space<vmem>>, vector<32x432xf32>
    %c0_1 = arith.constant 0 : index
    %c0_2 = arith.constant 0 : index
    %c0_3 = arith.constant 0 : index
    %1 = vector.load %arg1[%c0_1, %c0_2, %c0_3] : memref<1x432x64xf32, #tpu.memory_space<vmem>>, vector<1x432x64xf32>
    %2 = vector.shape_cast %1 : vector<1x432x64xf32> to vector<432x64xf32>
    %cst = arith.constant dense<0.000000e+00> : vector<32x64xf32>
    %3 = tpu.matmul %0, %2, %cst {dimension_numbers = #tpu.dot_dimension_numbers<[1], [0], [0], [1], [0, 0, 1, 1], [], []>} : vector<32x432xf32>, vector<432x64xf32>, vector<32x64xf32> -> vector<32x64xf32>
    %c0_4 = arith.constant 0 : index
    %c0_5 = arith.constant 0 : index
    %c0_6 = arith.constant 0 : index
    %4 = vector.load %arg3[%c0_4, %c0_5, %c0_6] : memref<1x32x64xf32, #tpu.memory_space<vmem>>, vector<1x32x64xf32>
    %5 = vector.shape_cast %4 : vector<1x32x64xf32> to vector<32x64xf32>
    %6 = arith.addf %3, %5 : vector<32x64xf32>
    %cst_7 = arith.constant dense<0.000000e+00> : vector<32xf32>
    %7 = vector.multi_reduction <add>, %6, %cst_7 [1] : vector<32x64xf32> to vector<32xf32>
    %8 = vector.shape_cast %7 : vector<32xf32> to vector<32x1xf32>
    %cst_8 = arith.constant 6.400000e+01 : f32
    %9 = vector.broadcast %cst_8 : f32 to vector<32x1xf32>
    %10 = arith.divf %8, %9 : vector<32x1xf32>
    %c0_9 = arith.constant 0 : index
    %c0_10 = arith.constant 0 : index
    %11 = vector.load %arg4[%c0_9, %c0_10] : memref<8x32xf32, #tpu.memory_space<vmem>>, vector<8x32xf32>
    %cst_11 = arith.constant dense<0.000000e+00> : vector<8x1xf32>
    %12 = tpu.matmul %11, %10, %cst_11 {dimension_numbers = #tpu.dot_dimension_numbers<[1], [0], [0], [1], [0, 0, 1, 1], [], []>} : vector<8x32xf32>, vector<32x1xf32>, vector<8x1xf32> -> vector<8x1xf32>
    %c0_12 = arith.constant 0 : index
    %c0_13 = arith.constant 0 : index
    %13 = vector.load %arg5[%c0_12, %c0_13] : memref<8x1xf32, #tpu.memory_space<vmem>>, vector<8x1xf32>
    %14 = arith.addf %12, %13 : vector<8x1xf32>
    %cst_14 = arith.constant 0.000000e+00 : f32
    %15 = vector.broadcast %cst_14 : f32 to vector<8x1xf32>
    %16 = arith.maximumf %14, %15 : vector<8x1xf32>
    %c0_15 = arith.constant 0 : index
    %c0_16 = arith.constant 0 : index
    %17 = vector.load %arg6[%c0_15, %c0_16] : memref<32x8xf32, #tpu.memory_space<vmem>>, vector<32x8xf32>
    %cst_17 = arith.constant dense<0.000000e+00> : vector<32x1xf32>
    %18 = tpu.matmul %17, %16, %cst_17 {dimension_numbers = #tpu.dot_dimension_numbers<[1], [0], [0], [1], [0, 0, 1, 1], [], []>} : vector<32x8xf32>, vector<8x1xf32>, vector<32x1xf32> -> vector<32x1xf32>
    %c0_18 = arith.constant 0 : index
    %c0_19 = arith.constant 0 : index
    %19 = vector.load %arg7[%c0_18, %c0_19] : memref<32x1xf32, #tpu.memory_space<vmem>>, vector<32x1xf32>
    %20 = arith.addf %18, %19 : vector<32x1xf32>
    %cst_20 = arith.constant 0.000000e+00 : f32
    %21 = vector.broadcast %cst_20 : f32 to vector<32x1xf32>
    %22 = arith.subf %21, %20 : vector<32x1xf32>
    %23 = math.exp %22 : vector<32x1xf32>
    %cst_21 = arith.constant 1.000000e+00 : f32
    %24 = vector.broadcast %cst_21 : f32 to vector<32x1xf32>
    %25 = arith.addf %24, %23 : vector<32x1xf32>
    %cst_22 = arith.constant 1.000000e+00 : f32
    %26 = vector.broadcast %cst_22 : f32 to vector<32x1xf32>
    %27 = arith.divf %26, %25 : vector<32x1xf32>
    %28 = vector.broadcast %27 : vector<32x1xf32> to vector<32x64xf32>
    %29 = arith.mulf %6, %28 : vector<32x64xf32>
    %30 = arith.addf %6, %29 : vector<32x64xf32>
    %c0_23 = arith.constant 0 : index
    %c0_24 = arith.constant 0 : index
    %c0_25 = arith.constant 0 : index
    %31 = vector.load %arg8[%c0_23, %c0_24, %c0_25] : memref<1x32x64xf32, #tpu.memory_space<vmem>>, vector<1x32x64xf32>
    %32 = vector.shape_cast %31 : vector<1x32x64xf32> to vector<32x64xf32>
    %33 = vector.shape_cast %30 : vector<32x64xf32> to vector<1x32x64xf32>
    tpu.vector_store %arg8[%c0_23, %c0_24, %c0_25], %33 {strides = array<i32>} : memref<1x32x64xf32, #tpu.memory_space<vmem>>, vector<1x32x64xf32>,
    return
  }
  func.func @transform_0(%arg0: i32) -> (i32, i32, i32) {
    %c0_i32 = arith.constant 0 : i32
    %c0_i32_0 = arith.constant 0 : i32
    %c0_i32_1 = arith.constant 0 : i32
    return %arg0, %c0_i32, %c0_i32_0 : i32, i32, i32
  }
  func.func @transform_1(%arg0: i32) -> (i32, i32) {
    %c0_i32 = arith.constant 0 : i32
    %c0_i32_0 = arith.constant 0 : i32
    %c0_i32_1 = arith.constant 0 : i32
    return %c0_i32, %c0_i32_0 : i32, i32
  }
  func.func @transform_2(%arg0: i32) -> (i32, i32, i32) {
    %c0_i32 = arith.constant 0 : i32
    %c0_i32_0 = arith.constant 0 : i32
    %c0_i32_1 = arith.constant 0 : i32
    return %arg0, %c0_i32, %c0_i32_0 : i32, i32, i32
  }
  func.func @transform_3(%arg0: i32) -> (i32, i32) {
    %c0_i32 = arith.constant 0 : i32
    %c0_i32_0 = arith.constant 0 : i32
    %c0_i32_1 = arith.constant 0 : i32
    return %c0_i32, %c0_i32_0 : i32, i32
  }
  func.func @transform_4(%arg0: i32) -> (i32, i32) {
    %c0_i32 = arith.constant 0 : i32
    %c0_i32_0 = arith.constant 0 : i32
    %c0_i32_1 = arith.constant 0 : i32
    return %c0_i32, %c0_i32_0 : i32, i32
  }
  func.func @transform_5(%arg0: i32) -> (i32, i32) {
    %c0_i32 = arith.constant 0 : i32
    %c0_i32_0 = arith.constant 0 : i32
    %c0_i32_1 = arith.constant 0 : i32
    return %c0_i32, %c0_i32_0 : i32, i32
  }
  func.func @transform_6(%arg0: i32) -> (i32, i32) {
    %c0_i32 = arith.constant 0 : i32
    %c0_i32_0 = arith.constant 0 : i32
    %c0_i32_1 = arith.constant 0 : i32
    return %c0_i32, %c0_i32_0 : i32, i32
  }
  func.func @transform_7(%arg0: i32) -> (i32, i32, i32) {
    %c0_i32 = arith.constant 0 : i32
    %c0_i32_0 = arith.constant 0 : i32
    %c0_i32_1 = arith.constant 0 : i32
    return %arg0, %c0_i32, %c0_i32_0 : i32, i32, i32
  }
}

</mosaic_0001>

<bundles_post_ra>
// kernel: transition_forward.8
= control target key start
LH: loop header
LB: loop body
LE: loop exit
PB: predicated region body
PF: predicated region fallthrough
CT: control target
= control target key end

     0   :  { %s710_s9 = smov 0   ;;  %s973_s0 = inlined_call_operand.vmem [shape: f32[8,9,9,32], index: 0, kind: input, shape index: {}]   ;;  %s974_s1 = inlined_call_operand.vmem [shape: f32[9,1,32], index: 1, kind: input, shape index: {}]   ;;  %s975_s2 = inlined_call_operand.vmem [shape: f32[2,8,8,32], index: 2, kind: output, shape index: {}]  }
   0x1 LB: > { %s716_s10 = sadd.s32 4294967295, %s693_s9   ;;  %p620_p0 = scmp.ge.s32.totalorder %s693_s9, 1  ;;  %s693_s9 = sphi %s710_s9, %s12_s9  }
   0x2   : > { %p114_p1 = scmp.lt.s32.totalorder %s693_s9, 3 }
   0x4   : > { %p115_p2 = pnand %p620_p0, %p114_p1 }
   0x5   : > { %s621_s11 = sshll.u32 (!%p115_p2), %s716_s10, 2  ;;  %p144_p4 = scmp.lt.s32.totalorder (!%p115_p2), %s716_s10, 1 }
   0x6   : > { %118 = sbr.rel (%p115_p2) target bundleno = 82 (0x52), region = 28  ;;  %p138_p3 = scmp.lt.s32.totalorder (!%p115_p2), %s621_s11, 7 }
   0xb   : > { %s977_s11 = smov (!%p138_p3, %s621_s11), 7  ;;  %v724_v0 = vld [vmem:[%s974_s1] ss:$0 sm:$0xff]  ;;  %v729_v1 = vld [vmem:[%s974_s1 + $0x1] ss:$0 sm:$0xff]  ;;  %vm273_vm0 = vcmask 1046528  }
   0xc   : > { %v734_v2 = vld [vmem:[%s974_s1 + $0x2] ss:$0 sm:$0xff]  ;;  %s669_s18 = smul.u32 144, %s977_s11  ;;  %v739_v3 = vld [vmem:[%s974_s1 + $0x3] ss:$0 sm:$0xff]  ;;  %vm552_vm1 = vcmask 261120  }
   0xd   : > { %v744_v4 = vld [vmem:[%s974_s1 + $0x4] ss:$0 sm:$0xff]  ;;  %v754_v5 = vld [vmem:[%s974_s1 + $0x5] ss:$0 sm:$0xff]  ;;  %v759_v6 = vld [vmem:[%s974_s1 + $0x6] ss:$0 sm:$0xff] }
   0xe   : > { %s749_s25 = scalar_lea.vmem %s973_s0, %s669_s18  ;;  %v767_v10 = vld [vmem:[%s974_s1 + $0x7] ss:$0 sm:$0xff]  ;;  %v772_v11 = vld [vmem:[%s974_s1 + $0x8] ss:$0 sm:$0xff]  ;;  %s979_s10 = smov (!%p144_p4, %s716_s10), 1 }
   0xf   : > { %v149_v7 = vld [vmem:[%s749_s25] sm:$0xff]  ;;  %v150_v8 = vld [vmem:[%s749_s25 + $0x8] sm:$0x1]  ;;  %v151_v9 = vld [vmem:[%s749_s25 + $0x10] sm:$0xff]  ;;  %s668_s6 = sshll.u32 %s979_s10, 6 }
  0x10   : > { %v152_v12 = vld [vmem:[%s749_s25 + $0x18] sm:$0x1]  ;;  %v625_v13 = vld [vmem:[%s749_s25 + $0x90] sm:$0xff]  ;;  %v626_v14 = vld [vmem:[%s749_s25 + $0xa0] sm:$0xff]  ;;  %v207_v15 = vmul.f32 %v724_v0, %v149_v7  ;;  %v208_v16 = vmul.f32 %v724_v0, %v151_v9  ;;  %v241_v17 = vmul.f32 %v734_v2, %v149_v7  ;;  %v242_v18 = vmul.f32 %v734_v2, %v150_v8  ;;  %s839_s10 = scalar_lea.vmem %s975_s2, %s668_s6 }
  0x11   : > { %v634_v19 = vld [vmem:[%s749_s25 + $0x120] sm:$0xff]  ;;  %v635_v20 = vld [vmem:[%s749_s25 + $0x128] sm:$0x1]  ;;  %v650_v21 = vld [vmem:[%s749_s25 + $0x1b0] sm:$0xff]  ;;  %v220_v22 = vmul.f32 %v729_v1, %v625_v13  ;;  %v221_v23 = vmul.f32 %v729_v1, %v626_v14  ;;  %v243_v24 = vmul.f32 %v734_v2, %v151_v9  ;;  %v244_v25 = vmul.f32 %v734_v2, %v152_v12 }
  0x12   : > { %v274_v26 = vrot.slane %v241_v17, 1  ;;  %v275_v27 = vrot.slane %v242_v18, 1  ;;  %v319_v28 = vmul.f32 %v739_v3, %v634_v19  ;;  %v340_v29 = vmul.f32 %v744_v4, %v650_v21  ;;  %v153_v38 = vld [vmem:[%s749_s25 + $0x20] sm:$0xff]  ;;  %v627_v39 = vld [vmem:[%s749_s25 + $0xb0] sm:$0xff]  ;;  %v154_v44 = vld [vmem:[%s749_s25 + $0x28] sm:$0x1] }
  0x13   : > { %v228_v30 = vadd.f32 %v220_v22, %v207_v15  ;;  %v229_v31 = vadd.f32 %v221_v23, %v208_v16  ;;  %v277_v32 = vrot.slane %v243_v24, 1  ;;  %v278_v33 = vrot.slane %v244_v25, 1  ;;  %v636_v49 = vld [vmem:[%s749_s25 + $0x130] sm:$0xff]  ;;  %v651_v50 = vld [vmem:[%s749_s25 + $0x1c0] sm:$0xff]  ;;  %v637_v57 = vld [vmem:[%s749_s25 + $0x138] sm:$0x1] }
  0x14   : > { %v276_v34 = vsel %vm273_vm0, %v274_v26, %v275_v27  ;;  %v361_v35 = vmul.f32 %v754_v5, %v634_v19  ;;  %v362_v36 = vmul.f32 %v754_v5, %v635_v20  ;;  %v438_v37 = vmul.f32 %v759_v6, %v151_v9  ;;  %v155_v17 = vld [vmem:[%s749_s25 + $0x30] sm:$0xff]  ;;  %v628_v18 = vld [vmem:[%s749_s25 + $0xc0] sm:$0xff]  ;;  %v156_v23 = vld [vmem:[%s749_s25 + $0x38] sm:$0x1] }
  0x15   : > { %v279_v40 = vsel %vm273_vm0, %v277_v32, %v278_v33  ;;  %v306_v41 = vadd.f32 %v276_v34, %v228_v30  ;;  %v459_v42 = vmul.f32 %v767_v10, %v626_v14  ;;  %v480_v43 = vmul.f32 %v772_v11, %v151_v9 }
  0x16   : > { %v307_v45 = vadd.f32 %v279_v40, %v229_v31  ;;  %v393_v46 = vrot.slane %v361_v35, 1  ;;  %v394_v47 = vrot.slane %v362_v36, 1  ;;  %v481_v48 = vmul.f32 %v772_v11, %v152_v12  ;;  %v652_v31 = vld [vmem:[%s749_s25 + $0x1d0] sm:$0xff]  ;;  %v639_v40 = vld [vmem:[%s749_s25 + $0x148] sm:$0x1] }
  0x17   : > { %v327_v51 = vadd.f32 %v319_v28, %v306_v41  ;;  %v512_v52 = vrot.slane %v480_v43, 1  ;;  %v209_v53 = vmul.f32 %v724_v0, %v153_v38  ;;  %v222_v54 = vmul.f32 %v729_v1, %v627_v39  ;;  %v638_v28 = vld [vmem:[%s749_s25 + $0x140] sm:$0xff] }
  0x18   : > { %v395_v55 = vsel %vm273_vm0, %v393_v46, %v394_v47  ;;  %v513_v56 = vrot.slane %v481_v48, 1  ;;  %v245_v58 = vmul.f32 %v734_v2, %v153_v38  ;;  %v246_v59 = vmul.f32 %v734_v2, %v154_v44 }
  0x19   : > { %v348_v60 = vadd.f32 %v340_v29, %v327_v51  ;;  %v230_v61 = vadd.f32 %v222_v54, %v209_v53  ;;  %v320_v62 = vmul.f32 %v739_v3, %v636_v49  ;;  %v341_v63 = vmul.f32 %v744_v4, %v651_v50  ;;  %v157_v51 = vld [vmem:[%s749_s25 + $0x40] sm:$0xff] }
  0x1a   : > { %v514_v7 = vsel %vm273_vm0, %v512_v52, %v513_v56  ;;  %v280_v8 = vrot.slane %v245_v58, 1  ;;  %v281_v9 = vrot.slane %v246_v59, 1  ;;  %v363_v12 = vmul.f32 %v754_v5, %v636_v49  ;;  %v158_v56 = vld [vmem:[%s749_s25 + $0x48] sm:$0x1] }
  0x1b   : > { %v425_v13 = vadd.f32 %v395_v55, %v348_v60  ;;  %v328_v14 = vadd.f32 %v320_v62, %v307_v45  ;;  %v364_v15 = vmul.f32 %v754_v5, %v637_v57  ;;  %v439_v16 = vmul.f32 %v759_v6, %v153_v38  ;;  %v629_v57 = vld [vmem:[%s749_s25 + $0xd0] sm:$0xff] }
  0x1c   : > { %v282_v19 = vsel %vm273_vm0, %v280_v8, %v281_v9  ;;  %v396_v20 = vrot.slane %v363_v12, 1  ;;  %v460_v21 = vmul.f32 %v767_v10, %v627_v39  ;;  %v482_v22 = vmul.f32 %v772_v11, %v153_v38  ;;  %v640_v62 = vld [vmem:[%s749_s25 + $0x150] sm:$0xff] }
  0x1d   : > { %v446_v24 = vadd.f32 %v438_v37, %v425_v13  ;;  %v308_v25 = vadd.f32 %v282_v19, %v230_v61  ;;  %v349_v26 = vadd.f32 %v341_v63, %v328_v14  ;;  %v397_v27 = vrot.slane %v364_v15, 1  ;;  %v653_v13 = vld [vmem:[%s749_s25 + $0x1e0] sm:$0xff] }
  0x1e   : > { %v483_v29 = vmul.f32 %v772_v11, %v154_v44  ;;  %v515_v30 = vrot.slane %v482_v22, 1  ;;  %v210_v32 = vmul.f32 %v724_v0, %v155_v17  ;;  %v223_v33 = vmul.f32 %v729_v1, %v628_v18 }
  0x1f   : > { %v467_v34 = vadd.f32 %v459_v42, %v446_v24  ;;  %v398_v35 = vsel %vm273_vm0, %v396_v20, %v397_v27  ;;  %v247_v36 = vmul.f32 %v734_v2, %v155_v17  ;;  %v248_v37 = vmul.f32 %v734_v2, %v156_v23 }
  0x20   : > { %v426_v38 = vadd.f32 %v398_v35, %v349_v26  ;;  %v516_v39 = vrot.slane %v483_v29, 1  ;;  %v231_v41 = vadd.f32 %v223_v33, %v210_v32  ;;  %v321_v42 = vmul.f32 %v739_v3, %v638_v28  ;;  %v160_v35 = vld [vmem:[%s749_s25 + $0x58] sm:$0x1] }
  0x21   : > { %v544_v43 = vadd.f32 %v514_v7, %v467_v34  ;;  %v283_v44 = vrot.slane %v247_v36, 1  ;;  %v284_v45 = vrot.slane %v248_v37, 1  ;;  %v342_v46 = vmul.f32 %v744_v4, %v652_v31  ;;  %v159_v34 = vld [vmem:[%s749_s25 + $0x50] sm:$0xff]  ;;  %v630_v36 = vld [vmem:[%s749_s25 + $0xe0] sm:$0xff] }
  0x22   : > { %v447_v47 = vadd.f32 %v439_v16, %v426_v38  ;;  %v517_v48 = vsel %vm273_vm0, %v515_v30, %v516_v39  ;;  %v329_v49 = vadd.f32 %v321_v42, %v308_v25  ;;  %v365_v50 = vmul.f32 %v754_v5, %v638_v28 }
  0x23   : > { %553 = vst.msk [vmem:[%s839_s10] sm:$0xff] %vm552_vm1, %v544_v43  ;;  %v285_v52 = vsel %vm273_vm0, %v283_v44, %v284_v45  ;;  %v366_v53 = vmul.f32 %v754_v5, %v639_v40  ;;  %v440_v54 = vmul.f32 %v759_v6, %v155_v17  ;;  %v461_v55 = vmul.f32 %v767_v10, %v628_v18  ;;  %v642_v45 = vld [vmem:[%s749_s25 + $0x160] sm:$0xff] }
  0x24   : > { %v468_v58 = vadd.f32 %v460_v21, %v447_v47  ;;  %v309_v59 = vadd.f32 %v285_v52, %v231_v41  ;;  %v350_v60 = vadd.f32 %v342_v46, %v329_v49  ;;  %v399_v61 = vrot.slane %v365_v50, 1  ;;  %v641_v21 = vld [vmem:[%s749_s25 + $0x158] sm:$0x1]  ;;  %v654_v46 = vld [vmem:[%s749_s25 + $0x1f0] sm:$0xff] }
  0x25   : > { %v400_v63 = vrot.slane %v366_v53, 1  ;;  %v484_v7 = vmul.f32 %v772_v11, %v155_v17  ;;  %v485_v8 = vmul.f32 %v772_v11, %v156_v23  ;;  %v211_v9 = vmul.f32 %v724_v0, %v157_v51 }
  0x26   : > { %v545_v12 = vadd.f32 %v517_v48, %v468_v58  ;;  %v224_v14 = vmul.f32 %v729_v1, %v629_v57  ;;  %v249_v15 = vmul.f32 %v734_v2, %v157_v51  ;;  %v250_v16 = vmul.f32 %v734_v2, %v158_v56 }
  0x27   : > { %v401_v18 = vsel %vm273_vm0, %v399_v61, %v400_v63  ;;  %v518_v19 = vrot.slane %v484_v7, 1  ;;  %v519_v20 = vrot.slane %v485_v8, 1  ;;  %v322_v17 = vmul.f32 %v739_v3, %v640_v62 }
  0x28   : > { %554 = vst.msk [vmem:[%s839_s10 + $0x8] sm:$0xff] %vm552_vm1, %v545_v12  ;;  %v427_v22 = vadd.f32 %v401_v18, %v350_v60  ;;  %v232_v23 = vadd.f32 %v224_v14, %v211_v9  ;;  %v286_v24 = vrot.slane %v249_v15, 1  ;;  %v287_v25 = vrot.slane %v250_v16, 1  ;;  %v631_v14 = vld [vmem:[%s749_s25 + $0xf0] sm:$0xff] }
  0x29   : > { %v520_v26 = vsel %vm273_vm0, %v518_v19, %v519_v20  ;;  %v330_v27 = vadd.f32 %v322_v17, %v309_v59  ;;  %v343_v28 = vmul.f32 %v744_v4, %v653_v13  ;;  %v367_v29 = vmul.f32 %v754_v5, %v640_v62  ;;  %v161_v13 = vld [vmem:[%s749_s25 + $0x60] sm:$0xff] }
  0x2a   : > { %v448_v30 = vadd.f32 %v440_v54, %v427_v22  ;;  %v288_v31 = vsel %vm273_vm0, %v286_v24, %v287_v25  ;;  %v368_v32 = vmul.f32 %v754_v5, %v641_v21  ;;  %v441_v33 = vmul.f32 %v759_v6, %v157_v51  ;;  %v644_v25 = vld [vmem:[%s749_s25 + $0x170] sm:$0xff] }
  0x2b   : > { %v310_v37 = vadd.f32 %v288_v31, %v232_v23  ;;  %v351_v38 = vadd.f32 %v343_v28, %v330_v27  ;;  %v402_v39 = vrot.slane %v367_v29, 1  ;;  %v462_v40 = vmul.f32 %v767_v10, %v629_v57  ;;  %v162_v23 = vld [vmem:[%s749_s25 + $0x68] sm:$0x1] }
  0x2c   : > { %v469_v41 = vadd.f32 %v461_v55, %v448_v30  ;;  %v403_v42 = vrot.slane %v368_v32, 1  ;;  %v486_v43 = vmul.f32 %v772_v11, %v157_v51  ;;  %v487_v44 = vmul.f32 %v772_v11, %v158_v56  ;;  %v643_v51 = vld [vmem:[%s749_s25 + $0x168] sm:$0x1] }
  0x2d   : > { %v212_v47 = vmul.f32 %v724_v0, %v159_v34  ;;  %v225_v48 = vmul.f32 %v729_v1, %v630_v36  ;;  %v251_v49 = vmul.f32 %v734_v2, %v159_v34  ;;  %v252_v50 = vmul.f32 %v734_v2, %v160_v35 }
  0x2e   : > { %v546_v52 = vadd.f32 %v520_v26, %v469_v41  ;;  %v404_v53 = vsel %vm273_vm0, %v402_v39, %v403_v42  ;;  %v521_v54 = vrot.slane %v486_v43, 1  ;;  %v522_v55 = vrot.slane %v487_v44, 1  ;;  %v655_v26 = vld [vmem:[%s749_s25 + $0x200] sm:$0xff] }
  0x2f   : > { %v428_v56 = vadd.f32 %v404_v53, %v351_v38  ;;  %v233_v57 = vadd.f32 %v225_v48, %v212_v47  ;;  %v289_v58 = vrot.slane %v251_v49, 1  ;;  %v290_v59 = vrot.slane %v252_v50, 1  ;;  %v163_v47 = vld [vmem:[%s749_s25 + $0x70] sm:$0xff]  ;;  %v632_v53 = vld [vmem:[%s749_s25 + $0x100] sm:$0xff] }
  0x30   : > { %555 = vst.msk [vmem:[%s839_s10 + $0x10] sm:$0xff] %vm552_vm1, %v546_v52  ;;  %v523_v60 = vsel %vm273_vm0, %v521_v54, %v522_v55  ;;  %v323_v61 = vmul.f32 %v739_v3, %v642_v45  ;;  %v344_v62 = vmul.f32 %v744_v4, %v654_v46  ;;  %v369_v63 = vmul.f32 %v754_v5, %v642_v45 }
  0x31   : > { %v449_v7 = vadd.f32 %v441_v33, %v428_v56  ;;  %v291_v8 = vsel %vm273_vm0, %v289_v58, %v290_v59  ;;  %v370_v9 = vmul.f32 %v754_v5, %v643_v51  ;;  %v442_v12 = vmul.f32 %v759_v6, %v159_v34  ;;  %v646_v58 = vld [vmem:[%s749_s25 + $0x180] sm:$0xff] }
  0x32   : > { %v311_v15 = vadd.f32 %v291_v8, %v233_v57  ;;  %v331_v16 = vadd.f32 %v323_v61, %v310_v37  ;;  %v405_v18 = vrot.slane %v369_v63, 1  ;;  %v463_v19 = vmul.f32 %v767_v10, %v630_v36  ;;  %v164_v57 = vld [vmem:[%s749_s25 + $0x78] sm:$0x1] }
  0x33   : > { %v470_v20 = vadd.f32 %v462_v40, %v449_v7  ;;  %v406_v21 = vrot.slane %v370_v9, 1  ;;  %v488_v17 = vmul.f32 %v772_v11, %v159_v34  ;;  %v489_v22 = vmul.f32 %v772_v11, %v160_v35  ;;  %v645_v34 = vld [vmem:[%s749_s25 + $0x178] sm:$0x1] }
  0x34   : > { %v352_v24 = vadd.f32 %v344_v62, %v331_v16  ;;  %v213_v27 = vmul.f32 %v724_v0, %v161_v13  ;;  %v226_v28 = vmul.f32 %v729_v1, %v631_v14  ;;  %v253_v29 = vmul.f32 %v734_v2, %v161_v13  ;;  %v656_v62 = vld [vmem:[%s749_s25 + $0x210] sm:$0xff] }
  0x35   : > { %v547_v30 = vadd.f32 %v523_v60, %v470_v20  ;;  %v407_v31 = vsel %vm273_vm0, %v405_v18, %v406_v21  ;;  %v524_v32 = vrot.slane %v488_v17, 1  ;;  %v525_v33 = vrot.slane %v489_v22, 1 }
  0x36   : > { %v429_v36 = vadd.f32 %v407_v31, %v352_v24  ;;  %v234_v35 = vadd.f32 %v226_v28, %v213_v27  ;;  %v254_v37 = vmul.f32 %v734_v2, %v162_v23  ;;  %v292_v38 = vrot.slane %v253_v29, 1  ;;  %v657_v27 = vld [vmem:[%s749_s25 + $0x220] sm:$0xff] }
  0x37   : > { %556 = vst.msk [vmem:[%s839_s10 + $0x18] sm:$0xff] %vm552_vm1, %v547_v30  ;;  %v526_v39 = vsel %vm273_vm0, %v524_v32, %v525_v33  ;;  %v324_v40 = vmul.f32 %v739_v3, %v644_v25  ;;  %v345_v41 = vmul.f32 %v744_v4, %v655_v26  ;;  %v371_v42 = vmul.f32 %v754_v5, %v644_v25  ;;  %v649_v32 = vld [vmem:[%s749_s25 + $0x198] sm:$0x1] }
  0x38   : > { %v450_v43 = vadd.f32 %v442_v12, %v429_v36  ;;  %v293_v44 = vrot.slane %v254_v37, 1  ;;  %v372_v45 = vmul.f32 %v754_v5, %v645_v34  ;;  %v443_v46 = vmul.f32 %v759_v6, %v161_v13 }
  0x39   : > { %v332_v48 = vadd.f32 %v324_v40, %v311_v15  ;;  %v408_v49 = vrot.slane %v371_v42, 1  ;;  %v464_v50 = vmul.f32 %v767_v10, %v631_v14  ;;  %v490_v52 = vmul.f32 %v772_v11, %v161_v13  ;;  %v647_v14 = vld [vmem:[%s749_s25 + $0x188] sm:$0x1] }
  0x3a   : > { %v471_v54 = vadd.f32 %v463_v19, %v450_v43  ;;  %v294_v55 = vsel %vm273_vm0, %v292_v38, %v293_v44  ;;  %v409_v51 = vrot.slane %v372_v45, 1  ;;  %v491_v56 = vmul.f32 %v772_v11, %v162_v23  ;;  %v648_v23 = vld [vmem:[%s749_s25 + $0x190] sm:$0xff]  ;;  %v166_v44 = vld [vmem:[%s749_s25 + $0x88] sm:$0x1] }
  0x3b   : > { %v312_v59 = vadd.f32 %v294_v55, %v234_v35  ;;  %v353_v60 = vadd.f32 %v345_v41, %v332_v48  ;;  %v527_v61 = vrot.slane %v490_v52, 1  ;;  %v214_v63 = vmul.f32 %v724_v0, %v163_v47 }
  0x3c   : > { %v548_v7 = vadd.f32 %v526_v39, %v471_v54  ;;  %v410_v8 = vsel %vm273_vm0, %v408_v49, %v409_v51  ;;  %v528_v9 = vrot.slane %v491_v56, 1  ;;  %v227_v12 = vmul.f32 %v729_v1, %v632_v53  ;;  %v165_v39 = vld [vmem:[%s749_s25 + $0x80] sm:$0xff]  ;;  %v633_v49 = vld [vmem:[%s749_s25 + $0x110] sm:$0xff] }
  0x3d   : > { %v430_v13 = vadd.f32 %v410_v8, %v353_v60  ;;  %v255_v15 = vmul.f32 %v734_v2, %v163_v47  ;;  %v256_v16 = vmul.f32 %v734_v2, %v164_v57  ;;  %v325_v18 = vmul.f32 %v739_v3, %v646_v58 }
  0x3e   : > { %557 = vst.msk [vmem:[%s839_s10 + $0x20] sm:$0xff] %vm552_vm1, %v548_v7  ;;  %v235_v19 = vadd.f32 %v227_v12, %v214_v63  ;;  %v346_v0 = vmul.f32 %v744_v4, %v656_v62  ;;  %v373_v20 = vmul.f32 %v754_v5, %v646_v58  ;;  %v529_v24 = vsel %vm273_vm0, %v527_v61, %v528_v9 }
  0x3f   : > { %v451_v21 = vadd.f32 %v443_v46, %v430_v13  ;;  %v295_v17 = vrot.slane %v255_v15, 1  ;;  %v296_v1 = vrot.slane %v256_v16, 1  ;;  %v333_v22 = vadd.f32 %v325_v18, %v312_v59 }
  0x40   : > { %v374_v2 = vmul.f32 %v754_v5, %v647_v14  ;;  %v411_v25 = vrot.slane %v373_v20, 1  ;;  %v444_v26 = vmul.f32 %v759_v6, %v163_v47  ;;  %v492_v31 = vmul.f32 %v772_v11, %v163_v47 }
  0x41   : > { %v472_v28 = vadd.f32 %v464_v50, %v451_v21  ;;  %v297_v29 = vsel %vm273_vm0, %v295_v17, %v296_v1  ;;  %v354_v30 = vadd.f32 %v346_v0, %v333_v22  ;;  %v493_v36 = vmul.f32 %v772_v11, %v164_v57 }
  0x42   : > { %v313_v33 = vadd.f32 %v297_v29, %v235_v19  ;;  %v412_v34 = vrot.slane %v374_v2, 1  ;;  %v326_v35 = vmul.f32 %v739_v3, %v648_v23  ;;  %v530_v38 = vrot.slane %v492_v31, 1 }
  0x43   : > { %v549_v37 = vadd.f32 %v529_v24, %v472_v28  ;;  %v347_v40 = vmul.f32 %v744_v4, %v657_v27  ;;  %v375_v41 = vmul.f32 %v754_v5, %v648_v23  ;;  %v531_v43 = vrot.slane %v493_v36, 1 }
  0x44   : > { %v413_v42 = vsel %vm273_vm0, %v411_v25, %v412_v34  ;;  %v334_v45 = vadd.f32 %v326_v35, %v313_v33  ;;  %v376_v46 = vmul.f32 %v754_v5, %v649_v32  ;;  %v465_v48 = vmul.f32 %v767_v10, %v632_v53 }
  0x45   : > { %558 = vst.msk [vmem:[%s839_s10 + $0x28] sm:$0xff] %vm552_vm1, %v549_v37  ;;  %v431_v47 = vadd.f32 %v413_v42, %v354_v30  ;;  %v414_v3 = vrot.slane %v375_v41, 1  ;;  %v494_v4 = vmul.f32 %v772_v11, %v165_v39  ;;  %v445_v55 = vmul.f32 %v759_v6, %v165_v39 }
  0x46   : > { %v355_v50 = vadd.f32 %v347_v40, %v334_v45  ;;  %v415_v52 = vrot.slane %v376_v46, 1  ;;  %v495_v51 = vmul.f32 %v772_v11, %v166_v44  ;;  %v532_v5 = vsel %vm273_vm0, %v530_v38, %v531_v43 }
  0x47   : > { %v452_v54 = vadd.f32 %v444_v26, %v431_v47  ;;  %v533_v57 = vrot.slane %v494_v4, 1  ;;  %v466_v59 = vmul.f32 %v767_v10, %v633_v49 }
  0x48   : > { %v416_v56 = vsel %vm273_vm0, %v414_v3, %v415_v52  ;;  %v534_v60 = vrot.slane %v495_v51, 1 }
  0x49   : > { %v473_v58 = vadd.f32 %v465_v48, %v452_v54  ;;  %v432_v53 = vadd.f32 %v416_v56, %v355_v50 }
  0x4a   : > { %v535_v63 = vsel %vm273_vm0, %v533_v57, %v534_v60 }
  0x4b   : > { %v550_v61 = vadd.f32 %v532_v5, %v473_v58  ;;  %v453_v62 = vadd.f32 %v445_v55, %v432_v53 }
  0x4d   : > { %559 = vst.msk [vmem:[%s839_s10 + $0x30] sm:$0xff] %vm552_vm1, %v550_v61  ;;  %v474_v7 = vadd.f32 %v466_v59, %v453_v62 }
  0x4f   : > { %v551_v6 = vadd.f32 %v535_v63, %v474_v7 }
  0x51   : > { %560 = vst.msk [vmem:[%s839_s10 + $0x38] sm:$0xff] %vm552_vm1, %v551_v6 }
  0x52 PF: > { %s12_s9 = sadd.s32 1, %s693_s9  }
  0x53   : > { %p9_p5 = scmp.ge.s32.totalorder %s12_s9, 4  }
  0x55   :  { %11 = sbr.rel (!%p9_p5) target bundleno = 1 (0x1), region = 69 }

// kernel: transition_forward.7
= control target key start
LH: loop header
LB: loop body
LE: loop exit
PB: predicated region body
PF: predicated region fallthrough
CT: control target
= control target key end

     0   :  { %s3765_s24 = smov 0   ;;  %s7038_s0 = inlined_call_operand.vmem [shape: f32[8,17,17,32], index: 0, kind: input, shape index: {}]   ;;  %s7039_s1 = inlined_call_operand.vmem [shape: f32[4,17,17,1], index: 1, kind: input, shape index: {}]   ;;  %s7040_s2 = inlined_call_operand.vmem [shape: f32[1,32], index: 2, kind: input, shape index: {}]   ;;  %s7041_s3 = inlined_call_operand.vmem [shape: f32[1,32], index: 3, kind: input, shape index: {}]   ;;  %s7042_s4 = inlined_call_operand.vmem [shape: f32[9,1,32], index: 4, kind: input, shape index: {}]   ;;  %s7043_s5 = inlined_call_operand.vmem [shape: f32[1,32], index: 5, kind: input, shape index: {}]   ;;  %s7044_s6 = inlined_call_operand.vmem [shape: f32[1,32], index: 6, kind: input, shape index: {}]   ;;  %s7045_s7 = inlined_call_operand.vmem [shape: f32[2,16,16,32], index: 7, kind: output, shape index: {}]  }
   0x1 LB: > { %s3771_s25 = sadd.s32 4294967295, %s3722_s24   ;;  %p3426_p0 = scmp.ge.s32.totalorder %s3722_s24, 1  ;;  %s3722_s24 = sphi %s3765_s24, %s17_s24  }
   0x2   : > { %p239_p1 = scmp.lt.s32.totalorder %s3722_s24, 3 }
   0x4   : > { %p240_p2 = pnand %p3426_p0, %p239_p1 }
   0x6   : > { %243 = sbr.rel (%p240_p2) target bundleno = 589 (0x24d), region = 48 }
   0xb   : > { %v500_v0 = vld [vmem:[%s7039_s1 + $0x20] sm:$0xff]  ;;  %v498_v1 = vld [vmem:[%s7039_s1 + $0x10] sm:$0x1]  ;;  %v3724_v3 = vmov 0   ;;  %v501_v4 = vld [vmem:[%s7039_s1 + $0x28] sm:$0x1] }
   0xc   : > { %v496_v2 = vld [vmem:[%s7039_s1] sm:$0xff]  ;;  %3682 = vset.pattern.permute.xlu2 %v3724_v3  ;;  %3681 = vset.pattern.permute.xlu1 %v3724_v3  ;;  %v499_v5 = vld [vmem:[%s7039_s1 + $0x18] sm:$0xff]  ;;  %v497_v6 = vld [vmem:[%s7039_s1 + $0x8] sm:$0xff]  ;;  %s3427_s21 = sshll.u32 %s3771_s25, 2  ;;  %vm2319_vm0 = vcmask 1046528   ;;  %p279_p4 = scmp.lt.s32.totalorder %s3771_s25, 1 }
   0xd   : > { %3680 = vset.pattern.permute.xlu0 %v3724_v3  ;;  %569 = vperm.xlu2 %3682, %v500_v0   ;;  %v504_v7 = vld [vmem:[%s7039_s1 + $0x40] sm:$0x1]  ;;  %v503_v8 = vld [vmem:[%s7039_s1 + $0x38] sm:$0xff]  ;;  %v502_v9 = vld [vmem:[%s7039_s1 + $0x30] sm:$0xff]  ;;  %p273_p3 = scmp.lt.s32.totalorder %s3427_s21, 7  ;;  %vm3334_vm1 = vcmask 261120  }
   0xe   : > { %559 = vperm.xlu1 %3681, %v498_v1   ;;  %549 = vperm.xlu0 %3680, %v496_v2   ;;  %v507_v10 = vld [vmem:[%s7039_s1 + $0x58] sm:$0x1]  ;;  %v506_v11 = vld [vmem:[%s7039_s1 + $0x50] sm:$0xff]  ;;  %v505_v12 = vld [vmem:[%s7039_s1 + $0x48] sm:$0xff]  ;;  %s7625_s25 = smov (!%p279_p4, %s3771_s25), 1 }
   0xf   : > { %v510_v13 = vld [vmem:[%s7039_s1 + $0x70] sm:$0x1]  ;;  %v509_v14 = vld [vmem:[%s7039_s1 + $0x68] sm:$0xff]  ;;  %v508_v15 = vld [vmem:[%s7039_s1 + $0x60] sm:$0xff]  ;;  %s7623_s21 = smov (!%p273_p3, %s3427_s21), 7  ;;  %s3669_s29 = sshll.u32 %s7625_s25, 8 }
  0x10   : > { %v513_v16 = vld [vmem:[%s7039_s1 + $0x88] sm:$0x1]  ;;  %v512_v17 = vld [vmem:[%s7039_s1 + $0x80] sm:$0xff]  ;;  %v511_v18 = vld [vmem:[%s7039_s1 + $0x78] sm:$0xff]  ;;  %s3670_s30 = smul.u32 408, %s7623_s21  ;;  %s6538_s8 = scalar_lea.vmem %s7045_s7, %s3669_s29 }
  0x11   : > { %v516_v19 = vld [vmem:[%s7039_s1 + $0xa0] sm:$0x1]  ;;  %v515_v20 = vld [vmem:[%s7039_s1 + $0x98] sm:$0xff]  ;;  %v514_v21 = vld [vmem:[%s7039_s1 + $0x90] sm:$0xff] }
  0x12   : > { %v519_v22 = vld [vmem:[%s7039_s1 + $0xb8] sm:$0x1]  ;;  %v518_v23 = vld [vmem:[%s7039_s1 + $0xb0] sm:$0xff]  ;;  %v517_v24 = vld [vmem:[%s7039_s1 + $0xa8] sm:$0xff]  ;;  %s3978_s16 = scalar_lea.vmem %s7038_s0, %s3670_s30 }
  0x13   : > { %v522_v25 = vld [vmem:[%s7039_s1 + $0xd0] sm:$0x1]  ;;  %v521_v26 = vld [vmem:[%s7039_s1 + $0xc8] sm:$0xff]  ;;  %v520_v27 = vld [vmem:[%s7039_s1 + $0xc0] sm:$0xff] }
  0x14   : > { %v525_v28 = vld [vmem:[%s7039_s1 + $0xe8] sm:$0x1]  ;;  %v524_v29 = vld [vmem:[%s7039_s1 + $0xe0] sm:$0xff]  ;;  %v523_v30 = vld [vmem:[%s7039_s1 + $0xd8] sm:$0xff] }
  0x15   : > { %574 = vperm.xlu2 %3682, %v501_v4   ;;  %v528_v31 = vld [vmem:[%s7039_s1 + $0x100] sm:$0x1]  ;;  %v527_v32 = vld [vmem:[%s7039_s1 + $0xf8] sm:$0xff]  ;;  %v526_v33 = vld [vmem:[%s7039_s1 + $0xf0] sm:$0xff] }
  0x16   : > { %564 = vperm.xlu1 %3681, %v499_v5   ;;  %554 = vperm.xlu0 %3680, %v497_v6   ;;  %v531_v34 = vld [vmem:[%s7039_s1 + $0x118] sm:$0x1]  ;;  %v530_v35 = vld [vmem:[%s7039_s1 + $0x110] sm:$0xff]  ;;  %v529_v36 = vld [vmem:[%s7039_s1 + $0x108] sm:$0xff] }
  0x17   : > { %v534_v38 = vld [vmem:[%s7039_s1 + $0x130] sm:$0x1]  ;;  %v533_v39 = vld [vmem:[%s7039_s1 + $0x128] sm:$0xff]  ;;  %v532_v40 = vld [vmem:[%s7039_s1 + $0x120] sm:$0xff] }
  0x18   : > { %v537_v42 = vld [vmem:[%s7039_s1 + $0x148] sm:$0x1]  ;;  %v536_v43 = vld [vmem:[%s7039_s1 + $0x140] sm:$0xff]  ;;  %v535_v44 = vld [vmem:[%s7039_s1 + $0x138] sm:$0xff] }
  0x19   : > { %v540_v46 = vld [vmem:[%s7039_s1 + $0x160] sm:$0x1]  ;;  %v539_v47 = vld [vmem:[%s7039_s1 + $0x158] sm:$0xff]  ;;  %v538_v48 = vld [vmem:[%s7039_s1 + $0x150] sm:$0xff] }
  0x1a   : > { %v543_v52 = vld [vmem:[%s7039_s1 + $0x178] sm:$0x1]  ;;  %v542_v53 = vld [vmem:[%s7039_s1 + $0x170] sm:$0xff]  ;;  %v541_v54 = vld [vmem:[%s7039_s1 + $0x168] sm:$0xff] }
  0x1b   : > { %v546_v58 = vld [vmem:[%s7039_s1 + $0x190] sm:$0x1]  ;;  %v545_v59 = vld [vmem:[%s7039_s1 + $0x188] sm:$0xff]  ;;  %v544_v60 = vld [vmem:[%s7039_s1 + $0x180] sm:$0xff] }
  0x1c   : > { %v3467_v0 = vld [vmem:[%s7039_s1 + $0x1b0] sm:$0xff]  ;;  %v3466_v1 = vld [vmem:[%s7039_s1 + $0x1a0] sm:$0xff]  ;;  %v3465_v2 = vld [vmem:[%s7039_s1 + $0x198] sm:$0xff] }
  0x1d   : > { %589 = vperm.xlu2 %3682, %v504_v7   ;;  %v3470_v6 = vld [vmem:[%s7039_s1 + $0x1d0] sm:$0xff]  ;;  %v3469_v7 = vld [vmem:[%s7039_s1 + $0x1c8] sm:$0xff] }
  0x1e   : > { %584 = vperm.xlu1 %3681, %v503_v8   ;;  %579 = vperm.xlu0 %3680, %v502_v9   ;;  %v3468_v8 = vld [vmem:[%s7039_s1 + $0x1b8] sm:$0xff]  ;;  %v304_v9 = vld [vmem:[%s3978_s16 + $0xa0] sm:$0x1] }
  0x25   : > { %604 = vperm.xlu2 %3682, %v507_v10   ;;  %v3984_v10 = vld [vmem:[%s7040_s2] ss:$0 sm:$0xff] }
  0x26   : > { %599 = vperm.xlu1 %3681, %v506_v11   ;;  %594 = vperm.xlu0 %3680, %v505_v12   ;;  %v359_v12 = vmul.f32 %v3984_v10, %v304_v9 }
  0x2d   : > { %619 = vperm.xlu2 %3682, %v510_v13  }
  0x2e   : > { %614 = vperm.xlu1 %3681, %v509_v14   ;;  %609 = vperm.xlu0 %3680, %v508_v15   ;;  %v3996_v15 = vld [vmem:[%s7041_s3] ss:$0 sm:$0xff] }
  0x35   : > { %634 = vperm.xlu2 %3682, %v513_v16   ;;  %v3473_v16 = vld [vmem:[%s7039_s1 + $0x1f8] sm:$0xff] }
  0x36   : > { %629 = vperm.xlu1 %3681, %v512_v17   ;;  %624 = vperm.xlu0 %3680, %v511_v18   ;;  %v303_v17 = vld [vmem:[%s3978_s16 + $0x98] sm:$0xff]  ;;  %v302_v18 = vld [vmem:[%s3978_s16 + $0x90] sm:$0xff] }
  0x3d   : > { %649 = vperm.xlu2 %3682, %v516_v19   ;;  %v3472_v19 = vld [vmem:[%s7039_s1 + $0x1e8] sm:$0xff] }
  0x3e   : > { %644 = vperm.xlu1 %3681, %v515_v20   ;;  %639 = vperm.xlu0 %3680, %v514_v21   ;;  %v3471_v20 = vld [vmem:[%s7039_s1 + $0x1e0] sm:$0xff]  ;;  %v414_v21 = vadd.f32 %v3996_v15, %v359_v12 }
  0x3f   : > { %v3479_v12 = vld [vmem:[%s7039_s1 + $0x240] sm:$0xff] }
  0x45   : > { %664 = vperm.xlu2 %3682, %v519_v22   ;;  %v358_v22 = vmul.f32 %v3984_v10, %v303_v17  ;;  %v313_v17 = vld [vmem:[%s3978_s16 + $0xe8] sm:$0x1] }
  0x46   : > { %659 = vperm.xlu1 %3681, %v518_v23   ;;  %654 = vperm.xlu0 %3680, %v517_v24   ;;  %v357_v23 = vmul.f32 %v3984_v10, %v302_v18  ;;  %v307_v24 = vld [vmem:[%s3978_s16 + $0xb8] sm:$0x1] }
  0x4d   : > { %679 = vperm.xlu2 %3682, %v522_v25  }
  0x4e   : > { %674 = vperm.xlu1 %3681, %v521_v26   ;;  %669 = vperm.xlu0 %3680, %v520_v27   ;;  %v306_v26 = vld [vmem:[%s3978_s16 + $0xb0] sm:$0xff]  ;;  %v465_v27 = vmax.f32 %v414_v21, 0.0 }
  0x4f   : > { %v3478_v21 = vld [vmem:[%s7039_s1 + $0x230] sm:$0xff] }
  0x55   : > { %694 = vperm.xlu2 %3682, %v525_v28  }
  0x56   : > { %689 = vperm.xlu1 %3681, %v524_v29   ;;  %684 = vperm.xlu0 %3680, %v523_v30   ;;  %v362_v30 = vmul.f32 %v3984_v10, %v307_v24 }
  0x5d   : > { %709 = vperm.xlu2 %3682, %v528_v31   ;;  %v413_v31 = vadd.f32 %v3996_v15, %v358_v22  ;;  %v3477_v22 = vld [vmem:[%s7039_s1 + $0x228] sm:$0xff] }
  0x5e   : > { %704 = vperm.xlu1 %3681, %v527_v32   ;;  %699 = vperm.xlu0 %3680, %v526_v33   ;;  %v412_v32 = vadd.f32 %v3996_v15, %v357_v23  ;;  %v305_v33 = vld [vmem:[%s3978_s16 + $0xa8] sm:$0xff] }
  0x65   : > { %724 = vperm.xlu2 %3682, %v531_v34   ;;  %v3476_v34 = vld [vmem:[%s7039_s1 + $0x218] sm:$0xff] }
  0x66   : > { %719 = vperm.xlu1 %3681, %v530_v35   ;;  %714 = vperm.xlu0 %3680, %v529_v36   ;;  %v361_v35 = vmul.f32 %v3984_v10, %v306_v26  ;;  %v310_v36 = vld [vmem:[%s3978_s16 + $0xd0] sm:$0x1] }
  0x67   : > { %v3883_v37 = vpop.permute.xlu2 %569 }
  0x6d   : > { %739 = vperm.xlu2 %3682, %v534_v38   ;;  %v3475_v38 = vld [vmem:[%s7039_s1 + $0x210] sm:$0xff] }
  0x6e   : > { %734 = vperm.xlu1 %3681, %v533_v39   ;;  %729 = vperm.xlu0 %3680, %v532_v40   ;;  %v3474_v39 = vld [vmem:[%s7039_s1 + $0x200] sm:$0xff] }
  0x6f   : > { %v3894_v41 = vpop.permute.xlu2 %574 }
  0x75   : > { %754 = vperm.xlu2 %3682, %v537_v42   ;;  %v360_v42 = vmul.f32 %v3984_v10, %v305_v33 }
  0x76   : > { %749 = vperm.xlu1 %3681, %v536_v43   ;;  %744 = vperm.xlu0 %3680, %v535_v44   ;;  %v417_v43 = vadd.f32 %v3996_v15, %v362_v30  ;;  %v464_v44 = vmax.f32 %v413_v31, 0.0  ;;  %v288_v31 = vld [vmem:[%s3978_s16 + $0x20] sm:$0xff] }
  0x77   : > { %v3905_v45 = vpop.permute.xlu2 %589 }
  0x7d   : > { %769 = vperm.xlu2 %3682, %v540_v46   ;;  %v463_v46 = vmax.f32 %v412_v32, 0.0 }
  0x7e   : > { %764 = vperm.xlu1 %3681, %v539_v47   ;;  %759 = vperm.xlu0 %3680, %v538_v48   ;;  %v4040_v47 = vld [vmem:[%s7042_s4 + $0x2] ss:$0 sm:$0xff]  ;;  %v365_v48 = vmul.f32 %v3984_v10, %v310_v36  ;;  %v368_v36 = vmul.f32 %v3984_v10, %v313_v17 }
  0x7f   : > { %v3916_v49 = vpop.permute.xlu2 %604 }
  0x80   : > { %v3918_v50 = vpop.permute.xlu1 %559  ;;  %v3920_v51 = vpop.permute.xlu0 %549  ;;  %v420_v9 = vadd.f32 %v3996_v15, %v365_v48  ;;  %v343_v48 = vmul.f32 %v3984_v10, %v288_v31 }
  0x85   : > { %784 = vperm.xlu2 %3682, %v543_v52   ;;  %v416_v52 = vadd.f32 %v3996_v15, %v361_v35 }
  0x86   : > { %779 = vperm.xlu1 %3681, %v542_v53   ;;  %774 = vperm.xlu0 %3680, %v541_v54   ;;  %v4049_v54 = vld [vmem:[%s7042_s4 + $0x8] ss:$0 sm:$0xff] }
  0x87   : > { %v3931_v55 = vpop.permute.xlu2 %619 }
  0x88   : > { %v3933_v56 = vpop.permute.xlu1 %564  ;;  %v3935_v57 = vpop.permute.xlu0 %554 }
  0x8d   : > { %799 = vperm.xlu2 %3682, %v546_v58  }
  0x8e   : > { %794 = vperm.xlu1 %3681, %v545_v59   ;;  %789 = vperm.xlu0 %3680, %v544_v60  }
  0x8f   : > { %v3947_v61 = vpop.permute.xlu2 %634 }
  0x90   : > { %v3949_v62 = vpop.permute.xlu1 %584  ;;  %v3951_v63 = vpop.permute.xlu0 %579 }
  0x95   : > { %1037 = vperm.xlu2 %3682, %v3467_v0   ;;  %v415_v0 = vadd.f32 %v3996_v15, %v360_v42 }
  0x96   : > { %1032 = vperm.xlu1 %3681, %v3466_v1   ;;  %1027 = vperm.xlu0 %3680, %v3465_v2   ;;  %v309_v1 = vld [vmem:[%s3978_s16 + $0xc8] sm:$0xff]  ;;  %v468_v2 = vmax.f32 %v417_v43, 0.0 }
  0x97   : > { %v650_v3 = vpop.permute.xlu2 %649  ;;  %v364_v23 = vmul.f32 %v3984_v10, %v309_v1 }
  0x98   : > { %v3962_v4 = vpop.permute.xlu1 %599  ;;  %v3964_v5 = vpop.permute.xlu0 %594  ;;  %v822_v40 = vmul.f32 %v650_v3, %v465_v27  ;;  %v466_v27 = vmax.f32 %v415_v0, 0.0 }
  0x99   : > { %v419_v43 = vadd.f32 %v3996_v15, %v364_v23 }
  0x9a   : > { %v2243_v58 = vmul.f32 %v4040_v47, %v822_v40 }
  0x9c   : > { %v2353_v24 = vrot.slane %v2243_v58, 1 }
  0x9d   : > { %1052 = vperm.xlu2 %3682, %v3470_v6  }
  0x9e   : > { %1047 = vperm.xlu1 %3681, %v3469_v7   ;;  %1042 = vperm.xlu0 %3680, %v3468_v8   ;;  %v308_v7 = vld [vmem:[%s3978_s16 + $0xc0] sm:$0xff]  ;;  %v3007_v8 = vmul.f32 %v4049_v54, %v822_v40 }
  0x9f   : > { %v3986_v11 = vpop.permute.xlu2 %664  ;;  %v363_v30 = vmul.f32 %v3984_v10, %v308_v7 }
  0xa0   : > { %v3989_v13 = vpop.permute.xlu1 %614  ;;  %v3991_v14 = vpop.permute.xlu0 %609  ;;  %v825_v32 = vmul.f32 %v3986_v11, %v468_v2  ;;  %v3114_v40 = vrot.slane %v3007_v8, 1  ;;  %v311_v8 = vld [vmem:[%s3978_s16 + $0xd8] sm:$0xff] }
  0xa2   : > { %v2246_v1 = vmul.f32 %v4040_v47, %v825_v32 }
  0xa5   : > { %1067 = vperm.xlu2 %3682, %v3473_v16   ;;  %v467_v16 = vmax.f32 %v416_v52, 0.0  ;;  %v471_v52 = vmax.f32 %v420_v9, 0.0  ;;  %v3010_v9 = vmul.f32 %v4049_v54, %v825_v32 }
  0xa6   : > { %1062 = vperm.xlu1 %3681, %v3472_v19   ;;  %1057 = vperm.xlu0 %3680, %v3471_v20  }
  0xa7   : > { %v4013_v25 = vpop.permute.xlu2 %679 }
  0xa8   : > { %v4016_v28 = vpop.permute.xlu1 %629  ;;  %v4018_v29 = vpop.permute.xlu0 %624 }
  0xa9   : > { %7110 = vst [vmem:[#allocation2_spill] sm:$0xff] %v4016_v28 }
  0xaa   : > { %7111 = vst [vmem:[#allocation3_spill] sm:$0xff] %v4018_v29 }
  0xad   : > { %1082 = vperm.xlu2 %3682, %v3476_v34  }
  0xae   : > { %1077 = vperm.xlu1 %3681, %v3475_v38   ;;  %1072 = vperm.xlu0 %3680, %v3474_v39   ;;  %v289_v39 = vld [vmem:[%s3978_s16 + $0x28] sm:$0x1] }
  0xaf   : > { %v4044_v53 = vpop.permute.xlu2 %694  ;;  %v344_v17 = vmul.f32 %v3984_v10, %v289_v39  ;;  %v3119_v39 = vrot.slane %v3010_v9, 1 }
  0xb0   : > { %v645_v59 = vpop.permute.xlu1 %644  ;;  %v640_v60 = vpop.permute.xlu0 %639 }
  0xb1   : > { %v4054_v3 = vmul.f32 %v645_v59, %v464_v44  ;;  %v4056_v6 = vmul.f32 %v640_v60, %v463_v46  ;;  %v312_v44 = vld [vmem:[%s3978_s16 + $0xe0] sm:$0xff]  ;;  %v418_v60 = vadd.f32 %v3996_v15, %v363_v30  ;;  %v828_v30 = vmul.f32 %v4013_v25, %v471_v52 }
  0xb2   : > { %v292_v52 = vld [vmem:[%s3978_s16 + $0x40] sm:$0x1] }
  0xb3   : > { %7112 = vst [vmem:[#allocation4_spill] sm:$0xff] %v4054_v3  ;;  %v2242_v18 = vmul.f32 %v4040_v47, %v4054_v3  ;;  %v3006_v19 = vmul.f32 %v4049_v54, %v4054_v3  ;;  %v2241_v20 = vmul.f32 %v4040_v47, %v4056_v6  ;;  %v3005_v26 = vmul.f32 %v4049_v54, %v4056_v6 }
  0xb4   : > { %7113 = vst [vmem:[#allocation5_spill] sm:$0xff] %v4056_v6  ;;  %v469_v32 = vmax.f32 %v418_v60, 0.0 }
  0xb5   : > { %v2351_v33 = vrot.slane %v2242_v18, 1  ;;  %v3112_v34 = vrot.slane %v3006_v19, 1  ;;  %v2350_v35 = vrot.slane %v2241_v20, 1  ;;  %1097 = vperm.xlu2 %3682, %v3479_v12   ;;  %v3111_v38 = vrot.slane %v3005_v26, 1  ;;  %v3482_v19 = vld [vmem:[%s7039_s1 + $0x260] sm:$0xff]  ;;  %v3480_v26 = vld [vmem:[%s7039_s1 + $0x248] sm:$0xff] }
  0xb6   : > { %1092 = vperm.xlu1 %3681, %v3478_v21   ;;  %1087 = vperm.xlu0 %3680, %v3477_v22   ;;  %v423_v18 = vadd.f32 %v3996_v15, %v368_v36  ;;  %v367_v20 = vmul.f32 %v3984_v10, %v312_v44 }
  0xb7   : > { %v4085_v42 = vpop.permute.xlu2 %709  ;;  %v4090_v11 = vsel %vm2319_vm0, %v2351_v33, %v2353_v24  ;;  %v4093_v46 = vsel %vm2319_vm0, %v2350_v35, %v2351_v33  ;;  %v4098_v0 = vsel %vm2319_vm0, %v3111_v38, %v3112_v34  ;;  %v4107_v12 = vsel %vm2319_vm0, %v3112_v34, %v3114_v40  ;;  %v3481_v24 = vld [vmem:[%s7039_s1 + $0x258] sm:$0xff] }
  0xb8   : > { %7114 = vst [vmem:[#allocation6_spill] sm:$0xff] %v4090_v11  ;;  %v660_v58 = vpop.permute.xlu1 %659  ;;  %v655_v59 = vpop.permute.xlu0 %654  ;;  %v366_v33 = vmul.f32 %v3984_v10, %v311_v8  ;;  %v2358_v34 = vrot.slane %v2246_v1, 1  ;;  %v422_v25 = vadd.f32 %v3996_v15, %v367_v20  ;;  %v4148_v1 = vadd.f32 %v3996_v15, %v344_v17  ;;  %v315_v20 = vld [vmem:[%s3978_s16 + $0xf8] sm:$0xff] }
  0xb9   : > { %7115 = vst [vmem:[#allocation7_spill] sm:$0xff] %v4093_v46  ;;  %v4101_v2 = vmul.f32 %v660_v58, %v467_v16  ;;  %v4103_v7 = vmul.f32 %v655_v59, %v466_v27  ;;  %v316_v16 = vld [vmem:[%s3978_s16 + $0x100] sm:$0x1]  ;;  %v470_v27 = vmax.f32 %v419_v43, 0.0  ;;  %v4136_v43 = vadd.f32 %v3996_v15, %v343_v48 }
  0xba   : > { %7116 = vst [vmem:[#allocation8_spill] sm:$0xff] %v4098_v0  ;;  %v371_v40 = vmul.f32 %v3984_v10, %v316_v16  ;;  %v2249_v8 = vmul.f32 %v4040_v47, %v828_v30  ;;  %v421_v48 = vadd.f32 %v3996_v15, %v366_v33  ;;  %v3485_v33 = vld [vmem:[%s7039_s1 + $0x288] sm:$0xff] }
  0xbb   : > { %7117 = vst [vmem:[#allocation9_spill] sm:$0xff] %v4101_v2  ;;  %v2245_v21 = vmul.f32 %v4040_v47, %v4101_v2  ;;  %v3009_v22 = vmul.f32 %v4049_v54, %v4101_v2  ;;  %v2244_v23 = vmul.f32 %v4040_v47, %v4103_v7  ;;  %v3008_v31 = vmul.f32 %v4049_v54, %v4103_v7 }
  0xbc   : > { %7118 = vst [vmem:[#allocation10_spill] sm:$0xff] %v4103_v7 }
  0xbd   : > { %7119 = vst [vmem:[#allocation11_spill] sm:$0xff] %v4107_v12  ;;  %v2356_v35 = vrot.slane %v2245_v21, 1  ;;  %v3117_v36 = vrot.slane %v3009_v22, 1  ;;  %v2355_v38 = vrot.slane %v2244_v23, 1  ;;  %1112 = vperm.xlu2 %3682, %v3482_v19   ;;  %v3116_v44 = vrot.slane %v3008_v31, 1 }
  0xbe   : > { %1107 = vperm.xlu1 %3681, %v3481_v24   ;;  %1102 = vperm.xlu0 %3680, %v3480_v26   ;;  %v474_v21 = vmax.f32 %v423_v18, 0.0  ;;  %v314_v24 = vld [vmem:[%s3978_s16 + $0xf0] sm:$0xff]  ;;  %v347_v26 = vmul.f32 %v3984_v10, %v292_v52  ;;  %v3013_v31 = vmul.f32 %v4049_v54, %v828_v30  ;;  %v319_v18 = vld [vmem:[%s3978_s16 + $0x118] sm:$0x1] }
  0xbf   : > { %v4139_v58 = vpop.permute.xlu2 %724  ;;  %v4142_v59 = vsel %vm2319_vm0, %v2356_v35, %v2358_v34  ;;  %v4145_v60 = vsel %vm2319_vm0, %v2355_v38, %v2356_v35  ;;  %v4154_v16 = vsel %vm2319_vm0, %v3117_v36, %v3119_v39  ;;  %v4162_v17 = vsel %vm2319_vm0, %v3116_v44, %v3117_v36  ;;  %v3484_v30 = vld [vmem:[%s7039_s1 + $0x278] sm:$0xff]  ;;  %v3483_v38 = vld [vmem:[%s7039_s1 + $0x270] sm:$0xff] }
  0xc0   : > { %7120 = vst [vmem:[#allocation12_spill] sm:$0xff] %v4142_v59  ;;  %v675_v9 = vpop.permute.xlu1 %674  ;;  %v670_v19 = vpop.permute.xlu0 %669  ;;  %v426_v34 = vadd.f32 %v3996_v15, %v371_v40  ;;  %v473_v35 = vmax.f32 %v422_v25, 0.0  ;;  %v370_v39 = vmul.f32 %v3984_v10, %v315_v20  ;;  %v2363_v40 = vrot.slane %v2249_v8, 1 }
  0xc1   : > { %7121 = vst [vmem:[#allocation13_spill] sm:$0xff] %v4154_v16  ;;  %v4156_v22 = vmul.f32 %v675_v9, %v470_v27  ;;  %v4158_v23 = vmul.f32 %v670_v19, %v469_v32  ;;  %v472_v25 = vmax.f32 %v421_v48, 0.0  ;;  %v369_v52 = vmul.f32 %v3984_v10, %v314_v24  ;;  %v295_v48 = vld [vmem:[%s3978_s16 + $0x58] sm:$0x1] }
  0xc2   : > { %7124 = vst [vmem:[#allocation16_spill] sm:$0xff] %v4162_v17  ;;  %v831_v9 = vmul.f32 %v4044_v53, %v474_v21  ;;  %v3124_v0 = vrot.slane %v3013_v31, 1  ;;  %v374_v20 = vmul.f32 %v3984_v10, %v319_v18  ;;  %v425_v53 = vadd.f32 %v3996_v15, %v370_v39  ;;  %v318_v21 = vld [vmem:[%s3978_s16 + $0x110] sm:$0xff] }
  0xc3   : > { %7122 = vst [vmem:[#allocation14_spill] sm:$0xff] %v4156_v22  ;;  %v2248_v27 = vmul.f32 %v4040_v47, %v4156_v22  ;;  %v3012_v32 = vmul.f32 %v4049_v54, %v4156_v22  ;;  %v2247_v36 = vmul.f32 %v4040_v47, %v4158_v23  ;;  %v3011_v44 = vmul.f32 %v4049_v54, %v4158_v23 }
  0xc4   : > { %7123 = vst [vmem:[#allocation15_spill] sm:$0xff] %v4158_v23  ;;  %v4203_v18 = vadd.f32 %v3996_v15, %v347_v26  ;;  %v2252_v39 = vmul.f32 %v4040_v47, %v831_v9 }
  0xc5   : > { %v2361_v19 = vrot.slane %v2248_v27, 1  ;;  %v3122_v12 = vrot.slane %v3012_v32, 1  ;;  %v2360_v17 = vrot.slane %v2247_v36, 1  ;;  %1127 = vperm.xlu2 %3682, %v3485_v33   ;;  %v3121_v8 = vrot.slane %v3011_v44, 1 }
  0xc6   : > { %1122 = vperm.xlu1 %3681, %v3484_v30   ;;  %1117 = vperm.xlu0 %3680, %v3483_v38   ;;  %v477_v27 = vmax.f32 %v426_v34, 0.0  ;;  %v424_v30 = vadd.f32 %v3996_v15, %v369_v52  ;;  %v4219_v34 = vmul.f32 %v3984_v10, %v295_v48  ;;  %v3016_v52 = vmul.f32 %v4049_v54, %v831_v9  ;;  %v3487_v9 = vld [vmem:[%s7039_s1 + $0x2a0] sm:$0xff] }
  0xc7   : > { %v4192_v24 = vpop.permute.xlu2 %739  ;;  %v4197_v33 = vsel %vm2319_vm0, %v2361_v19, %v2363_v40  ;;  %v4200_v31 = vsel %vm2319_vm0, %v2360_v17, %v2361_v19  ;;  %v4207_v38 = vsel %vm2319_vm0, %v3122_v12, %v3124_v0  ;;  %v317_v17 = vld [vmem:[%s3978_s16 + $0x108] sm:$0xff]  ;;  %v4216_v26 = vsel %vm2319_vm0, %v3121_v8, %v3122_v12  ;;  %v286_v19 = vld [vmem:[%s3978_s16 + $0x10] sm:$0x1] }
  0xc8   : > { %7125 = vst [vmem:[#allocation17_spill] sm:$0xff] %v4200_v31  ;;  %v690_v32 = vpop.permute.xlu1 %689  ;;  %v685_v36 = vpop.permute.xlu0 %684  ;;  %v429_v0 = vadd.f32 %v3996_v15, %v374_v20  ;;  %v3486_v20 = vld [vmem:[%s7039_s1 + $0x290] sm:$0xff]  ;;  %v476_v48 = vmax.f32 %v425_v53, 0.0  ;;  %v834_v59 = vmul.f32 %v4085_v42, %v477_v27  ;;  %v341_v29 = vmul.f32 %v3984_v10, %v286_v19 }
  0xc9   : > { %7126 = vst [vmem:[#allocation18_spill] sm:$0xff] %v4207_v38  ;;  %v4210_v44 = vmul.f32 %v690_v32, %v473_v35  ;;  %v4212_v40 = vmul.f32 %v685_v36, %v472_v25  ;;  %v3488_v35 = vld [vmem:[%s7039_s1 + $0x2a8] sm:$0xff]  ;;  %v373_v25 = vmul.f32 %v3984_v10, %v318_v21  ;;  %v322_v32 = vld [vmem:[%s3978_s16 + $0x130] sm:$0x1]  ;;  %v284_v21 = vld [vmem:[%s3978_s16] sm:$0xff]  ;;  %v372_v38 = vmul.f32 %v3984_v10, %v317_v17 }
  0xca   : > { %7129 = vst [vmem:[#allocation21_spill] sm:$0xff] %v4216_v26  ;;  %v475_v26 = vmax.f32 %v424_v30, 0.0  ;;  %v377_v28 = vmul.f32 %v3984_v10, %v322_v32  ;;  %v339_v27 = vmul.f32 %v3984_v10, %v284_v21  ;;  %v3129_v30 = vrot.slane %v3016_v52, 1 }
  0xcb   : > { %7127 = vst [vmem:[#allocation19_spill] sm:$0xff] %v4210_v44  ;;  %v2251_v36 = vmul.f32 %v4040_v47, %v4210_v44  ;;  %v3015_v12 = vmul.f32 %v4049_v54, %v4210_v44  ;;  %v2250_v8 = vmul.f32 %v4040_v47, %v4212_v40  ;;  %v3014_v16 = vmul.f32 %v4049_v54, %v4212_v40 }
  0xcc   : > { %7128 = vst [vmem:[#allocation20_spill] sm:$0xff] %v4212_v40  ;;  %v2368_v44 = vrot.slane %v2252_v39, 1  ;;  %v428_v42 = vadd.f32 %v3996_v15, %v373_v25  ;;  %v321_v39 = vld [vmem:[%s3978_s16 + $0x128] sm:$0xff]  ;;  %v2255_v19 = vmul.f32 %v4040_v47, %v834_v59  ;;  %v427_v25 = vadd.f32 %v3996_v15, %v372_v38  ;;  %v3491_v38 = vld [vmem:[%s7039_s1 + $0x2d0] sm:$0xff] }
  0xcd   : > { %v2366_v31 = vrot.slane %v2251_v36, 1  ;;  %v3127_v23 = vrot.slane %v3015_v12, 1  ;;  %v2365_v2 = vrot.slane %v2250_v8, 1  ;;  %1142 = vperm.xlu2 %3682, %v3488_v35   ;;  %v3126_v53 = vrot.slane %v3014_v16, 1  ;;  %v320_v12 = vld [vmem:[%s3978_s16 + $0x120] sm:$0xff] }
  0xce   : > { %1137 = vperm.xlu1 %3681, %v3487_v9   ;;  %1132 = vperm.xlu0 %3680, %v3486_v20   ;;  %v480_v16 = vmax.f32 %v429_v0, 0.0  ;;  %v3019_v8 = vmul.f32 %v4049_v54, %v834_v59  ;;  %v432_v0 = vadd.f32 %v3996_v15, %v377_v28  ;;  %v479_v20 = vmax.f32 %v428_v42, 0.0  ;;  %v3490_v28 = vld [vmem:[%s7039_s1 + $0x2c0] sm:$0xff] }
  0xcf   : > { %v4250_v40 = vpop.permute.xlu2 %754  ;;  %v4254_v17 = vsel %vm2319_vm0, %v2366_v31, %v2368_v44  ;;  %v4257_v35 = vsel %vm2319_vm0, %v2365_v2, %v2366_v31  ;;  %v4263_v52 = vsel %vm2319_vm0, %v3126_v53, %v3127_v23  ;;  %v4271_v2 = vsel %vm2319_vm0, %v3127_v23, %v3129_v30  ;;  %v325_v53 = vld [vmem:[%s3978_s16 + $0x148] sm:$0x1] }
  0xd0   : > { %7130 = vst [vmem:[#allocation22_spill] sm:$0xff] %v4254_v17  ;;  %v705_v32 = vpop.permute.xlu1 %704  ;;  %v700_v36 = vpop.permute.xlu0 %699  ;;  %v376_v21 = vmul.f32 %v3984_v10, %v321_v39  ;;  %v375_v42 = vmul.f32 %v3984_v10, %v320_v12  ;;  %v2373_v30 = vrot.slane %v2255_v19, 1  ;;  %v837_v39 = vmul.f32 %v4139_v58, %v480_v16 }
  0xd1   : > { %7131 = vst [vmem:[#allocation23_spill] sm:$0xff] %v4257_v35  ;;  %v4266_v9 = vmul.f32 %v705_v32, %v476_v48  ;;  %v4268_v44 = vmul.f32 %v700_v36, %v475_v26  ;;  %v3489_v48 = vld [vmem:[%s7039_s1 + $0x2b8] sm:$0xff]  ;;  %v478_v36 = vmax.f32 %v427_v25, 0.0  ;;  %v3134_v31 = vrot.slane %v3019_v8, 1  ;;  %v324_v25 = vld [vmem:[%s3978_s16 + $0x140] sm:$0xff] }
  0xd2   : > { %7132 = vst [vmem:[#allocation24_spill] sm:$0xff] %v4263_v52  ;;  %v4298_v35 = vadd.f32 %v3996_v15, %v4219_v34  ;;  %v380_v17 = vmul.f32 %v3984_v10, %v325_v53  ;;  %v4302_v58 = vadd.f32 %v3996_v15, %v376_v21  ;;  %v430_v16 = vadd.f32 %v3996_v15, %v375_v42 }
  0xd3   : > { %7133 = vst [vmem:[#allocation25_spill] sm:$0xff] %v4266_v9  ;;  %v2254_v59 = vmul.f32 %v4040_v47, %v4266_v9  ;;  %v3018_v26 = vmul.f32 %v4049_v54, %v4266_v9  ;;  %v2253_v23 = vmul.f32 %v4040_v47, %v4268_v44  ;;  %v3017_v32 = vmul.f32 %v4049_v54, %v4268_v44 }
  0xd4   : > { %7134 = vst [vmem:[#allocation26_spill] sm:$0xff] %v4268_v44  ;;  %v4318_v53 = vadd.f32 %v3996_v15, %v341_v29  ;;  %v4321_v21 = vadd.f32 %v3996_v15, %v339_v27  ;;  %v435_v27 = vadd.f32 %v3996_v15, %v380_v17  ;;  %v3493_v17 = vld [vmem:[%s7039_s1 + $0x2e8] sm:$0xff] }
  0xd5   : > { %7135 = vst [vmem:[#allocation27_spill] sm:$0xff] %v4271_v2  ;;  %v2371_v2 = vrot.slane %v2254_v59, 1  ;;  %v3132_v52 = vrot.slane %v3018_v26, 1  ;;  %v2370_v9 = vrot.slane %v2253_v23, 1  ;;  %1157 = vperm.xlu2 %3682, %v3491_v38   ;;  %v3131_v12 = vrot.slane %v3017_v32, 1 }
  0xd6   : > { %1152 = vperm.xlu1 %3681, %v3490_v28   ;;  %1147 = vperm.xlu0 %3680, %v3489_v48   ;;  %v2258_v59 = vmul.f32 %v4040_v47, %v837_v39  ;;  %v3022_v26 = vmul.f32 %v4049_v54, %v837_v39  ;;  %v483_v48 = vmax.f32 %v432_v0, 0.0  ;;  %v482_v0 = vmax.f32 %v4302_v58, 0.0  ;;  %v328_v39 = vld [vmem:[%s3978_s16 + $0x160] sm:$0x1] }
  0xd7   : > { %v4304_v19 = vpop.permute.xlu2 %769  ;;  %v4309_v8 = vsel %vm2319_vm0, %v2371_v2, %v2373_v30  ;;  %v4312_v34 = vsel %vm2319_vm0, %v2370_v9, %v2371_v2  ;;  %v4315_v38 = vsel %vm2319_vm0, %v3132_v52, %v3134_v31  ;;  %v323_v2 = vld [vmem:[%s3978_s16 + $0x138] sm:$0xff]  ;;  %v4331_v31 = vsel %vm2319_vm0, %v3131_v12, %v3132_v52  ;;  %v3494_v30 = vld [vmem:[%s7039_s1 + $0x2f0] sm:$0xff] }
  0xd8   : > { %7136 = vst [vmem:[#allocation28_spill] sm:$0xff] %v4309_v8  ;;  %v720_v23 = vpop.permute.xlu1 %719  ;;  %v715_v28 = vpop.permute.xlu0 %714  ;;  %v3492_v12 = vld [vmem:[%s7039_s1 + $0x2d8] sm:$0xff]  ;;  %v481_v58 = vmax.f32 %v430_v16, 0.0  ;;  %v378_v29 = vmul.f32 %v3984_v10, %v323_v2  ;;  %v840_v8 = vmul.f32 %v4192_v24, %v483_v48  ;;  %v383_v16 = vmul.f32 %v3984_v10, %v328_v39 }
  0xd9   : > { %7137 = vst [vmem:[#allocation29_spill] sm:$0xff] %v4312_v34  ;;  %v4325_v42 = vmul.f32 %v720_v23, %v479_v20  ;;  %v4327_v9 = vmul.f32 %v715_v28, %v478_v36  ;;  %v379_v20 = vmul.f32 %v3984_v10, %v324_v25  ;;  %v2378_v25 = vrot.slane %v2258_v59, 1  ;;  %v331_v24 = vld [vmem:[%s3978_s16 + $0x178] sm:$0x1] }
  0xda   : > { %7138 = vst [vmem:[#allocation30_spill] sm:$0xff] %v4315_v38  ;;  %v3139_v23 = vrot.slane %v3022_v26, 1  ;;  %v287_v38 = vld [vmem:[%s3978_s16 + $0x18] sm:$0xff]  ;;  %v2261_v2 = vmul.f32 %v4040_v47, %v840_v8 }
  0xdb   : > { %7139 = vst [vmem:[#allocation31_spill] sm:$0xff] %v4325_v42  ;;  %v2257_v32 = vmul.f32 %v4040_v47, %v4325_v42  ;;  %v3021_v52 = vmul.f32 %v4049_v54, %v4325_v42  ;;  %v2256_v36 = vmul.f32 %v4040_v47, %v4327_v9  ;;  %v3020_v28 = vmul.f32 %v4049_v54, %v4327_v9 }
  0xdc   : > { %7140 = vst [vmem:[#allocation32_spill] sm:$0xff] %v4327_v9  ;;  %v434_v26 = vadd.f32 %v3996_v15, %v379_v20  ;;  %v285_v9 = vld [vmem:[%s3978_s16 + $0x8] sm:$0xff]  ;;  %v342_v20 = vmul.f32 %v3984_v10, %v287_v38  ;;  %v438_v38 = vadd.f32 %v3996_v15, %v383_v16  ;;  %v3495_v16 = vld [vmem:[%s7039_s1 + $0x300] sm:$0xff] }
  0xdd   : > { %7141 = vst [vmem:[#allocation33_spill] sm:$0xff] %v4331_v31  ;;  %v298_v31 = vld [vmem:[%s3978_s16 + $0x70] sm:$0x1]  ;;  %v2376_v46 = vrot.slane %v2257_v32, 1  ;;  %v3137_v11 = vrot.slane %v3021_v52, 1  ;;  %v2375_v6 = vrot.slane %v2256_v36, 1  ;;  %1172 = vperm.xlu2 %3682, %v3494_v30  }
  0xde   : > { %v3136_v59 = vrot.slane %v3020_v28, 1  ;;  %1167 = vperm.xlu1 %3681, %v3493_v17   ;;  %1162 = vperm.xlu0 %3680, %v3492_v12   ;;  %v353_v32 = vmul.f32 %v3984_v10, %v298_v31  ;;  %v486_v52 = vmax.f32 %v435_v27, 0.0  ;;  %v433_v12 = vadd.f32 %v3996_v15, %v378_v29  ;;  %v327_v28 = vld [vmem:[%s3978_s16 + $0x158] sm:$0xff] }
  0xdf   : > { %v4364_v42 = vpop.permute.xlu2 %784  ;;  %v4368_v48 = vsel %vm2319_vm0, %v2376_v46, %v2378_v25  ;;  %v4371_v30 = vsel %vm2319_vm0, %v2375_v6, %v2376_v46  ;;  %v4374_v39 = vsel %vm2319_vm0, %v3137_v11, %v3139_v23  ;;  %v326_v6 = vld [vmem:[%s3978_s16 + $0x150] sm:$0xff]  ;;  %v340_v31 = vmul.f32 %v3984_v10, %v285_v9  ;;  %v3497_v29 = vld [vmem:[%s7039_s1 + $0x318] sm:$0xff]  ;;  %v3496_v9 = vld [vmem:[%s7039_s1 + $0x308] sm:$0xff] }
  0xe0   : > { %7142 = vst [vmem:[#allocation34_spill] sm:$0xff] %v4368_v48  ;;  %v735_v36 = vpop.permute.xlu1 %734  ;;  %v730_v17 = vpop.permute.xlu0 %729  ;;  %v4387_v46 = vsel %vm2319_vm0, %v3136_v59, %v3137_v11  ;;  %v386_v27 = vmul.f32 %v3984_v10, %v331_v24  ;;  %v485_v23 = vmax.f32 %v434_v26, 0.0  ;;  %v382_v59 = vmul.f32 %v3984_v10, %v327_v28 }
  0xe1   : > { %7143 = vst [vmem:[#allocation35_spill] sm:$0xff] %v4371_v30  ;;  %v4381_v25 = vmul.f32 %v735_v36, %v482_v0  ;;  %v4383_v3 = vmul.f32 %v730_v17, %v481_v58  ;;  %v843_v26 = vmul.f32 %v4250_v40, %v486_v52  ;;  %v484_v36 = vmax.f32 %v433_v12, 0.0 }
  0xe2   : > { %7144 = vst [vmem:[#allocation36_spill] sm:$0xff] %v4374_v39  ;;  %v381_v17 = vmul.f32 %v3984_v10, %v326_v6  ;;  %v4416_v48 = vadd.f32 %v3996_v15, %v353_v32  ;;  %v4419_v28 = vadd.f32 %v3996_v15, %v342_v20  ;;  %v3025_v40 = vmul.f32 %v4049_v54, %v840_v8  ;;  %v334_v32 = vld [vmem:[%s3978_s16 + $0x190] sm:$0x1] }
  0xe3   : > { %7145 = vst [vmem:[#allocation37_spill] sm:$0xff] %v4381_v25  ;;  %v2260_v0 = vmul.f32 %v4040_v47, %v4381_v25  ;;  %v4399_v58 = vmul.f32 %v4049_v54, %v4381_v25  ;;  %v2259_v11 = vmul.f32 %v4040_v47, %v4383_v3  ;;  %v3023_v24 = vmul.f32 %v4049_v54, %v4383_v3  ;;  %v330_v20 = vld [vmem:[%s3978_s16 + $0x170] sm:$0xff] }
  0xe4   : > { %7146 = vst [vmem:[#allocation38_spill] sm:$0xff] %v4383_v3  ;;  %v7148_v12 = vmax.f32 %v4136_v43, 0.0  ;;  %v4428_v6 = vadd.f32 %v3996_v15, %v340_v31  ;;  %v2264_v8 = vmul.f32 %v4040_v47, %v843_v26  ;;  %v4440_v43 = vadd.f32 %v3996_v15, %v386_v27 }
  0xe5   : > { %7147 = vst [vmem:[#allocation39_spill] sm:$0xff] %v4387_v46  ;;  %v2383_v46 = vrot.slane %v2261_v2, 1  ;;  %v2381_v39 = vrot.slane %v2260_v0, 1  ;;  %v3142_v30 = vrot.slane %v4399_v58, 1  ;;  %v2380_v25 = vrot.slane %v2259_v11, 1  ;;  %1187 = vperm.xlu2 %3682, %v3497_v29  }
  0xe6   : > { %v3141_v52 = vrot.slane %v3023_v24, 1  ;;  %1182 = vperm.xlu1 %3681, %v3496_v9   ;;  %1177 = vperm.xlu0 %3680, %v3495_v16   ;;  %v4425_v2 = vmul.f32 %v3883_v37, %v7148_v12  ;;  %v437_v0 = vadd.f32 %v3996_v15, %v382_v59  ;;  %v489_v11 = vmax.f32 %v438_v38, 0.0 }
  0xe7   : > { %v4430_v29 = vpop.permute.xlu2 %799  ;;  %v4436_v58 = vsel %vm2319_vm0, %v2381_v39, %v2383_v46  ;;  %v436_v31 = vadd.f32 %v3996_v15, %v381_v17  ;;  %v4448_v59 = vsel %vm2319_vm0, %v2380_v25, %v2381_v39  ;;  %v3144_v12 = vrot.slane %v3025_v40, 1  ;;  %v329_v17 = vld [vmem:[%s3978_s16 + $0x168] sm:$0xff]  ;;  %v3498_v40 = vld [vmem:[%s7039_s1 + $0x320] sm:$0xff] }
  0xe8   : > { %7149 = vst [vmem:[#allocation40_spill] sm:$0xff] %v4436_v58  ;;  %v750_v37 = vpop.permute.xlu1 %749  ;;  %v745_v9 = vpop.permute.xlu0 %744  ;;  %v4451_v46 = vsel %vm2319_vm0, %v3141_v52, %v3142_v30  ;;  %v3028_v38 = vmul.f32 %v4049_v54, %v843_v26  ;;  %v389_v27 = vmul.f32 %v3984_v10, %v334_v32  ;;  %v3548_v58 = vld [vmem:[%s7039_s1 + $0x338] sm:$0xff]  ;;  %v3547_v26 = vld [vmem:[%s7039_s1 + $0x330] sm:$0xff]  ;;  %v488_v52 = vmax.f32 %v437_v0, 0.0 }
  0xe9   : > { %v4443_v16 = vmul.f32 %v750_v37, %v485_v23  ;;  %v4445_v24 = vmul.f32 %v745_v9, %v484_v36  ;;  %7152 = vst [vmem:[#allocation43_spill] sm:$0xff] %v4448_v59  ;;  %v385_v23 = vmul.f32 %v3984_v10, %v330_v20  ;;  %v2388_v32 = vrot.slane %v2264_v8, 1 }
  0xea   : > { %7153 = vst [vmem:[#allocation44_spill] sm:$0xff] %v4451_v46  ;;  %v846_v20 = vmul.f32 %v4304_v19, %v489_v11  ;;  %v487_v9 = vmax.f32 %v436_v31, 0.0  ;;  %v384_v3 = vmul.f32 %v3984_v10, %v329_v17  ;;  %v3149_v34 = vrot.slane %v3028_v38, 1 }
  0xeb   : > { %7150 = vst [vmem:[#allocation41_spill] sm:$0xff] %v4443_v16  ;;  %v2263_v36 = vmul.f32 %v4040_v47, %v4443_v16  ;;  %v3027_v39 = vmul.f32 %v4049_v54, %v4443_v16  ;;  %v2262_v25 = vmul.f32 %v4040_v47, %v4445_v24  ;;  %v3026_v37 = vmul.f32 %v4049_v54, %v4445_v24 }
  0xec   : > { %7151 = vst [vmem:[#allocation42_spill] sm:$0xff] %v4445_v24  ;;  %v4477_v0 = vadd.f32 %v3996_v15, %v385_v23  ;;  %v4480_v19 = vsel %vm2319_vm0, %v3142_v30, %v3144_v12  ;;  %v2267_v17 = vmul.f32 %v4040_v47, %v846_v20  ;;  %v492_v23 = vmax.f32 %v4440_v43, 0.0  ;;  %v333_v12 = vld [vmem:[%s3978_s16 + $0x188] sm:$0xff]  ;;  %v4511_v43 = vld [vmem:[%s7042_s4 + $0x6] ss:$0 sm:$0xff] }
  0xed   : > { %v2386_v46 = vrot.slane %v2263_v36, 1  ;;  %v3147_v59 = vrot.slane %v3027_v39, 1  ;;  %v2385_v16 = vrot.slane %v2262_v25, 1  ;;  %1478 = vperm.xlu2 %3682, %v3548_v58   ;;  %v3146_v44 = vrot.slane %v3026_v37, 1  ;;  %7154 = vst [vmem:[#allocation45_spill] sm:$0xff] %v4480_v19 }
  0xee   : > { %1473 = vperm.xlu1 %3681, %v3547_v26   ;;  %1192 = vperm.xlu0 %3680, %v3498_v40   ;;  %v4526_v37 = vld [vmem:[%s7042_s4] ss:$0 sm:$0xff]  ;;  %v2393_v8 = vrot.slane %v2267_v17, 1  ;;  %v849_v26 = vmul.f32 %v4364_v42, %v492_v23  ;;  %v4551_v17 = vmul.f32 %v4049_v54, %v4425_v2 }
  0xef   : > { %v4484_v31 = vpop.permute.xlu2 %1037  ;;  %v4487_v58 = vsel %vm2319_vm0, %v2386_v46, %v2388_v32  ;;  %v4490_v38 = vsel %vm2319_vm0, %v2385_v16, %v2386_v46  ;;  %v4496_v39 = vsel %vm2319_vm0, %v3147_v59, %v3149_v34  ;;  %v4499_v25 = vsel %vm2319_vm0, %v3146_v44, %v3147_v59  ;;  %v332_v46 = vld [vmem:[%s3978_s16 + $0x180] sm:$0xff] }
  0xf0   : > { %7155 = vst [vmem:[#allocation46_spill] sm:$0xff] %v4484_v31  ;;  %v765_v36 = vpop.permute.xlu1 %764  ;;  %v760_v30 = vpop.permute.xlu0 %759  ;;  %v439_v16 = vadd.f32 %v3996_v15, %v384_v3  ;;  %v4515_v34 = vmul.f32 %v4040_v47, %v4425_v2  ;;  %v3031_v44 = vmul.f32 %v4049_v54, %v846_v20  ;;  %v444_v59 = vadd.f32 %v3996_v15, %v389_v27  ;;  %v3550_v20 = vld [vmem:[%s7039_s1 + $0x348] sm:$0xff] }
  0xf1   : > { %7156 = vst [vmem:[#allocation47_spill] sm:$0xff] %v4487_v58  ;;  %v4502_v40 = vmul.f32 %v765_v36, %v488_v52  ;;  %v4504_v32 = vmul.f32 %v760_v30, %v487_v9  ;;  %v3551_v52 = vld [vmem:[%s7039_s1 + $0x350] sm:$0xff]  ;;  %v491_v3 = vmax.f32 %v4477_v0, 0.0  ;;  %v3549_v0 = vld [vmem:[%s7039_s1 + $0x340] sm:$0x1]  ;;  %v388_v30 = vmul.f32 %v3984_v10, %v333_v12 }
  0xf2   : > { %7157 = vst [vmem:[#allocation48_spill] sm:$0xff] %v4490_v38  ;;  %v387_v19 = vmul.f32 %v3984_v10, %v332_v46  ;;  %v490_v31 = vmax.f32 %v439_v16, 0.0  ;;  %v3154_v42 = vrot.slane %v3031_v44, 1  ;;  %v301_v12 = vld [vmem:[%s3978_s16 + $0x88] sm:$0x1]  ;;  %v290_v46 = vld [vmem:[%s3978_s16 + $0x30] sm:$0xff]  ;;  %v4561_v16 = vmul.f32 %v4526_v37, %v4425_v2 }
  0xf3   : > { %7158 = vst [vmem:[#allocation49_spill] sm:$0xff] %v4496_v39  ;;  %v2266_v9 = vmul.f32 %v4040_v47, %v4502_v40  ;;  %v3030_v36 = vmul.f32 %v4049_v54, %v4502_v40  ;;  %v2265_v27 = vmul.f32 %v4040_v47, %v4504_v32  ;;  %v3029_v11 = vmul.f32 %v4049_v54, %v4504_v32 }
  0xf4   : > { %7159 = vst [vmem:[#allocation50_spill] sm:$0xff] %v4499_v25 }
  0xf5   : > { %7160 = vst [vmem:[#allocation51_spill] sm:$0xff] %v4502_v40  ;;  %v2391_v25 = vrot.slane %v2266_v9, 1  ;;  %v3152_v39 = vrot.slane %v3030_v36, 1  ;;  %v2390_v58 = vrot.slane %v2265_v27, 1  ;;  %1493 = vperm.xlu2 %3682, %v3551_v52   ;;  %v4547_v40 = vmul.f32 %v4511_v43, %v4425_v2 }
  0xf6   : > { %7161 = vst [vmem:[#allocation52_spill] sm:$0xff] %v4504_v32  ;;  %v3151_v23 = vrot.slane %v3029_v11, 1  ;;  %1488 = vperm.xlu1 %3681, %v3550_v20   ;;  %1483 = vperm.xlu0 %3680, %v3549_v0   ;;  %v291_v32 = vld [vmem:[%s3978_s16 + $0x38] sm:$0xff]  ;;  %v443_v52 = vadd.f32 %v3996_v15, %v388_v30  ;;  %v2270_v11 = vmul.f32 %v4040_v47, %v849_v26 }
  0xf7   : > { %7162 = vst [vmem:[#allocation53_spill] sm:$0xff] %v4547_v40  ;;  %v4556_v9 = vpop.permute.xlu2 %1052  ;;  %v4564_v36 = vsel %vm2319_vm0, %v2391_v25, %v2393_v8  ;;  %v4567_v27 = vsel %vm2319_vm0, %v2390_v58, %v2391_v25  ;;  %v442_v0 = vadd.f32 %v3996_v15, %v387_v19  ;;  %v4572_v40 = vsel %vm2319_vm0, %v3152_v39, %v3154_v42 }
  0xf8   : > { %7163 = vst [vmem:[#allocation54_spill] sm:$0xff] %v4556_v9  ;;  %v780_v44 = vpop.permute.xlu1 %779  ;;  %v775_v20 = vpop.permute.xlu0 %774  ;;  %v4575_v30 = vsel %vm2319_vm0, %v3151_v23, %v3152_v39  ;;  %v495_v8 = vmax.f32 %v444_v59, 0.0  ;;  %v7170_v25 = vmax.f32 %v4148_v1, 0.0  ;;  %v356_v19 = vmul.f32 %v3984_v10, %v301_v12  ;;  %v3554_v23 = vld [vmem:[%s7039_s1 + $0x368] sm:$0xff]  ;;  %v294_v12 = vld [vmem:[%s3978_s16 + $0x50] sm:$0xff] }
  0xf9   : > { %7164 = vst [vmem:[#allocation55_spill] sm:$0xff] %v4561_v16  ;;  %v4578_v16 = vmul.f32 %v780_v44, %v491_v3  ;;  %v4580_v58 = vmul.f32 %v775_v20, %v490_v31  ;;  %v346_v42 = vmul.f32 %v3984_v10, %v291_v32  ;;  %v345_v39 = vmul.f32 %v3984_v10, %v290_v46  ;;  %v3553_v32 = vld [vmem:[%s7039_s1 + $0x360] sm:$0xff]  ;;  %v3552_v3 = vld [vmem:[%s7039_s1 + $0x358] sm:$0x1]  ;;  %v293_v46 = vld [vmem:[%s3978_s16 + $0x48] sm:$0xff] }
  0xfa   : > { %7165 = vst [vmem:[#allocation56_spill] sm:$0xff] %v4564_v36  ;;  %v3034_v59 = vmul.f32 %v4049_v54, %v849_v26  ;;  %v2398_v26 = vrot.slane %v2270_v11, 1  ;;  %v494_v20 = vmax.f32 %v443_v52, 0.0  ;;  %v852_v2 = vmul.f32 %v4430_v29, %v495_v8 }
  0xfb   : > { %7166 = vst [vmem:[#allocation57_spill] sm:$0xff] %v4567_v27  ;;  %v807_v27 = vmul.f32 %v3894_v41, %v7170_v25  ;;  %v2269_v31 = vmul.f32 %v4040_v47, %v4578_v16  ;;  %v3033_v1 = vmul.f32 %v4049_v54, %v4578_v16  ;;  %v2268_v41 = vmul.f32 %v4040_v47, %v4580_v58 }
  0xfc   : > { %7167 = vst [vmem:[#allocation58_spill] sm:$0xff] %v4572_v40  ;;  %v3032_v44 = vmul.f32 %v4049_v54, %v4580_v58  ;;  %v493_v25 = vmax.f32 %v442_v0, 0.0  ;;  %v4613_v36 = vadd.f32 %v3996_v15, %v356_v19  ;;  %v4616_v38 = vadd.f32 %v3996_v15, %v346_v42 }
  0xfd   : > { %7168 = vst [vmem:[#allocation59_spill] sm:$0xff] %v4575_v30  ;;  %v2396_v30 = vrot.slane %v2269_v31, 1  ;;  %v3157_v40 = vrot.slane %v3033_v1, 1  ;;  %1508 = vperm.xlu2 %3682, %v3554_v23   ;;  %v4610_v9 = vmul.f32 %v4040_v47, %v807_v27  ;;  %v2992_v52 = vmul.f32 %v4049_v54, %v807_v27 }
  0xfe   : > { %7169 = vst [vmem:[#allocation60_spill] sm:$0xff] %v4578_v16  ;;  %v2395_v16 = vrot.slane %v2268_v41, 1  ;;  %v3156_v11 = vrot.slane %v3032_v44, 1  ;;  %1503 = vperm.xlu1 %3681, %v3553_v32   ;;  %1498 = vperm.xlu0 %3680, %v3552_v3   ;;  %v349_v29 = vmul.f32 %v3984_v10, %v294_v12  ;;  %v348_v0 = vmul.f32 %v3984_v10, %v293_v46  ;;  %v300_v10 = vld [vmem:[%s3978_s16 + $0x80] sm:$0xff] }
  0xff   : > { %v4621_v8 = vpop.permute.xlu2 %1067  ;;  %v4624_v23 = vsel %vm2319_vm0, %v2396_v30, %v2398_v26  ;;  %v7173_v19 = vmax.f32 %v4203_v18, 0.0  ;;  %v3159_v31 = vrot.slane %v3034_v59, 1  ;;  %v3037_v3 = vmul.f32 %v4049_v54, %v852_v2  ;;  %v3445_v18 = vld [vmem:[%s3978_s16 + $0x240] sm:$0xff] }
 0x100   : > { %7171 = vst [vmem:[#allocation61_spill] sm:$0xff] %v4621_v8  ;;  %v795_v1 = vpop.permute.xlu1 %794  ;;  %v790_v41 = vpop.permute.xlu0 %789  ;;  %v4630_v27 = vsel %vm2319_vm0, %v2395_v16, %v2396_v30  ;;  %v4633_v32 = vsel %vm2319_vm0, %v3156_v11, %v3157_v40  ;;  %v4645_v26 = vadd.f32 %v3996_v15, %v345_v39  ;;  %v297_v16 = vld [vmem:[%s3978_s16 + $0x68] sm:$0xff]  ;;  %v3557_v30 = vld [vmem:[%s7039_s1 + $0x380] sm:$0xff]  ;;  %v2328_v44 = vrot.slane %v4610_v9, 1 }
 0x101   : > { %7172 = vst [vmem:[#allocation62_spill] sm:$0xff] %v4624_v23  ;;  %v810_v42 = vmul.f32 %v3905_v45, %v7173_v19  ;;  %v4637_v12 = vmul.f32 %v795_v1, %v494_v20  ;;  %v4639_v46 = vmul.f32 %v790_v41, %v493_v25  ;;  %v4652_v2 = vsel %vm2319_vm0, %v3157_v40, %v3159_v31  ;;  %v296_v25 = vld [vmem:[%s3978_s16 + $0x60] sm:$0xff]  ;;  %v3556_v19 = vld [vmem:[%s7039_s1 + $0x378] sm:$0xff]  ;;  %v3555_v1 = vld [vmem:[%s7039_s1 + $0x370] sm:$0x1] }
 0x102   : > { %7174 = vst [vmem:[#allocation63_spill] sm:$0xff] %v4630_v27  ;;  %v3089_v20 = vrot.slane %v2992_v52, 1  ;;  %v4670_v9 = vadd.f32 %v3996_v15, %v349_v29  ;;  %v4675_v52 = vld [vmem:[%s7041_s3] ss:$0 sm:$0xff]  ;;  %v3164_v15 = vrot.slane %v3037_v3, 1  ;;  %v7197_v23 = vrot.slane %v4515_v34, 1 }
 0x103   : > { %7175 = vst [vmem:[#allocation64_spill] sm:$0xff] %v4633_v32  ;;  %v3036_v11 = vmul.f32 %v4049_v54, %v4637_v12  ;;  %v3035_v39 = vmul.f32 %v4049_v54, %v4639_v46  ;;  %v4667_v40 = vmul.f32 %v4040_v47, %v810_v42  ;;  %v4678_v31 = vadd.f32 %v4675_v52, %v348_v0  ;;  %v4683_v41 = vld [vmem:[%s7040_s2] ss:$0 sm:$0xff] }
 0x104   : > { %7176 = vst [vmem:[#allocation65_spill] sm:$0xff] %v4637_v12  ;;  %v902_v45 = vmul.f32 %v4683_v41, %v3445_v18  ;;  %v352_v59 = vmul.f32 %v4683_v41, %v297_v16  ;;  %v7179_v0 = vmax.f32 %v4298_v35, 0.0  ;;  %v351_v8 = vmul.f32 %v4683_v41, %v296_v25 }
 0x105   : > { %7177 = vst [vmem:[#allocation66_spill] sm:$0xff] %v4639_v46  ;;  %v3162_v29 = vrot.slane %v3036_v11, 1  ;;  %1523 = vperm.xlu2 %3682, %v3557_v30   ;;  %v4689_v46 = vmul.f32 %v4049_v54, %v810_v42  ;;  %v7180_v18 = vmax.f32 %v4318_v53, 0.0  ;;  %v7181_v16 = vmax.f32 %v4321_v21, 0.0 }
 0x106   : > { %7178 = vst [vmem:[#allocation67_spill] sm:$0xff] %v4652_v2  ;;  %v3161_v2 = vrot.slane %v3035_v39, 1  ;;  %v813_v32 = vmul.f32 %v3916_v49, %v7179_v0  ;;  %1518 = vperm.xlu1 %3681, %v3556_v19   ;;  %1513 = vperm.xlu0 %3680, %v3555_v1   ;;  %v7184_v25 = vrot.slane %v4551_v17, 1  ;;  %v7186_v39 = vrot.slane %v4515_v34, 1  ;;  %v3448_v0 = vld [vmem:[%s3978_s16 + $0x260] sm:$0xff] }
 0x107   : > { %v804_v3 = vmul.f32 %v3918_v50, %v7180_v18  ;;  %v802_v42 = vmul.f32 %v3920_v51, %v7181_v16  ;;  %v4703_v35 = vsel %vm2319_vm0, %v3162_v29, %v3164_v15  ;;  %v4708_v30 = vpop.permute.xlu2 %1082  ;;  %v355_v50 = vmul.f32 %v4683_v41, %v300_v10  ;;  %v3560_v16 = vld [vmem:[%s7039_s1 + $0x398] sm:$0xff]  ;;  %v4782_v15 = vld [vmem:[%s7042_s4 + $0x8] ss:$0 sm:$0xff] }
 0x108   : > { %7182 = vst [vmem:[#allocation68_spill] sm:$0xff] %v4703_v35  ;;  %v4706_v49 = vsel %vm2319_vm0, %v3161_v2, %v3162_v29  ;;  %v4713_v53 = vsel %vm2319_vm0, %v7184_v25, %v3089_v20  ;;  %v4716_v11 = vpop.permute.xlu1 %1032  ;;  %v4718_v21 = vpop.permute.xlu0 %1027  ;;  %v936_v51 = vadd.f32 %v4675_v52, %v902_v45  ;;  %v4724_v2 = vsel %vm2319_vm0, %v7186_v39, %v2328_v44  ;;  %v299_v29 = vld [vmem:[%s3978_s16 + $0x78] sm:$0xff] }
 0x109   : > { %7183 = vst [vmem:[#allocation69_spill] sm:$0xff] %v4706_v49  ;;  %v7187_v19 = vmax.f32 %v4419_v28, 0.0  ;;  %v4732_v10 = vadd.f32 %v4675_v52, %v352_v59  ;;  %v4738_v18 = vmul.f32 %v4040_v47, %v813_v32  ;;  %v7188_v44 = vmax.f32 %v4428_v6, 0.0  ;;  %v4756_v47 = vld [vmem:[%s7042_s4 + $0x2] ss:$0 sm:$0xff] }
 0x10a   : > { %7185 = vst [vmem:[#allocation70_spill] sm:$0xff] %v4713_v53  ;;  %v4751_v25 = vmul.f32 %v4049_v54, %v813_v32  ;;  %v4759_v6 = vmul.f32 %v4756_v47, %v804_v3  ;;  %v3558_v54 = vld [vmem:[%s7039_s1 + $0x388] sm:$0x1]  ;;  %v4771_v32 = vadd.f32 %v4675_v52, %v355_v50  ;;  %v354_v39 = vmul.f32 %v4683_v41, %v299_v29 }
 0x10b   : > { %v805_v1 = vmul.f32 %v3933_v56, %v7187_v19  ;;  %v803_v28 = vmul.f32 %v3935_v57, %v7188_v44  ;;  %v4744_v56 = vadd.f32 %v4675_v52, %v351_v8  ;;  %v4762_v57 = vmul.f32 %v4756_v47, %v802_v42  ;;  %v3559_v8 = vld [vmem:[%s7039_s1 + $0x390] sm:$0xff] }
 0x10c   : > { %v970_v19 = vmax.f32 %v936_v51, 0.0  ;;  %v905_v3 = vmul.f32 %v4683_v41, %v3448_v0  ;;  %v7189_v44 = vmax.f32 %v4416_v48, 0.0  ;;  %v4788_v29 = vmul.f32 %v4526_v37, %v802_v42 }
 0x10d   : > { %v2226_v45 = vmul.f32 %v4756_v47, %v805_v1  ;;  %v2990_v20 = vmul.f32 %v4782_v15, %v805_v1  ;;  %1538 = vperm.xlu2 %3682, %v3560_v16   ;;  %v2224_v48 = vmul.f32 %v4756_v47, %v803_v28  ;;  %v2320_v12 = vrot.slane %v4762_v57, 1 }
 0x10e   : > { %v816_v59 = vmul.f32 %v3931_v55, %v7189_v44  ;;  %1533 = vperm.xlu1 %3681, %v3559_v8   ;;  %1528 = vperm.xlu0 %3680, %v3558_v54   ;;  %v2323_v44 = vrot.slane %v4759_v6, 1  ;;  %v7190_v16 = vmax.f32 %v4616_v38, 0.0  ;;  %v4800_v49 = vadd.f32 %v4675_v52, %v354_v39  ;;  %v4805_v8 = vld [vmem:[%s7042_s4 + $0x1] ss:$0 sm:$0xff]  ;;  %v3451_v55 = vld [vmem:[%s3978_s16 + $0x288] sm:$0xff] }
 0x10f   : > { %v1098_v50 = vpop.permute.xlu2 %1097  ;;  %v939_v38 = vadd.f32 %v4675_v52, %v905_v3  ;;  %v3086_v42 = vrot.slane %v2990_v20, 1  ;;  %v7193_v39 = vmax.f32 %v4645_v26, 0.0  ;;  %v4832_v20 = vmul.f32 %v4511_v43, %v805_v1 }
 0x110   : > { %v809_v51 = vmul.f32 %v3949_v62, %v7190_v16  ;;  %v4807_v54 = vmul.f32 %v1098_v50, %v970_v19  ;;  %v4809_v6 = vpop.permute.xlu1 %1047  ;;  %v4811_v57 = vpop.permute.xlu0 %1042  ;;  %v4815_v62 = vmul.f32 %v4756_v47, %v816_v59  ;;  %v2325_v16 = vrot.slane %v2226_v45, 1  ;;  %v3563_v45 = vld [vmem:[%s7039_s1 + $0x3b0] sm:$0xff] }
 0x111   : > { %7192 = vst [vmem:[#allocation72_spill] sm:$0xff] %v4809_v6  ;;  %v808_v0 = vmul.f32 %v3951_v63, %v7193_v39  ;;  %v4822_v35 = vmul.f32 %v4782_v15, %v816_v59  ;;  %v2321_v19 = vrot.slane %v2224_v48, 1  ;;  %v2131_v50 = vmul.f32 %v4526_v37, %v4103_v7  ;;  %v3562_v48 = vld [vmem:[%s7039_s1 + $0x3a8] sm:$0xff]  ;;  %v3561_v39 = vld [vmem:[%s7039_s1 + $0x3a0] sm:$0x1] }
 0x112   : > { %7191 = vst [vmem:[#allocation71_spill] sm:$0xff] %v4807_v54  ;;  %v2168_v3 = vmul.f32 %v4805_v8, %v4807_v54  ;;  %v4835_v63 = vmul.f32 %v4526_v37, %v803_v28  ;;  %v2230_v26 = vmul.f32 %v4756_v47, %v809_v51  ;;  %v4839_v59 = vmul.f32 %v4526_v37, %v805_v1 }
 0x113   : > { %7194 = vst [vmem:[#allocation73_spill] sm:$0xff] %v4832_v20  ;;  %v7196_v53 = vmax.f32 %v4613_v36, 0.0  ;;  %v973_v28 = vmax.f32 %v939_v38, 0.0  ;;  %v908_v7 = vmul.f32 %v4683_v41, %v3451_v55  ;;  %v2994_v27 = vmul.f32 %v4782_v15, %v809_v51 }
 0x114   : > { %7195 = vst [vmem:[#allocation74_spill] sm:$0xff] %v4839_v59  ;;  %v2200_v54 = vadd.f32 %v2168_v3, %v2131_v50  ;;  %v2229_v1 = vmul.f32 %v4756_v47, %v808_v0  ;;  %v4856_v6 = vsel %vm2319_vm0, %v2325_v16, %v7197_v23  ;;  %v7198_v59 = vrot.slane %v4551_v17, 1 }
 0x115   : > { %v819_v20 = vmul.f32 %v3947_v61, %v7196_v53  ;;  %1553 = vperm.xlu2 %3682, %v3563_v45   ;;  %v2993_v61 = vmul.f32 %v4782_v15, %v808_v0  ;;  %v4866_v55 = vsel %vm2319_vm0, %v2321_v19, %v2323_v44  ;;  %v2331_v34 = vrot.slane %v2230_v26, 1  ;;  %v3454_v26 = vld [vmem:[%s3978_s16 + $0x2a8] sm:$0xff] }
 0x116   : > { %v4861_v36 = vsel %vm2319_vm0, %v3086_v42, %v7198_v59  ;;  %1548 = vperm.xlu1 %3681, %v3562_v48   ;;  %1543 = vperm.xlu0 %3680, %v3561_v39   ;;  %v4869_v38 = vadd.f32 %v4145_v60, %v2200_v54  ;;  %v7201_v23 = vmax.f32 %v4670_v9, 0.0  ;;  %v7202_v42 = vmax.f32 %v4678_v31, 0.0 }
 0x117   : > { %7199 = vst [vmem:[#allocation75_spill] sm:$0xff] %v4861_v36  ;;  %v1113_v50 = vpop.permute.xlu2 %1112  ;;  %v4878_v3 = vsel %vm2319_vm0, %v2320_v12, %v2321_v19  ;;  %v4881_v44 = vmul.f32 %v4756_v47, %v819_v20  ;;  %v4884_v60 = vmul.f32 %v4782_v15, %v819_v20  ;;  %v4894_v31 = vmul.f32 %v4511_v43, %v809_v51 }
 0x118   : > { %7200 = vst [vmem:[#allocation76_spill] sm:$0xff] %v4869_v38  ;;  %v812_v17 = vmul.f32 %v3962_v4, %v7201_v23  ;;  %v811_v16 = vmul.f32 %v3964_v5, %v7202_v42  ;;  %v4886_v54 = vmul.f32 %v1113_v50, %v973_v28  ;;  %v4888_v9 = vpop.permute.xlu1 %1062  ;;  %v4890_v4 = vpop.permute.xlu0 %1057  ;;  %v942_v5 = vadd.f32 %v4675_v52, %v908_v7  ;;  %v3566_v7 = vld [vmem:[%s7039_s1 + $0x3c8] sm:$0xff]  ;;  %v3564_v42 = vld [vmem:[%s7039_s1 + $0x3b8] sm:$0x1] }
 0x119   : > { %7203 = vst [vmem:[#allocation77_spill] sm:$0xff] %v4884_v60  ;;  %v3092_v12 = vrot.slane %v2994_v27, 1  ;;  %v2330_v19 = vrot.slane %v2229_v1, 1  ;;  %v4897_v45 = vmul.f32 %v4511_v43, %v808_v0  ;;  %v3091_v20 = vrot.slane %v2993_v61, 1  ;;  %v3444_v27 = vld [vmem:[%s3978_s16 + $0x230] sm:$0xff]  ;;  %v3443_v28 = vld [vmem:[%s3978_s16 + $0x228] sm:$0xff] }
 0x11a   : > { %7204 = vst [vmem:[#allocation78_spill] sm:$0xff] %v4886_v54  ;;  %v4901_v59 = vmul.f32 %v4526_v37, %v809_v51  ;;  %v2134_v48 = vmul.f32 %v4526_v37, %v4156_v22  ;;  %v2171_v39 = vmul.f32 %v4805_v8, %v4886_v54  ;;  %v2233_v1 = vmul.f32 %v4756_v47, %v812_v17  ;;  %v3565_v51 = vld [vmem:[%s7039_s1 + $0x3c0] sm:$0xff] }
 0x11b   : > { %7205 = vst [vmem:[#allocation79_spill] sm:$0xff] %v4894_v31  ;;  %v2232_v23 = vmul.f32 %v4756_v47, %v811_v16  ;;  %v4915_v61 = vmul.f32 %v4526_v37, %v808_v0  ;;  %v7207_v50 = vrot.slane %v4667_v40, 1  ;;  %v976_v36 = vmax.f32 %v942_v5, 0.0  ;;  %v7218_v40 = vld [vmem:[#allocation26_spill] sm:$0xff] }
 0x11c   : > { %7206 = vst [vmem:[#allocation80_spill] sm:$0xff] %v4897_v45  ;;  %v2997_v45 = vmul.f32 %v4782_v15, %v812_v17  ;;  %v2203_v31 = vadd.f32 %v2171_v39, %v2134_v48  ;;  %v911_v0 = vmul.f32 %v4683_v41, %v3454_v26  ;;  %v2996_v54 = vmul.f32 %v4782_v15, %v811_v16 }
 0x11d   : > { %v4926_v53 = vsel %vm2319_vm0, %v2331_v34, %v7207_v50  ;;  %1568 = vperm.xlu2 %3682, %v3566_v7   ;;  %v901_v38 = vmul.f32 %v4683_v41, %v3444_v27  ;;  %v900_v22 = vmul.f32 %v4683_v41, %v3443_v28  ;;  %v4934_v60 = vsel %vm2319_vm0, %v2330_v19, %v2331_v34 }
 0x11e   : > { %1563 = vperm.xlu1 %3681, %v3565_v51   ;;  %1558 = vperm.xlu0 %3680, %v3564_v42   ;;  %v4938_v48 = vadd.f32 %v4197_v33, %v2203_v31  ;;  %v7209_v5 = vrot.slane %v4689_v46, 1  ;;  %v4946_v39 = vsel %vm2319_vm0, %v3091_v20, %v3092_v12  ;;  %v2336_v7 = vrot.slane %v2233_v1, 1  ;;  %v3457_v42 = vld [vmem:[%s3978_s16 + $0x2d0] sm:$0xff] }
 0x11f   : > { %7211 = vst [vmem:[#allocation83_spill] sm:$0xff] %v4946_v39  ;;  %v4949_v34 = vmul.f32 %v4511_v43, %v812_v17  ;;  %v2335_v19 = vrot.slane %v2232_v23, 1  ;;  %v7213_v27 = vmax.f32 %v4732_v10, 0.0  ;;  %v1128_v31 = vpop.permute.xlu2 %1127  ;;  %v3097_v46 = vrot.slane %v2997_v45, 1 }
 0x120   : > { %7208 = vst [vmem:[#allocation81_spill] sm:$0xff] %v4938_v48  ;;  %v4943_v26 = vsel %vm2319_vm0, %v3092_v12, %v7209_v5  ;;  %v4957_v28 = vmul.f32 %v4511_v43, %v811_v16  ;;  %v4959_v51 = vmul.f32 %v1128_v31, %v976_v36  ;;  %v4961_v12 = vpop.permute.xlu1 %1077  ;;  %v4963_v20 = vpop.permute.xlu0 %1072  ;;  %v945_v1 = vadd.f32 %v4675_v52, %v911_v0  ;;  %v3447_v5 = vld [vmem:[%s3978_s16 + $0x258] sm:$0xff] }
 0x121   : > { %7210 = vst [vmem:[#allocation82_spill] sm:$0xff] %v4943_v26  ;;  %v4954_v33 = vmul.f32 %v3989_v13, %v7213_v27  ;;  %v3096_v23 = vrot.slane %v2996_v54, 1  ;;  %v7217_v10 = vmax.f32 %v4744_v56, 0.0  ;;  %v935_v50 = vadd.f32 %v4675_v52, %v901_v38  ;;  %v3446_v27 = vld [vmem:[%s3978_s16 + $0x248] sm:$0xff]  ;;  %v3568_v38 = vld [vmem:[%s7039_s1 + $0x3d8] sm:$0xff] }
 0x122   : > { %7212 = vst [vmem:[#allocation84_spill] sm:$0xff] %v4949_v34  ;;  %v934_v45 = vadd.f32 %v4675_v52, %v900_v22  ;;  %v4975_v36 = vmul.f32 %v4526_v37, %v812_v17  ;;  %v4978_v31 = vmul.f32 %v4526_v37, %v811_v16  ;;  %v2137_v0 = vmul.f32 %v4526_v37, %v7218_v40  ;;  %v3567_v17 = vld [vmem:[%s7039_s1 + $0x3d0] sm:$0x1] }
 0x123   : > { %7214 = vst [vmem:[#allocation85_spill] sm:$0xff] %v4957_v28  ;;  %v814_v13 = vmul.f32 %v3991_v14, %v7217_v10  ;;  %v2174_v56 = vmul.f32 %v4805_v8, %v4959_v51  ;;  %v3569_v14 = vld [vmem:[%s7039_s1 + $0x3e0] sm:$0xff]  ;;  %v4989_v22 = vmul.f32 %v4756_v47, %v4954_v33  ;;  %v914_v16 = vmul.f32 %v4683_v41, %v3457_v42 }
 0x124   : > { %7215 = vst [vmem:[#allocation86_spill] sm:$0xff] %v4959_v51  ;;  %v7219_v54 = vrot.slane %v4738_v18, 1  ;;  %v5004_v34 = vsel %vm2319_vm0, %v2335_v19, %v2336_v7  ;;  %v979_v26 = vmax.f32 %v945_v1, 0.0  ;;  %v904_v28 = vmul.f32 %v4683_v41, %v3447_v5 }
 0x125   : > { %7216 = vst [vmem:[#allocation87_spill] sm:$0xff] %v4961_v12  ;;  %v2206_v39 = vadd.f32 %v2174_v56, %v2137_v0  ;;  %v903_v51 = vmul.f32 %v4683_v41, %v3446_v27  ;;  %v5010_v40 = vmul.f32 %v4782_v15, %v4954_v33  ;;  %v2235_v42 = vmul.f32 %v4756_v47, %v814_v13 }
 0x126   : > { %v5001_v10 = vsel %vm2319_vm0, %v2336_v7, %v7219_v54  ;;  %7220 = vst [vmem:[#allocation88_spill] sm:$0xff] %v5004_v34  ;;  %1583 = vperm.xlu2 %3682, %v3569_v14   ;;  %v969_v18 = vmax.f32 %v935_v50, 0.0  ;;  %v968_v48 = vmax.f32 %v934_v45, 0.0  ;;  %v3104_v54 = vrot.slane %v4822_v35, 1  ;;  %1578 = vperm.xlu1 %3681, %v3568_v38   ;;  %v7221_v7 = vld [vmem:[#allocation29_spill] sm:$0xff] }
 0x127   : > { %1573 = vperm.xlu0 %3680, %v3567_v17   ;;  %v5015_v19 = vadd.f32 %v7221_v7, %v2206_v39  ;;  %v5018_v1 = vsel %vm2319_vm0, %v3096_v23, %v3097_v46  ;;  %v7224_v5 = vrot.slane %v4751_v25, 1  ;;  %v5027_v50 = vmul.f32 %v4511_v43, %v4954_v33  ;;  %v1143_v39 = vpop.permute.xlu2 %1142 }
 0x128   : > { %7223 = vst [vmem:[#allocation89_spill] sm:$0xff] %v5018_v1  ;;  %v5030_v35 = vmul.f32 %v4511_v43, %v814_v13  ;;  %v5033_v45 = vmul.f32 %v4782_v15, %v814_v13  ;;  %v948_v23 = vadd.f32 %v4675_v52, %v914_v16  ;;  %v2341_v0 = vrot.slane %v4989_v22, 1  ;;  %v1088_v56 = vpop.permute.xlu0 %1087  ;;  %v3460_v16 = vld [vmem:[%s3978_s16 + $0x2f0] sm:$0xff] }
 0x129   : > { %7222 = vst [vmem:[#allocation29_spill] sm:$0xff] %v5015_v19  ;;  %v5023_v27 = vsel %vm2319_vm0, %v3097_v46, %v7224_v5  ;;  %v5037_v25 = vmul.f32 %v1143_v39, %v979_v26  ;;  %v1093_v46 = vpop.permute.xlu1 %1092  ;;  %v938_v14 = vadd.f32 %v4675_v52, %v904_v28  ;;  %v937_v38 = vadd.f32 %v4675_v52, %v903_v51  ;;  %v7232_v26 = vld [vmem:[#allocation31_spill] sm:$0xff]  ;;  %v7233_v28 = vld [vmem:[#allocation4_spill] sm:$0xff] }
 0x12a   : > { %7225 = vst [vmem:[#allocation90_spill] sm:$0xff] %v5023_v27  ;;  %v2340_v7 = vrot.slane %v2235_v42, 1  ;;  %v5042_v15 = vmul.f32 %v1093_v46, %v969_v18  ;;  %v5044_v5 = vmul.f32 %v1088_v56, %v968_v48  ;;  %v5048_v22 = vmul.f32 %v4526_v37, %v814_v13  ;;  %v3572_v42 = vld [vmem:[%s7039_s1 + $0x3f8] sm:$0xff]  ;;  %v3449_v48 = vld [vmem:[%s3978_s16 + $0x270] sm:$0xff] }
 0x12b   : > { %7226 = vst [vmem:[#allocation91_spill] sm:$0xff] %v5027_v50  ;;  %v2140_v39 = vmul.f32 %v4526_v37, %v7232_v26  ;;  %v2177_v27 = vmul.f32 %v4805_v8, %v5037_v25  ;;  %v2130_v51 = vmul.f32 %v4526_v37, %v7233_v28  ;;  %v3450_v18 = vld [vmem:[%s3978_s16 + $0x278] sm:$0xff]  ;;  %v3570_v50 = vld [vmem:[%s7039_s1 + $0x3e8] sm:$0x1]  ;;  %v982_v1 = vmax.f32 %v948_v23, 0.0 }
 0x12c   : > { %7227 = vst [vmem:[#allocation92_spill] sm:$0xff] %v5030_v35  ;;  %v2167_v46 = vmul.f32 %v4805_v8, %v5042_v15  ;;  %v7234_v13 = vld [vmem:[#allocation5_spill] sm:$0xff]  ;;  %v2166_v17 = vmul.f32 %v4805_v8, %v5044_v5  ;;  %v3571_v35 = vld [vmem:[%s7039_s1 + $0x3f0] sm:$0xff]  ;;  %v971_v26 = vmax.f32 %v937_v38, 0.0  ;;  %v906_v12 = vmul.f32 %v4683_v41, %v3449_v48  ;;  %v7248_v48 = vld [vmem:[#allocation3_spill] sm:$0xff] }
 0x12d   : > { %7228 = vst [vmem:[#allocation93_spill] sm:$0xff] %v5037_v25  ;;  %v2129_v56 = vmul.f32 %v4526_v37, %v7234_v13  ;;  %v2209_v19 = vadd.f32 %v2177_v27, %v2140_v39  ;;  %v972_v25 = vmax.f32 %v938_v14, 0.0  ;;  %v3101_v34 = vrot.slane %v5033_v45, 1  ;;  %v7236_v14 = vld [vmem:[#allocation34_spill] sm:$0xff] }
 0x12e   : > { %7229 = vst [vmem:[#allocation94_spill] sm:$0xff] %v5042_v15  ;;  %v917_v15 = vmul.f32 %v4683_v41, %v3460_v16  ;;  %v2199_v28 = vadd.f32 %v2167_v46, %v2130_v51  ;;  %1598 = vperm.xlu2 %3682, %v3572_v42   ;;  %1593 = vperm.xlu1 %3681, %v3571_v35   ;;  %v7235_v27 = vrot.slane %v4815_v62, 1  ;;  %v7238_v39 = vld [vmem:[#allocation6_spill] sm:$0xff]  ;;  %v7241_v35 = vld [vmem:[#allocation7_spill] sm:$0xff]  ;;  %v7243_v62 = vrot.slane %v5010_v40, 1 }
 0x12f   : > { %7230 = vst [vmem:[#allocation95_spill] sm:$0xff] %v5044_v5  ;;  %v2198_v13 = vadd.f32 %v2166_v17, %v2129_v56  ;;  %v907_v5 = vmul.f32 %v4683_v41, %v3450_v18  ;;  %1588 = vperm.xlu0 %3680, %v3570_v50   ;;  %v5087_v38 = vadd.f32 %v7236_v14, %v2209_v19  ;;  %v3432_v17 = vld [vmem:[%s3978_s16 + $0x1a0] sm:$0xff]  ;;  %v1158_v16 = vpop.permute.xlu2 %1157  ;;  %v7245_v19 = vmax.f32 %v4771_v32, 0.0 }
 0x130   : > { %7231 = vst [vmem:[#allocation96_spill] sm:$0xff] %v5048_v22  ;;  %v5079_v22 = vmul.f32 %v4526_v37, %v4954_v33  ;;  %v5084_v23 = vsel %vm2319_vm0, %v2341_v0, %v7235_v27  ;;  %v5091_v51 = vadd.f32 %v7238_v39, %v2199_v28  ;;  %v5094_v33 = vsel %vm2319_vm0, %v2340_v7, %v2341_v0  ;;  %v7246_v42 = vld [vmem:[#allocation2_spill] sm:$0xff]  ;;  %v3433_v0 = vld [vmem:[%s3978_s16 + $0x1b0] sm:$0xff]  ;;  %v1103_v56 = vpop.permute.xlu0 %1102 }
 0x131   : > { %7237 = vst [vmem:[#allocation34_spill] sm:$0xff] %v5087_v38  ;;  %v5097_v50 = vadd.f32 %v7241_v35, %v2198_v13  ;;  %v5102_v45 = vsel %vm2319_vm0, %v7243_v62, %v3104_v54  ;;  %v5107_v18 = vmul.f32 %v7246_v42, %v7245_v19  ;;  %v7247_v28 = vmax.f32 %v4800_v49, 0.0  ;;  %v1108_v13 = vpop.permute.xlu1 %1107  ;;  %v3453_v35 = vld [vmem:[%s3978_s16 + $0x2a0] sm:$0xff]  ;;  %v3452_v49 = vld [vmem:[%s3978_s16 + $0x290] sm:$0xff]  ;;  %v7253_v19 = vld [vmem:[#allocation9_spill] sm:$0xff] }
 0x132   : > { %7239 = vst [vmem:[#allocation6_spill] sm:$0xff] %v5091_v51  ;;  %v5115_v7 = vmul.f32 %v1158_v16, %v982_v1  ;;  %v951_v27 = vadd.f32 %v4675_v52, %v917_v15  ;;  %v5118_v14 = vmul.f32 %v1108_v13, %v972_v25  ;;  %v5120_v54 = vmul.f32 %v1103_v56, %v971_v26  ;;  %v3575_v15 = vld [vmem:[%s7039_s1 + $0x410] sm:$0xff]  ;;  %v3435_v51 = vld [vmem:[%s3978_s16 + $0x1c8] sm:$0xff] }
 0x133   : > { %7240 = vst [vmem:[#allocation97_spill] sm:$0xff] %v5094_v33  ;;  %v5112_v46 = vmul.f32 %v7248_v48, %v7247_v28  ;;  %v941_v32 = vadd.f32 %v4675_v52, %v907_v5  ;;  %v940_v39 = vadd.f32 %v4675_v52, %v906_v12  ;;  %v889_v62 = vmul.f32 %v4683_v41, %v3432_v17  ;;  %v7254_v12 = vld [vmem:[#allocation15_spill] sm:$0xff]  ;;  %v3573_v48 = vld [vmem:[%s7039_s1 + $0x400] sm:$0x1] }
 0x134   : > { %7242 = vst [vmem:[#allocation7_spill] sm:$0xff] %v5097_v50  ;;  %v2143_v1 = vmul.f32 %v4526_v37, %v4445_v24  ;;  %v2180_v16 = vmul.f32 %v4805_v8, %v5115_v7  ;;  %v2132_v25 = vmul.f32 %v4526_v37, %v7253_v19  ;;  %v890_v5 = vmul.f32 %v4683_v41, %v3433_v0  ;;  %v3574_v28 = vld [vmem:[%s7039_s1 + $0x408] sm:$0xff]  ;;  %v7255_v50 = vld [vmem:[#allocation48_spill] sm:$0xff] }
 0x135   : > { %7244 = vst [vmem:[#allocation98_spill] sm:$0xff] %v5102_v45  ;;  %v2133_v26 = vmul.f32 %v4526_v37, %v7254_v12  ;;  %v2170_v17 = vmul.f32 %v4805_v8, %v5118_v14  ;;  %v2169_v42 = vmul.f32 %v4805_v8, %v5120_v54  ;;  %v985_v0 = vmax.f32 %v951_v27, 0.0 }
 0x136   : > { %7249 = vst [vmem:[#allocation2_spill] sm:$0xff] %v5112_v46  ;;  %v2212_v13 = vadd.f32 %v2180_v16, %v2143_v1  ;;  %v910_v56 = vmul.f32 %v4683_v41, %v3453_v35  ;;  %v909_v45 = vmul.f32 %v4683_v41, %v3452_v49  ;;  %1613 = vperm.xlu2 %3682, %v3575_v15   ;;  %v974_v38 = vmax.f32 %v940_v39, 0.0  ;;  %v3434_v39 = vld [vmem:[%s3978_s16 + $0x1b8] sm:$0xff]  ;;  %v7260_v1 = vld [vmem:[#allocation12_spill] sm:$0xff] }
 0x137   : > { %7250 = vst [vmem:[#allocation3_spill] sm:$0xff] %v5115_v7  ;;  %v2202_v7 = vadd.f32 %v2170_v17, %v2133_v26  ;;  %v923_v24 = vadd.f32 %v4675_v52, %v889_v62  ;;  %1608 = vperm.xlu1 %3681, %v3574_v28   ;;  %1603 = vperm.xlu0 %3680, %v3573_v48   ;;  %v7257_v27 = vrot.slane %v5010_v40, 1  ;;  %v1173_v62 = vpop.permute.xlu2 %1172  ;;  %v3436_v40 = vld [vmem:[%s3978_s16 + $0x1d0] sm:$0xff]  ;;  %v7265_v17 = vld [vmem:[#allocation19_spill] sm:$0xff] }
 0x138   : > { %7251 = vst [vmem:[#allocation99_spill] sm:$0xff] %v5118_v14  ;;  %v2201_v14 = vadd.f32 %v2169_v42, %v2132_v25  ;;  %v5153_v12 = vadd.f32 %v7255_v50, %v2212_v13  ;;  %v5162_v49 = vmul.f32 %v4756_v47, %v5107_v18  ;;  %v7262_v50 = vld [vmem:[#allocation17_spill] sm:$0xff]  ;;  %v5177_v15 = vmul.f32 %v1173_v62, %v985_v0  ;;  %v1118_v42 = vpop.permute.xlu0 %1117  ;;  %v7268_v0 = vld [vmem:[#allocation20_spill] sm:$0xff] }
 0x139   : > { %7252 = vst [vmem:[#allocation100_spill] sm:$0xff] %v5120_v54  ;;  %v975_v54 = vmax.f32 %v941_v32, 0.0  ;;  %v5158_v35 = vsel %vm2319_vm0, %v3101_v34, %v7257_v27  ;;  %v5166_v32 = vmul.f32 %v4511_v43, %v5107_v18  ;;  %v5173_v25 = vadd.f32 %v7262_v50, %v2202_v7  ;;  %v3439_v34 = vld [vmem:[%s3978_s16 + $0x1f8] sm:$0xff]  ;;  %v1123_v26 = vpop.permute.xlu1 %1122 }
 0x13a   : > { %7256 = vst [vmem:[#allocation48_spill] sm:$0xff] %v5153_v12  ;;  %v5170_v16 = vadd.f32 %v7260_v1, %v2201_v14  ;;  %v2136_v43 = vmul.f32 %v4526_v37, %v7265_v17  ;;  %v944_v28 = vadd.f32 %v4675_v52, %v910_v56  ;;  %v943_v48 = vadd.f32 %v4675_v52, %v909_v45  ;;  %v3500_v62 = vld [vmem:[%s3978_s16 + $0x338] sm:$0xff] }
 0x13b   : > { %7258 = vst [vmem:[#allocation101_spill] sm:$0xff] %v5158_v35  ;;  %v5184_v14 = vadd.f32 %v4675_v52, %v890_v5  ;;  %v5186_v7 = vmul.f32 %v1123_v26, %v975_v54  ;;  %v5188_v13 = vmul.f32 %v1118_v42, %v974_v38  ;;  %v2135_v27 = vmul.f32 %v4526_v37, %v7268_v0  ;;  %v3578_v54 = vld [vmem:[%s7039_s1 + $0x428] sm:$0xff]  ;;  %v3456_v5 = vld [vmem:[%s3978_s16 + $0x2c0] sm:$0xff]  ;;  %v3455_v38 = vld [vmem:[%s3978_s16 + $0x2b8] sm:$0xff] }
 0x13c   : > { %7259 = vst [vmem:[#allocation102_spill] sm:$0xff] %v5166_v32  ;;  %v957_v1 = vmax.f32 %v923_v24, 0.0  ;;  %v891_v50 = vmul.f32 %v4683_v41, %v3434_v39  ;;  %v7269_v32 = vld [vmem:[#allocation51_spill] sm:$0xff]  ;;  %v2183_v45 = vmul.f32 %v4805_v8, %v5177_v15  ;;  %v893_v56 = vmul.f32 %v4683_v41, %v3436_v40  ;;  %v3577_v42 = vld [vmem:[%s7039_s1 + $0x420] sm:$0xff] }
 0x13d   : > { %7261 = vst [vmem:[#allocation12_spill] sm:$0xff] %v5170_v16  ;;  %v2146_v35 = vmul.f32 %v4526_v37, %v7269_v32  ;;  %v896_v26 = vmul.f32 %v4683_v41, %v3439_v34  ;;  %v2173_v24 = vmul.f32 %v4805_v8, %v5186_v7  ;;  %v2172_v39 = vmul.f32 %v4805_v8, %v5188_v13 }
 0x13e   : > { %7263 = vst [vmem:[#allocation17_spill] sm:$0xff] %v5173_v25  ;;  %v978_v12 = vmax.f32 %v944_v28, 0.0  ;;  %v977_v25 = vmax.f32 %v943_v48, 0.0  ;;  %v1279_v40 = vmul.f32 %v4683_v41, %v3500_v62  ;;  %1628 = vperm.xlu2 %3682, %v3578_v54   ;;  %v1196_v19 = vmul.f32 %v4716_v11, %v957_v1  ;;  %v7274_v11 = vld [vmem:[#allocation22_spill] sm:$0xff]  ;;  %v7276_v1 = vld [vmem:[#allocation23_spill] sm:$0xff] }
 0x13f   : > { %7264 = vst [vmem:[#allocation103_spill] sm:$0xff] %v5177_v15  ;;  %v3576_v15 = vld [vmem:[%s7039_s1 + $0x418] sm:$0x1]  ;;  %v2215_v32 = vadd.f32 %v2183_v45, %v2146_v35  ;;  %v2205_v34 = vadd.f32 %v2173_v24, %v2136_v43  ;;  %v2204_v0 = vadd.f32 %v2172_v39, %v2135_v27  ;;  %v925_v16 = vadd.f32 %v4675_v52, %v891_v50  ;;  %v7270_v35 = vld [vmem:[#allocation56_spill] sm:$0xff]  ;;  %v5232_v27 = vpop.permute.xlu2 %1187 }
 0x140   : > { %7266 = vst [vmem:[#allocation104_spill] sm:$0xff] %v5186_v7  ;;  %v913_v7 = vmul.f32 %v4683_v41, %v3456_v5  ;;  %1623 = vperm.xlu1 %3681, %v3577_v42   ;;  %1618 = vperm.xlu0 %3680, %v3576_v15   ;;  %v5226_v43 = vmul.f32 %v4756_v47, %v5112_v46  ;;  %v3442_v47 = vld [vmem:[%s3978_s16 + $0x218] sm:$0xff]  ;;  %v1133_v54 = vpop.permute.xlu0 %1132  ;;  %v3503_v39 = vld [vmem:[%s3978_s16 + $0x350] sm:$0xff] }
 0x141   : > { %7267 = vst [vmem:[#allocation105_spill] sm:$0xff] %v5188_v13  ;;  %v912_v13 = vmul.f32 %v4683_v41, %v3455_v38  ;;  %v5222_v28 = vadd.f32 %v7270_v35, %v2215_v32  ;;  %v5230_v48 = vmul.f32 %v4526_v37, %v5107_v18  ;;  %v5235_v62 = vadd.f32 %v7274_v11, %v2205_v34  ;;  %v1138_v45 = vpop.permute.xlu1 %1137  ;;  %v7278_v5 = vld [vmem:[#allocation25_spill] sm:$0xff] }
 0x142   : > { %7272 = vst [vmem:[#allocation106_spill] sm:$0xff] %v5226_v43  ;;  %v5238_v15 = vadd.f32 %v7276_v1, %v2204_v0  ;;  %v5242_v50 = vadd.f32 %v4675_v52, %v893_v56  ;;  %v2138_v38 = vmul.f32 %v4526_v37, %v7278_v5  ;;  %v1327_v24 = vadd.f32 %v4675_v52, %v1279_v40  ;;  %v3431_v42 = vld [vmem:[%s3978_s16 + $0x198] sm:$0xff]  ;;  %v3459_v56 = vld [vmem:[%s3978_s16 + $0x2e8] sm:$0xff] }
 0x143   : > { %7271 = vst [vmem:[#allocation56_spill] sm:$0xff] %v5222_v28  ;;  %v5250_v34 = vmul.f32 %v1138_v45, %v978_v12  ;;  %v5252_v35 = vmul.f32 %v1133_v54, %v977_v25  ;;  %v947_v0 = vadd.f32 %v4675_v52, %v913_v7  ;;  %v946_v11 = vadd.f32 %v4675_v52, %v912_v13  ;;  %v3458_v1 = vld [vmem:[%s3978_s16 + $0x2d8] sm:$0xff]  ;;  %v7281_v28 = vld [vmem:[#allocation32_spill] sm:$0xff]  ;;  %v3581_v12 = vld [vmem:[%s7039_s1 + $0x440] sm:$0xff] }
 0x144   : > { %7273 = vst [vmem:[#allocation107_spill] sm:$0xff] %v5232_v27  ;;  %v5259_v17 = vadd.f32 %v4675_v52, %v896_v26  ;;  %v2155_v32 = vmul.f32 %v4805_v8, %v1196_v19  ;;  %v959_v27 = vmax.f32 %v925_v16, 0.0  ;;  %v2139_v40 = vmul.f32 %v4526_v37, %v7281_v28  ;;  %v3580_v19 = vld [vmem:[%s7039_s1 + $0x438] sm:$0xff]  ;;  %v3579_v16 = vld [vmem:[%s7039_s1 + $0x430] sm:$0x1] }
 0x145   : > { %7275 = vst [vmem:[#allocation22_spill] sm:$0xff] %v5235_v62  ;;  %v899_v25 = vmul.f32 %v4683_v41, %v3442_v47  ;;  %v2176_v7 = vmul.f32 %v4805_v8, %v5250_v34  ;;  %v2175_v13 = vmul.f32 %v4805_v8, %v5252_v35  ;;  %v1282_v26 = vmul.f32 %v4683_v41, %v3503_v39 }
 0x146   : > { %7277 = vst [vmem:[#allocation23_spill] sm:$0xff] %v5238_v15  ;;  %v888_v45 = vmul.f32 %v4683_v41, %v3431_v42  ;;  %v1375_v47 = vmax.f32 %v1327_v24, 0.0  ;;  %v916_v54 = vmul.f32 %v4683_v41, %v3459_v56  ;;  %1643 = vperm.xlu2 %3682, %v3581_v12   ;;  %v981_v28 = vmax.f32 %v947_v0, 0.0  ;;  %v5291_v24 = vld [vmem:[%s7042_s4 + $0x3] ss:$0 sm:$0xff]  ;;  %v7283_v42 = vld [vmem:[#allocation37_spill] sm:$0xff] }
 0x147   : > { %7279 = vst [vmem:[#allocation108_spill] sm:$0xff] %v5250_v34  ;;  %v915_v34 = vmul.f32 %v4683_v41, %v3458_v1  ;;  %v2208_v15 = vadd.f32 %v2176_v7, %v2139_v40  ;;  %v980_v62 = vmax.f32 %v946_v11, 0.0  ;;  %v961_v5 = vmax.f32 %v5242_v50, 0.0  ;;  %v3438_v0 = vld [vmem:[%s3978_s16 + $0x1e8] sm:$0xff]  ;;  %v1479_v11 = vpop.permute.xlu2 %1478  ;;  %v7284_v50 = vld [vmem:[#allocation38_spill] sm:$0xff] }
 0x148   : > { %7280 = vst [vmem:[#allocation109_spill] sm:$0xff] %v5252_v35  ;;  %v2207_v35 = vadd.f32 %v2175_v13, %v2138_v38  ;;  %v2187_v33 = vadd.f32 %v2155_v32, %v4835_v63  ;;  %v5286_v39 = vmul.f32 %v4811_v57, %v959_v27  ;;  %1638 = vperm.xlu1 %3681, %v3580_v19   ;;  %v7285_v57 = vld [vmem:[#allocation28_spill] sm:$0xff]  ;;  %v7287_v56 = vld [vmem:[#allocation35_spill] sm:$0xff]  ;;  %v1148_v13 = vpop.permute.xlu0 %1147 }
 0x149   : > { %1633 = vperm.xlu0 %3680, %v3579_v16   ;;  %v2142_v38 = vmul.f32 %v4526_v37, %v7283_v42  ;;  %v2141_v63 = vmul.f32 %v4526_v37, %v7284_v50  ;;  %v1330_v32 = vadd.f32 %v4675_v52, %v1282_v26  ;;  %v5303_v1 = vadd.f32 %v7287_v56, %v2208_v15  ;;  %v1153_v7 = vpop.permute.xlu1 %1152  ;;  %v7293_v42 = vld [vmem:[#allocation55_spill] sm:$0xff] }
 0x14a   : > { %7282 = vst [vmem:[#allocation110_spill] sm:$0xff] %v5286_v39  ;;  %v5300_v27 = vadd.f32 %v7285_v57, %v2207_v35  ;;  %v5306_v40 = vadd.f32 %v4675_v52, %v899_v25  ;;  %v5308_v12 = vmul.f32 %v1479_v11, %v1375_v47  ;;  %v950_v19 = vadd.f32 %v4675_v52, %v916_v54  ;;  %v3506_v25 = vld [vmem:[%s3978_s16 + $0x368] sm:$0xff] }
 0x14b   : > { %7288 = vst [vmem:[#allocation35_spill] sm:$0xff] %v5303_v1  ;;  %v949_v37 = vadd.f32 %v4675_v52, %v915_v34  ;;  %v922_v16 = vadd.f32 %v4675_v52, %v888_v45  ;;  %v892_v35 = vmul.f32 %v4683_v41, %v3435_v51  ;;  %v5314_v26 = vmul.f32 %v1153_v7, %v981_v28  ;;  %v3584_v34 = vld [vmem:[%s7039_s1 + $0x458] sm:$0xff]  ;;  %v3462_v51 = vld [vmem:[%s3978_s16 + $0x308] sm:$0xff]  ;;  %v3461_v28 = vld [vmem:[%s3978_s16 + $0x300] sm:$0xff] }
 0x14c   : > { %7286 = vst [vmem:[#allocation28_spill] sm:$0xff] %v5300_v27  ;;  %v5316_v15 = vmul.f32 %v1148_v13, %v980_v62  ;;  %v2157_v47 = vmul.f32 %v4805_v8, %v5286_v39  ;;  %v895_v11 = vmul.f32 %v4683_v41, %v3438_v0  ;;  %v2433_v57 = vadd.f32 %v4866_v55, %v2187_v33  ;;  %v7291_v45 = vld [vmem:[#allocation54_spill] sm:$0xff]  ;;  %v3583_v55 = vld [vmem:[%s7039_s1 + $0x450] sm:$0xff]  ;;  %v3582_v33 = vld [vmem:[%s7039_s1 + $0x448] sm:$0x1] }
 0x14d   : > { %7289 = vst [vmem:[#allocation111_spill] sm:$0xff] %v5314_v26  ;;  %v2470_v54 = vmul.f32 %v5291_v24, %v5308_v12  ;;  %v5331_v62 = vmul.f32 %v7291_v45, %v961_v5  ;;  %v2179_v56 = vmul.f32 %v4805_v8, %v5314_v26  ;;  %v1378_v7 = vmax.f32 %v1330_v32, 0.0  ;;  %v5353_v32 = vld [vmem:[%s7042_s4] ss:$0 sm:$0xff] }
 0x14e   : > { %7290 = vst [vmem:[#allocation112_spill] sm:$0xff] %v5316_v15  ;;  %v2178_v0 = vmul.f32 %v4805_v8, %v5316_v15  ;;  %v984_v1 = vmax.f32 %v950_v19, 0.0  ;;  %v983_v5 = vmax.f32 %v949_v37, 0.0  ;;  %v1285_v45 = vmul.f32 %v4683_v41, %v3506_v25  ;;  %1658 = vperm.xlu2 %3682, %v3584_v34   ;;  %v7294_v19 = vld [vmem:[#allocation41_spill] sm:$0xff]  ;;  %v7296_v37 = vld [vmem:[#allocation46_spill] sm:$0xff] }
 0x14f   : > { %v5343_v13 = vadd.f32 %v2470_v54, %v2433_v57  ;;  %v2211_v26 = vadd.f32 %v2179_v56, %v2142_v38  ;;  %v919_v15 = vmul.f32 %v4683_v41, %v3462_v51  ;;  %v918_v27 = vmul.f32 %v4683_v41, %v3461_v28  ;;  %v7298_v54 = vld [vmem:[#allocation43_spill] sm:$0xff]  ;;  %v7300_v56 = vld [vmem:[#allocation52_spill] sm:$0xff] }
 0x150   : > { %v2210_v39 = vadd.f32 %v2178_v0, %v2141_v63  ;;  %v956_v50 = vmax.f32 %v922_v16, 0.0  ;;  %v2189_v43 = vadd.f32 %v2157_v47, %v7293_v42  ;;  %v929_v46 = vadd.f32 %v4675_v52, %v895_v11  ;;  %1653 = vperm.xlu1 %3681, %v3583_v55   ;;  %v3440_v16 = vld [vmem:[%s3978_s16 + $0x200] sm:$0xff]  ;;  %v1494_v47 = vpop.permute.xlu2 %1493  ;;  %v7297_v11 = vld [vmem:[#allocation40_spill] sm:$0xff]  ;;  %v1163_v55 = vpop.permute.xlu0 %1162 }
 0x151   : > { %7292 = vst [vmem:[#allocation54_spill] sm:$0xff] %v5343_v13  ;;  %1648 = vperm.xlu0 %3680, %v3582_v33   ;;  %v2144_v38 = vmul.f32 %v5353_v32, %v7294_v19  ;;  %v7295_v63 = vmax.f32 %v5184_v14, 0.0  ;;  %v2159_v42 = vmul.f32 %v4805_v8, %v5331_v62  ;;  %v5366_v57 = vadd.f32 %v7297_v11, %v2211_v26  ;;  %v1168_v28 = vpop.permute.xlu1 %1167  ;;  %v3509_v11 = vld [vmem:[%s3978_s16 + $0x380] sm:$0xff] }
 0x152   : > { %v5369_v34 = vadd.f32 %v7298_v54, %v2210_v39  ;;  %v5372_v51 = vadd.f32 %v4675_v52, %v892_v35  ;;  %v5374_v14 = vmul.f32 %v1494_v47, %v1378_v7  ;;  %v2145_v0 = vmul.f32 %v5353_v32, %v7300_v56  ;;  %v3499_v35 = vld [vmem:[%s3978_s16 + $0x330] sm:$0xff] }
 0x153   : > { %v5360_v25 = vmul.f32 %v7296_v37, %v7295_v63  ;;  %v1333_v33 = vadd.f32 %v4675_v52, %v1285_v45  ;;  %v5379_v63 = vmul.f32 %v1168_v28, %v984_v1  ;;  %v5381_v37 = vmul.f32 %v1163_v55, %v983_v5  ;;  %v3587_v1 = vld [vmem:[%s7039_s1 + $0x470] sm:$0xff] }
 0x154   : > { %7299 = vst [vmem:[#allocation55_spill] sm:$0xff] %v5369_v34  ;;  %v953_v26 = vadd.f32 %v4675_v52, %v919_v15  ;;  %v952_v39 = vadd.f32 %v4675_v52, %v918_v27  ;;  %v963_v7 = vmax.f32 %v929_v46, 0.0  ;;  %v897_v47 = vmul.f32 %v4683_v41, %v3440_v16 }
 0x155   : > { %7301 = vst [vmem:[#allocation41_spill] sm:$0xff] %v5379_v63  ;;  %v2435_v54 = vadd.f32 %v4724_v2, %v2189_v43  ;;  %v2472_v56 = vmul.f32 %v5291_v24, %v5374_v14  ;;  %v2191_v5 = vadd.f32 %v2159_v42, %v4901_v59  ;;  %v1195_v15 = vmul.f32 %v4718_v21, %v956_v50  ;;  %v3586_v2 = vld [vmem:[%s7039_s1 + $0x468] sm:$0xff]  ;;  %v3585_v43 = vld [vmem:[%s7039_s1 + $0x460] sm:$0x1] }
 0x156   : > { %7302 = vst [vmem:[#allocation46_spill] sm:$0xff] %v5381_v37  ;;  %v2182_v27 = vmul.f32 %v4805_v8, %v5379_v63  ;;  %v2181_v46 = vmul.f32 %v4805_v8, %v5381_v37  ;;  %v1381_v16 = vmax.f32 %v1333_v33, 0.0  ;;  %v1288_v59 = vmul.f32 %v4683_v41, %v3509_v11  ;;  %v3437_v50 = vld [vmem:[%s3978_s16 + $0x1e0] sm:$0xff]  ;;  %1673 = vperm.xlu2 %3682, %v3587_v1   ;;  %v7305_v11 = vld [vmem:[#allocation57_spill] sm:$0xff] }
 0x157   : > { %v5406_v45 = vadd.f32 %v2472_v56, %v2435_v54  ;;  %v1278_v21 = vmul.f32 %v4683_v41, %v3499_v35  ;;  %v987_v55 = vmax.f32 %v953_v26, 0.0  ;;  %v986_v63 = vmax.f32 %v952_v39, 0.0  ;;  %v7304_v26 = vld [vmem:[#allocation47_spill] sm:$0xff] }
 0x158   : > { %v2214_v42 = vadd.f32 %v2182_v27, %v2145_v0  ;;  %v2213_v28 = vadd.f32 %v2181_v46, %v2144_v38  ;;  %v2156_v13 = vmul.f32 %v4805_v8, %v5360_v25  ;;  %v967_v37 = vmax.f32 %v5306_v40, 0.0  ;;  %1668 = vperm.xlu1 %3681, %v3586_v2   ;;  %v1509_v0 = vpop.permute.xlu2 %1508  ;;  %v7308_v27 = vld [vmem:[#allocation60_spill] sm:$0xff] }
 0x159   : > { %7303 = vst [vmem:[#allocation40_spill] sm:$0xff] %v5406_v45  ;;  %v5415_v34 = vmul.f32 %v4888_v9, %v963_v7  ;;  %v931_v56 = vadd.f32 %v4675_v52, %v897_v47  ;;  %1663 = vperm.xlu0 %3680, %v3585_v43   ;;  %v2154_v33 = vmul.f32 %v4805_v8, %v1195_v15  ;;  %v960_v38 = vmax.f32 %v5372_v51, 0.0  ;;  %v1183_v7 = vpop.permute.xlu1 %1182  ;;  %v1178_v47 = vpop.permute.xlu0 %1177  ;;  %v3512_v43 = vld [vmem:[%s3978_s16 + $0x398] sm:$0xff] }
 0x15a   : > { %v5421_v39 = vadd.f32 %v7304_v26, %v2213_v28  ;;  %v5424_v35 = vadd.f32 %v7305_v11, %v2214_v42  ;;  %v894_v40 = vmul.f32 %v4683_v41, %v3437_v50  ;;  %v5427_v9 = vmul.f32 %v1509_v0, %v1381_v16  ;;  %v5457_v28 = vld [vmem:[%s7042_s4 + $0x5] ss:$0 sm:$0xff] }
 0x15b   : > { %v1336_v54 = vadd.f32 %v4675_v52, %v1288_v59  ;;  %v1326_v1 = vadd.f32 %v4675_v52, %v1278_v21  ;;  %v2437_v51 = vadd.f32 %v4926_v53, %v2191_v5  ;;  %v5432_v15 = vmul.f32 %v1183_v7, %v987_v55  ;;  %v3590_v53 = vld [vmem:[%s7039_s1 + $0x488] sm:$0xff]  ;;  %v3501_v59 = vld [vmem:[%s3978_s16 + $0x340] sm:$0x1] }
 0x15c   : > { %7306 = vst [vmem:[#allocation43_spill] sm:$0xff] %v5424_v35  ;;  %v2148_v46 = vmul.f32 %v5353_v32, %v7308_v27  ;;  %v5436_v2 = vmul.f32 %v1178_v47, %v986_v63  ;;  %v2161_v16 = vmul.f32 %v4805_v8, %v5415_v34  ;;  %v965_v50 = vmax.f32 %v931_v56, 0.0  ;;  %v3502_v5 = vld [vmem:[%s3978_s16 + $0x348] sm:$0xff]  ;;  %v3589_v0 = vld [vmem:[%s7039_s1 + $0x480] sm:$0xff] }
 0x15d   : > { %7307 = vst [vmem:[#allocation47_spill] sm:$0xff] %v5432_v15  ;;  %v2474_v42 = vmul.f32 %v5291_v24, %v5427_v9  ;;  %v2147_v52 = vmul.f32 %v5353_v32, %v4580_v58  ;;  %v5451_v63 = vmul.f32 %v4708_v30, %v967_v37  ;;  %v2186_v21 = vadd.f32 %v2154_v33, %v4788_v29  ;;  %v3588_v30 = vld [vmem:[%s7039_s1 + $0x478] sm:$0x1]  ;;  %v7311_v27 = vld [vmem:[#allocation74_spill] sm:$0xff] }
 0x15e   : > { %7309 = vst [vmem:[#allocation57_spill] sm:$0xff] %v5436_v2  ;;  %v2185_v55 = vmul.f32 %v4805_v8, %v5432_v15  ;;  %v2184_v56 = vmul.f32 %v4805_v8, %v5436_v2  ;;  %v1384_v37 = vmax.f32 %v1336_v54, 0.0  ;;  %v1374_v33 = vmax.f32 %v1326_v1, 0.0  ;;  %1688 = vperm.xlu2 %3682, %v3590_v53   ;;  %v7312_v54 = vld [vmem:[#allocation72_spill] sm:$0xff] }
 0x15f   : > { %v5469_v29 = vadd.f32 %v2474_v42, %v2437_v51  ;;  %v1291_v26 = vmul.f32 %v4683_v41, %v3512_v43  ;;  %v1281_v47 = vmul.f32 %v4683_v41, %v3502_v5  ;;  %v1280_v15 = vmul.f32 %v4683_v41, %v3501_v59 }
 0x160   : > { %v2217_v11 = vadd.f32 %v2185_v55, %v2148_v46  ;;  %v2216_v7 = vadd.f32 %v2184_v56, %v2147_v52  ;;  %v2188_v45 = vadd.f32 %v2156_v13, %v7311_v27  ;;  %v964_v35 = vmax.f32 %v5259_v17, 0.0  ;;  %1683 = vperm.xlu1 %3681, %v3589_v0   ;;  %v1524_v41 = vpop.permute.xlu2 %1523  ;;  %v3515_v13 = vld [vmem:[%s3978_s16 + $0x3b0] sm:$0xff]  ;;  %v7313_v27 = vld [vmem:[#allocation62_spill] sm:$0xff]  ;;  %v3504_v0 = vld [vmem:[%s3978_s16 + $0x358] sm:$0x1] }
 0x161   : > { %7310 = vst [vmem:[#allocation113_spill] sm:$0xff] %v5469_v29  ;;  %v2193_v2 = vadd.f32 %v2161_v16, %v4975_v36  ;;  %v5478_v51 = vmul.f32 %v4963_v20, %v965_v50  ;;  %1678 = vperm.xlu0 %3680, %v3588_v30   ;;  %v5481_v1 = vmul.f32 %v7312_v54, %v960_v38  ;;  %v7314_v36 = vld [vmem:[#allocation63_spill] sm:$0xff]  ;;  %v5499_v38 = vld [vmem:[%s7041_s3] ss:$0 sm:$0xff]  ;;  %v1474_v50 = vpop.permute.xlu1 %1473  ;;  %v5506_v42 = vpop.permute.xlu0 %1192 }
 0x162   : > { %v5485_v46 = vmul.f32 %v5457_v28, %v5308_v12  ;;  %v5489_v17 = vadd.f32 %v7313_v27, %v2217_v11  ;;  %v5492_v43 = vadd.f32 %v7314_v36, %v2216_v7  ;;  %v2165_v20 = vmul.f32 %v4805_v8, %v5451_v63  ;;  %v3505_v56 = vld [vmem:[%s3978_s16 + $0x360] sm:$0xff]  ;;  %v3592_v11 = vld [vmem:[%s7039_s1 + $0x498] sm:$0xff]  ;;  %v3591_v7 = vld [vmem:[%s7039_s1 + $0x490] sm:$0x1] }
 0x163   : > { %v5502_v12 = vadd.f32 %v5499_v38, %v894_v40  ;;  %v5504_v16 = vmul.f32 %v1524_v41, %v1384_v37  ;;  %v1339_v52 = vadd.f32 %v5499_v38, %v1291_v26  ;;  %v1711_v53 = vmul.f32 %v1474_v50, %v1374_v33  ;;  %v3593_v33 = vld [vmem:[%s7039_s1 + $0x4a0] sm:$0xff] }
 0x164   : > { %v2432_v5 = vadd.f32 %v4878_v3, %v2186_v21  ;;  %v1329_v59 = vadd.f32 %v5499_v38, %v1281_v47  ;;  %v1328_v55 = vadd.f32 %v5499_v38, %v1280_v15  ;;  %v2163_v40 = vmul.f32 %v4805_v8, %v5478_v51  ;;  %v5525_v3 = vld [vmem:[%s7040_s2] ss:$0 sm:$0xff]  ;;  %v3441_v47 = vld [vmem:[%s3978_s16 + $0x210] sm:$0xff] }
 0x165   : > { %v2439_v30 = vadd.f32 %v5001_v10, %v2193_v2  ;;  %v2476_v37 = vmul.f32 %v5291_v24, %v5504_v16  ;;  %v1294_v15 = vmul.f32 %v5525_v3, %v3515_v13  ;;  %v2158_v21 = vmul.f32 %v4805_v8, %v5481_v1 }
 0x166   : > { %v2469_v10 = vmul.f32 %v5291_v24, %v1711_v53  ;;  %v2607_v2 = vmul.f32 %v5457_v28, %v1711_v53  ;;  %v1387_v41 = vmax.f32 %v1339_v52, 0.0  ;;  %v1284_v8 = vmul.f32 %v5525_v3, %v3505_v56  ;;  %1703 = vperm.xlu2 %3682, %v3593_v33  }
 0x167   : > { %v5540_v54 = vadd.f32 %v2476_v37, %v2439_v30  ;;  %v1283_v13 = vmul.f32 %v5525_v3, %v3504_v0  ;;  %v1377_v50 = vmax.f32 %v1329_v59, 0.0  ;;  %v1376_v53 = vmax.f32 %v1328_v55, 0.0 }
 0x168   : > { %v5544_v27 = vadd.f32 %v2469_v10, %v2432_v5  ;;  %v2703_v36 = vrot.slane %v2607_v2, 1  ;;  %v7107_v26 = vrot.slane %v5162_v49, 1  ;;  %v2195_v29 = vadd.f32 %v2163_v40, %v5079_v22  ;;  %1698 = vperm.xlu1 %3681, %v3592_v11   ;;  %v1539_v59 = vpop.permute.xlu2 %1538  ;;  %v7317_v40 = vld [vmem:[#allocation61_spill] sm:$0xff]  ;;  %v3518_v2 = vld [vmem:[%s3978_s16 + $0x3c8] sm:$0xff] }
 0x169   : > { %v5550_v30 = vmul.f32 %v5457_v28, %v5374_v14  ;;  %1693 = vperm.xlu0 %3680, %v3591_v7   ;;  %v1342_v52 = vadd.f32 %v5499_v38, %v1294_v15  ;;  %v962_v5 = vmax.f32 %v5502_v12, 0.0  ;;  %v898_v56 = vmul.f32 %v5525_v3, %v3441_v47  ;;  %v1489_v33 = vpop.permute.xlu1 %1488  ;;  %v1484_v15 = vpop.permute.xlu0 %1483  ;;  %v3508_v47 = vld [vmem:[%s3978_s16 + $0x378] sm:$0xff] }
 0x16a   : > { %v2434_v55 = vadd.f32 %v4856_v6, %v2188_v45  ;;  %v7315_v0 = vrot.slane %v5485_v46, 1  ;;  %v5562_v14 = vmul.f32 %v7317_v40, %v964_v35  ;;  %v5564_v37 = vmul.f32 %v1539_v59, %v1387_v41  ;;  %v3507_v59 = vld [vmem:[%s3978_s16 + $0x370] sm:$0x1] }
 0x16b   : > { %v1332_v12 = vadd.f32 %v5499_v38, %v1284_v8  ;;  %v1331_v10 = vadd.f32 %v5499_v38, %v1283_v13  ;;  %v2197_v6 = vadd.f32 %v2165_v20, %v5230_v48  ;;  %v2190_v45 = vadd.f32 %v2158_v21, %v4915_v61  ;;  %v3628_v8 = vld [vmem:[%s7039_s1 + $0x4d0] sm:$0xff]  ;;  %v3627_v21 = vld [vmem:[%s7039_s1 + $0x4c8] sm:$0xff] }
 0x16c   : > { %v5559_v22 = vsel %vm2319_vm0, %v2703_v36, %v7315_v0  ;;  %v1714_v11 = vmul.f32 %v1489_v33, %v1377_v50  ;;  %v1713_v7 = vmul.f32 %v1484_v15, %v1376_v53  ;;  %v7108_v35 = vrot.slane %v5550_v30, 1 }
 0x16d   : > { %7316 = vst [vmem:[#allocation74_spill] sm:$0xff] %v5559_v22  ;;  %v2441_v41 = vadd.f32 %v5084_v23, %v2195_v29  ;;  %v2478_v36 = vmul.f32 %v5291_v24, %v5564_v37  ;;  %v1390_v13 = vmax.f32 %v1342_v52, 0.0  ;;  %v3594_v23 = vld [vmem:[%s7039_s1 + $0x4a8] sm:$0x1]  ;;  %v1297_v29 = vmul.f32 %v5525_v3, %v3518_v2  ;;  %v5725_v22 = vld [vmem:[%s7042_s4 + $0x6] ss:$0 sm:$0xff] }
 0x16e   : > { %v2471_v48 = vmul.f32 %v5291_v24, %v1714_v11  ;;  %v2610_v61 = vmul.f32 %v5457_v28, %v1714_v11  ;;  %v2609_v20 = vmul.f32 %v5457_v28, %v1713_v7  ;;  %v1380_v53 = vmax.f32 %v1332_v12, 0.0  ;;  %1928 = vperm.xlu2 %3682, %v3628_v8  }
 0x16f   : > { %v5590_v50 = vadd.f32 %v2478_v36, %v2441_v41  ;;  %v1379_v52 = vmax.f32 %v1331_v10, 0.0  ;;  %v1287_v0 = vmul.f32 %v5525_v3, %v3508_v47  ;;  %v1286_v11 = vmul.f32 %v5525_v3, %v3507_v59 }
 0x170   : > { %v5593_v40 = vadd.f32 %v2471_v48, %v2434_v55  ;;  %v2708_v33 = vrot.slane %v2610_v61, 1  ;;  %v2706_v15 = vrot.slane %v2609_v20, 1  ;;  %v5597_v7 = vmul.f32 %v4890_v4, %v962_v5  ;;  %1923 = vperm.xlu1 %3681, %v3627_v21   ;;  %v1554_v47 = vpop.permute.xlu2 %1553  ;;  %v3521_v5 = vld [vmem:[%s3978_s16 + $0x3e0] sm:$0xff] }
 0x171   : > { %7318 = vst [vmem:[#allocation72_spill] sm:$0xff] %v5590_v50  ;;  %v5601_v2 = vmul.f32 %v5457_v28, %v5427_v9  ;;  %1708 = vperm.xlu0 %3680, %v3594_v23   ;;  %v7320_v12 = vrot.slane %v4881_v44, 1  ;;  %v5609_v10 = vadd.f32 %v5499_v38, %v898_v56  ;;  %v1345_v4 = vadd.f32 %v5499_v38, %v1297_v29  ;;  %v5626_v56 = vld [vmem:[%s7042_s4 + $0x1] ss:$0 sm:$0xff]  ;;  %v1499_v48 = vpop.permute.xlu0 %1498  ;;  %v7330_v50 = vld [vmem:[#allocation96_spill] sm:$0xff] }
 0x172   : > { %7319 = vst [vmem:[#allocation62_spill] sm:$0xff] %v5593_v40  ;;  %v7321_v9 = vrot.slane %v5485_v46, 1  ;;  %v5621_v44 = vsel %vm2319_vm0, %v2708_v33, %v7108_v35  ;;  %v2162_v36 = vmul.f32 %v5626_v56, %v5562_v14  ;;  %v5630_v8 = vmul.f32 %v1554_v47, %v1390_v13  ;;  %v1504_v46 = vpop.permute.xlu1 %1503  ;;  %v3511_v33 = vld [vmem:[%s3978_s16 + $0x390] sm:$0xff]  ;;  %v3631_v13 = vld [vmem:[%s7039_s1 + $0x4f8] sm:$0xff] }
 0x173   : > { %v2349_v55 = vsel %vm2319_vm0, %v7107_v26, %v7320_v12  ;;  %7322 = vst [vmem:[#allocation63_spill] sm:$0xff] %v5621_v44  ;;  %v1335_v61 = vadd.f32 %v5499_v38, %v1287_v0  ;;  %v1717_v20 = vmul.f32 %v1504_v46, %v1380_v53  ;;  %v2436_v21 = vadd.f32 %v4934_v60, %v2190_v45  ;;  %v3630_v0 = vld [vmem:[%s7039_s1 + $0x4e8] sm:$0xff] }
 0x174   : > { %v5616_v41 = vsel %vm2319_vm0, %v7321_v9, %v2706_v15  ;;  %v2443_v59 = vadd.f32 %v2349_v55, %v2197_v6  ;;  %v1716_v23 = vmul.f32 %v1499_v48, %v1379_v52  ;;  %v1334_v29 = vadd.f32 %v5499_v38, %v1286_v11  ;;  %v3510_v15 = vld [vmem:[%s3978_s16 + $0x388] sm:$0x1]  ;;  %v3629_v11 = vld [vmem:[%s7039_s1 + $0x4e0] sm:$0xff]  ;;  %v7324_v9 = vld [vmem:[#allocation77_spill] sm:$0xff] }
 0x175   : > { %v2160_v12 = vmul.f32 %v5626_v56, %v5597_v7  ;;  %v2480_v6 = vmul.f32 %v5291_v24, %v5630_v8  ;;  %v1300_v53 = vmul.f32 %v5525_v3, %v3521_v5  ;;  %v2473_v60 = vmul.f32 %v5291_v24, %v1717_v20  ;;  %v3514_v44 = vld [vmem:[%s3978_s16 + $0x3a8] sm:$0xff] }
 0x176   : > { %v2613_v45 = vmul.f32 %v5457_v28, %v1717_v20  ;;  %v2612_v52 = vmul.f32 %v5457_v28, %v1716_v23  ;;  %v1393_v55 = vmax.f32 %v1345_v4, 0.0  ;;  %v1383_v46 = vmax.f32 %v1335_v61, 0.0  ;;  %1943 = vperm.xlu2 %3682, %v3631_v13   ;;  %v3704_v4 = vld [vmem:[%s7042_s4 + $0x8] ss:$0 sm:$0xff]  ;;  %v3524_v13 = vld [vmem:[%s3978_s16 + $0x3f8] sm:$0xff] }
 0x177   : > { %v5655_v47 = vadd.f32 %v2480_v6, %v2443_v59  ;;  %v1290_v5 = vmul.f32 %v5525_v3, %v3511_v33  ;;  %v1289_v48 = vmul.f32 %v5525_v3, %v3510_v15  ;;  %v5659_v20 = vadd.f32 %v2473_v60, %v2436_v21  ;;  %v7325_v33 = vld [vmem:[#allocation2_spill] sm:$0xff] }
 0x178   : > { %v2713_v23 = vrot.slane %v2613_v45, 1  ;;  %v2711_v26 = vrot.slane %v2612_v52, 1  ;;  %v1382_v35 = vmax.f32 %v1334_v29, 0.0  ;;  %v5666_v59 = vmul.f32 %v3704_v4, %v5107_v18  ;;  %1938 = vperm.xlu1 %3681, %v3630_v0   ;;  %v1569_v6 = vpop.permute.xlu2 %1568 }
 0x179   : > { %7323 = vst [vmem:[#allocation61_spill] sm:$0xff] %v5655_v47  ;;  %v2192_v61 = vadd.f32 %v2160_v12, %v4978_v31  ;;  %1933 = vperm.xlu0 %3680, %v3629_v11   ;;  %v1348_v21 = vadd.f32 %v5499_v38, %v1300_v53  ;;  %v5671_v15 = vmul.f32 %v3704_v4, %v7325_v33  ;;  %v7326_v60 = vrot.slane %v5601_v2, 1  ;;  %v7329_v53 = vld [vmem:[#allocation106_spill] sm:$0xff] }
 0x17a   : > { %v5675_v29 = vmul.f32 %v5457_v28, %v5504_v16  ;;  %v7327_v31 = vrot.slane %v5550_v30, 1  ;;  %v2345_v45 = vrot.slane %v7329_v53, 1  ;;  %v5689_v52 = vmul.f32 %v1569_v6, %v1393_v55  ;;  %v1519_v0 = vpop.permute.xlu1 %1518  ;;  %v1514_v16 = vpop.permute.xlu0 %1513  ;;  %v3634_v55 = vld [vmem:[%s7039_s1 + $0x518] sm:$0xff] }
 0x17b   : > { %v5681_v18 = vsel %vm2319_vm0, %v2713_v23, %v7326_v60  ;;  %v1338_v11 = vadd.f32 %v5499_v38, %v1290_v5  ;;  %v1337_v4 = vadd.f32 %v5499_v38, %v1289_v48  ;;  %v2194_v47 = vadd.f32 %v2162_v36, %v7330_v50  ;;  %v3513_v48 = vld [vmem:[%s3978_s16 + $0x3a0] sm:$0x1] }
 0x17c   : > { %v5686_v12 = vsel %vm2319_vm0, %v7327_v31, %v2711_v26  ;;  %v966_v23 = vmax.f32 %v5609_v10, 0.0  ;;  %v1720_v60 = vmul.f32 %v1519_v0, %v1383_v46  ;;  %v1719_v30 = vmul.f32 %v1514_v16, %v1382_v35  ;;  %v7331_v31 = vld [vmem:[#allocation88_spill] sm:$0xff] }
 0x17d   : > { %7328 = vst [vmem:[#allocation77_spill] sm:$0xff] %v5686_v12  ;;  %v2482_v26 = vmul.f32 %v5291_v24, %v5689_v52  ;;  %v2438_v53 = vadd.f32 %v7331_v31, %v2192_v61  ;;  %v1396_v6 = vmax.f32 %v1348_v21, 0.0  ;;  %v1303_v5 = vmul.f32 %v5525_v3, %v3524_v13  ;;  %v3633_v46 = vld [vmem:[%s7039_s1 + $0x510] sm:$0xff]  ;;  %v3632_v61 = vld [vmem:[%s7039_s1 + $0x500] sm:$0xff] }
 0x17e   : > { %v2475_v10 = vmul.f32 %v5291_v24, %v1720_v60  ;;  %v2616_v35 = vmul.f32 %v5457_v28, %v1720_v60  ;;  %v2615_v36 = vmul.f32 %v5457_v28, %v1719_v30  ;;  %v7332_v21 = vld [vmem:[#allocation6_spill] sm:$0xff]  ;;  %v1386_v13 = vmax.f32 %v1338_v11, 0.0  ;;  %1958 = vperm.xlu2 %3682, %v3634_v55  }
 0x17f   : > { %v5715_v0 = vadd.f32 %v2482_v26, %v7332_v21  ;;  %v1385_v16 = vmax.f32 %v1337_v4, 0.0  ;;  %v1293_v31 = vmul.f32 %v5525_v3, %v3514_v44  ;;  %v1292_v12 = vmul.f32 %v5525_v3, %v3513_v48  ;;  %v7334_v44 = vld [vmem:[#allocation87_spill] sm:$0xff]  ;;  %v3527_v48 = vld [vmem:[%s3978_s16 + $0x410] sm:$0xff] }
 0x180   : > { %v5718_v50 = vadd.f32 %v2475_v10, %v2438_v53  ;;  %v2718_v60 = vrot.slane %v2616_v35, 1  ;;  %v2716_v30 = vrot.slane %v2615_v36, 1  ;;  %v3107_v40 = vrot.slane %v5666_v59, 1  ;;  %1953 = vperm.xlu1 %3681, %v3633_v46   ;;  %v1584_v55 = vpop.permute.xlu2 %1583 }
 0x181   : > { %v5729_v11 = vmul.f32 %v5725_v22, %v7325_v33  ;;  %v5732_v4 = vmul.f32 %v7334_v44, %v966_v23  ;;  %1948 = vperm.xlu0 %3680, %v3632_v61   ;;  %v1351_v26 = vadd.f32 %v5499_v38, %v1303_v5  ;;  %v3106_v53 = vrot.slane %v5671_v15, 1 }
 0x182   : > { %v5738_v59 = vmul.f32 %v5457_v28, %v5564_v37  ;;  %v7335_v10 = vrot.slane %v5675_v29, 1  ;;  %v7337_v23 = vrot.slane %v5601_v2, 1  ;;  %v2127_v15 = vmul.f32 %v5353_v32, %v7325_v33  ;;  %v1534_v37 = vpop.permute.xlu1 %1533  ;;  %v1529_v46 = vpop.permute.xlu0 %1528 }
 0x183   : > { %7333 = vst [vmem:[#allocation2_spill] sm:$0xff] %v5729_v11  ;;  %v5753_v5 = vmul.f32 %v1584_v55, %v1396_v6  ;;  %v1341_v61 = vadd.f32 %v5499_v38, %v1293_v31  ;;  %v7339_v21 = vrot.slane %v5162_v49, 1  ;;  %v1722_v2 = vmul.f32 %v1529_v46, %v1385_v16  ;;  %v3637_v49 = vld [vmem:[%s7039_s1 + $0x540] sm:$0xff]  ;;  %v3635_v31 = vld [vmem:[%s7039_s1 + $0x528] sm:$0xff]  ;;  %v7341_v55 = vld [vmem:[#allocation12_spill] sm:$0xff] }
 0x184   : > { %v5744_v35 = vsel %vm2319_vm0, %v2718_v60, %v7335_v10  ;;  %v5749_v36 = vsel %vm2319_vm0, %v7337_v23, %v2716_v30  ;;  %v1723_v60 = vmul.f32 %v1534_v37, %v1386_v13  ;;  %v7340_v10 = vld [vmem:[#allocation97_spill] sm:$0xff]  ;;  %v1340_v30 = vadd.f32 %v5499_v38, %v1292_v12  ;;  %v3517_v23 = vld [vmem:[%s3978_s16 + $0x3c0] sm:$0xff] }
 0x185   : > { %7336 = vst [vmem:[#allocation106_spill] sm:$0xff] %v5744_v35  ;;  %v2347_v44 = vsel %vm2319_vm0, %v2345_v45, %v7339_v21  ;;  %v2440_v11 = vadd.f32 %v7340_v10, %v2194_v47  ;;  %v2164_v32 = vmul.f32 %v5626_v56, %v5732_v4  ;;  %v2484_v33 = vmul.f32 %v5291_v24, %v5753_v5  ;;  %v3636_v56 = vld [vmem:[%s7039_s1 + $0x530] sm:$0xff] }
 0x186   : > { %7338 = vst [vmem:[#allocation96_spill] sm:$0xff] %v5749_v36  ;;  %v3516_v36 = vld [vmem:[%s3978_s16 + $0x3b8] sm:$0x1]  ;;  %v1399_v6 = vmax.f32 %v1351_v26, 0.0  ;;  %v1306_v45 = vmul.f32 %v5525_v3, %v3527_v48  ;;  %v2477_v13 = vmul.f32 %v5291_v24, %v1723_v60  ;;  %v2619_v12 = vmul.f32 %v5457_v28, %v1723_v60  ;;  %1973 = vperm.xlu2 %3682, %v3637_v49   ;;  %v7350_v49 = vld [vmem:[#allocation4_spill] sm:$0xff] }
 0x187   : > { %v2618_v16 = vmul.f32 %v5457_v28, %v1722_v2  ;;  %v5782_v26 = vadd.f32 %v2484_v33, %v7341_v55  ;;  %v1389_v48 = vmax.f32 %v1341_v61, 0.0  ;;  %v1296_v37 = vmul.f32 %v5525_v3, %v3517_v23 }
 0x188   : > { %v1295_v46 = vmul.f32 %v5525_v3, %v3516_v36  ;;  %v5786_v21 = vadd.f32 %v2477_v13, %v2440_v11  ;;  %v2723_v60 = vrot.slane %v2619_v12, 1  ;;  %v1388_v2 = vmax.f32 %v1340_v30, 0.0  ;;  %1968 = vperm.xlu1 %3681, %v3636_v56   ;;  %v1599_v11 = vpop.permute.xlu2 %1598  ;;  %v3530_v36 = vld [vmem:[%s3978_s16 + $0x428] sm:$0xff]  ;;  %v7352_v56 = vld [vmem:[#allocation5_spill] sm:$0xff] }
 0x189   : > { %7342 = vst [vmem:[#allocation88_spill] sm:$0xff] %v5782_v26  ;;  %v2721_v10 = vrot.slane %v2618_v16, 1  ;;  %v2196_v47 = vadd.f32 %v2164_v32, %v2127_v15  ;;  %1963 = vperm.xlu0 %3680, %v3635_v31   ;;  %v1354_v35 = vadd.f32 %v5499_v38, %v1306_v45  ;;  %v7344_v33 = vrot.slane %v7324_v9, 1 }
 0x18a   : > { %7343 = vst [vmem:[#allocation6_spill] sm:$0xff] %v5786_v21  ;;  %v5796_v61 = vmul.f32 %v5457_v28, %v5630_v8  ;;  %v7346_v23 = vrot.slane %v5675_v29, 1  ;;  %v7347_v30 = vrot.slane %v5738_v59, 1  ;;  %v5810_v9 = vsel %vm2319_vm0, %v3106_v53, %v3107_v40  ;;  %v1549_v13 = vpop.permute.xlu1 %1548  ;;  %v1544_v29 = vpop.permute.xlu0 %1543 }
 0x18b   : > { %v5792_v55 = vsel %vm2319_vm0, %v3107_v40, %v7344_v33  ;;  %7349 = vst [vmem:[#allocation12_spill] sm:$0xff] %v5810_v9  ;;  %v5814_v8 = vmul.f32 %v5725_v22, %v7350_v49  ;;  %v5816_v45 = vmul.f32 %v1599_v11, %v1399_v6  ;;  %v1344_v12 = vadd.f32 %v5499_v38, %v1296_v37  ;;  %v3520_v33 = vld [vmem:[%s3978_s16 + $0x3d8] sm:$0xff]  ;;  %v3640_v37 = vld [vmem:[%s7039_s1 + $0x560] sm:$0xff] }
 0x18c   : > { %7345 = vst [vmem:[#allocation87_spill] sm:$0xff] %v5792_v55  ;;  %v5802_v15 = vsel %vm2319_vm0, %v7346_v23, %v2721_v10  ;;  %v5807_v32 = vsel %vm2319_vm0, %v2723_v60, %v7347_v30  ;;  %v1343_v16 = vadd.f32 %v5499_v38, %v1295_v46  ;;  %v5822_v31 = vmul.f32 %v5725_v22, %v7352_v56  ;;  %v7353_v60 = vld [vmem:[#allocation9_spill] sm:$0xff]  ;;  %v3519_v30 = vld [vmem:[%s3978_s16 + $0x3d0] sm:$0x1]  ;;  %v7358_v55 = vld [vmem:[#allocation14_spill] sm:$0xff] }
 0x18d   : > { %7348 = vst [vmem:[#allocation97_spill] sm:$0xff] %v5807_v32  ;;  %v5826_v40 = vmul.f32 %v5725_v22, %v7353_v60  ;;  %v1726_v53 = vmul.f32 %v1549_v13, %v1389_v48  ;;  %v1725_v10 = vmul.f32 %v1544_v29, %v1388_v2  ;;  %v2486_v6 = vmul.f32 %v5291_v24, %v5816_v45 }
 0x18e   : > { %7351 = vst [vmem:[#allocation4_spill] sm:$0xff] %v5814_v8  ;;  %v2442_v11 = vadd.f32 %v2347_v44, %v2196_v47  ;;  %v1402_v46 = vmax.f32 %v1354_v35, 0.0  ;;  %v1309_v23 = vmul.f32 %v5525_v3, %v3530_v36  ;;  %v3639_v44 = vld [vmem:[%s7039_s1 + $0x558] sm:$0xff]  ;;  %v3638_v47 = vld [vmem:[%s7039_s1 + $0x548] sm:$0xff]  ;;  %v1392_v36 = vmax.f32 %v1344_v12, 0.0  ;;  %1988 = vperm.xlu2 %3682, %v3640_v37   ;;  %v7356_v8 = vld [vmem:[#allocation10_spill] sm:$0xff] }
 0x18f   : > { %v2479_v56 = vmul.f32 %v5291_v24, %v1726_v53  ;;  %v2622_v48 = vmul.f32 %v5457_v28, %v1726_v53  ;;  %v2621_v2 = vmul.f32 %v5457_v28, %v1725_v10  ;;  %v7354_v35 = vld [vmem:[#allocation81_spill] sm:$0xff]  ;;  %v1391_v29 = vmax.f32 %v1343_v16, 0.0  ;;  %v7360_v16 = vld [vmem:[#allocation15_spill] sm:$0xff]  ;;  %v3533_v37 = vld [vmem:[%s3978_s16 + $0x440] sm:$0xff] }
 0x190   : > { %v5847_v13 = vadd.f32 %v2486_v6, %v7354_v35  ;;  %v1299_v60 = vmul.f32 %v5525_v3, %v3520_v33  ;;  %v1298_v26 = vmul.f32 %v5525_v3, %v3519_v30  ;;  %v5855_v9 = vmul.f32 %v5725_v22, %v7356_v8  ;;  %1983 = vperm.xlu1 %3681, %v3639_v44   ;;  %v1614_v8 = vpop.permute.xlu2 %1613  ;;  %v7367_v44 = vld [vmem:[#allocation20_spill] sm:$0xff] }
 0x191   : > { %v5850_v49 = vadd.f32 %v2479_v56, %v2442_v11  ;;  %v2728_v53 = vrot.slane %v2622_v48, 1  ;;  %v2726_v10 = vrot.slane %v2621_v2, 1  ;;  %v5859_v6 = vmul.f32 %v5725_v22, %v7358_v55  ;;  %1978 = vperm.xlu0 %3680, %v3638_v47   ;;  %v7365_v48 = vld [vmem:[#allocation19_spill] sm:$0xff] }
 0x192   : > { %7355 = vst [vmem:[#allocation5_spill] sm:$0xff] %v5847_v13  ;;  %v1357_v12 = vadd.f32 %v5499_v38, %v1309_v23  ;;  %v5864_v33 = vmul.f32 %v5725_v22, %v7360_v16  ;;  %v5868_v11 = vmul.f32 %v5457_v28, %v5689_v52  ;;  %v7362_v30 = vrot.slane %v5796_v61, 1  ;;  %v1564_v35 = vpop.permute.xlu1 %1563  ;;  %v1559_v16 = vpop.permute.xlu0 %1558 }
 0x193   : > { %7357 = vst [vmem:[#allocation9_spill] sm:$0xff] %v5855_v9  ;;  %v7363_v56 = vrot.slane %v5738_v59, 1  ;;  %v5883_v2 = vmul.f32 %v5725_v22, %v7365_v48  ;;  %v5887_v52 = vmul.f32 %v5725_v22, %v7367_v44  ;;  %v5889_v47 = vmul.f32 %v1614_v8, %v1402_v46  ;;  %v3523_v48 = vld [vmem:[%s3978_s16 + $0x3f0] sm:$0xff] }
 0x194   : > { %7359 = vst [vmem:[#allocation81_spill] sm:$0xff] %v5859_v6  ;;  %v5874_v55 = vsel %vm2319_vm0, %v2728_v53, %v7362_v30  ;;  %v1347_v53 = vadd.f32 %v5499_v38, %v1299_v60  ;;  %v7369_v30 = vld [vmem:[#allocation25_spill] sm:$0xff]  ;;  %v1346_v13 = vadd.f32 %v5499_v38, %v1298_v26  ;;  %v3643_v60 = vld [vmem:[%s7039_s1 + $0x588] sm:$0xff]  ;;  %v1405_v8 = vmax.f32 %v1357_v12, 0.0 }
 0x195   : > { %7361 = vst [vmem:[#allocation10_spill] sm:$0xff] %v5864_v33  ;;  %v5879_v23 = vsel %vm2319_vm0, %v7363_v56, %v2726_v10  ;;  %v5894_v59 = vmul.f32 %v5725_v22, %v7369_v30  ;;  %v1729_v10 = vmul.f32 %v1564_v35, %v1392_v36  ;;  %v1728_v56 = vmul.f32 %v1559_v16, %v1391_v29  ;;  %v7371_v33 = vld [vmem:[#allocation26_spill] sm:$0xff]  ;;  %v3641_v16 = vld [vmem:[%s7039_s1 + $0x570] sm:$0xff] }
 0x196   : > { %7364 = vst [vmem:[#allocation14_spill] sm:$0xff] %v5879_v23  ;;  %v5901_v44 = vmul.f32 %v5725_v22, %v7371_v33  ;;  %v2488_v46 = vmul.f32 %v5291_v24, %v5889_v47  ;;  %v1312_v30 = vmul.f32 %v5525_v3, %v3533_v37  ;;  %v3642_v33 = vld [vmem:[%s7039_s1 + $0x578] sm:$0xff]  ;;  %v1395_v37 = vmax.f32 %v1347_v53, 0.0  ;;  %2003 = vperm.xlu2 %3682, %v3643_v60   ;;  %v5938_v53 = vld [vmem:[%s7042_s4 + $0x7] ss:$0 sm:$0xff] }
 0x197   : > { %7366 = vst [vmem:[#allocation15_spill] sm:$0xff] %v5883_v2  ;;  %v3522_v2 = vld [vmem:[%s3978_s16 + $0x3e8] sm:$0x1]  ;;  %v2481_v26 = vmul.f32 %v5291_v24, %v1729_v10  ;;  %v2625_v29 = vmul.f32 %v5457_v28, %v1729_v10  ;;  %v2624_v35 = vmul.f32 %v5457_v28, %v1728_v56  ;;  %v1302_v36 = vmul.f32 %v5525_v3, %v3523_v48  ;;  %v7381_v48 = vld [vmem:[#allocation37_spill] sm:$0xff] }
 0x198   : > { %7368 = vst [vmem:[#allocation19_spill] sm:$0xff] %v5887_v52  ;;  %v1301_v6 = vmul.f32 %v5525_v3, %v3522_v2  ;;  %v7375_v10 = vld [vmem:[#allocation7_spill] sm:$0xff]  ;;  %v1394_v21 = vmax.f32 %v1346_v13, 0.0  ;;  %v7379_v52 = vld [vmem:[#allocation32_spill] sm:$0xff]  ;;  %1998 = vperm.xlu1 %3681, %v3642_v33   ;;  %v1360_v2 = vadd.f32 %v5499_v38, %v1312_v30  ;;  %v5943_v13 = vmul.f32 %v5725_v22, %v7381_v48 }
 0x199   : > { %7370 = vst [vmem:[#allocation20_spill] sm:$0xff] %v5894_v59  ;;  %v5925_v9 = vadd.f32 %v2481_v26, %v7375_v10  ;;  %v2733_v56 = vrot.slane %v2625_v29, 1  ;;  %v2731_v32 = vrot.slane %v2624_v35, 1  ;;  %v7377_v59 = vld [vmem:[#allocation31_spill] sm:$0xff]  ;;  %1993 = vperm.xlu0 %3680, %v3641_v16   ;;  %v7383_v60 = vrot.slane %v5868_v11, 1  ;;  %v7387_v35 = vld [vmem:[#allocation38_spill] sm:$0xff] }
 0x19a   : > { %7372 = vst [vmem:[#allocation25_spill] sm:$0xff] %v5901_v44  ;;  %v7373_v44 = vld [vmem:[#allocation22_spill] sm:$0xff]  ;;  %v5929_v23 = vmul.f32 %v5725_v22, %v7377_v59  ;;  %v5947_v59 = vmul.f32 %v5457_v28, %v5753_v5  ;;  %v7385_v29 = vrot.slane %v5796_v61, 1  ;;  %v5962_v33 = vmul.f32 %v5725_v22, %v7387_v35  ;;  %v1579_v5 = vpop.permute.xlu1 %1578  ;;  %v1574_v10 = vpop.permute.xlu0 %1573  ;;  %v3526_v35 = vld [vmem:[%s3978_s16 + $0x408] sm:$0xff] }
 0x19b   : > { %v5920_v12 = vadd.f32 %v2488_v46, %v7373_v44  ;;  %7376 = vst [vmem:[#allocation22_spill] sm:$0xff] %v5925_v9  ;;  %v5933_v44 = vmul.f32 %v5725_v22, %v7379_v52  ;;  %v1629_v52 = vpop.permute.xlu2 %1628  ;;  %v3536_v46 = vld [vmem:[%s3978_s16 + $0x458] sm:$0xff]  ;;  %v5953_v26 = vsel %vm2319_vm0, %v2733_v56, %v7383_v60  ;;  %v1350_v48 = vadd.f32 %v5499_v38, %v1302_v36  ;;  %v7390_v61 = vld [vmem:[#allocation42_spill] sm:$0xff] }
 0x19c   : > { %7378 = vst [vmem:[#allocation7_spill] sm:$0xff] %v5929_v23  ;;  %v5958_v30 = vsel %vm2319_vm0, %v7385_v29, %v2731_v32  ;;  %v5964_v16 = vmul.f32 %v1629_v52, %v1405_v8  ;;  %v5970_v56 = vmul.f32 %v5725_v22, %v7294_v19  ;;  %v5974_v32 = vmul.f32 %v5725_v22, %v7390_v61 }
 0x19d   : > { %7374 = vst [vmem:[#allocation26_spill] sm:$0xff] %v5920_v12  ;;  %v1732_v60 = vmul.f32 %v1579_v5, %v1395_v37  ;;  %v1731_v29 = vmul.f32 %v1574_v10, %v1394_v21  ;;  %v5979_v8 = vmul.f32 %v5938_v53, %v5360_v25  ;;  %v1408_v19 = vmax.f32 %v1360_v2, 0.0  ;;  %v3645_v5 = vld [vmem:[%s7039_s1 + $0x5a0] sm:$0xff]  ;;  %v3644_v10 = vld [vmem:[%s7039_s1 + $0x590] sm:$0xff] }
 0x19e   : > { %7380 = vst [vmem:[#allocation31_spill] sm:$0xff] %v5933_v44  ;;  %v2490_v36 = vmul.f32 %v5291_v24, %v5964_v16  ;;  %v1315_v52 = vmul.f32 %v5525_v3, %v3536_v46  ;;  %v3525_v44 = vld [vmem:[%s3978_s16 + $0x400] sm:$0x1]  ;;  %v7392_v2 = vld [vmem:[#allocation28_spill] sm:$0xff]  ;;  %v1305_v23 = vmul.f32 %v5525_v3, %v3526_v35  ;;  %v3463_v35 = vld [vmem:[%s3978_s16 + $0x318] sm:$0xff] }
 0x19f   : > { %7382 = vst [vmem:[#allocation32_spill] sm:$0xff] %v5943_v13  ;;  %v1349_v13 = vadd.f32 %v5499_v38, %v1301_v6  ;;  %v3646_v6 = vld [vmem:[%s7039_s1 + $0x5a8] sm:$0xff]  ;;  %v2483_v21 = vmul.f32 %v5291_v24, %v1732_v60  ;;  %v2628_v37 = vmul.f32 %v5457_v28, %v1732_v60  ;;  %v2627_v25 = vmul.f32 %v5457_v28, %v1731_v29  ;;  %v7394_v60 = vld [vmem:[#allocation76_spill] sm:$0xff] }
 0x1a0   : > { %7384 = vst [vmem:[#allocation37_spill] sm:$0xff] %v5953_v26  ;;  %v5999_v46 = vadd.f32 %v2490_v36, %v7392_v2  ;;  %2018 = vperm.xlu2 %3682, %v3646_v6   ;;  %v6008_v26 = vmul.f32 %v5938_v53, %v5331_v62  ;;  %v6012_v36 = vmul.f32 %v5725_v22, %v4580_v58  ;;  %v3539_v6 = vld [vmem:[%s3978_s16 + $0x470] sm:$0xff]  ;;  %v7397_v58 = vrot.slane %v5868_v11, 1  ;;  %v7403_v2 = vld [vmem:[#allocation71_spill] sm:$0xff] }
 0x1a1   : > { %7386 = vst [vmem:[#allocation114_spill] sm:$0xff] %v5958_v30  ;;  %v1397_v61 = vmax.f32 %v1349_v13, 0.0  ;;  %v2738_v29 = vrot.slane %v2628_v37, 1  ;;  %v2736_v30 = vrot.slane %v2627_v25, 1  ;;  %2013 = vperm.xlu1 %3681, %v3645_v5   ;;  %2008 = vperm.xlu0 %3680, %v3644_v10   ;;  %v1363_v13 = vadd.f32 %v5499_v38, %v1315_v52 }
 0x1a2   : > { %7388 = vst [vmem:[#allocation38_spill] sm:$0xff] %v5962_v33  ;;  %v1304_v33 = vmul.f32 %v5525_v3, %v3525_v44  ;;  %v6022_v44 = vmul.f32 %v5457_v28, %v5816_v45  ;;  %v7398_v52 = vrot.slane %v5947_v59, 1  ;;  %v6041_v45 = vmul.f32 %v5938_v53, %v5451_v63  ;;  %v1594_v10 = vpop.permute.xlu1 %1593  ;;  %v1589_v11 = vpop.permute.xlu0 %1588 }
 0x1a3   : > { %7389 = vst [vmem:[#allocation115_spill] sm:$0xff] %v5970_v56  ;;  %v6003_v56 = vadd.f32 %v2483_v21, %v7394_v60  ;;  %v1644_v62 = vpop.permute.xlu2 %1643  ;;  %v6028_v21 = vsel %vm2319_vm0, %v7397_v58, %v2736_v30  ;;  %v1353_v30 = vadd.f32 %v5499_v38, %v1305_v23  ;;  %v6048_v60 = vmul.f32 %v5938_v53, %v7403_v2 }
 0x1a4   : > { %7391 = vst [vmem:[#allocation42_spill] sm:$0xff] %v5974_v32  ;;  %v1398_v32 = vmax.f32 %v1350_v48, 0.0  ;;  %v6017_v48 = vmul.f32 %v5938_v53, %v5562_v14  ;;  %v6033_v37 = vsel %vm2319_vm0, %v2738_v29, %v7398_v52  ;;  %v7400_v14 = vld [vmem:[#allocation65_spill] sm:$0xff]  ;;  %v6043_v5 = vmul.f32 %v1644_v62, %v1408_v19  ;;  %v3649_v19 = vld [vmem:[%s7039_s1 + $0x5d0] sm:$0xff] }
 0x1a5   : > { %7393 = vst [vmem:[#allocation28_spill] sm:$0xff] %v5999_v46  ;;  %v6037_v25 = vmul.f32 %v5725_v22, %v7400_v14  ;;  %v1734_v58 = vmul.f32 %v1589_v11, %v1397_v61  ;;  %v1352_v52 = vadd.f32 %v5499_v38, %v1304_v33  ;;  %v3529_v22 = vld [vmem:[%s3978_s16 + $0x420] sm:$0xff]  ;;  %v3528_v14 = vld [vmem:[%s3978_s16 + $0x418] sm:$0x1]  ;;  %v1411_v23 = vmax.f32 %v1363_v13, 0.0 }
 0x1a6   : > { %7395 = vst [vmem:[#allocation76_spill] sm:$0xff] %v6003_v56  ;;  %v1735_v29 = vmul.f32 %v1594_v10, %v1398_v32  ;;  %v2492_v63 = vmul.f32 %v5291_v24, %v6043_v5  ;;  %v1318_v62 = vmul.f32 %v5525_v3, %v3539_v6  ;;  %v3647_v10 = vld [vmem:[%s7039_s1 + $0x5b8] sm:$0xff]  ;;  %v7405_v11 = vld [vmem:[#allocation34_spill] sm:$0xff]  ;;  %v1401_v6 = vmax.f32 %v1353_v30, 0.0 }
 0x1a7   : > { %7396 = vst [vmem:[#allocation116_spill] sm:$0xff] %v6012_v36  ;;  %v2630_v61 = vmul.f32 %v5457_v28, %v1734_v58  ;;  %v1308_v2 = vmul.f32 %v5525_v3, %v3529_v22  ;;  %v7407_v46 = vld [vmem:[#allocation17_spill] sm:$0xff]  ;;  %v6080_v56 = vmul.f32 %v5938_v53, %v5481_v1  ;;  %v7408_v22 = vld [vmem:[#allocation110_spill] sm:$0xff] }
 0x1a8   : > { %7399 = vst [vmem:[#allocation117_spill] sm:$0xff] %v6033_v37  ;;  %v2485_v32 = vmul.f32 %v5291_v24, %v1735_v29  ;;  %v2631_v33 = vmul.f32 %v5457_v28, %v1735_v29  ;;  %v6071_v13 = vadd.f32 %v2492_v63, %v7405_v11  ;;  %v1307_v24 = vmul.f32 %v5525_v3, %v3528_v14  ;;  %v7409_v14 = vld [vmem:[#allocation78_spill] sm:$0xff] }
 0x1a9   : > { %7401 = vst [vmem:[#allocation65_spill] sm:$0xff] %v6037_v25  ;;  %v920_v25 = vmul.f32 %v5525_v3, %v3463_v35  ;;  %v3648_v35 = vld [vmem:[%s7039_s1 + $0x5c0] sm:$0xff]  ;;  %v2741_v36 = vrot.slane %v2630_v61, 1  ;;  %2033 = vperm.xlu2 %3682, %v3649_v19   ;;  %v1400_v37 = vmax.f32 %v1352_v52, 0.0  ;;  %v6084_v63 = vmul.f32 %v5457_v28, %v5889_v47  ;;  %2023 = vperm.xlu0 %3680, %v3647_v10  }
 0x1aa   : > { %7402 = vst [vmem:[#allocation118_spill] sm:$0xff] %v6041_v45  ;;  %v6076_v29 = vadd.f32 %v2485_v32, %v7407_v46  ;;  %v2743_v58 = vrot.slane %v2631_v33, 1  ;;  %2028 = vperm.xlu1 %3681, %v3648_v35   ;;  %v1366_v30 = vadd.f32 %v5499_v38, %v1318_v62  ;;  %v6089_v46 = vmul.f32 %v5938_v53, %v7408_v22  ;;  %v1609_v35 = vpop.permute.xlu1 %1608  ;;  %v1604_v10 = vpop.permute.xlu0 %1603  ;;  %v7438_v45 = vld [vmem:[#allocation100_spill] sm:$0xff] }
 0x1ab   : > { %7404 = vst [vmem:[#allocation71_spill] sm:$0xff] %v6048_v60  ;;  %v6093_v52 = vmul.f32 %v5938_v53, %v7409_v14  ;;  %v1659_v1 = vpop.permute.xlu2 %1658  ;;  %v7411_v19 = vrot.slane %v6022_v44, 1  ;;  %v7412_v47 = vrot.slane %v5947_v59, 1  ;;  %v6107_v62 = vmul.f32 %v5938_v53, %v5415_v34 }
 0x1ac   : > { %7406 = vst [vmem:[#allocation34_spill] sm:$0xff] %v6071_v13  ;;  %v6109_v61 = vmul.f32 %v1659_v1, %v1411_v23  ;;  %v1356_v11 = vadd.f32 %v5499_v38, %v1308_v2  ;;  %v1355_v22 = vadd.f32 %v5499_v38, %v1307_v24  ;;  %v6116_v59 = vmul.f32 %v5938_v53, %v5597_v7  ;;  %v7416_v23 = vld [vmem:[#allocation86_spill] sm:$0xff] }
 0x1ad   : > { %7410 = vst [vmem:[#allocation17_spill] sm:$0xff] %v6093_v52  ;;  %v6098_v32 = vsel %vm2319_vm0, %v2743_v58, %v7411_v19  ;;  %v6103_v33 = vsel %vm2319_vm0, %v7412_v47, %v2741_v36  ;;  %v3542_v58 = vld [vmem:[%s3978_s16 + $0x488] sm:$0xff]  ;;  %v6119_v36 = vadd.f32 %v5499_v38, %v920_v25  ;;  %v1738_v14 = vmul.f32 %v1609_v35, %v1401_v6  ;;  %v3532_v19 = vld [vmem:[%s3978_s16 + $0x438] sm:$0xff]  ;;  %v6130_v2 = vld [vmem:[%s7042_s4 + $0x3] ss:$0 sm:$0xff] }
 0x1ae   : > { %7413 = vst [vmem:[#allocation110_spill] sm:$0xff] %v6103_v33  ;;  %v1737_v34 = vmul.f32 %v1604_v10, %v1400_v37  ;;  %v6124_v1 = vmul.f32 %v5938_v53, %v7416_v23  ;;  %v2494_v7 = vmul.f32 %v6130_v2, %v6109_v61  ;;  %v3652_v25 = vld [vmem:[%s7039_s1 + $0x5f0] sm:$0xff]  ;;  %v1414_v37 = vmax.f32 %v1366_v30, 0.0  ;;  %v3651_v23 = vld [vmem:[%s7039_s1 + $0x5e8] sm:$0xff]  ;;  %v3650_v47 = vld [vmem:[%s7039_s1 + $0x5d8] sm:$0xff] }
 0x1af   : > { %7414 = vst [vmem:[#allocation78_spill] sm:$0xff] %v6107_v62  ;;  %v3531_v6 = vld [vmem:[%s3978_s16 + $0x430] sm:$0x1]  ;;  %v2487_v24 = vmul.f32 %v6130_v2, %v1738_v14  ;;  %v2634_v35 = vmul.f32 %v5457_v28, %v1738_v14  ;;  %v1404_v30 = vmax.f32 %v1356_v11, 0.0  ;;  %v1311_v14 = vmul.f32 %v5525_v3, %v3532_v19  ;;  %v7419_v52 = vld [vmem:[#allocation23_spill] sm:$0xff]  ;;  %v7422_v11 = vld [vmem:[#allocation93_spill] sm:$0xff] }
 0x1b0   : > { %7415 = vst [vmem:[#allocation119_spill] sm:$0xff] %v6119_v36  ;;  %v2633_v10 = vmul.f32 %v5457_v28, %v1737_v34  ;;  %v1321_v36 = vmul.f32 %v5525_v3, %v3542_v58  ;;  %v6149_v13 = vadd.f32 %v2494_v7, %v5366_v57  ;;  %v1310_v9 = vmul.f32 %v5525_v3, %v3531_v6  ;;  %v7426_v7 = vld [vmem:[#allocation95_spill] sm:$0xff]  ;;  %v3541_v62 = vld [vmem:[%s3978_s16 + $0x480] sm:$0xff] }
 0x1b1   : > { %7417 = vst [vmem:[#allocation86_spill] sm:$0xff] %v6124_v1  ;;  %v1403_v1 = vmax.f32 %v1355_v22, 0.0  ;;  %v6153_v34 = vadd.f32 %v2487_v24, %v7419_v52  ;;  %v2748_v33 = vrot.slane %v2634_v35, 1  ;;  %2048 = vperm.xlu2 %3682, %v3652_v25   ;;  %v6158_v58 = vmul.f32 %v5938_v53, %v5732_v4  ;;  %2038 = vperm.xlu0 %3680, %v3650_v47   ;;  %v7424_v52 = vld [vmem:[#allocation94_spill] sm:$0xff]  ;;  %v7429_v47 = vld [vmem:[#allocation3_spill] sm:$0xff] }
 0x1b2   : > { %7418 = vst [vmem:[#allocation120_spill] sm:$0xff] %v6149_v13  ;;  %v2746_v60 = vrot.slane %v2633_v10, 1  ;;  %v6162_v57 = vmul.f32 %v5938_v53, %v5478_v51  ;;  %v6166_v22 = vmul.f32 %v5938_v53, %v7422_v11  ;;  %2043 = vperm.xlu1 %3681, %v3651_v23   ;;  %v6170_v19 = vmul.f32 %v5938_v53, %v7424_v52  ;;  %v3464_v4 = vld [vmem:[%s3978_s16 + $0x320] sm:$0xff]  ;;  %v1624_v52 = vpop.permute.xlu1 %1623 }
 0x1b3   : > { %7420 = vst [vmem:[#allocation23_spill] sm:$0xff] %v6153_v34  ;;  %v6174_v25 = vmul.f32 %v5938_v53, %v7426_v7  ;;  %v1674_v6 = vpop.permute.xlu2 %1673  ;;  %v1369_v51 = vadd.f32 %v5499_v38, %v1321_v36  ;;  %v3545_v24 = vld [vmem:[%s3978_s16 + $0x4a0] sm:$0xff]  ;;  %v7427_v35 = vrot.slane %v6084_v63, 1  ;;  %v6186_v23 = vmul.f32 %v5938_v53, %v7429_v47  ;;  %v1619_v7 = vpop.permute.xlu0 %1618 }
 0x1b4   : > { %7421 = vst [vmem:[#allocation121_spill] sm:$0xff] %v6158_v58  ;;  %v6188_v11 = vmul.f32 %v1674_v6, %v1414_v37  ;;  %v7431_v34 = vrot.slane %v6022_v44, 1  ;;  %v1358_v47 = vadd.f32 %v5499_v38, %v1310_v9  ;;  %v3534_v37 = vld [vmem:[%s3978_s16 + $0x448] sm:$0x1]  ;;  %v921_v6 = vmul.f32 %v5525_v3, %v3464_v4 }
 0x1b5   : > { %7423 = vst [vmem:[#allocation93_spill] sm:$0xff] %v6166_v22  ;;  %v6182_v10 = vsel %vm2319_vm0, %v2748_v33, %v7427_v35  ;;  %v1359_v22 = vadd.f32 %v5499_v38, %v1311_v14  ;;  %v1741_v33 = vmul.f32 %v1624_v52, %v1404_v30  ;;  %v1740_v35 = vmul.f32 %v1619_v7, %v1403_v1 }
 0x1b6   : > { %7425 = vst [vmem:[#allocation94_spill] sm:$0xff] %v6170_v19  ;;  %v6194_v36 = vsel %vm2319_vm0, %v7431_v34, %v2746_v60  ;;  %v7433_v19 = vld [vmem:[#allocation99_spill] sm:$0xff]  ;;  %v6206_v14 = vmul.f32 %v5457_v28, %v5964_v16  ;;  %v2496_v44 = vmul.f32 %v6130_v2, %v6188_v11  ;;  %v3655_v60 = vld [vmem:[%s7039_s1 + $0x618] sm:$0xff]  ;;  %v1324_v30 = vmul.f32 %v5525_v3, %v3545_v24 }
 0x1b7   : > { %7428 = vst [vmem:[#allocation95_spill] sm:$0xff] %v6182_v10  ;;  %v6198_v13 = vmul.f32 %v5938_v53, %v7433_v19  ;;  %v2489_v1 = vmul.f32 %v6130_v2, %v1741_v33  ;;  %v2637_v9 = vmul.f32 %v5457_v28, %v1741_v33  ;;  %v2636_v34 = vmul.f32 %v5457_v28, %v1740_v35  ;;  %v3654_v16 = vld [vmem:[%s7039_s1 + $0x608] sm:$0xff]  ;;  %v3653_v19 = vld [vmem:[%s7039_s1 + $0x600] sm:$0xff] }
 0x1b8   : > { %7430 = vst [vmem:[#allocation3_spill] sm:$0xff] %v6186_v23  ;;  %v3535_v23 = vld [vmem:[%s3978_s16 + $0x450] sm:$0xff]  ;;  %v1417_v4 = vmax.f32 %v1369_v51, 0.0  ;;  %v6224_v52 = vadd.f32 %v2496_v44, %v5421_v39  ;;  %v1407_v24 = vmax.f32 %v1359_v22, 0.0  ;;  %v1313_v33 = vmul.f32 %v5525_v3, %v3534_v37 }
 0x1b9   : > { %7432 = vst [vmem:[#allocation122_spill] sm:$0xff] %v6194_v36  ;;  %v1314_v7 = vmul.f32 %v5525_v3, %v3535_v23  ;;  %v7436_v36 = vld [vmem:[#allocation29_spill] sm:$0xff]  ;;  %v2753_v10 = vrot.slane %v2637_v9, 1  ;;  %2063 = vperm.xlu2 %3682, %v3655_v60   ;;  %v1406_v58 = vmax.f32 %v1358_v47, 0.0  ;;  %v6233_v51 = vmul.f32 %v5938_v53, %v7438_v45  ;;  %2053 = vperm.xlu0 %3680, %v3653_v19   ;;  %v3596_v37 = vld [vmem:[%s3978_s16 + $0x4d0] sm:$0xff]  ;;  %v3538_v60 = vld [vmem:[%s3978_s16 + $0x468] sm:$0xff] }
 0x1ba   : > { %7434 = vst [vmem:[#allocation99_spill] sm:$0xff] %v6198_v13  ;;  %v6229_v35 = vadd.f32 %v2489_v1, %v7436_v36  ;;  %v2751_v13 = vrot.slane %v2636_v34, 1  ;;  %v955_v39 = vadd.f32 %v5499_v38, %v921_v6  ;;  %v7109_v22 = vrot.slane %v6206_v14, 1  ;;  %2058 = vperm.xlu1 %3681, %v3654_v16   ;;  %v7439_v36 = vld [vmem:[#allocation104_spill] sm:$0xff]  ;;  %v7441_v1 = vld [vmem:[#allocation105_spill] sm:$0xff]  ;;  %v1639_v16 = vpop.permute.xlu1 %1638 }
 0x1bb   : > { %7435 = vst [vmem:[#allocation123_spill] sm:$0xff] %v6224_v52  ;;  %v1372_v23 = vadd.f32 %v5499_v38, %v1324_v30  ;;  %v6241_v44 = vmul.f32 %v5938_v53, %v7439_v36  ;;  %v6245_v47 = vmul.f32 %v5938_v53, %v7441_v1  ;;  %v6249_v45 = vmul.f32 %v5457_v28, %v6043_v5  ;;  %v1689_v6 = vpop.permute.xlu2 %1688  ;;  %v1634_v19 = vpop.permute.xlu0 %1633  ;;  %v7445_v5 = vld [vmem:[#allocation108_spill] sm:$0xff] }
 0x1bc   : > { %7437 = vst [vmem:[#allocation29_spill] sm:$0xff] %v6229_v35  ;;  %v7442_v9 = vrot.slane %v6084_v63, 1  ;;  %v6257_v34 = vmul.f32 %v1689_v6, %v1417_v4  ;;  %v1362_v36 = vadd.f32 %v5499_v38, %v1314_v7  ;;  %v1361_v1 = vadd.f32 %v5499_v38, %v1313_v33  ;;  %v3537_v6 = vld [vmem:[%s3978_s16 + $0x460] sm:$0x1]  ;;  %v3658_v38 = vld [vmem:[%s7039_s1 + $0x638] sm:$0xff] }
 0x1bd   : > { %7440 = vst [vmem:[#allocation100_spill] sm:$0xff] %v6241_v44  ;;  %v6264_v28 = vsel %vm2319_vm0, %v2753_v10, %v7109_v22  ;;  %v6268_v52 = vmul.f32 %v5938_v53, %v7445_v5  ;;  %v1744_v63 = vmul.f32 %v1639_v16, %v1407_v24  ;;  %v1793_v4 = vmul.f32 %v5525_v3, %v3596_v37  ;;  %v3599_v16 = vld [vmem:[%s3978_s16 + $0x4f8] sm:$0xff] }
 0x1be   : > { %v6255_v30 = vsel %vm2319_vm0, %v7442_v9, %v2751_v13  ;;  %7444 = vst [vmem:[#allocation105_spill] sm:$0xff] %v6264_v28  ;;  %v1743_v13 = vmul.f32 %v1634_v19, %v1406_v58  ;;  %v989_v9 = vmax.f32 %v955_v39, 0.0  ;;  %v2498_v7 = vmul.f32 %v6130_v2, %v6257_v34  ;;  %v6283_v58 = vld [vmem:[%s7042_s4 + $0x5] ss:$0 sm:$0xff]  ;;  %v7447_v19 = vld [vmem:[#allocation56_spill] sm:$0xff] }
 0x1bf   : > { %7443 = vst [vmem:[#allocation104_spill] sm:$0xff] %v6255_v30  ;;  %v1420_v10 = vmax.f32 %v1372_v23, 0.0  ;;  %v1317_v33 = vmul.f32 %v5525_v3, %v3538_v60  ;;  %v2491_v24 = vmul.f32 %v6130_v2, %v1744_v63  ;;  %v2640_v39 = vmul.f32 %v6283_v58, %v1744_v63  ;;  %v3657_v23 = vld [vmem:[%s7039_s1 + $0x630] sm:$0xff]  ;;  %v3656_v60 = vld [vmem:[%s7039_s1 + $0x620] sm:$0xff]  ;;  %v7449_v63 = vld [vmem:[#allocation35_spill] sm:$0xff] }
 0x1c0   : > { %7446 = vst [vmem:[#allocation108_spill] sm:$0xff] %v6268_v52  ;;  %v2639_v37 = vmul.f32 %v6283_v58, %v1743_v13  ;;  %v6295_v22 = vadd.f32 %v2498_v7, %v7447_v19  ;;  %v1410_v5 = vmax.f32 %v1362_v36, 0.0  ;;  %v1409_v52 = vmax.f32 %v1361_v1, 0.0  ;;  %v6304_v30 = vld [vmem:[%s7041_s3] ss:$0 sm:$0xff] }
 0x1c1   : > { %v1316_v28 = vmul.f32 %v5525_v3, %v3537_v6  ;;  %v6299_v35 = vadd.f32 %v2491_v24, %v7449_v63  ;;  %v2758_v13 = vrot.slane %v2640_v39, 1  ;;  %2078 = vperm.xlu2 %3682, %v3658_v38   ;;  %v1825_v12 = vadd.f32 %v6304_v30, %v1793_v4  ;;  %v3540_v7 = vld [vmem:[%s3978_s16 + $0x478] sm:$0x1]  ;;  %2068 = vperm.xlu0 %3680, %v3656_v60   ;;  %v7453_v39 = vld [vmem:[#allocation112_spill] sm:$0xff] }
 0x1c2   : > { %7448 = vst [vmem:[#allocation56_spill] sm:$0xff] %v6295_v22  ;;  %v2756_v44 = vrot.slane %v2639_v37, 1  ;;  %v6311_v36 = vmul.f32 %v6283_v58, %v6109_v61  ;;  %2073 = vperm.xlu1 %3681, %v3657_v23   ;;  %v1365_v1 = vadd.f32 %v6304_v30, %v1317_v33  ;;  %v1796_v6 = vmul.f32 %v5525_v3, %v3599_v16  ;;  %v7451_v38 = vld [vmem:[#allocation109_spill] sm:$0xff]  ;;  %v1654_v3 = vpop.permute.xlu1 %1653  ;;  %v6334_v16 = vld [vmem:[%s7040_s2] ss:$0 sm:$0xff] }
 0x1c3   : > { %7450 = vst [vmem:[#allocation35_spill] sm:$0xff] %v6299_v35  ;;  %v6317_v24 = vmul.f32 %v5938_v53, %v7451_v38  ;;  %v6321_v4 = vmul.f32 %v5938_v53, %v7453_v39  ;;  %v1228_v37 = vmul.f32 %v5506_v42, %v989_v9  ;;  %v1704_v19 = vpop.permute.xlu2 %1703  ;;  %v7455_v61 = vrot.slane %v6249_v45, 1  ;;  %v1649_v60 = vpop.permute.xlu0 %1648 }
 0x1c4   : > { %v6329_v33 = vmul.f32 %v1704_v19, %v1420_v10  ;;  %v1320_v63 = vmul.f32 %v6334_v16, %v3541_v62  ;;  %v1319_v42 = vmul.f32 %v6334_v16, %v3540_v7  ;;  %v7457_v9 = vrot.slane %v6206_v14, 1  ;;  %v3544_v14 = vld [vmem:[%s3978_s16 + $0x498] sm:$0xff] }
 0x1c5   : > { %7452 = vst [vmem:[#allocation109_spill] sm:$0xff] %v6317_v24  ;;  %v6327_v23 = vsel %vm2319_vm0, %v2758_v13, %v7455_v61  ;;  %v1747_v10 = vmul.f32 %v1654_v3, %v1410_v5  ;;  %v1746_v38 = vmul.f32 %v1649_v60, %v1409_v52  ;;  %v1857_v39 = vmax.f32 %v1825_v12, 0.0  ;;  %v3602_v61 = vld [vmem:[%s3978_s16 + $0x518] sm:$0xff]  ;;  %v3543_v5 = vld [vmem:[%s3978_s16 + $0x490] sm:$0x1] }
 0x1c6   : > { %7454 = vst [vmem:[#allocation112_spill] sm:$0xff] %v6321_v4  ;;  %v6341_v13 = vsel %vm2319_vm0, %v7457_v9, %v2756_v44  ;;  %v1364_v19 = vadd.f32 %v6304_v30, %v1316_v28  ;;  %v2500_v4 = vmul.f32 %v6130_v2, %v6329_v33  ;;  %v1413_v62 = vmax.f32 %v1365_v1, 0.0 }
 0x1c7   : > { %7456 = vst [vmem:[#allocation124_spill] sm:$0xff] %v6327_v23  ;;  %v6349_v7 = vadd.f32 %v6304_v30, %v1796_v6  ;;  %v6354_v44 = vmul.f32 %v6283_v58, %v6188_v11  ;;  %v2493_v12 = vmul.f32 %v6130_v2, %v1747_v10  ;;  %v2643_v52 = vmul.f32 %v6283_v58, %v1747_v10  ;;  %v7460_v11 = vld [vmem:[#allocation55_spill] sm:$0xff]  ;;  %v7462_v23 = vld [vmem:[#allocation46_spill] sm:$0xff] }
 0x1c8   : > { %7458 = vst [vmem:[#allocation125_spill] sm:$0xff] %v6341_v13  ;;  %v2642_v28 = vmul.f32 %v6283_v58, %v1746_v38  ;;  %v6361_v3 = vadd.f32 %v2500_v4, %v5489_v17  ;;  %v6364_v1 = vadd.f32 %v6304_v30, %v1320_v63  ;;  %v6367_v6 = vadd.f32 %v6304_v30, %v1319_v42  ;;  %v3605_v38 = vld [vmem:[%s3978_s16 + $0x540] sm:$0xff]  ;;  %v7464_v4 = vld [vmem:[#allocation57_spill] sm:$0xff] }
 0x1c9   : > { %v1799_v60 = vmul.f32 %v6334_v16, %v3602_v61  ;;  %v6371_v9 = vadd.f32 %v2493_v12, %v7460_v11  ;;  %v2763_v22 = vrot.slane %v2643_v52, 1  ;;  %v1323_v10 = vmul.f32 %v6334_v16, %v3544_v14  ;;  %v6386_v42 = vld [vmem:[%s7042_s4 + $0x4] ss:$0 sm:$0xff]  ;;  %v3546_v52 = vld [vmem:[%s3978_s16 + $0x4a8] sm:$0x1] }
 0x1ca   : > { %7459 = vst [vmem:[#allocation126_spill] sm:$0xff] %v6361_v3  ;;  %v2761_v13 = vrot.slane %v2642_v28, 1  ;;  %v6377_v17 = vmul.f32 %v5938_v53, %v7462_v23  ;;  %v6381_v63 = vmul.f32 %v5938_v53, %v7464_v4  ;;  %v1412_v61 = vmax.f32 %v1364_v19, 0.0  ;;  %v1669_v3 = vpop.permute.xlu1 %1668 }
 0x1cb   : > { %7461 = vst [vmem:[#allocation55_spill] sm:$0xff] %v6371_v9  ;;  %v1322_v12 = vmul.f32 %v6334_v16, %v3543_v5  ;;  %v6390_v14 = vmul.f32 %v5938_v53, %v1228_v37  ;;  %v1929_v23 = vpop.permute.xlu2 %1928  ;;  %v1860_v28 = vmax.f32 %v6349_v7, 0.0  ;;  %v7467_v11 = vrot.slane %v6311_v36, 1  ;;  %v1664_v19 = vpop.permute.xlu0 %1663  ;;  %v3595_v37 = vld [vmem:[%s3978_s16 + $0x4c8] sm:$0xff] }
 0x1cc   : > { %7463 = vst [vmem:[#allocation46_spill] sm:$0xff] %v6377_v17  ;;  %v2082_v9 = vmul.f32 %v1929_v23, %v1857_v39  ;;  %v6400_v5 = vadd.f32 %v6304_v30, %v1799_v60  ;;  %v1802_v53 = vmul.f32 %v6334_v16, %v3605_v38  ;;  %v1415_v39 = vmax.f32 %v6367_v6, 0.0 }
 0x1cd   : > { %7465 = vst [vmem:[#allocation57_spill] sm:$0xff] %v6381_v63  ;;  %v6397_v4 = vsel %vm2319_vm0, %v2763_v22, %v7467_v11  ;;  %v1750_v63 = vmul.f32 %v1669_v3, %v1413_v62  ;;  %v1416_v22 = vmax.f32 %v6364_v1, 0.0  ;;  %v6413_v23 = vadd.f32 %v6304_v30, %v1323_v10  ;;  %v3608_v11 = vld [vmem:[%s3978_s16 + $0x560] sm:$0xff] }
 0x1ce   : > { %7466 = vst [vmem:[#allocation127_spill] sm:$0xff] %v6390_v14  ;;  %v7469_v14 = vrot.slane %v6249_v45, 1  ;;  %v6418_v60 = vmul.f32 %v6283_v58, %v6257_v34  ;;  %v2539_v38 = vmul.f32 %v6386_v42, %v2082_v9  ;;  %v6422_v45 = vadd.f32 %v6304_v30, %v1322_v12  ;;  %v3597_v62 = vld [vmem:[%s3978_s16 + $0x4e0] sm:$0xff]  ;;  %v7472_v12 = vld [vmem:[#allocation48_spill] sm:$0xff] }
 0x1cf   : > { %7468 = vst [vmem:[#allocation128_spill] sm:$0xff] %v6397_v4  ;;  %v1749_v4 = vmul.f32 %v1664_v19, %v1412_v61  ;;  %v2495_v3 = vmul.f32 %v6130_v2, %v1750_v63  ;;  %v2646_v1 = vmul.f32 %v6283_v58, %v1750_v63  ;;  %v1792_v6 = vmul.f32 %v6334_v16, %v3595_v37 }
 0x1d0   : > { %v6408_v7 = vsel %vm2319_vm0, %v7469_v14, %v2761_v13  ;;  %v3598_v13 = vld [vmem:[%s3978_s16 + $0x4e8] sm:$0xff]  ;;  %v1325_v10 = vmul.f32 %v6334_v16, %v3546_v52  ;;  %v7471_v14 = vld [vmem:[#allocation54_spill] sm:$0xff]  ;;  %v6433_v9 = vadd.f32 %v6304_v30, %v1802_v53  ;;  %v1805_v61 = vmul.f32 %v6334_v16, %v3608_v11 }
 0x1d1   : > { %7470 = vst [vmem:[#allocation129_spill] sm:$0xff] %v6408_v7  ;;  %v2571_v34 = vadd.f32 %v2539_v38, %v7471_v14  ;;  %v6437_v19 = vadd.f32 %v2495_v3, %v7472_v12  ;;  %v2768_v17 = vrot.slane %v2646_v1, 1  ;;  %v1795_v63 = vmul.f32 %v6334_v16, %v3598_v13  ;;  %v3601_v7 = vld [vmem:[%s3978_s16 + $0x510] sm:$0xff] }
 0x1d2   : > { %v1794_v37 = vmul.f32 %v6334_v16, %v3597_v62  ;;  %v2645_v53 = vmul.f32 %v6283_v58, %v1749_v4  ;;  %v1419_v14 = vmax.f32 %v6413_v23, 0.0  ;;  %v6448_v11 = vmul.f32 %v6283_v58, %v6329_v33  ;;  %v1684_v23 = vpop.permute.xlu1 %1683 }
 0x1d3   : > { %7473 = vst [vmem:[#allocation54_spill] sm:$0xff] %v6437_v19  ;;  %v2816_v38 = vadd.f32 %v5616_v41, %v2571_v34  ;;  %v1944_v3 = vpop.permute.xlu2 %1943  ;;  %v1418_v13 = vmax.f32 %v6422_v45, 0.0  ;;  %v6452_v62 = vadd.f32 %v6304_v30, %v1792_v6  ;;  %v6455_v1 = vadd.f32 %v6304_v30, %v1325_v10  ;;  %v3611_v41 = vld [vmem:[%s3978_s16 + $0x588] sm:$0xff]  ;;  %v7474_v34 = vld [vmem:[#allocation53_spill] sm:$0xff]  ;;  %v1679_v52 = vpop.permute.xlu0 %1678  ;;  %v3600_v19 = vld [vmem:[%s3978_s16 + $0x500] sm:$0xff] }
 0x1d4   : > { %v2085_v12 = vmul.f32 %v1944_v3, %v1860_v28  ;;  %v7475_v45 = vrot.slane %v6354_v44, 1  ;;  %v1752_v10 = vmul.f32 %v1679_v52, %v1415_v39  ;;  %v6468_v35 = vadd.f32 %v6304_v30, %v1805_v61 }
 0x1d5   : > { %v2885_v4 = vadd.f32 %v7474_v34, %v2816_v38  ;;  %v6471_v24 = vadd.f32 %v6304_v30, %v1795_v63  ;;  %v6474_v28 = vadd.f32 %v6304_v30, %v1794_v37  ;;  %v6479_v38 = vld [vmem:[%s7043_s5] ss:$0 sm:$0xff]  ;;  %v2766_v39 = vrot.slane %v2645_v53, 1 }
 0x1d6   : > { %v6465_v6 = vsel %vm2319_vm0, %v2768_v17, %v7475_v45  ;;  %v2542_v61 = vmul.f32 %v6386_v42, %v2085_v12  ;;  %v1808_v63 = vmul.f32 %v6334_v16, %v3611_v41  ;;  %v1753_v52 = vmul.f32 %v1684_v23, %v1416_v22  ;;  %v7477_v53 = vld [vmem:[#allocation70_spill] sm:$0xff] }
 0x1d7   : > { %7476 = vst [vmem:[#allocation48_spill] sm:$0xff] %v6465_v6  ;;  %v2954_v17 = vadd.f32 %v6089_v46, %v2885_v4  ;;  %v2648_v37 = vmul.f32 %v6283_v58, %v1752_v10  ;;  %v1798_v3 = vmul.f32 %v6334_v16, %v3601_v7  ;;  %v1797_v34 = vmul.f32 %v6334_v16, %v3600_v19  ;;  %v6496_v46 = vld [vmem:[%s7044_s6] ss:$0 sm:$0xff]  ;;  %v3603_v6 = vld [vmem:[%s3978_s16 + $0x528] sm:$0xff] }
 0x1d8   : > { %v2574_v12 = vadd.f32 %v2542_v61, %v5659_v20  ;;  %v7478_v20 = vrot.slane %v6311_v36, 1  ;;  %v6516_v7 = vadd.f32 %v6304_v30, %v1808_v63  ;;  %v7482_v63 = vrot.slane %v6354_v44, 1 }
 0x1d9   : > { %v3199_v4 = vadd.f32 %v7477_v53, %v2954_v17  ;;  %v2771_v41 = vrot.slane %v2648_v37, 1  ;;  %v3614_v53 = vld [vmem:[%s3978_s16 + $0x5a8] sm:$0xff]  ;;  %v2497_v37 = vmul.f32 %v6130_v2, %v1753_v52  ;;  %v6519_v19 = vadd.f32 %v6304_v30, %v1798_v3  ;;  %v7480_v17 = vld [vmem:[#allocation85_spill] sm:$0xff] }
 0x1da   : > { %v2819_v33 = vadd.f32 %v5681_v18, %v2574_v12  ;;  %v6512_v61 = vsel %vm2319_vm0, %v7478_v20, %v2766_v39  ;;  %v3604_v18 = vld [vmem:[%s3978_s16 + $0x530] sm:$0xff]  ;;  %v7481_v39 = vmax.f32 %v6400_v5, 0.0  ;;  %v1699_v22 = vpop.permute.xlu1 %1698  ;;  %v2649_v3 = vmul.f32 %v6283_v58, %v1753_v52 }
 0x1db   : > { %v3235_v10 = vmul.f32 %v6479_v38, %v3199_v4  ;;  %7479 = vst [vmem:[#allocation53_spill] sm:$0xff] %v6512_v61  ;;  %v1959_v23 = vpop.permute.xlu2 %1958  ;;  %v6522_v4 = vadd.f32 %v6304_v30, %v1797_v34  ;;  %v1694_v45 = vpop.permute.xlu0 %1693  ;;  %v6533_v61 = vsel %vm2319_vm0, %v7482_v63, %v2771_v41  ;;  %v1811_v5 = vmul.f32 %v6334_v16, %v3614_v53 }
 0x1dc   : > { %v2888_v36 = vadd.f32 %v7480_v17, %v2819_v33  ;;  %v2088_v20 = vmul.f32 %v1959_v23, %v7481_v39  ;;  %v1756_v33 = vmul.f32 %v1699_v22, %v1419_v14  ;;  %v1755_v34 = vmul.f32 %v1694_v45, %v1418_v13  ;;  %v7483_v13 = vld [vmem:[#allocation89_spill] sm:$0xff] }
 0x1dd   : > { %v3271_v12 = vadd.f32 %v6496_v46, %v3235_v10  ;;  %v1801_v41 = vmul.f32 %v6334_v16, %v3604_v18  ;;  %v1800_v14 = vmul.f32 %v6334_v16, %v3603_v6  ;;  %v1872_v45 = vmax.f32 %v6516_v7, 0.0 }
 0x1de   : > { %v2957_v10 = vadd.f32 %v6116_v59, %v2888_v36  ;;  %v2545_v44 = vmul.f32 %v6386_v42, %v2088_v20  ;;  %v2499_v17 = vmul.f32 %v6130_v2, %v1756_v33  ;;  %v2652_v39 = vmul.f32 %v6283_v58, %v1756_v33 }
 0x1df   : > { %v3303_v23 = vmax.f32 %v3271_v12, 0.0  ;;  %v2651_v63 = vmul.f32 %v6283_v58, %v1755_v34  ;;  %v2773_v2 = vrot.slane %v2649_v3, 1  ;;  %v6561_v20 = vadd.f32 %v6304_v30, %v1811_v5  ;;  %v3607_v34 = vld [vmem:[%s3978_s16 + $0x558] sm:$0xff] }
 0x1e0   : > { %v3202_v52 = vadd.f32 %v7483_v13, %v2957_v10  ;;  %v2577_v59 = vadd.f32 %v2545_v44, %v5540_v54  ;;  %v6556_v53 = vadd.f32 %v2499_v17, %v5492_v43  ;;  %v2778_v18 = vrot.slane %v2652_v39, 1  ;;  %v3617_v54 = vld [vmem:[%s3978_s16 + $0x5d0] sm:$0xff] }
 0x1e1   : > { %3336 = vst.msk [vmem:[%s6538_s8 + $0x8] sm:$0xff] %vm3334_vm1, %v3303_v23  ;;  %v2776_v12 = vrot.slane %v2651_v63, 1  ;;  %v6564_v33 = vadd.f32 %v6304_v30, %v1801_v41  ;;  %v3606_v23 = vld [vmem:[%s3978_s16 + $0x548] sm:$0xff]  ;;  %v6570_v3 = vadd.f32 %v6304_v30, %v1800_v14  ;;  %v1814_v43 = vmul.f32 %v6334_v16, %v3617_v54 }
 0x1e2   : > { %v3238_v36 = vmul.f32 %v6479_v38, %v3202_v52  ;;  %v2822_v6 = vadd.f32 %v5802_v15, %v2577_v59  ;;  %v1804_v44 = vmul.f32 %v6334_v16, %v3607_v34  ;;  %v7484_v17 = vrot.slane %v6448_v11, 1  ;;  %v7485_v41 = vld [vmem:[#allocation91_spill] sm:$0xff]  ;;  %v1924_v52 = vpop.permute.xlu1 %1923 }
 0x1e3   : > { %v1974_v10 = vpop.permute.xlu2 %1973  ;;  %v7486_v63 = vmax.f32 %v6433_v9, 0.0  ;;  %v1709_v14 = vpop.permute.xlu0 %1708  ;;  %v7487_v59 = vrot.slane %v6418_v60, 1  ;;  %v7488_v34 = vmax.f32 %v6452_v62, 0.0  ;;  %v1803_v9 = vmul.f32 %v6334_v16, %v3606_v23 }
 0x1e4   : > { %v6577_v15 = vsel %vm2319_vm0, %v2778_v18, %v7484_v17  ;;  %v3274_v5 = vadd.f32 %v6496_v46, %v3238_v36  ;;  %v2891_v39 = vadd.f32 %v7485_v41, %v2822_v6  ;;  %v7489_v18 = vmax.f32 %v6455_v1, 0.0 }
 0x1e5   : > { %v2091_v13 = vmul.f32 %v1974_v10, %v7486_v63  ;;  %v6586_v54 = vsel %vm2319_vm0, %v7487_v59, %v2776_v12  ;;  %v2081_v22 = vmul.f32 %v1924_v52, %v7488_v34  ;;  %v6593_v36 = vadd.f32 %v6304_v30, %v1814_v43  ;;  %v7490_v12 = vld [vmem:[#allocation43_spill] sm:$0xff]  ;;  %v7495_v34 = vld [vmem:[#allocation73_spill] sm:$0xff] }
 0x1e6   : > { %v1758_v17 = vmul.f32 %v1709_v14, %v7489_v18  ;;  %v3306_v6 = vmax.f32 %v3274_v5, 0.0  ;;  %v2960_v10 = vadd.f32 %v6162_v57, %v2891_v39  ;;  %v6599_v63 = vadd.f32 %v6304_v30, %v1804_v44  ;;  %v7491_v57 = vld [vmem:[#allocation98_spill] sm:$0xff]  ;;  %v3620_v18 = vld [vmem:[%s3978_s16 + $0x5f0] sm:$0xff] }
 0x1e7   : > { %v2548_v41 = vmul.f32 %v6386_v42, %v2091_v13  ;;  %v6602_v59 = vadd.f32 %v2497_v37, %v7490_v12  ;;  %v2538_v62 = vmul.f32 %v6386_v42, %v2081_v22  ;;  %v1861_v43 = vmax.f32 %v6522_v4, 0.0  ;;  %v7509_v4 = vld [vmem:[#allocation82_spill] sm:$0xff] }
 0x1e8   : > { %v2654_v1 = vmul.f32 %v6283_v58, %v1758_v17  ;;  %3339 = vst.msk [vmem:[%s6538_s8 + $0x20] sm:$0xff] %vm3334_vm1, %v3306_v6  ;;  %v3205_v23 = vadd.f32 %v7491_v57, %v2960_v10  ;;  %v1875_v44 = vmax.f32 %v6561_v20, 0.0  ;;  %v7492_v37 = vrot.slane %v6418_v60, 1  ;;  %v3609_v17 = vld [vmem:[%s3978_s16 + $0x570] sm:$0xff]  ;;  %v7493_v6 = vld [vmem:[#allocation74_spill] sm:$0xff] }
 0x1e9   : > { %v2580_v5 = vadd.f32 %v2548_v41, %v5850_v49  ;;  %v2570_v22 = vadd.f32 %v2538_v62, %v5544_v27  ;;  %v1865_v58 = vmax.f32 %v6564_v33, 0.0  ;;  %v1864_v13 = vmax.f32 %v6570_v3, 0.0  ;;  %v7517_v33 = vld [vmem:[#allocation24_spill] sm:$0xff] }
 0x1ea   : > { %v6615_v39 = vsel %vm2319_vm0, %v2773_v2, %v7492_v37  ;;  %v6621_v52 = vadd.f32 %v6304_v30, %v1803_v9  ;;  %v3241_v14 = vmul.f32 %v6479_v38, %v3205_v23  ;;  %v3610_v2 = vld [vmem:[%s3978_s16 + $0x578] sm:$0xff]  ;;  %v2781_v10 = vrot.slane %v2654_v1, 1 }
 0x1eb   : > { %v2825_v49 = vadd.f32 %v5874_v55, %v2580_v5  ;;  %v2815_v27 = vadd.f32 %v7493_v6, %v2570_v22  ;;  %v1989_v41 = vpop.permute.xlu2 %1988  ;;  %v1817_v12 = vmul.f32 %v6334_v16, %v3620_v18  ;;  %v1807_v9 = vmul.f32 %v6334_v16, %v3610_v2  ;;  %v1939_v5 = vpop.permute.xlu1 %1938 }
 0x1ec   : > { %v3277_v62 = vadd.f32 %v6496_v46, %v3241_v14  ;;  %v7494_v55 = vmax.f32 %v6468_v35, 0.0  ;;  %v1934_v37 = vpop.permute.xlu0 %1933  ;;  %v1806_v60 = vmul.f32 %v6334_v16, %v3609_v17  ;;  %v7496_v1 = vmax.f32 %v6471_v24, 0.0 }
 0x1ed   : > { %v2894_v57 = vadd.f32 %v5822_v31, %v2825_v49  ;;  %v2884_v22 = vadd.f32 %v7495_v34, %v2815_v27  ;;  %v7497_v18 = vmax.f32 %v6474_v28, 0.0  ;;  %v6644_v14 = vadd.f32 %v6304_v30, %v1817_v12  ;;  %v7498_v27 = vld [vmem:[#allocation8_spill] sm:$0xff] }
 0x1ee   : > { %v2094_v23 = vmul.f32 %v1989_v41, %v7494_v55  ;;  %v2084_v6 = vmul.f32 %v1939_v5, %v7496_v1  ;;  %v3309_v31 = vmax.f32 %v3277_v62, 0.0  ;;  %v6649_v41 = vadd.f32 %v6304_v30, %v1807_v9 }
 0x1ef   : > { %v2083_v2 = vmul.f32 %v1934_v37, %v7497_v18  ;;  %v2963_v35 = vadd.f32 %v6174_v25, %v2894_v57  ;;  %v2953_v17 = vadd.f32 %v5979_v8, %v2884_v22  ;;  %v1867_v28 = vmax.f32 %v6621_v52, 0.0  ;;  %v7500_v57 = vld [vmem:[#allocation75_spill] sm:$0xff]  ;;  %v7502_v37 = vld [vmem:[#allocation62_spill] sm:$0xff] }
 0x1f0   : > { %v2551_v49 = vmul.f32 %v6386_v42, %v2094_v23  ;;  %v2541_v34 = vmul.f32 %v6386_v42, %v2084_v6  ;;  %3342 = vst.msk [vmem:[%s6538_s8 + $0x38] sm:$0xff] %vm3334_vm1, %v3309_v31  ;;  %v6660_v62 = vadd.f32 %v6304_v30, %v1806_v60  ;;  %v7499_v9 = vrot.slane %v6448_v11, 1  ;;  %v7501_v23 = vld [vmem:[#allocation40_spill] sm:$0xff]  ;;  %v3623_v11 = vld [vmem:[%s3978_s16 + $0x618] sm:$0xff] }
 0x1f1   : > { %v2540_v24 = vmul.f32 %v6386_v42, %v2083_v2  ;;  %v3208_v12 = vadd.f32 %v7498_v27, %v2963_v35  ;;  %v3198_v55 = vadd.f32 %v7500_v57, %v2953_v17  ;;  %v1881_v1 = vmax.f32 %v6644_v14, 0.0  ;;  %v3613_v2 = vld [vmem:[%s3978_s16 + $0x5a0] sm:$0xff]  ;;  %v7503_v31 = vld [vmem:[#allocation77_spill] sm:$0xff] }
 0x1f2   : > { %v2583_v25 = vadd.f32 %v2551_v49, %v5715_v0  ;;  %v6665_v8 = vsel %vm2319_vm0, %v7499_v9, %v2781_v10  ;;  %v2573_v5 = vadd.f32 %v2541_v34, %v7501_v23  ;;  %v1871_v60 = vmax.f32 %v6649_v41, 0.0  ;;  %v7504_v49 = vld [vmem:[#allocation63_spill] sm:$0xff]  ;;  %v7548_v41 = vld [vmem:[#allocation4_spill] sm:$0xff] }
 0x1f3   : > { %v2572_v22 = vadd.f32 %v2540_v24, %v7502_v37  ;;  %v3244_v6 = vmul.f32 %v6479_v38, %v3208_v12  ;;  %v1870_v18 = vmax.f32 %v6660_v62, 0.0  ;;  %v3234_v10 = vmul.f32 %v6479_v38, %v3198_v55  ;;  %v2004_v34 = vpop.permute.xlu2 %2003  ;;  %v7505_v23 = vld [vmem:[#allocation79_spill] sm:$0xff]  ;;  %v7506_v37 = vld [vmem:[#allocation80_spill] sm:$0xff] }
 0x1f4   : > { %v2828_v0 = vadd.f32 %v6028_v21, %v2583_v25  ;;  %v2818_v35 = vadd.f32 %v7503_v31, %v2573_v5  ;;  %v1820_v24 = vmul.f32 %v6334_v16, %v3623_v11  ;;  %v2097_v21 = vmul.f32 %v2004_v34, %v1872_v45  ;;  %v1954_v25 = vpop.permute.xlu1 %1953  ;;  %v1949_v9 = vpop.permute.xlu0 %1948 }
 0x1f5   : > { %v2817_v17 = vadd.f32 %v7504_v49, %v2572_v22  ;;  %v3280_v27 = vadd.f32 %v6496_v46, %v3244_v6  ;;  %v1810_v57 = vmul.f32 %v6334_v16, %v3613_v2  ;;  %v3270_v55 = vadd.f32 %v6496_v46, %v3234_v10  ;;  %v7508_v49 = vld [vmem:[#allocation13_spill] sm:$0xff] }
 0x1f6   : > { %v2897_v12 = vadd.f32 %v5826_v40, %v2828_v0  ;;  %v2887_v5 = vadd.f32 %v7505_v23, %v2818_v35  ;;  %v7507_v11 = vmax.f32 %v6519_v19, 0.0  ;;  %v2554_v7 = vmul.f32 %v6386_v42, %v2097_v21 }
 0x1f7   : > { %v2886_v22 = vadd.f32 %v7506_v37, %v2817_v17  ;;  %v3312_v31 = vmax.f32 %v3280_v27, 0.0  ;;  %v2086_v45 = vmul.f32 %v1949_v9, %v1861_v43  ;;  %v3302_v0 = vmax.f32 %v3270_v55, 0.0 }
 0x1f8   : > { %v2087_v6 = vmul.f32 %v1954_v25, %v7507_v11  ;;  %v2966_v40 = vadd.f32 %v6233_v51, %v2897_v12  ;;  %v2956_v2 = vadd.f32 %v6008_v26, %v2887_v5  ;;  %v2586_v17 = vadd.f32 %v2554_v7, %v6076_v29  ;;  %v7510_v26 = vld [vmem:[#allocation83_spill] sm:$0xff]  ;;  %v7511_v25 = vld [vmem:[#allocation113_spill] sm:$0xff]  ;;  %v7512_v5 = vld [vmem:[#allocation106_spill] sm:$0xff] }
 0x1f9   : > { %v2955_v10 = vadd.f32 %v6080_v56, %v2886_v22  ;;  %3345 = vst.msk [vmem:[%s6538_s8 + $0x50] sm:$0xff] %vm3334_vm1, %v3312_v31  ;;  %v2543_v51 = vmul.f32 %v6386_v42, %v2086_v45  ;;  %v6704_v34 = vadd.f32 %v6304_v30, %v1820_v24  ;;  %v6712_v12 = vadd.f32 %v6304_v30, %v1810_v57  ;;  %v7513_v11 = vld [vmem:[#allocation19_spill] sm:$0xff] }
 0x1fa   : > { %v2544_v35 = vmul.f32 %v6386_v42, %v2087_v6  ;;  %v3211_v19 = vadd.f32 %v7508_v49, %v2966_v40  ;;  %3335 = vst.msk [vmem:[%s6538_s8] sm:$0xff] %vm3334_vm1, %v3302_v0  ;;  %v3201_v43 = vadd.f32 %v7509_v4, %v2956_v2  ;;  %v2831_v29 = vadd.f32 %v6098_v32, %v2586_v17  ;;  %v7514_v32 = vld [vmem:[#allocation96_spill] sm:$0xff] }
 0x1fb   : > { %v3200_v27 = vadd.f32 %v7510_v26, %v2955_v10  ;;  %v2575_v9 = vadd.f32 %v2543_v51, %v7511_v25  ;;  %v1884_v24 = vmax.f32 %v6704_v34, 0.0  ;;  %v2019_v22 = vpop.permute.xlu2 %2018  ;;  %v7515_v10 = vld [vmem:[#allocation92_spill] sm:$0xff] }
 0x1fc   : > { %v2576_v56 = vadd.f32 %v2544_v35, %v5718_v50  ;;  %v3247_v21 = vmul.f32 %v6479_v38, %v3211_v19  ;;  %v3237_v55 = vmul.f32 %v6479_v38, %v3201_v43  ;;  %v1874_v50 = vmax.f32 %v6712_v12, 0.0  ;;  %v1969_v7 = vpop.permute.xlu1 %1968  ;;  %v1964_v45 = vpop.permute.xlu0 %1963  ;;  %v7516_v51 = vld [vmem:[#allocation84_spill] sm:$0xff]  ;;  %v3626_v43 = vld [vmem:[%s3978_s16 + $0x638] sm:$0xff] }
 0x1fd   : > { %v3236_v23 = vmul.f32 %v6479_v38, %v3200_v27  ;;  %v2900_v6 = vadd.f32 %v7513_v11, %v2831_v29  ;;  %v2820_v31 = vadd.f32 %v7514_v32, %v2575_v9  ;;  %v2100_v40 = vmul.f32 %v2019_v22, %v1875_v44  ;;  %v3612_v44 = vld [vmem:[%s3978_s16 + $0x590] sm:$0xff]  ;;  %v7518_v29 = vld [vmem:[#allocation78_spill] sm:$0xff]  ;;  %v7563_v12 = vld [vmem:[#allocation49_spill] sm:$0xff] }
 0x1fe   : > { %v2821_v37 = vadd.f32 %v7512_v5, %v2576_v56  ;;  %v3283_v57 = vadd.f32 %v6496_v46, %v3247_v21  ;;  %v3273_v0 = vadd.f32 %v6496_v46, %v3237_v55  ;;  %v2090_v49 = vmul.f32 %v1969_v7, %v1865_v58  ;;  %v7524_v7 = vld [vmem:[#allocation14_spill] sm:$0xff] }
 0x1ff   : > { %v3272_v2 = vadd.f32 %v6496_v46, %v3236_v23  ;;  %v2969_v17 = vadd.f32 %v6245_v47, %v2900_v6  ;;  %v2889_v4 = vadd.f32 %v7516_v51, %v2820_v31  ;;  %v2557_v20 = vmul.f32 %v6386_v42, %v2100_v40  ;;  %v7519_v47 = vld [vmem:[#allocation26_spill] sm:$0xff]  ;;  %v7520_v23 = vld [vmem:[#allocation101_spill] sm:$0xff]  ;;  %v7523_v31 = vld [vmem:[#allocation104_spill] sm:$0xff] }
 0x200   : > { %v2890_v35 = vadd.f32 %v7515_v10, %v2821_v37  ;;  %v3315_v19 = vmax.f32 %v3283_v57, 0.0  ;;  %v3305_v26 = vmax.f32 %v3273_v0, 0.0  ;;  %v2547_v21 = vmul.f32 %v6386_v42, %v2090_v49  ;;  %v7521_v37 = vld [vmem:[#allocation72_spill] sm:$0xff]  ;;  %v7522_v6 = vld [vmem:[#allocation90_spill] sm:$0xff] }
 0x201   : > { %v3304_v27 = vmax.f32 %v3272_v2, 0.0  ;;  %v3214_v58 = vadd.f32 %v7517_v33, %v2969_v17  ;;  %v2958_v25 = vadd.f32 %v7518_v29, %v2889_v4  ;;  %v2589_v9 = vadd.f32 %v2557_v20, %v7519_v47  ;;  %v7526_v51 = vld [vmem:[#allocation6_spill] sm:$0xff]  ;;  %v7530_v47 = vld [vmem:[#allocation109_spill] sm:$0xff] }
 0x202   : > { %v2959_v56 = vadd.f32 %v6017_v48, %v2890_v35  ;;  %3348 = vst.msk [vmem:[%s6538_s8 + $0x68] sm:$0xff] %vm3334_vm1, %v3315_v19  ;;  %v2089_v55 = vmul.f32 %v1964_v45, %v1864_v13  ;;  %v2579_v22 = vadd.f32 %v2547_v21, %v7521_v37  ;;  %v1809_v48 = vmul.f32 %v6334_v16, %v3612_v44  ;;  %v7525_v19 = vld [vmem:[#allocation20_spill] sm:$0xff]  ;;  %v7532_v37 = vld [vmem:[#allocation118_spill] sm:$0xff] }
 0x203   : > { %3338 = vst.msk [vmem:[%s6538_s8 + $0x18] sm:$0xff] %vm3334_vm1, %v3305_v26  ;;  %v1823_v57 = vmul.f32 %v6334_v16, %v3626_v43  ;;  %v3250_v11 = vmul.f32 %v6479_v38, %v3214_v58  ;;  %v3203_v32 = vadd.f32 %v7522_v6, %v2958_v25  ;;  %v2834_v40 = vadd.f32 %v7523_v31, %v2589_v9  ;;  %v2034_v0 = vpop.permute.xlu2 %2033  ;;  %v7527_v26 = vld [vmem:[#allocation102_spill] sm:$0xff] }
 0x204   : > { %v3204_v5 = vadd.f32 %v7520_v23, %v2959_v56  ;;  %3337 = vst.msk [vmem:[%s6538_s8 + $0x10] sm:$0xff] %vm3334_vm1, %v3304_v27  ;;  %v2546_v3 = vmul.f32 %v6386_v42, %v2089_v55  ;;  %v2824_v45 = vadd.f32 %v7524_v7, %v2579_v22  ;;  %v6761_v2 = vadd.f32 %v6304_v30, %v1809_v48  ;;  %v1984_v20 = vpop.permute.xlu1 %1983  ;;  %v1979_v44 = vpop.permute.xlu0 %1978  ;;  %v7531_v55 = vld [vmem:[#allocation97_spill] sm:$0xff]  ;;  %v7534_v6 = vld [vmem:[#allocation2_spill] sm:$0xff]  ;;  %v7536_v7 = vld [vmem:[#allocation35_spill] sm:$0xff] }
 0x205   : > { %v6764_v10 = vadd.f32 %v6304_v30, %v1823_v57  ;;  %v3286_v35 = vadd.f32 %v6496_v46, %v3250_v11  ;;  %v3239_v49 = vmul.f32 %v6479_v38, %v3203_v32  ;;  %v2903_v17 = vadd.f32 %v7525_v19, %v2834_v40  ;;  %v7533_v57 = vld [vmem:[#allocation30_spill] sm:$0xff] }
 0x206   : > { %v3240_v13 = vmul.f32 %v6479_v38, %v3204_v5  ;;  %v2578_v4 = vadd.f32 %v2546_v3, %v7526_v51  ;;  %v2893_v27 = vadd.f32 %v7527_v26, %v2824_v45  ;;  %v7528_v56 = vmax.f32 %v6593_v36, 0.0  ;;  %v3616_v40 = vld [vmem:[%s3978_s16 + $0x5c0] sm:$0xff]  ;;  %v7535_v3 = vld [vmem:[#allocation87_spill] sm:$0xff] }
 0x207   : > { %v7529_v33 = vmax.f32 %v6599_v63, 0.0  ;;  %v3318_v29 = vmax.f32 %v3286_v35, 0.0  ;;  %v3275_v25 = vadd.f32 %v6496_v46, %v3239_v49  ;;  %v2972_v9 = vadd.f32 %v7530_v47, %v2903_v17  ;;  %v7538_v17 = vld [vmem:[#allocation121_spill] sm:$0xff] }
 0x208   : > { %v3276_v43 = vadd.f32 %v6496_v46, %v3240_v13  ;;  %v2103_v21 = vmul.f32 %v2034_v0, %v7528_v56  ;;  %v2823_v23 = vadd.f32 %v7531_v55, %v2578_v4  ;;  %v2962_v22 = vadd.f32 %v7532_v37, %v2893_v27  ;;  %v7537_v0 = vld [vmem:[#allocation22_spill] sm:$0xff] }
 0x209   : > { %v2093_v58 = vmul.f32 %v1984_v20, %v7529_v33  ;;  %3351 = vst.msk [vmem:[%s6538_s8 + $0x80] sm:$0xff] %vm3334_vm1, %v3318_v29  ;;  %v3307_v63 = vmax.f32 %v3275_v25, 0.0  ;;  %v3217_v11 = vadd.f32 %v7533_v57, %v2972_v9  ;;  %v2092_v31 = vmul.f32 %v1979_v44, %v1867_v28  ;;  %v7539_v20 = vld [vmem:[#allocation124_spill] sm:$0xff]  ;;  %v7542_v29 = vld [vmem:[#allocation61_spill] sm:$0xff] }
 0x20a   : > { %v3308_v5 = vmax.f32 %v3276_v43, 0.0  ;;  %v2560_v48 = vmul.f32 %v6386_v42, %v2103_v21  ;;  %v2892_v32 = vadd.f32 %v7534_v6, %v2823_v23  ;;  %v3207_v13 = vadd.f32 %v7535_v3, %v2962_v22  ;;  %v7540_v43 = vld [vmem:[#allocation37_spill] sm:$0xff]  ;;  %v7541_v33 = vld [vmem:[#allocation12_spill] sm:$0xff] }
 0x20b   : > { %v2550_v36 = vmul.f32 %v6386_v42, %v2093_v58  ;;  %v1873_v49 = vmax.f32 %v6761_v2, 0.0  ;;  %3340 = vst.msk [vmem:[%s6538_s8 + $0x28] sm:$0xff] %vm3334_vm1, %v3307_v63  ;;  %v3253_v19 = vmul.f32 %v6479_v38, %v3217_v11  ;;  %v2549_v52 = vmul.f32 %v6386_v42, %v2092_v31  ;;  %v2049_v27 = vpop.permute.xlu2 %2048  ;;  %v7544_v22 = vld [vmem:[#allocation9_spill] sm:$0xff]  ;;  %v7545_v11 = vld [vmem:[#allocation114_spill] sm:$0xff] }
 0x20c   : > { %3341 = vst.msk [vmem:[%s6538_s8 + $0x30] sm:$0xff] %vm3334_vm1, %v3308_v5  ;;  %v2592_v45 = vadd.f32 %v2560_v48, %v7536_v7  ;;  %v2961_v51 = vadd.f32 %v7538_v17, %v2892_v32  ;;  %v1887_v28 = vmax.f32 %v6764_v10, 0.0  ;;  %v3243_v4 = vmul.f32 %v6479_v38, %v3207_v13  ;;  %v1999_v9 = vpop.permute.xlu1 %1998  ;;  %v1994_v55 = vpop.permute.xlu0 %1993  ;;  %v7543_v5 = vld [vmem:[#allocation38_spill] sm:$0xff]  ;;  %v7546_v32 = vld [vmem:[#allocation112_spill] sm:$0xff]  ;;  %v3619_v10 = vld [vmem:[%s3978_s16 + $0x5e8] sm:$0xff] }
 0x20d   : > { %v2582_v35 = vadd.f32 %v2550_v36, %v7537_v0  ;;  %v1813_v56 = vmul.f32 %v6334_v16, %v3616_v40  ;;  %v3289_v21 = vadd.f32 %v6496_v46, %v3253_v19  ;;  %v2581_v25 = vadd.f32 %v2549_v52, %v7542_v29  ;;  %v7547_v40 = vld [vmem:[#allocation71_spill] sm:$0xff]  ;;  %v7550_v19 = vld [vmem:[#allocation44_spill] sm:$0xff]  ;;  %v7555_v29 = vld [vmem:[#allocation110_spill] sm:$0xff] }
 0x20e   : > { %v2837_v44 = vadd.f32 %v7539_v20, %v2592_v45  ;;  %v3206_v58 = vadd.f32 %v7541_v33, %v2961_v51  ;;  %v2106_v47 = vmul.f32 %v2049_v27, %v1881_v1  ;;  %v3279_v23 = vadd.f32 %v6496_v46, %v3243_v4  ;;  %v7549_v45 = vld [vmem:[#allocation120_spill] sm:$0xff] }
 0x20f   : > { %v2827_v26 = vadd.f32 %v7540_v43, %v2582_v35  ;;  %v2096_v36 = vmul.f32 %v1999_v9, %v1871_v60  ;;  %v3321_v63 = vmax.f32 %v3289_v21, 0.0  ;;  %v2826_v6 = vadd.f32 %v7545_v11, %v2581_v25  ;;  %v7551_v51 = vld [vmem:[#allocation16_spill] sm:$0xff]  ;;  %v7554_v21 = vld [vmem:[#allocation53_spill] sm:$0xff] }
 0x210   : > { %v2906_v37 = vadd.f32 %v7543_v5, %v2837_v44  ;;  %v3242_v57 = vmul.f32 %v6479_v38, %v3206_v58  ;;  %v2563_v14 = vmul.f32 %v6386_v42, %v2106_v47  ;;  %v3311_v1 = vmax.f32 %v3279_v23, 0.0  ;;  %v7552_v4 = vld [vmem:[#allocation88_spill] sm:$0xff]  ;;  %v7557_v23 = vld [vmem:[#allocation115_spill] sm:$0xff] }
 0x211   : > { %v2896_v48 = vadd.f32 %v7544_v22, %v2827_v26  ;;  %v2553_v13 = vmul.f32 %v6386_v42, %v2096_v36  ;;  %3354 = vst.msk [vmem:[%s6538_s8 + $0x98] sm:$0xff] %vm3334_vm1, %v3321_v63  ;;  %v2895_v60 = vadd.f32 %v7548_v41, %v2826_v6  ;;  %v2095_v35 = vmul.f32 %v1994_v55, %v1870_v18  ;;  %v7553_v26 = vld [vmem:[#allocation94_spill] sm:$0xff]  ;;  %v7556_v55 = vld [vmem:[#allocation11_spill] sm:$0xff]  ;;  %v7559_v6 = vld [vmem:[#allocation81_spill] sm:$0xff] }
 0x212   : > { %v2975_v31 = vadd.f32 %v7546_v32, %v2906_v37  ;;  %v3278_v7 = vadd.f32 %v6496_v46, %v3242_v57  ;;  %v2595_v0 = vadd.f32 %v2563_v14, %v7549_v45  ;;  %3344 = vst.msk [vmem:[%s6538_s8 + $0x48] sm:$0xff] %vm3334_vm1, %v3311_v1  ;;  %v1845_v44 = vadd.f32 %v6304_v30, %v1813_v56  ;;  %v7558_v37 = vld [vmem:[#allocation76_spill] sm:$0xff] }
 0x213   : > { %v2965_v3 = vadd.f32 %v7547_v40, %v2896_v48  ;;  %v2585_v20 = vadd.f32 %v2553_v13, %v7552_v4  ;;  %v2964_v27 = vadd.f32 %v7553_v26, %v2895_v60  ;;  %v2552_v58 = vmul.f32 %v6386_v42, %v2095_v35  ;;  %v2064_v47 = vpop.permute.xlu2 %2063  ;;  %v7562_v60 = vld [vmem:[#allocation17_spill] sm:$0xff] }
 0x214   : > { %v3220_v17 = vadd.f32 %v7550_v19, %v2975_v31  ;;  %v3310_v43 = vmax.f32 %v3278_v7, 0.0  ;;  %v2840_v33 = vadd.f32 %v7554_v21, %v2595_v0  ;;  %v1877_v9 = vmax.f32 %v1845_v44, 0.0  ;;  %v2014_v36 = vpop.permute.xlu1 %2013  ;;  %v2009_v63 = vpop.permute.xlu0 %2008  ;;  %v7560_v31 = vld [vmem:[#allocation46_spill] sm:$0xff] }
 0x215   : > { %v3210_v52 = vadd.f32 %v7551_v51, %v2965_v3  ;;  %v2830_v25 = vadd.f32 %v7555_v29, %v2585_v20  ;;  %v3209_v56 = vadd.f32 %v7556_v55, %v2964_v27  ;;  %v2584_v22 = vadd.f32 %v2552_v58, %v7558_v37  ;;  %v7561_v3 = vld [vmem:[#allocation117_spill] sm:$0xff]  ;;  %v7564_v19 = vld [vmem:[#allocation10_spill] sm:$0xff]  ;;  %v7566_v20 = vld [vmem:[#allocation23_spill] sm:$0xff] }
 0x216   : > { %v3256_v62 = vmul.f32 %v6479_v38, %v3220_v17  ;;  %3343 = vst.msk [vmem:[%s6538_s8 + $0x40] sm:$0xff] %vm3334_vm1, %v3310_v43  ;;  %v2909_v5 = vadd.f32 %v7557_v23, %v2840_v33  ;;  %v2109_v48 = vmul.f32 %v2064_v47, %v1884_v24  ;;  %v2099_v1 = vmul.f32 %v2014_v36, %v1874_v50  ;;  %v3615_v24 = vld [vmem:[%s3978_s16 + $0x5b8] sm:$0xff]  ;;  %v7567_v33 = vld [vmem:[#allocation99_spill] sm:$0xff]  ;;  %v7570_v23 = vld [vmem:[#allocation116_spill] sm:$0xff] }
 0x217   : > { %v3246_v18 = vmul.f32 %v6479_v38, %v3210_v52  ;;  %v2899_v14 = vadd.f32 %v7559_v6, %v2830_v25  ;;  %v3245_v32 = vmul.f32 %v6479_v38, %v3209_v56  ;;  %v2829_v13 = vadd.f32 %v7561_v3, %v2584_v22  ;;  %v7565_v52 = vld [vmem:[#allocation18_spill] sm:$0xff]  ;;  %v7569_v55 = vld [vmem:[#allocation21_spill] sm:$0xff] }
 0x218   : > { %v3292_v57 = vadd.f32 %v6496_v46, %v3256_v62  ;;  %v2978_v40 = vadd.f32 %v7560_v31, %v2909_v5  ;;  %v2566_v34 = vmul.f32 %v6386_v42, %v2109_v48  ;;  %v2556_v0 = vmul.f32 %v6386_v42, %v2099_v1  ;;  %v7571_v36 = vld [vmem:[#allocation25_spill] sm:$0xff]  ;;  %v7574_v3 = vld [vmem:[#allocation86_spill] sm:$0xff] }
 0x219   : > { %v3282_v11 = vadd.f32 %v6496_v46, %v3246_v18  ;;  %v2968_v45 = vadd.f32 %v7562_v60, %v2899_v14  ;;  %v3281_v35 = vadd.f32 %v6496_v46, %v3245_v32  ;;  %v2898_v17 = vadd.f32 %v7564_v19, %v2829_v13  ;;  %v7568_v18 = vld [vmem:[#allocation95_spill] sm:$0xff]  ;;  %v7573_v32 = vld [vmem:[#allocation57_spill] sm:$0xff] }
 0x21a   : > { %v3324_v7 = vmax.f32 %v3292_v57, 0.0  ;;  %v3223_v50 = vadd.f32 %v7563_v12, %v2978_v40  ;;  %v2598_v51 = vadd.f32 %v2566_v34, %v6602_v59  ;;  %v2588_v44 = vadd.f32 %v2556_v0, %v7566_v20  ;;  %v7572_v57 = vld [vmem:[#allocation5_spill] sm:$0xff]  ;;  %v7575_v34 = vld [vmem:[#allocation122_spill] sm:$0xff]  ;;  %v7579_v19 = vld [vmem:[#allocation15_spill] sm:$0xff] }
 0x21b   : > { %v3314_v41 = vmax.f32 %v3282_v11, 0.0  ;;  %v3213_v4 = vadd.f32 %v7565_v52, %v2968_v45  ;;  %v2098_v43 = vmul.f32 %v2009_v63, %v1873_v49  ;;  %v1812_v26 = vmul.f32 %v6334_v16, %v3615_v24  ;;  %v2079_v47 = vpop.permute.xlu2 %2078  ;;  %v7577_v45 = vld [vmem:[#allocation126_spill] sm:$0xff]  ;;  %v7578_v12 = vld [vmem:[#allocation33_spill] sm:$0xff] }
 0x21c   : > { %3357 = vst.msk [vmem:[%s6538_s8 + $0xb0] sm:$0xff] %vm3334_vm1, %v3324_v7  ;;  %v3313_v27 = vmax.f32 %v3281_v35, 0.0  ;;  %v3259_v21 = vmul.f32 %v6479_v38, %v3223_v50  ;;  %v2967_v58 = vadd.f32 %v7567_v33, %v2898_v17  ;;  %v2843_v59 = vadd.f32 %v6615_v39, %v2598_v51  ;;  %v2029_v37 = vpop.permute.xlu1 %2028  ;;  %v2024_v22 = vpop.permute.xlu0 %2023  ;;  %v7580_v51 = vld [vmem:[#allocation28_spill] sm:$0xff]  ;;  %v3618_v20 = vld [vmem:[%s3978_s16 + $0x5d8] sm:$0xff] }
 0x21d   : > { %3347 = vst.msk [vmem:[%s6538_s8 + $0x60] sm:$0xff] %vm3334_vm1, %v3314_v41  ;;  %v3249_v62 = vmul.f32 %v6479_v38, %v3213_v4  ;;  %v2833_v29 = vadd.f32 %v7568_v18, %v2588_v44  ;;  %v2555_v25 = vmul.f32 %v6386_v42, %v2098_v43  ;;  %v1844_v2 = vadd.f32 %v6304_v30, %v1812_v26  ;;  %v7576_v41 = vld [vmem:[#allocation64_spill] sm:$0xff] }
 0x21e   : > { %3346 = vst.msk [vmem:[%s6538_s8 + $0x58] sm:$0xff] %vm3334_vm1, %v3313_v27  ;;  %v3295_v49 = vadd.f32 %v6496_v46, %v3259_v21  ;;  %v3212_v56 = vadd.f32 %v7569_v55, %v2967_v58  ;;  %v2912_v5 = vadd.f32 %v7570_v23, %v2843_v59  ;;  %v2112_v39 = vmul.f32 %v2079_v47, %v1887_v28  ;;  %v7581_v33 = vld [vmem:[#allocation100_spill] sm:$0xff]  ;;  %v7582_v59 = vld [vmem:[#allocation125_spill] sm:$0xff]  ;;  %v7584_v23 = vld [vmem:[#allocation27_spill] sm:$0xff] }
 0x21f   : > { %v3285_v48 = vadd.f32 %v6496_v46, %v3249_v62  ;;  %v2902_v63 = vadd.f32 %v7571_v36, %v2833_v29  ;;  %v2587_v11 = vadd.f32 %v2555_v25, %v7572_v57  ;;  %v2102_v6 = vmul.f32 %v2029_v37, %v1877_v9  ;;  %v7583_v25 = vld [vmem:[#allocation65_spill] sm:$0xff] }
 0x220   : > { %v3327_v14 = vmax.f32 %v3295_v49, 0.0  ;;  %v3248_v1 = vmul.f32 %v6479_v38, %v3212_v56  ;;  %v2981_v31 = vadd.f32 %v7573_v32, %v2912_v5  ;;  %v2569_v40 = vmul.f32 %v6386_v42, %v2112_v39  ;;  %v7585_v39 = vld [vmem:[#allocation7_spill] sm:$0xff] }
 0x221   : > { %v3317_v28 = vmax.f32 %v3285_v48, 0.0  ;;  %v2971_v13 = vadd.f32 %v7574_v3, %v2902_v63  ;;  %v2832_v24 = vadd.f32 %v7575_v34, %v2587_v11  ;;  %v2559_v7 = vmul.f32 %v6386_v42, %v2102_v6  ;;  %v3622_v48 = vld [vmem:[%s3978_s16 + $0x608] sm:$0xff]  ;;  %v7587_v11 = vld [vmem:[#allocation29_spill] sm:$0xff]  ;;  %v7589_v3 = vld [vmem:[#allocation68_spill] sm:$0xff] }
 0x222   : > { %3360 = vst.msk [vmem:[%s6538_s8 + $0xc8] sm:$0xff] %vm3334_vm1, %v3327_v14  ;;  %v3284_v9 = vadd.f32 %v6496_v46, %v3248_v1  ;;  %v3226_v60 = vadd.f32 %v7576_v41, %v2981_v31  ;;  %v2601_v0 = vadd.f32 %v2569_v40, %v7577_v45  ;;  %v1876_v35 = vmax.f32 %v1844_v2, 0.0  ;;  %v7586_v63 = vld [vmem:[#allocation127_spill] sm:$0xff]  ;;  %v3621_v1 = vld [vmem:[%s3978_s16 + $0x600] sm:$0xff]  ;;  %v7588_v40 = vld [vmem:[#allocation93_spill] sm:$0xff] }
 0x223   : > { %3350 = vst.msk [vmem:[%s6538_s8 + $0x78] sm:$0xff] %vm3334_vm1, %v3317_v28  ;;  %v3216_v50 = vadd.f32 %v7578_v12, %v2971_v13  ;;  %v2901_v17 = vadd.f32 %v7579_v19, %v2832_v24  ;;  %v2591_v52 = vadd.f32 %v2559_v7, %v7580_v51  ;;  %v1816_v4 = vmul.f32 %v6334_v16, %v3619_v10  ;;  %v7590_v34 = vld [vmem:[#allocation105_spill] sm:$0xff]  ;;  %v7591_v41 = vld [vmem:[#allocation36_spill] sm:$0xff]  ;;  %v7592_v12 = vld [vmem:[#allocation31_spill] sm:$0xff] }
 0x224   : > { %v3316_v44 = vmax.f32 %v3284_v9, 0.0  ;;  %v3262_v43 = vmul.f32 %v6479_v38, %v3226_v60  ;;  %v2846_v26 = vadd.f32 %v6665_v8, %v2601_v0  ;;  %v2101_v27 = vmul.f32 %v2024_v22, %v1876_v35  ;;  %v2044_v8 = vpop.permute.xlu1 %2043  ;;  %v2039_v49 = vpop.permute.xlu0 %2038 }
 0x225   : > { %v3252_v21 = vmul.f32 %v6479_v38, %v3216_v50  ;;  %v2970_v58 = vadd.f32 %v7581_v33, %v2901_v17  ;;  %v2836_v62 = vadd.f32 %v7582_v59, %v2591_v52  ;;  %v1848_v18 = vadd.f32 %v6304_v30, %v1816_v4  ;;  %v3710_v17 = vld [vmem:[%s7041_s3] ss:$0 sm:$0xff]  ;;  %v3625_v52 = vld [vmem:[%s3978_s16 + $0x630] sm:$0xff] }
 0x226   : > { %3349 = vst.msk [vmem:[%s6538_s8 + $0x70] sm:$0xff] %vm3334_vm1, %v3316_v44  ;;  %v3298_v29 = vadd.f32 %v6496_v46, %v3262_v43  ;;  %v2915_v47 = vadd.f32 %v7583_v25, %v2846_v26  ;;  %v2558_v2 = vmul.f32 %v6386_v42, %v2101_v27  ;;  %v1815_v55 = vmul.f32 %v6334_v16, %v3618_v20  ;;  %v7593_v44 = vld [vmem:[#allocation55_spill] sm:$0xff]  ;;  %v7594_v27 = vld [vmem:[#allocation108_spill] sm:$0xff] }
 0x227   : > { %v3288_v56 = vadd.f32 %v6496_v46, %v3252_v21  ;;  %v3215_v5 = vadd.f32 %v7584_v23, %v2970_v58  ;;  %v2905_v37 = vadd.f32 %v7585_v39, %v2836_v62  ;;  %v1880_v22 = vmax.f32 %v1848_v18, 0.0 }
 0x228   : > { %v3330_v36 = vmax.f32 %v3298_v29, 0.0  ;;  %v2984_v57 = vadd.f32 %v7586_v63, %v2915_v47  ;;  %v2590_v6 = vadd.f32 %v2558_v2, %v7587_v11  ;;  %v1847_v14 = vadd.f32 %v6304_v30, %v1815_v55  ;;  %v7595_v29 = vld [vmem:[#allocation128_spill] sm:$0xff]  ;;  %v3711_v2 = vld [vmem:[%s7040_s2] ss:$0 sm:$0xff] }
 0x229   : > { %v3320_v32 = vmax.f32 %v3288_v56, 0.0  ;;  %v3251_v31 = vmul.f32 %v6479_v38, %v3215_v5  ;;  %v2974_v10 = vadd.f32 %v7588_v40, %v2905_v37  ;;  %v2105_v28 = vmul.f32 %v2044_v8, %v1880_v22  ;;  %v7596_v56 = vld [vmem:[#allocation39_spill] sm:$0xff]  ;;  %v7597_v5 = vld [vmem:[#allocation34_spill] sm:$0xff] }
 0x22a   : > { %3363 = vst.msk [vmem:[%s6538_s8 + $0xe0] sm:$0xff] %vm3334_vm1, %v3330_v36  ;;  %v3229_v13 = vadd.f32 %v7589_v3, %v2984_v57  ;;  %v2835_v24 = vadd.f32 %v7590_v34, %v2590_v6  ;;  %v1879_v7 = vmax.f32 %v1847_v14, 0.0  ;;  %v1819_v9 = vmul.f32 %v6334_v16, %v3622_v48  ;;  %v7598_v48 = vld [vmem:[#allocation42_spill] sm:$0xff]  ;;  %v7599_v6 = vld [vmem:[#allocation129_spill] sm:$0xff]  ;;  %v7600_v40 = vld [vmem:[#allocation111_spill] sm:$0xff] }
 0x22b   : > { %3353 = vst.msk [vmem:[%s6538_s8 + $0x90] sm:$0xff] %vm3334_vm1, %v3320_v32  ;;  %v3287_v30 = vadd.f32 %v6496_v46, %v3251_v31  ;;  %v3219_v60 = vadd.f32 %v7591_v41, %v2974_v10  ;;  %v2562_v45 = vmul.f32 %v6386_v42, %v2105_v28  ;;  %v1818_v0 = vmul.f32 %v6334_v16, %v3621_v1  ;;  %v3712_v31 = vld [vmem:[%s7042_s4 + $0x7] ss:$0 sm:$0xff]  ;;  %v7601_v28 = vld [vmem:[#allocation3_spill] sm:$0xff] }
 0x22c   : > { %v3265_v35 = vmul.f32 %v6479_v38, %v3229_v13  ;;  %v2904_v50 = vadd.f32 %v7592_v12, %v2835_v24  ;;  %v2104_v19 = vmul.f32 %v2039_v49, %v1879_v7  ;;  %v1851_v51 = vadd.f32 %v3710_v17, %v1819_v9  ;;  %v2059_v58 = vpop.permute.xlu1 %2058  ;;  %v2054_v62 = vpop.permute.xlu0 %2053  ;;  %v3624_v49 = vld [vmem:[%s3978_s16 + $0x620] sm:$0xff]  ;;  %v7602_v7 = vld [vmem:[#allocation32_spill] sm:$0xff] }
 0x22d   : > { %v3319_v4 = vmax.f32 %v3287_v30, 0.0  ;;  %v3255_v20 = vmul.f32 %v6479_v38, %v3219_v60  ;;  %v2594_v43 = vadd.f32 %v2562_v45, %v7593_v44  ;;  %v1850_v26 = vadd.f32 %v3710_v17, %v1818_v0  ;;  %v7603_v30 = vld [vmem:[#allocation123_spill] sm:$0xff]  ;;  %v3713_v45 = vld [vmem:[%s7042_s4 + $0x6] ss:$0 sm:$0xff]  ;;  %v7605_v12 = vld [vmem:[#allocation52_spill] sm:$0xff] }
 0x22e   : > { %v3301_v16 = vadd.f32 %v6496_v46, %v3265_v35  ;;  %v2973_v21 = vadd.f32 %v7594_v27, %v2904_v50  ;;  %v2561_v33 = vmul.f32 %v6386_v42, %v2104_v19  ;;  %v1883_v59 = vmax.f32 %v1851_v51, 0.0  ;;  %v7604_v0 = vld [vmem:[#allocation51_spill] sm:$0xff]  ;;  %v7606_v19 = vld [vmem:[#allocation50_spill] sm:$0xff] }
 0x22f   : > { %3352 = vst.msk [vmem:[%s6538_s8 + $0x88] sm:$0xff] %vm3334_vm1, %v3319_v4  ;;  %v3291_v18 = vadd.f32 %v6496_v46, %v3255_v20  ;;  %v2839_v25 = vadd.f32 %v7595_v29, %v2594_v43  ;;  %v1882_v47 = vmax.f32 %v1850_v26, 0.0  ;;  %v1822_v8 = vmul.f32 %v3711_v2, %v3625_v52  ;;  %v7611_v29 = vld [vmem:[#allocation45_spill] sm:$0xff] }
 0x230   : > { %v3333_v55 = vmax.f32 %v3301_v16, 0.0  ;;  %v3218_v23 = vadd.f32 %v7596_v56, %v2973_v21  ;;  %v2593_v39 = vadd.f32 %v2561_v33, %v7597_v5  ;;  %v2108_v37 = vmul.f32 %v2059_v58, %v1883_v59  ;;  %v7608_v16 = vld [vmem:[#allocation119_spill] sm:$0xff]  ;;  %v7609_v33 = vld [vmem:[#allocation48_spill] sm:$0xff]  ;;  %v3714_v56 = vld [vmem:[%s7042_s4 + $0x4] ss:$0 sm:$0xff] }
 0x231   : > { %v3323_v22 = vmax.f32 %v3291_v18, 0.0  ;;  %v2908_v36 = vadd.f32 %v7598_v48, %v2839_v25  ;;  %v2107_v63 = vmul.f32 %v2054_v62, %v1882_v47  ;;  %v1854_v57 = vadd.f32 %v3710_v17, %v1822_v8  ;;  %v7610_v62 = vld [vmem:[#allocation103_spill] sm:$0xff]  ;;  %v7612_v8 = vld [vmem:[#allocation41_spill] sm:$0xff] }
 0x232   : > { %3366 = vst.msk [vmem:[%s6538_s8 + $0xf8] sm:$0xff] %vm3334_vm1, %v3333_v55  ;;  %v3254_v11 = vmul.f32 %v6479_v38, %v3218_v23  ;;  %v2838_v14 = vadd.f32 %v7599_v6, %v2593_v39  ;;  %v2565_v1 = vmul.f32 %v6386_v42, %v2108_v37  ;;  %v1821_v32 = vmul.f32 %v3711_v2, %v3624_v49  ;;  %v7614_v6 = vld [vmem:[#allocation58_spill] sm:$0xff] }
 0x233   : > { %v2944_v10 = vmul.f32 %v3712_v31, %v7600_v40  ;;  %3356 = vst.msk [vmem:[%s6538_s8 + $0xa8] sm:$0xff] %vm3334_vm1, %v3323_v22  ;;  %v2977_v3 = vadd.f32 %v7601_v28, %v2908_v36  ;;  %v2564_v13 = vmul.f32 %v6386_v42, %v2107_v63  ;;  %v1886_v34 = vmax.f32 %v1854_v57, 0.0  ;;  %v7607_v42 = vld [vmem:[#allocation54_spill] sm:$0xff]  ;;  %v7613_v22 = vld [vmem:[#allocation107_spill] sm:$0xff] }
 0x234   : > { %v3290_v24 = vadd.f32 %v6496_v46, %v3254_v11  ;;  %v2907_v9 = vadd.f32 %v7602_v7, %v2838_v14  ;;  %v2597_v41 = vadd.f32 %v2565_v1, %v7603_v30  ;;  %v1853_v60 = vadd.f32 %v3710_v17, %v1821_v32  ;;  %v2074_v43 = vpop.permute.xlu1 %2073  ;;  %v2069_v26 = vpop.permute.xlu0 %2068  ;;  %v7615_v1 = vld [vmem:[#allocation56_spill] sm:$0xff]  ;;  %v7616_v40 = vld [vmem:[#allocation66_spill] sm:$0xff]  ;;  %v7617_v28 = vld [vmem:[#allocation59_spill] sm:$0xff] }
 0x235   : > { %v2879_v35 = vmul.f32 %v3713_v45, %v7604_v0  ;;  %v2878_v50 = vmul.f32 %v3713_v45, %v7605_v12  ;;  %v3222_v51 = vadd.f32 %v7606_v19, %v2977_v3  ;;  %v2596_v52 = vadd.f32 %v2564_v13, %v7607_v42  ;;  %v7619_v0 = vld [vmem:[#allocation47_spill] sm:$0xff]  ;;  %v7620_v42 = vld [vmem:[#allocation69_spill] sm:$0xff] }
 0x236   : > { %v3322_v4 = vmax.f32 %v3290_v24, 0.0  ;;  %v2976_v20 = vadd.f32 %v2944_v10, %v2907_v9  ;;  %v2842_v44 = vadd.f32 %v6533_v61, %v2597_v41  ;;  %v1885_v17 = vmax.f32 %v1853_v60, 0.0 }
 0x237   : > { %v988_v27 = vmax.f32 %v7608_v16, 0.0  ;;  %v3258_v21 = vmul.f32 %v6479_v38, %v3222_v51  ;;  %v2841_v58 = vadd.f32 %v7609_v33, %v2596_v52  ;;  %v2111_v59 = vmul.f32 %v2074_v43, %v1886_v34  ;;  %v7618_v34 = vld [vmem:[#allocation60_spill] sm:$0xff] }
 0x238   : > { %v2948_v18 = vmul.f32 %v3712_v31, %v7610_v62  ;;  %3355 = vst.msk [vmem:[%s6538_s8 + $0xa0] sm:$0xff] %vm3334_vm1, %v3322_v4  ;;  %v3221_v25 = vadd.f32 %v7611_v29, %v2976_v20  ;;  %v2911_v47 = vadd.f32 %v2879_v35, %v2842_v44  ;;  %v2110_v2 = vmul.f32 %v2069_v26, %v1885_v17  ;;  %v7621_v4 = vld [vmem:[#allocation67_spill] sm:$0xff]  ;;  %v3715_v44 = vld [vmem:[%s7043_s5] ss:$0 sm:$0xff] }
 0x239   : > { %v2947_v61 = vmul.f32 %v3712_v31, %v7612_v8  ;;  %v3294_v49 = vadd.f32 %v6496_v46, %v3258_v21  ;;  %v2910_v55 = vadd.f32 %v2878_v50, %v2841_v58  ;;  %v2568_v23 = vmul.f32 %v3714_v56, %v2111_v59 }
 0x23a   : > { %v3257_v5 = vmul.f32 %v6479_v38, %v3221_v25  ;;  %v2980_v39 = vadd.f32 %v2948_v18, %v2911_v47  ;;  %v2567_v37 = vmul.f32 %v3714_v56, %v2110_v2  ;;  %v1227_v48 = vmul.f32 %v7613_v22, %v988_v27 }
 0x23b   : > { %v3326_v36 = vmax.f32 %v3294_v49, 0.0  ;;  %v2979_v63 = vadd.f32 %v2947_v61, %v2910_v55  ;;  %v2600_v57 = vadd.f32 %v2568_v23, %v6556_v53  ;;  %v2882_v10 = vmul.f32 %v3713_v45, %v7616_v40 }
 0x23c   : > { %v3293_v11 = vadd.f32 %v6496_v46, %v3257_v5  ;;  %v3225_v14 = vadd.f32 %v7614_v6, %v2980_v39  ;;  %v2599_v32 = vadd.f32 %v2567_v37, %v7615_v1  ;;  %v2881_v24 = vmul.f32 %v3713_v45, %v7618_v34 }
 0x23d   : > { %3359 = vst.msk [vmem:[%s6538_s8 + $0xc0] sm:$0xff] %vm3334_vm1, %v3326_v36  ;;  %v3224_v3 = vadd.f32 %v7617_v28, %v2979_v63  ;;  %v2845_v13 = vadd.f32 %v6577_v15, %v2600_v57  ;;  %v2951_v30 = vmul.f32 %v3712_v31, %v1227_v48  ;;  %v2950_v35 = vmul.f32 %v3712_v31, %v7619_v0 }
 0x23e   : > { %v3325_v7 = vmax.f32 %v3293_v11, 0.0  ;;  %v3261_v53 = vmul.f32 %v6479_v38, %v3225_v14  ;;  %v2844_v9 = vadd.f32 %v6586_v54, %v2599_v32 }
 0x23f   : > { %v3260_v41 = vmul.f32 %v6479_v38, %v3224_v3  ;;  %v2914_v60 = vadd.f32 %v2882_v10, %v2845_v13 }
 0x240   : > { %3358 = vst.msk [vmem:[%s6538_s8 + $0xb8] sm:$0xff] %vm3334_vm1, %v3325_v7  ;;  %v3297_v12 = vadd.f32 %v6496_v46, %v3261_v53  ;;  %v2913_v15 = vadd.f32 %v2881_v24, %v2844_v9 }
 0x241   : > { %v3296_v45 = vadd.f32 %v6496_v46, %v3260_v41  ;;  %v2983_v50 = vadd.f32 %v2951_v30, %v2914_v60 }
 0x242   : > { %v3329_v19 = vmax.f32 %v3297_v12, 0.0  ;;  %v2982_v51 = vadd.f32 %v2950_v35, %v2913_v15 }
 0x243   : > { %v3328_v54 = vmax.f32 %v3296_v45, 0.0  ;;  %v3228_v52 = vadd.f32 %v7620_v42, %v2983_v50 }
 0x244   : > { %3362 = vst.msk [vmem:[%s6538_s8 + $0xd8] sm:$0xff] %vm3334_vm1, %v3329_v19  ;;  %v3227_v20 = vadd.f32 %v7621_v4, %v2982_v51 }
 0x245   : > { %3361 = vst.msk [vmem:[%s6538_s8 + $0xd0] sm:$0xff] %vm3334_vm1, %v3328_v54  ;;  %v3264_v31 = vmul.f32 %v6479_v38, %v3228_v52 }
 0x246   : > { %v3263_v43 = vmul.f32 %v3715_v44, %v3227_v20 }
 0x247   : > { %v3300_v26 = vadd.f32 %v6496_v46, %v3264_v31 }
 0x248   : > { %v3299_v17 = vadd.f32 %v6496_v46, %v3263_v43 }
 0x249   : > { %v3332_v16 = vmax.f32 %v3300_v26, 0.0 }
 0x24a   : > { %v3331_v27 = vmax.f32 %v3299_v17, 0.0 }
 0x24b   : > { %3365 = vst.msk [vmem:[%s6538_s8 + $0xf0] sm:$0xff] %vm3334_vm1, %v3332_v16 }
 0x24c   : > { %3364 = vst.msk [vmem:[%s6538_s8 + $0xe8] sm:$0xff] %vm3334_vm1, %v3331_v27 }
 0x24d PF: > { %s17_s24 = sadd.s32 1, %s3722_s24  }
 0x24e   : > { %p14_p5 = scmp.ge.s32.totalorder %s17_s24, 4  }
 0x250   :  { %16 = sbr.rel (!%p14_p5) target bundleno = 1 (0x1), region = 92 }

// kernel: transition_forward.5
= control target key start
LH: loop header
LB: loop body
LE: loop exit
PB: predicated region body
PF: predicated region fallthrough
CT: control target
= control target key end

     0   :  { %s2891_s18 = smov 0   ;;  %s5560_s0 = inlined_call_operand.vmem [shape: f32[2,18,18,32], index: 0, kind: input, shape index: {}]   ;;  %s5561_s1 = inlined_call_operand.vmem [shape: f32[18,18,1], index: 1, kind: input, shape index: {}]   ;;  %s5562_s2 = inlined_call_operand.vmem [shape: f32[1,32], index: 2, kind: input, shape index: {}]   ;;  %s5563_s3 = inlined_call_operand.vmem [shape: f32[1,32], index: 3, kind: input, shape index: {}]   ;;  %s5564_s4 = inlined_call_operand.vmem [shape: f32[9,1,32], index: 4, kind: input, shape index: {}]   ;;  %s5565_s5 = inlined_call_operand.vmem [shape: f32[2,16,16,32], index: 5, kind: output, shape index: {}]  }
   0x1 LB: > { %s2785_s19 = sadd.s32 4294967295, %s2858_s18   ;;  %p2789_p0 = scmp.ge.s32.totalorder %s2858_s18, 1  ;;  %s2858_s18 = sphi %s2891_s18, %s15_s18  }
   0x2   : > { %p187_p1 = scmp.lt.s32.totalorder %s2858_s18, 3 }
   0x4   : > { %p188_p2 = pnand %p2789_p0, %p187_p1 }
   0x6   : > { %191 = sbr.rel (%p188_p2) target bundleno = 502 (0x1f6), region = 40 }
   0xb   : > { %v453_v0 = vld [vmem:[%s5561_s1 + $0x20] sm:$0xff]  ;;  %v451_v1 = vld [vmem:[%s5561_s1 + $0x10] sm:$0x3]  ;;  %v2860_v3 = vmov 0   ;;  %v454_v4 = vld [vmem:[%s5561_s1 + $0x28] sm:$0x3] }
   0xc   : > { %v449_v2 = vld [vmem:[%s5561_s1] sm:$0xff]  ;;  %2816 = vset.pattern.permute.xlu2 %v2860_v3  ;;  %2815 = vset.pattern.permute.xlu1 %v2860_v3  ;;  %v452_v5 = vld [vmem:[%s5561_s1 + $0x18] sm:$0xff]  ;;  %v450_v6 = vld [vmem:[%s5561_s1 + $0x8] sm:$0xff]  ;;  %p215_p3 = scmp.lt.s32.totalorder %s2785_s19, 1  ;;  %vm996_vm0 = vcmask 1046528   ;;  %vm1242_vm1 = vcmask 1045504  }
   0xd   : > { %2814 = vset.pattern.permute.xlu0 %v2860_v3  ;;  %525 = vperm.xlu2 %2816, %v453_v0   ;;  %v457_v7 = vld [vmem:[%s5561_s1 + $0x40] sm:$0x3]  ;;  %v456_v8 = vld [vmem:[%s5561_s1 + $0x38] sm:$0xff]  ;;  %v455_v9 = vld [vmem:[%s5561_s1 + $0x30] sm:$0xff]  ;;  %vm2697_vm2 = vcmask 261120  }
   0xe   : > { %515 = vperm.xlu1 %2815, %v451_v1   ;;  %505 = vperm.xlu0 %2814, %v449_v2   ;;  %v460_v10 = vld [vmem:[%s5561_s1 + $0x58] sm:$0x3]  ;;  %v459_v11 = vld [vmem:[%s5561_s1 + $0x50] sm:$0xff]  ;;  %v458_v12 = vld [vmem:[%s5561_s1 + $0x48] sm:$0xff]  ;;  %s5937_s19 = smov (!%p215_p3, %s2785_s19), 1 }
   0xf   : > { %v463_v13 = vld [vmem:[%s5561_s1 + $0x70] sm:$0x3]  ;;  %v462_v14 = vld [vmem:[%s5561_s1 + $0x68] sm:$0xff]  ;;  %v461_v15 = vld [vmem:[%s5561_s1 + $0x60] sm:$0xff]  ;;  %s2804_s9 = smul.u32 432, %s5937_s19  ;;  %s2803_s16 = sshll.u32 %s5937_s19, 8 }
  0x10   : > { %v466_v16 = vld [vmem:[%s5561_s1 + $0x88] sm:$0x3]  ;;  %v465_v17 = vld [vmem:[%s5561_s1 + $0x80] sm:$0xff]  ;;  %v464_v18 = vld [vmem:[%s5561_s1 + $0x78] sm:$0xff]  ;;  %s3510_s21 = scalar_lea.vmem %s5565_s5, %s2803_s16 }
  0x11   : > { %v469_v19 = vld [vmem:[%s5561_s1 + $0xa0] sm:$0x3]  ;;  %v468_v20 = vld [vmem:[%s5561_s1 + $0x98] sm:$0xff]  ;;  %v467_v21 = vld [vmem:[%s5561_s1 + $0x90] sm:$0xff]  ;;  %s3008_s20 = scalar_lea.vmem %s5560_s0, %s2804_s9 }
  0x12   : > { %v472_v22 = vld [vmem:[%s5561_s1 + $0xb8] sm:$0x3]  ;;  %v471_v23 = vld [vmem:[%s5561_s1 + $0xb0] sm:$0xff]  ;;  %v470_v24 = vld [vmem:[%s5561_s1 + $0xa8] sm:$0xff] }
  0x13   : > { %v475_v25 = vld [vmem:[%s5561_s1 + $0xd0] sm:$0x3]  ;;  %v474_v26 = vld [vmem:[%s5561_s1 + $0xc8] sm:$0xff]  ;;  %v473_v27 = vld [vmem:[%s5561_s1 + $0xc0] sm:$0xff] }
  0x14   : > { %v478_v28 = vld [vmem:[%s5561_s1 + $0xe8] sm:$0x3]  ;;  %v477_v29 = vld [vmem:[%s5561_s1 + $0xe0] sm:$0xff]  ;;  %v476_v30 = vld [vmem:[%s5561_s1 + $0xd8] sm:$0xff] }
  0x15   : > { %530 = vperm.xlu2 %2816, %v454_v4   ;;  %v481_v31 = vld [vmem:[%s5561_s1 + $0x100] sm:$0x3]  ;;  %v480_v32 = vld [vmem:[%s5561_s1 + $0xf8] sm:$0xff]  ;;  %v479_v33 = vld [vmem:[%s5561_s1 + $0xf0] sm:$0xff] }
  0x16   : > { %520 = vperm.xlu1 %2815, %v452_v5   ;;  %510 = vperm.xlu0 %2814, %v450_v6   ;;  %v3013_v34 = vld [vmem:[%s5562_s2] ss:$0 sm:$0xff]  ;;  %v230_v38 = vld [vmem:[%s3008_s20 + $0x28] sm:$0x3]  ;;  %v484_v39 = vld [vmem:[%s5561_s1 + $0x118] sm:$0x3] }
  0x17   : > { %5643 = vst [vmem:[#allocation2_spill] sm:$0xff] %v3013_v34  ;;  %v3016_v35 = vld [vmem:[%s3008_s20 + $0x20] sm:$0xff]  ;;  %v483_v40 = vld [vmem:[%s5561_s1 + $0x110] sm:$0xff]  ;;  %v482_v41 = vld [vmem:[%s5561_s1 + $0x108] sm:$0xff]  ;;  %v288_v42 = vmul.f32 %v3013_v34, %v230_v38  ;;  %v2556_v61 = vrot.slane %v230_v38, 1 }
  0x18   : > { %v287_v36 = vmul.f32 %v3013_v34, %v3016_v35  ;;  %v3023_v37 = vld [vmem:[%s5563_s3] ss:$0 sm:$0xff]  ;;  %v487_v48 = vld [vmem:[%s5561_s1 + $0x130] sm:$0x3]  ;;  %v486_v49 = vld [vmem:[%s5561_s1 + $0x128] sm:$0xff]  ;;  %v2554_v59 = vrot.slane %v3016_v35, 1 }
  0x19   : > { %v346_v45 = vadd.f32 %v3023_v37, %v288_v42  ;;  %v3039_v47 = vld [vmem:[%s3008_s20 + $0x40] sm:$0x3]  ;;  %v3051_v51 = vld [vmem:[%s3008_s20 + $0x58] sm:$0x3]  ;;  %v227_v54 = vld [vmem:[%s3008_s20 + $0x10] sm:$0x3] }
  0x1a   : > { %v345_v43 = vadd.f32 %v3023_v37, %v287_v36  ;;  %v485_v50 = vld [vmem:[%s5561_s1 + $0x120] sm:$0xff]  ;;  %5644 = vst [vmem:[#allocation3_spill] sm:$0xff] %v3051_v51  ;;  %v291_v53 = vmul.f32 %v3013_v34, %v3039_v47  ;;  %v294_v58 = vmul.f32 %v3013_v34, %v3051_v51  ;;  %v285_v62 = vmul.f32 %v3013_v34, %v227_v54  ;;  %v3080_v4 = vld [vmem:[%s3008_s20 + $0x70] sm:$0x3]  ;;  %v3083_v5 = vld [vmem:[%s3008_s20 + $0x18] sm:$0xff] }
  0x1b   : > { %v400_v52 = vmax.f32 %v346_v45, 0.0  ;;  %v225_v55 = vld [vmem:[%s3008_s20] sm:$0xff]  ;;  %5645 = vst [vmem:[#allocation4_spill] sm:$0xff] %v3080_v4  ;;  %v226_v6 = vld [vmem:[%s3008_s20 + $0x8] sm:$0xff] }
  0x1c   : > { %v399_v46 = vmax.f32 %v345_v43, 0.0  ;;  %v3062_v57 = vld [vmem:[%s5564_s4 + $0x1] ss:$0 sm:$0xff]  ;;  %v283_v63 = vmul.f32 %v3013_v34, %v225_v55  ;;  %v3072_v0 = vld [vmem:[%s5564_s4 + $0x2] ss:$0 sm:$0xff]  ;;  %v349_v2 = vadd.f32 %v3023_v37, %v291_v53  ;;  %v2553_v55 = vrot.slane %v3083_v5, 1 }
  0x1d   : > { %545 = vperm.xlu2 %2816, %v457_v7   ;;  %v3089_v7 = vld [vmem:[%s5564_s4 + $0x4] ss:$0 sm:$0xff] }
  0x1e   : > { %540 = vperm.xlu1 %2815, %v456_v8   ;;  %535 = vperm.xlu0 %2814, %v455_v9   ;;  %v3094_v8 = vld [vmem:[%s5564_s4 + $0x5] ss:$0 sm:$0xff] }
  0x25   : > { %560 = vperm.xlu2 %2816, %v460_v10   ;;  %v490_v10 = vld [vmem:[%s5561_s1 + $0x148] sm:$0x3] }
  0x26   : > { %555 = vperm.xlu1 %2815, %v459_v11   ;;  %550 = vperm.xlu0 %2814, %v458_v12   ;;  %v3101_v11 = vadd.f32 %v3023_v37, %v294_v58  ;;  %v3106_v12 = vsel %vm996_vm0, %v2554_v59, %v2556_v61  ;;  %v3188_v58 = vld [vmem:[%s5564_s4 + $0x3] ss:$0 sm:$0xff] }
  0x2d   : > { %575 = vperm.xlu2 %2816, %v463_v13   ;;  %v489_v13 = vld [vmem:[%s5561_s1 + $0x140] sm:$0xff] }
  0x2e   : > { %570 = vperm.xlu1 %2815, %v462_v14   ;;  %565 = vperm.xlu0 %2814, %v461_v15   ;;  %v3113_v15 = vadd.f32 %v3023_v37, %v285_v62 }
  0x35   : > { %590 = vperm.xlu2 %2816, %v466_v16   ;;  %v3116_v16 = vadd.f32 %v3023_v37, %v283_v63 }
  0x36   : > { %585 = vperm.xlu1 %2815, %v465_v17   ;;  %580 = vperm.xlu0 %2814, %v464_v18   ;;  %v3119_v17 = vld [vmem:[%s3008_s20 + $0x88] sm:$0x3]  ;;  %v3124_v18 = vld [vmem:[%s5564_s4] ss:$0 sm:$0xff] }
  0x37   : > { %5646 = vst [vmem:[#allocation5_spill] sm:$0xff] %v3119_v17 }
  0x3d   : > { %605 = vperm.xlu2 %2816, %v469_v19   ;;  %v488_v19 = vld [vmem:[%s5561_s1 + $0x138] sm:$0xff] }
  0x3e   : > { %600 = vperm.xlu1 %2815, %v468_v20   ;;  %595 = vperm.xlu0 %2814, %v467_v21   ;;  %v403_v20 = vmax.f32 %v349_v2, 0.0  ;;  %v297_v21 = vmul.f32 %v3013_v34, %v3080_v4  ;;  %v497_v4 = vld [vmem:[%s5561_s1 + $0x180] sm:$0xff] }
  0x40   : > { %v3165_v43 = vadd.f32 %v3023_v37, %v297_v21 }
  0x45   : > { %620 = vperm.xlu2 %2816, %v472_v22   ;;  %v286_v22 = vmul.f32 %v3013_v34, %v3083_v5  ;;  %v491_v5 = vld [vmem:[%s5561_s1 + $0x150] sm:$0xff] }
  0x46   : > { %615 = vperm.xlu1 %2815, %v471_v23   ;;  %610 = vperm.xlu0 %2814, %v470_v24   ;;  %v284_v23 = vmul.f32 %v3013_v34, %v226_v6  ;;  %v3135_v24 = vld [vmem:[%s3008_s20 + $0x38] sm:$0xff] }
  0x4d   : > { %635 = vperm.xlu2 %2816, %v475_v25  }
  0x4e   : > { %630 = vperm.xlu1 %2815, %v474_v26   ;;  %625 = vperm.xlu0 %2814, %v473_v27  }
  0x55   : > { %650 = vperm.xlu2 %2816, %v478_v28  }
  0x56   : > { %645 = vperm.xlu1 %2815, %v477_v29   ;;  %640 = vperm.xlu0 %2814, %v476_v30   ;;  %v3144_v29 = vld [vmem:[%s3008_s20 + $0x30] sm:$0xff] }
  0x57   : > { %v289_v45 = vmul.f32 %v3013_v34, %v3144_v29 }
  0x5d   : > { %665 = vperm.xlu2 %2816, %v481_v31  }
  0x5e   : > { %660 = vperm.xlu1 %2815, %v480_v32   ;;  %655 = vperm.xlu0 %2814, %v479_v33   ;;  %v406_v32 = vmax.f32 %v3101_v11, 0.0  ;;  %v300_v33 = vmul.f32 %v3013_v34, %v3119_v17  ;;  %v3205_v11 = vadd.f32 %v3023_v37, %v289_v45 }
  0x65   : > { %680 = vperm.xlu2 %2816, %v484_v39  }
  0x66   : > { %675 = vperm.xlu1 %2815, %v483_v40   ;;  %670 = vperm.xlu0 %2814, %v482_v41   ;;  %v397_v40 = vmax.f32 %v3113_v15, 0.0  ;;  %v290_v41 = vmul.f32 %v3013_v34, %v3135_v24  ;;  %v3213_v15 = vld [vmem:[%s5564_s4 + $0x7] ss:$0 sm:$0xff] }
  0x67   : > { %v526_v44 = vpop.permute.xlu2 %525 }
  0x68   : > { %v3057_v56 = vmul.f32 %v526_v44, %v399_v46  ;;  %v3168_v44 = vadd.f32 %v3023_v37, %v286_v22  ;;  %v3197_v2 = vadd.f32 %v3023_v37, %v290_v41 }
  0x6a   : > { %v3077_v3 = vmul.f32 %v3062_v57, %v3057_v56  ;;  %v3140_v27 = vmul.f32 %v3072_v0, %v3057_v56  ;;  %v3148_v30 = vmul.f32 %v3089_v7, %v3057_v56  ;;  %v3152_v31 = vmul.f32 %v3094_v8, %v3057_v56 }
  0x6b   : > { %v834_v42 = vmul.f32 %v3124_v18, %v3057_v56 }
  0x6c   : > { %v5569_v25 = vrot.slane %v3077_v3, 1  ;;  %v5567_v53 = vrot.slane %v3148_v30, 1  ;;  %v5566_v54 = vrot.slane %v3152_v31, 2 }
  0x6d   : > { %695 = vperm.xlu2 %2816, %v487_v48   ;;  %v5568_v48 = vrot.slane %v3140_v27, 2 }
  0x6e   : > { %690 = vperm.xlu1 %2815, %v486_v49   ;;  %685 = vperm.xlu0 %2814, %v485_v50   ;;  %v493_v50 = vld [vmem:[%s5561_s1 + $0x160] sm:$0x3] }
  0x6f   : > { %v531_v60 = vpop.permute.xlu2 %530 }
  0x70   : > { %v778_v1 = vmul.f32 %v531_v60, %v400_v52  ;;  %v3180_v52 = vadd.f32 %v3023_v37, %v284_v23  ;;  %v3191_v60 = vadd.f32 %v3023_v37, %v300_v33  ;;  %v3227_v23 = vsel %vm996_vm0, %v2553_v55, %v2554_v59 }
  0x72   : > { %v905_v9 = vmul.f32 %v3062_v57, %v778_v1  ;;  %v1151_v28 = vmul.f32 %v3072_v0, %v778_v1  ;;  %v1463_v36 = vmul.f32 %v3089_v7, %v778_v1  ;;  %v1708_v38 = vmul.f32 %v3094_v8, %v778_v1  ;;  %v492_v1 = vld [vmem:[%s5561_s1 + $0x158] sm:$0xff] }
  0x74   : > { %v1005_v26 = vrot.slane %v905_v9, 1  ;;  %v1251_v49 = vrot.slane %v1151_v28, 2  ;;  %v1560_v61 = vrot.slane %v1463_v36, 1  ;;  %v1805_v62 = vrot.slane %v1708_v38, 2 }
  0x75   : > { %710 = vperm.xlu2 %2816, %v490_v10   ;;  %v395_v10 = vmax.f32 %v3116_v16, 0.0  ;;  %v3221_v16 = vld [vmem:[%s5564_s4 + $0x8] ss:$0 sm:$0xff] }
  0x76   : > { %705 = vperm.xlu1 %2815, %v489_v13   ;;  %700 = vperm.xlu0 %2814, %v488_v19   ;;  %v1006_v46 = vsel %vm996_vm0, %v5569_v25, %v1005_v26  ;;  %v1252_v13 = vsel %vm1242_vm1, %v5568_v48, %v1251_v49  ;;  %v409_v19 = vmax.f32 %v3165_v43, 0.0  ;;  %v3231_v26 = vmul.f32 %v3188_v58, %v3057_v56 }
  0x77   : > { %v546_v39 = vpop.permute.xlu2 %545  ;;  %v1112_v6 = vadd.f32 %v1006_v46, %v834_v42  ;;  %v3237_v33 = vsel %vm996_vm0, %v5567_v53, %v1560_v61  ;;  %v3242_v36 = vsel %vm1242_vm1, %v5566_v54, %v1805_v62  ;;  %v3322_v54 = vld [vmem:[%s3008_s20 + $0x48] sm:$0xff] }
  0x78   : > { %v781_v63 = vmul.f32 %v546_v39, %v403_v20  ;;  %v398_v20 = vmax.f32 %v3168_v44, 0.0  ;;  %5655 = vst [vmem:[#allocation14_spill] sm:$0xff] %v3322_v54  ;;  %v3347_v44 = vmul.f32 %v3013_v34, %v3322_v54 }
  0x79   : > { %v3248_v38 = vadd.f32 %v1252_v13, %v1112_v6  ;;  %v496_v6 = vld [vmem:[%s5561_s1 + $0x178] sm:$0x3]  ;;  %v495_v13 = vld [vmem:[%s5561_s1 + $0x170] sm:$0xff] }
  0x7a   : > { %v3245_v35 = vmul.f32 %v3062_v57, %v781_v63  ;;  %v3251_v39 = vmul.f32 %v3072_v0, %v781_v63  ;;  %v3255_v46 = vmul.f32 %v3089_v7, %v781_v63  ;;  %v3258_v49 = vmul.f32 %v3094_v8, %v781_v63  ;;  %5658 = vst [vmem:[#allocation16_spill] sm:$0xff] %v3347_v44 }
  0x7b   : > { %v3264_v61 = vmul.f32 %v3221_v16, %v781_v63 }
  0x7c   : > { %5647 = vst [vmem:[#allocation6_spill] sm:$0xff] %v3258_v49 }
  0x7d   : > { %725 = vperm.xlu2 %2816, %v493_v50   ;;  %v3261_v50 = vmul.f32 %v3213_v15, %v781_v63 }
  0x7e   : > { %720 = vperm.xlu1 %2815, %v492_v1   ;;  %715 = vperm.xlu0 %2814, %v491_v5  }
  0x7f   : > { %v561_v59 = vpop.permute.xlu2 %560 }
  0x80   : > { %v784_v41 = vmul.f32 %v561_v59, %v406_v32  ;;  %v516_v42 = vpop.permute.xlu1 %515  ;;  %v506_v43 = vpop.permute.xlu0 %505 }
  0x81   : > { %v775_v55 = vmul.f32 %v516_v42, %v397_v40  ;;  %v773_v63 = vmul.f32 %v506_v43, %v395_v10  ;;  %v494_v10 = vld [vmem:[%s5561_s1 + $0x168] sm:$0xff]  ;;  %v3310_v43 = vld [vmem:[%s3008_s20 + $0xa0] sm:$0x3] }
  0x82   : > { %v3267_v62 = vmul.f32 %v3062_v57, %v784_v41  ;;  %v3270_v32 = vmul.f32 %v3072_v0, %v784_v41  ;;  %v3273_v1 = vmul.f32 %v3089_v7, %v784_v41  ;;  %v3280_v40 = vmul.f32 %v3094_v8, %v784_v41 }
  0x83   : > { %v3288_v22 = vmul.f32 %v3213_v15, %v784_v41  ;;  %v3291_v9 = vmul.f32 %v3221_v16, %v784_v41  ;;  %v3294_v45 = vmul.f32 %v3062_v57, %v775_v55  ;;  %v3303_v5 = vmul.f32 %v3072_v0, %v775_v55  ;;  %v3319_v41 = vld [vmem:[%s3008_s20 + $0x50] sm:$0xff] }
  0x84   : > { %5648 = vst [vmem:[#allocation7_spill] sm:$0xff] %v3267_v62  ;;  %v900_v42 = vmul.f32 %v3062_v57, %v773_v63  ;;  %v3315_v56 = vmul.f32 %v3072_v0, %v773_v63  ;;  %v303_v21 = vmul.f32 %v3013_v34, %v3310_v43 }
  0x85   : > { %5649 = vst [vmem:[#allocation8_spill] sm:$0xff] %v3270_v32  ;;  %740 = vperm.xlu2 %2816, %v496_v6   ;;  %v1000_v48 = vrot.slane %v3294_v45, 1  ;;  %v1246_v14 = vrot.slane %v3303_v5, 2  ;;  %v3343_v45 = vmul.f32 %v3013_v34, %v3319_v41 }
  0x86   : > { %5650 = vst [vmem:[#allocation9_spill] sm:$0xff] %v3273_v1  ;;  %735 = vperm.xlu1 %2815, %v495_v13   ;;  %730 = vperm.xlu0 %2814, %v494_v10   ;;  %v831_v10 = vmul.f32 %v3124_v18, %v773_v63  ;;  %v5657_v13 = vmax.f32 %v3180_v52, 0.0  ;;  %v5659_v52 = vrot.slane %v3039_v47, 1  ;;  %v5660_v63 = vrot.slane %v3135_v24, 1 }
  0x87   : > { %5651 = vst [vmem:[#allocation10_spill] sm:$0xff] %v3280_v40  ;;  %v576_v55 = vpop.permute.xlu2 %575  ;;  %v3379_v32 = vadd.f32 %v3023_v37, %v303_v21  ;;  %v5662_v47 = vrot.slane %v3077_v3, 1 }
  0x88   : > { %5652 = vst [vmem:[#allocation11_spill] sm:$0xff] %v3288_v22  ;;  %v787_v59 = vmul.f32 %v576_v55, %v409_v19  ;;  %v521_v28 = vpop.permute.xlu1 %520  ;;  %v511_v25 = vpop.permute.xlu0 %510  ;;  %v499_v19 = vld [vmem:[%s5561_s1 + $0x190] sm:$0x3]  ;;  %v3359_v55 = vsel %vm996_vm0, %v5660_v63, %v5659_v52 }
  0x89   : > { %5653 = vst [vmem:[#allocation12_spill] sm:$0xff] %v3291_v9  ;;  %v776_v6 = vmul.f32 %v521_v28, %v398_v20  ;;  %v774_v53 = vmul.f32 %v511_v25, %v5657_v13  ;;  %v997_v20 = vrot.slane %v900_v42, 1  ;;  %v1243_v28 = vrot.slane %v3315_v56, 2  ;;  %v498_v25 = vld [vmem:[%s5561_s1 + $0x188] sm:$0xff] }
  0x8a   : > { %5654 = vst [vmem:[#allocation13_spill] sm:$0xff] %v3319_v41  ;;  %v3334_v17 = vmul.f32 %v3062_v57, %v787_v59  ;;  %v3362_v13 = vmul.f32 %v3072_v0, %v787_v59  ;;  %v3365_v42 = vmul.f32 %v3089_v7, %v787_v59  ;;  %v3368_v56 = vmul.f32 %v3094_v8, %v787_v59  ;;  %v502_v9 = vld [vmem:[%s5561_s1 + $0x1a8] sm:$0x3] }
  0x8b   : > { %v903_v5 = vmul.f32 %v3062_v57, %v776_v6  ;;  %5661 = vst [vmem:[#allocation17_spill] sm:$0xff] %v3359_v55  ;;  %v3375_v40 = vmul.f32 %v3213_v15, %v787_v59  ;;  %v1149_v63 = vmul.f32 %v3072_v0, %v776_v6  ;;  %v3383_v55 = vmul.f32 %v3221_v16, %v787_v59 }
  0x8c   : > { %5656 = vst [vmem:[#allocation15_spill] sm:$0xff] %v3334_v17  ;;  %v833_v34 = vmul.f32 %v3124_v18, %v776_v6  ;;  %v901_v1 = vmul.f32 %v3062_v57, %v774_v53  ;;  %v1461_v51 = vmul.f32 %v3089_v7, %v776_v6  ;;  %v1147_v21 = vmul.f32 %v3072_v0, %v774_v53 }
  0x8d   : > { %v1002_v52 = vrot.slane %v903_v5, 1  ;;  %755 = vperm.xlu2 %2816, %v499_v19   ;;  %v1706_v19 = vmul.f32 %v3094_v8, %v776_v6  ;;  %v832_v3 = vmul.f32 %v3124_v18, %v774_v53  ;;  %v1392_v59 = vmul.f32 %v3188_v58, %v776_v6 }
  0x8e   : > { %750 = vperm.xlu1 %2815, %v498_v25   ;;  %745 = vperm.xlu0 %2814, %v497_v4   ;;  %v998_v62 = vrot.slane %v901_v1, 1  ;;  %v1248_v25 = vrot.slane %v1149_v63, 2  ;;  %v1244_v22 = vrot.slane %v1147_v21, 2  ;;  %v1557_v1 = vrot.slane %v1461_v51, 1  ;;  %v500_v51 = vld [vmem:[%s5561_s1 + $0x198] sm:$0xff] }
  0x8f   : > { %v1004_v5 = vsel %vm996_vm0, %v1002_v52, %v5662_v47  ;;  %v591_v54 = vpop.permute.xlu2 %590  ;;  %v5663_v47 = vmax.f32 %v3191_v60, 0.0  ;;  %v1802_v63 = vrot.slane %v1706_v19, 2 }
  0x90   : > { %v541_v41 = vpop.permute.xlu1 %540  ;;  %v1111_v44 = vadd.f32 %v1004_v5, %v833_v34  ;;  %v999_v49 = vsel %vm996_vm0, %v997_v20, %v998_v62  ;;  %v1001_v4 = vsel %vm996_vm0, %v998_v62, %v1000_v48  ;;  %v1245_v34 = vsel %vm1242_vm1, %v1243_v28, %v1244_v22 }
  0x91   : > { %v790_v52 = vmul.f32 %v591_v54, %v5663_v47  ;;  %v1109_v17 = vadd.f32 %v999_v49, %v831_v10  ;;  %v1110_v53 = vadd.f32 %v1001_v4, %v832_v3  ;;  %v501_v54 = vld [vmem:[%s5561_s1 + $0x1a0] sm:$0xff]  ;;  %v1247_v60 = vsel %vm1242_vm1, %v1244_v22, %v1246_v14  ;;  %v3606_v14 = vld [vmem:[%s3008_s20 + $0xb8] sm:$0x3] }
  0x92   : > { %v5664_v62 = vmax.f32 %v3197_v2, 0.0  ;;  %v5665_v2 = vrot.slane %v3140_v27, 2  ;;  %v5666_v3 = vrot.slane %v3148_v30, 1  ;;  %v3441_v47 = vld [vmem:[%s5564_s4 + $0x6] ss:$0 sm:$0xff]  ;;  %v5667_v27 = vrot.slane %v3152_v31, 2 }
  0x93   : > { %v3411_v48 = vmul.f32 %v3062_v57, %v790_v52  ;;  %v1355_v49 = vadd.f32 %v1245_v34, %v1109_v17  ;;  %v1356_v10 = vadd.f32 %v1247_v60, %v1110_v53  ;;  %v3419_v20 = vmul.f32 %v3072_v0, %v790_v52  ;;  %v536_v60 = vpop.permute.xlu0 %535 }
  0x94   : > { %v780_v6 = vmul.f32 %v541_v41, %v5664_v62  ;;  %v3422_v5 = vmul.f32 %v3089_v7, %v790_v52  ;;  %v1250_v41 = vsel %vm1242_vm1, %v1248_v25, %v5665_v2  ;;  %v3430_v28 = vmul.f32 %v3094_v8, %v790_v52 }
  0x95   : > { %770 = vperm.xlu2 %2816, %v502_v9   ;;  %v3432_v17 = vadd.f32 %v1250_v41, %v1111_v44  ;;  %v1424_v19 = vadd.f32 %v1392_v59, %v1355_v49  ;;  %v1425_v21 = vadd.f32 %v3231_v26, %v1356_v10  ;;  %v1559_v9 = vsel %vm996_vm0, %v1557_v1, %v5666_v3 }
  0x96   : > { %765 = vperm.xlu1 %2815, %v501_v54   ;;  %760 = vperm.xlu0 %2814, %v500_v51   ;;  %v1804_v25 = vsel %vm1242_vm1, %v1802_v63, %v5667_v27  ;;  %v3448_v59 = vmul.f32 %v3213_v15, %v790_v52  ;;  %v3451_v26 = vmul.f32 %v3062_v57, %v780_v6 }
  0x97   : > { %v1670_v30 = vadd.f32 %v3237_v33, %v1425_v21  ;;  %v3457_v53 = vmul.f32 %v3089_v7, %v780_v6  ;;  %v3461_v63 = vmul.f32 %v3221_v16, %v790_v52  ;;  %v3465_v34 = vmul.f32 %v3072_v0, %v780_v6 }
  0x98   : > { %v1008_v54 = vrot.slane %v3451_v26, 1  ;;  %v1669_v62 = vadd.f32 %v1559_v9, %v1424_v19  ;;  %v1395_v51 = vmul.f32 %v3188_v58, %v780_v6  ;;  %v1952_v49 = vmul.f32 %v3441_v47, %v780_v6 }
  0x99   : > { %v1915_v33 = vadd.f32 %v3242_v36, %v1670_v30  ;;  %v3472_v2 = vmul.f32 %v3094_v8, %v780_v6  ;;  %v2021_v52 = vmul.f32 %v3213_v15, %v780_v6  ;;  %v2266_v41 = vmul.f32 %v3221_v16, %v780_v6 }
  0x9a   : > { %v5668_v21 = vrot.slane %v3245_v35, 1  ;;  %v1563_v36 = vrot.slane %v3457_v53, 1  ;;  %v5669_v9 = vmax.f32 %v3205_v11, 0.0  ;;  %v836_v30 = vmul.f32 %v3124_v18, %v780_v6 }
  0x9b   : > { %v1984_v3 = vadd.f32 %v1952_v49, %v1915_v33  ;;  %v2117_v31 = vrot.slane %v2021_v52, 1  ;;  %v2362_v4 = vrot.slane %v2266_v41, 2  ;;  %v1914_v1 = vadd.f32 %v1804_v25, %v1669_v62 }
  0x9c   : > { %v1011_v19 = vsel %vm996_vm0, %v1008_v54, %v5668_v21  ;;  %v779_v27 = vmul.f32 %v536_v60, %v5669_v9  ;;  %v1254_v10 = vrot.slane %v3465_v34, 2  ;;  %v1427_v35 = vadd.f32 %v1395_v51, %v3248_v38  ;;  %v606_v9 = vpop.permute.xlu2 %605  ;;  %v5690_v34 = vld [vmem:[#allocation3_spill] sm:$0xff] }
  0x9d   : > { %v1114_v44 = vadd.f32 %v1011_v19, %v836_v30  ;;  %v5586_v53 = vrot.slane %v3472_v2, 2  ;;  %v5670_v33 = vrot.slane %v3261_v50, 1  ;;  %v5671_v6 = vrot.slane %v3255_v46, 1 }
  0x9e   : > { %v906_v21 = vmul.f32 %v3062_v57, %v779_v27  ;;  %v1464_v60 = vmul.f32 %v3089_v7, %v779_v27  ;;  %v3497_v49 = vmul.f32 %v3072_v0, %v779_v27  ;;  %v1394_v38 = vmul.f32 %v3188_v58, %v779_v27 }
  0x9f   : > { %v2120_v11 = vsel %vm996_vm0, %v2117_v31, %v5670_v33  ;;  %v1566_v25 = vsel %vm996_vm0, %v1563_v36, %v5671_v6  ;;  %v5672_v51 = vrot.slane %v3264_v61, 2  ;;  %v1951_v41 = vmul.f32 %v3441_v47, %v779_v27 }
  0xa0   : > { %v2229_v62 = vadd.f32 %v2120_v11, %v1984_v3  ;;  %v1007_v50 = vrot.slane %v906_v21, 1  ;;  %v2020_v19 = vmul.f32 %v3213_v15, %v779_v27  ;;  %v1562_v46 = vrot.slane %v1464_v60, 1 }
  0xa1   : > { %v2365_v52 = vsel %vm1242_vm1, %v2362_v4, %v5672_v51  ;;  %v2265_v33 = vmul.f32 %v3221_v16, %v779_v27  ;;  %v415_v3 = vmax.f32 %v3379_v32, 0.0  ;;  %v1672_v61 = vadd.f32 %v1566_v25, %v1427_v35 }
  0xa2   : > { %v2474_v30 = vadd.f32 %v2365_v52, %v2229_v62  ;;  %v3513_v21 = vmul.f32 %v3094_v8, %v779_v27  ;;  %v1983_v11 = vadd.f32 %v1951_v41, %v1914_v1  ;;  %v2116_v6 = vrot.slane %v2020_v19, 1 }
  0xa3   : > { %v2361_v62 = vrot.slane %v2265_v33, 2  ;;  %v5673_v60 = vrot.slane %v3135_v24, 1  ;;  %v5674_v52 = vrot.slane %v3144_v29, 1  ;;  %v793_v26 = vmul.f32 %v606_v9, %v415_v3 }
  0xa4   : > { %v2666_v51 = vadd.f32 %v3106_v12, %v2474_v30  ;;  %v835_v22 = vmul.f32 %v3124_v18, %v779_v27  ;;  %v1426_v35 = vadd.f32 %v1394_v38, %v3432_v17  ;;  %v2118_v25 = vsel %vm996_vm0, %v2116_v6, %v2117_v31 }
  0xa5   : > { %v3521_v32 = vsel %vm996_vm0, %v5674_v52, %v5673_v60  ;;  %v351_v1 = vadd.f32 %v3023_v37, %v3343_v45  ;;  %v1009_v12 = vsel %vm996_vm0, %v1007_v50, %v1008_v54  ;;  %v1253_v24 = vrot.slane %v3497_v49, 2  ;;  %v556_v45 = vpop.permute.xlu1 %555 }
  0xa6   : > { %2699 = vst.msk [vmem:[%s3510_s21 + $0x8] sm:$0xff] %vm2697_vm2, %v2666_v51  ;;  %v1564_v29 = vsel %vm996_vm0, %v1562_v46, %v1563_v36  ;;  %v2228_v41 = vadd.f32 %v2118_v25, %v1983_v11  ;;  %v1807_v19 = vrot.slane %v3513_v21, 2  ;;  %v2363_v27 = vsel %vm1242_vm1, %v2361_v62, %v2362_v4  ;;  %v5678_v11 = vld [vmem:[#allocation6_spill] sm:$0xff]  ;;  %v5681_v25 = vld [vmem:[#allocation16_spill] sm:$0xff] }
  0xa7   : > { %v3536_v17 = vmul.f32 %v3062_v57, %v793_v26  ;;  %v3539_v31 = vmul.f32 %v3072_v0, %v793_v26  ;;  %v3542_v54 = vmul.f32 %v3089_v7, %v793_v26  ;;  %v3545_v49 = vmul.f32 %v3094_v8, %v793_v26  ;;  %5687 = vst [vmem:[#allocation16_spill] sm:$0xff] %v3606_v14 }
  0xa8   : > { %v2473_v38 = vadd.f32 %v2363_v27, %v2228_v41  ;;  %v405_v36 = vmax.f32 %v351_v1, 0.0  ;;  %v1113_v50 = vadd.f32 %v1009_v12, %v835_v22  ;;  %v1671_v9 = vadd.f32 %v1564_v29, %v1426_v35 }
  0xa9   : > { %5675 = vst [vmem:[#allocation18_spill] sm:$0xff] %v3539_v31  ;;  %v5677_v30 = vrot.slane %v3251_v39, 2  ;;  %v3555_v3 = vmul.f32 %v3213_v15, %v793_v26  ;;  %v5679_v6 = vrot.slane %v5678_v11, 2  ;;  %v3565_v62 = vmul.f32 %v3221_v16, %v793_v26  ;;  %v551_v11 = vpop.permute.xlu0 %550 }
  0xaa   : > { %5676 = vst [vmem:[#allocation19_spill] sm:$0xff] %v3545_v49  ;;  %v2665_v33 = vadd.f32 %v3227_v23, %v2473_v38  ;;  %v783_v21 = vmul.f32 %v556_v45, %v405_v36  ;;  %v350_v1 = vadd.f32 %v3023_v37, %v5681_v25  ;;  %v5682_v38 = vld [vmem:[#allocation13_spill] sm:$0xff]  ;;  %v5683_v23 = vld [vmem:[#allocation11_spill] sm:$0xff]  ;;  %v5691_v36 = vrot.slane %v5690_v34, 1 }
  0xab   : > { %v1257_v46 = vsel %vm1242_vm1, %v1254_v10, %v5677_v30  ;;  %v1811_v22 = vsel %vm1242_vm1, %v5586_v53, %v5679_v6  ;;  %5680 = vst [vmem:[#allocation6_spill] sm:$0xff] %v3565_v62  ;;  %v5684_v51 = vrot.slane %v5683_v23, 1  ;;  %v5688_v23 = vld [vmem:[#allocation12_spill] sm:$0xff] }
  0xac   : > { %v1917_v60 = vadd.f32 %v1811_v22, %v1672_v61  ;;  %2698 = vst.msk [vmem:[%s3510_s21] sm:$0xff] %vm2697_vm2, %v2665_v33  ;;  %v910_v35 = vmul.f32 %v3062_v57, %v783_v21  ;;  %v1360_v12 = vadd.f32 %v1257_v46, %v1114_v44  ;;  %v3575_v29 = vmul.f32 %v3089_v7, %v783_v21 }
  0xad   : > { %v1954_v41 = vmul.f32 %v3441_v47, %v783_v21  ;;  %v2024_v26 = vmul.f32 %v3213_v15, %v783_v21  ;;  %v3580_v27 = vmul.f32 %v3072_v0, %v783_v21  ;;  %v3583_v45 = vmul.f32 %v3221_v16, %v783_v21 }
  0xae   : > { %v1013_v61 = vrot.slane %v910_v35, 1  ;;  %v1397_v30 = vmul.f32 %v3188_v58, %v783_v21  ;;  %v3588_v44 = vmul.f32 %v3094_v8, %v783_v21  ;;  %v1568_v22 = vrot.slane %v3575_v29, 1 }
  0xaf   : > { %v1986_v46 = vadd.f32 %v1954_v41, %v1917_v60  ;;  %v2122_v33 = vrot.slane %v2024_v26, 1  ;;  %v2367_v35 = vrot.slane %v3583_v45, 2  ;;  %v404_v25 = vmax.f32 %v350_v1, 0.0  ;;  %v5685_v41 = vld [vmem:[#allocation7_spill] sm:$0xff] }
  0xb0   : > { %v838_v39 = vmul.f32 %v3124_v18, %v783_v21  ;;  %v1255_v60 = vsel %vm1242_vm1, %v1253_v24, %v1254_v10  ;;  %v5686_v26 = vrot.slane %v5685_v41, 1  ;;  %v1429_v52 = vadd.f32 %v1397_v30, %v1360_v12  ;;  %v5693_v41 = vld [vmem:[#allocation9_spill] sm:$0xff] }
  0xb1   : > { %v2125_v4 = vsel %vm996_vm0, %v2122_v33, %v5684_v51  ;;  %v782_v1 = vmul.f32 %v551_v11, %v404_v25  ;;  %v5689_v53 = vrot.slane %v5688_v23, 2  ;;  %v5692_v10 = vrot.slane %v5682_v38, 1 }
  0xb2   : > { %v1016_v6 = vsel %vm996_vm0, %v1013_v61, %v5686_v26  ;;  %v2231_v45 = vadd.f32 %v2125_v4, %v1986_v46  ;;  %v5694_v26 = vrot.slane %v5693_v41, 1  ;;  %v5695_v30 = vrot.slane %v3472_v2, 2 }
  0xb3   : > { %v2370_v51 = vsel %vm1242_vm1, %v2367_v35, %v5689_v53  ;;  %v3617_v24 = vsel %vm996_vm0, %v5692_v10, %v5691_v36  ;;  %v909_v12 = vmul.f32 %v3062_v57, %v782_v1  ;;  %v1116_v11 = vadd.f32 %v1016_v6, %v838_v39  ;;  %v5696_v36 = vld [vmem:[#allocation2_spill] sm:$0xff]  ;;  %v5697_v10 = vld [vmem:[#allocation17_spill] sm:$0xff]  ;;  %v3635_v39 = vld [vmem:[%s3008_s20 + $0x68] sm:$0xff] }
  0xb4   : > { %v1571_v4 = vsel %vm996_vm0, %v1568_v22, %v5694_v26  ;;  %v2476_v46 = vadd.f32 %v2370_v51, %v2231_v45  ;;  %v1809_v53 = vsel %vm1242_vm1, %v1807_v19, %v5695_v30  ;;  %v1467_v25 = vmul.f32 %v3089_v7, %v782_v1 }
  0xb5   : > { %v1916_v23 = vadd.f32 %v1809_v53, %v1671_v9  ;;  %v306_v34 = vmul.f32 %v5696_v36, %v3606_v14  ;;  %v1012_v21 = vrot.slane %v909_v12, 1  ;;  %v1359_v26 = vadd.f32 %v1255_v60, %v1113_v50  ;;  %v5698_v60 = vld [vmem:[#allocation14_spill] sm:$0xff] }
  0xb6   : > { %v2668_v41 = vadd.f32 %v5697_v10, %v2476_v46  ;;  %v1953_v45 = vmul.f32 %v3441_v47, %v782_v1  ;;  %v1674_v51 = vadd.f32 %v1571_v4, %v1429_v52  ;;  %v1155_v29 = vmul.f32 %v3072_v0, %v782_v1 }
  0xb7   : > { %v1396_v2 = vmul.f32 %v3188_v58, %v782_v1  ;;  %v2023_v19 = vmul.f32 %v3213_v15, %v782_v1  ;;  %v1567_v9 = vrot.slane %v1467_v25, 1  ;;  %v1712_v6 = vmul.f32 %v3094_v8, %v782_v1 }
  0xb8   : > { %2701 = vst.msk [vmem:[%s3510_s21 + $0x18] sm:$0xff] %vm2697_vm2, %v2668_v41  ;;  %v1985_v30 = vadd.f32 %v1953_v45, %v1916_v23  ;;  %v2268_v46 = vmul.f32 %v3221_v16, %v782_v1  ;;  %v2563_v12 = vrot.slane %v5698_v60, 1  ;;  %v364_v52 = vadd.f32 %v3023_v37, %v306_v34  ;;  %v621_v41 = vpop.permute.xlu2 %620 }
  0xb9   : > { %v2121_v50 = vrot.slane %v2023_v19, 1  ;;  %v837_v53 = vmul.f32 %v3124_v18, %v782_v1  ;;  %v1014_v10 = vsel %vm996_vm0, %v1012_v21, %v1013_v61  ;;  %v296_v25 = vmul.f32 %v5696_v36, %v3635_v39 }
  0xba   : > { %v2366_v49 = vrot.slane %v2268_v46, 2  ;;  %v1258_v23 = vrot.slane %v1155_v29, 2  ;;  %v1428_v45 = vadd.f32 %v1396_v2, %v1359_v26  ;;  %v418_v31 = vmax.f32 %v364_v52, 0.0  ;;  %v571_v29 = vpop.permute.xlu1 %570  ;;  %v3658_v26 = vld [vmem:[%s3008_s20 + $0x60] sm:$0xff] }
  0xbb   : > { %v2123_v19 = vsel %vm996_vm0, %v2121_v50, %v2122_v33  ;;  %v1569_v60 = vsel %vm996_vm0, %v1567_v9, %v1568_v22  ;;  %v1812_v34 = vrot.slane %v1712_v6, 2  ;;  %v354_v4 = vadd.f32 %v3023_v37, %v296_v25  ;;  %v5700_v22 = vld [vmem:[#allocation8_spill] sm:$0xff]  ;;  %v5703_v50 = vld [vmem:[#allocation10_spill] sm:$0xff] }
  0xbc   : > { %v2230_v62 = vadd.f32 %v2123_v19, %v1985_v30  ;;  %v1115_v1 = vadd.f32 %v1014_v10, %v837_v53  ;;  %v2368_v61 = vsel %vm1242_vm1, %v2366_v49, %v2367_v35  ;;  %v5699_v21 = vrot.slane %v5682_v38, 1 }
  0xbd   : > { %v796_v14 = vmul.f32 %v621_v41, %v418_v31  ;;  %v408_v2 = vmax.f32 %v354_v4, 0.0  ;;  %v5701_v9 = vrot.slane %v5700_v22, 2  ;;  %v5702_v6 = vrot.slane %v3580_v27, 2 }
  0xbe   : > { %v3655_v46 = vsel %vm996_vm0, %v2563_v12, %v5699_v21  ;;  %v2475_v33 = vadd.f32 %v2368_v61, %v2230_v62  ;;  %v5704_v49 = vrot.slane %v5703_v50, 2  ;;  %v5705_v38 = vrot.slane %v3588_v44, 2 }
  0xbf   : > { %v1262_v30 = vsel %vm1242_vm1, %v5702_v6, %v5701_v9  ;;  %v1673_v12 = vadd.f32 %v1569_v60, %v1428_v45  ;;  %v786_v4 = vmul.f32 %v571_v29, %v408_v2  ;;  %v295_v10 = vmul.f32 %v5696_v36, %v3658_v26 }
  0xc0   : > { %v1816_v35 = vsel %vm1242_vm1, %v5705_v38, %v5704_v49  ;;  %v1362_v31 = vadd.f32 %v1262_v30, %v1116_v11  ;;  %v2667_v62 = vadd.f32 %v3521_v32, %v2475_v33  ;;  %v5706_v41 = vmov %v5702_v6  ;;  %v3737_v6 = vld [vmem:[%s3008_s20 + $0x80] sm:$0xff] }
  0xc1   : > { %v1919_v52 = vadd.f32 %v1816_v35, %v1674_v51  ;;  %v1260_v25 = vsel %vm1242_vm1, %v1258_v23, %v5706_v41  ;;  %v3678_v19 = vmul.f32 %v3062_v57, %v796_v14  ;;  %v3681_v61 = vmul.f32 %v3072_v0, %v796_v14 }
  0xc2   : > { %v3684_v11 = vmul.f32 %v3089_v7, %v796_v14  ;;  %v3686_v51 = vadd.f32 %v1260_v25, %v1115_v1  ;;  %2700 = vst.msk [vmem:[%s3510_s21 + $0x10] sm:$0xff] %vm2697_vm2, %v2667_v62  ;;  %v3691_v32 = vmul.f32 %v3094_v8, %v796_v14  ;;  %v3694_v27 = vmul.f32 %v3213_v15, %v796_v14  ;;  %v3730_v62 = vld [vmem:[%s3008_s20 + $0xd0] sm:$0x3]  ;;  %v566_v25 = vpop.permute.xlu0 %565 }
  0xc3   : > { %5707 = vst [vmem:[#allocation13_spill] sm:$0xff] %v3681_v61  ;;  %v3697_v23 = vmul.f32 %v3062_v57, %v786_v4  ;;  %v5709_v45 = vmov %v5705_v38  ;;  %v3703_v21 = vmul.f32 %v3221_v16, %v796_v14  ;;  %v3706_v1 = vmul.f32 %v3072_v0, %v786_v4 }
  0xc4   : > { %5708 = vst [vmem:[#allocation11_spill] sm:$0xff] %v3691_v32  ;;  %v1814_v60 = vsel %vm1242_vm1, %v1812_v34, %v5709_v45  ;;  %v1399_v29 = vmul.f32 %v3188_v58, %v786_v4  ;;  %v3710_v33 = vmul.f32 %v3089_v7, %v786_v4  ;;  %v1956_v22 = vmul.f32 %v3441_v47, %v786_v4 }
  0xc5   : > { %5710 = vst [vmem:[#allocation7_spill] sm:$0xff] %v3703_v21  ;;  %v5593_v2 = vrot.slane %v3697_v23, 1  ;;  %v3715_v44 = vmul.f32 %v3213_v15, %v786_v4  ;;  %v3718_v14 = vmul.f32 %v3221_v16, %v786_v4  ;;  %v3725_v50 = vmul.f32 %v3094_v8, %v786_v4  ;;  %v3805_v21 = vld [vmem:[%s3008_s20 + $0x78] sm:$0xff] }
  0xc6   : > { %v1573_v30 = vrot.slane %v3710_v33, 1  ;;  %v1988_v49 = vadd.f32 %v1956_v22, %v1919_v52  ;;  %5711 = vst [vmem:[#allocation12_spill] sm:$0xff] %v3730_v62  ;;  %v840_v45 = vmul.f32 %v3124_v18, %v786_v4  ;;  %v353_v9 = vadd.f32 %v3023_v37, %v295_v10  ;;  %v5712_v33 = vld [vmem:[#allocation15_spill] sm:$0xff] }
  0xc7   : > { %v2127_v38 = vrot.slane %v3715_v44, 1  ;;  %v5713_v34 = vrot.slane %v5712_v33, 1  ;;  %v1431_v44 = vadd.f32 %v1399_v29, %v1362_v31  ;;  %v5714_v53 = vrot.slane %v3375_v40, 1 }
  0xc8   : > { %v5715_v4 = vrot.slane %v3365_v42, 1  ;;  %v407_v32 = vmax.f32 %v353_v9, 0.0  ;;  %v309_v33 = vmul.f32 %v5696_v36, %v3730_v62  ;;  %v5716_v31 = vrot.slane %v3383_v55, 2  ;;  %v5718_v9 = vld [vmem:[#allocation4_spill] sm:$0xff] }
  0xc9   : > { %v1021_v52 = vsel %vm996_vm0, %v5593_v2, %v5713_v34  ;;  %v2130_v41 = vsel %vm996_vm0, %v2127_v38, %v5714_v53  ;;  %v5717_v40 = vrot.slane %v3718_v14, 2  ;;  %v299_v42 = vmul.f32 %v5696_v36, %v3737_v6 }
  0xca   : > { %v1576_v10 = vsel %vm996_vm0, %v1573_v30, %v5715_v4  ;;  %v2233_v35 = vadd.f32 %v2130_v41, %v1988_v49  ;;  %v1118_v29 = vadd.f32 %v1021_v52, %v840_v45  ;;  %v5719_v41 = vrot.slane %v5718_v9, 1 }
  0xcb   : > { %v2375_v53 = vsel %vm1242_vm1, %v5717_v40, %v5716_v31  ;;  %v5720_v4 = vrot.slane %v3635_v39, 1  ;;  %v785_v2 = vmul.f32 %v566_v25, %v407_v32  ;;  %v1676_v34 = vadd.f32 %v1576_v10, %v1431_v44 }
  0xcc   : > { %v2478_v49 = vadd.f32 %v2375_v53, %v2233_v35  ;;  %v1918_v55 = vadd.f32 %v1814_v60, %v1673_v12  ;;  %v2568_v22 = vrot.slane %v3658_v26, 1  ;;  %v367_v35 = vadd.f32 %v3023_v37, %v309_v33 }
  0xcd   : > { %v3767_v61 = vsel %vm996_vm0, %v5720_v4, %v5719_v41  ;;  %v912_v36 = vmul.f32 %v3062_v57, %v785_v2  ;;  %v5721_v45 = vrot.slane %v3362_v13, 2  ;;  %v5722_v52 = vrot.slane %v3706_v1, 2 }
  0xce   : > { %v2670_v40 = vadd.f32 %v3617_v24, %v2478_v49  ;;  %v1398_v32 = vmul.f32 %v3188_v58, %v785_v2  ;;  %v1470_v12 = vmul.f32 %v3089_v7, %v785_v2  ;;  %v1955_v26 = vmul.f32 %v3441_v47, %v785_v2  ;;  %v636_v49 = vpop.permute.xlu2 %635 }
  0xcf   : > { %v1267_v53 = vsel %vm1242_vm1, %v5722_v52, %v5721_v45  ;;  %v357_v60 = vadd.f32 %v3023_v37, %v299_v42  ;;  %v1017_v24 = vrot.slane %v912_v36, 1  ;;  %v1158_v25 = vmul.f32 %v3072_v0, %v785_v2  ;;  %v586_v52 = vpop.permute.xlu1 %585 }
  0xd0   : > { %2703 = vst.msk [vmem:[%s3510_s21 + $0x28] sm:$0xff] %vm2697_vm2, %v2670_v40  ;;  %v2026_v44 = vmul.f32 %v3213_v15, %v785_v2  ;;  %v2271_v13 = vmul.f32 %v3221_v16, %v785_v2  ;;  %v1572_v10 = vrot.slane %v1470_v12, 1  ;;  %v1987_v33 = vadd.f32 %v1955_v26, %v1918_v55 }
  0xd1   : > { %v5723_v9 = vrot.slane %v3368_v56, 2  ;;  %v5724_v41 = vrot.slane %v3725_v50, 2  ;;  %v3795_v42 = vmul.f32 %v3094_v8, %v785_v2  ;;  %v421_v45 = vmax.f32 %v367_v35, 0.0 }
  0xd2   : > { %v2126_v40 = vrot.slane %v2026_v44, 1  ;;  %v2371_v36 = vrot.slane %v2271_v13, 2  ;;  %v839_v12 = vmul.f32 %v3124_v18, %v785_v2  ;;  %v5725_v55 = vrot.slane %v3697_v23, 1 }
  0xd3   : > { %v1821_v4 = vsel %vm1242_vm1, %v5724_v41, %v5723_v9  ;;  %v1430_v26 = vadd.f32 %v1398_v32, %v3686_v51  ;;  %v411_v31 = vmax.f32 %v357_v60, 0.0  ;;  %v1263_v62 = vrot.slane %v1158_v25, 2 }
  0xd4   : > { %v1019_v56 = vsel %vm996_vm0, %v1017_v24, %v5725_v55  ;;  %v1574_v9 = vsel %vm996_vm0, %v1572_v10, %v1573_v30  ;;  %v2128_v41 = vsel %vm996_vm0, %v2126_v40, %v2127_v38  ;;  %v799_v37 = vmul.f32 %v636_v49, %v421_v45  ;;  %v5728_v10 = vld [vmem:[#allocation5_spill] sm:$0xff] }
  0xd5   : > { %v2232_v44 = vadd.f32 %v2128_v41, %v1987_v33  ;;  %v5726_v35 = vrot.slane %v3635_v39, 1  ;;  %v789_v23 = vmul.f32 %v586_v52, %v411_v31  ;;  %v1364_v13 = vadd.f32 %v1267_v53, %v1118_v29 }
  0xd6   : > { %v1117_v24 = vadd.f32 %v1019_v56, %v839_v12  ;;  %v1817_v51 = vrot.slane %v3795_v42, 2  ;;  %v5727_v32 = vrot.slane %v3718_v14, 2  ;;  %v1921_v60 = vadd.f32 %v1821_v4, %v1676_v34 }
  0xd7   : > { %v3810_v2 = vsel %vm996_vm0, %v2568_v22, %v5726_v35  ;;  %v1675_v38 = vadd.f32 %v1574_v9, %v1430_v26  ;;  %v5729_v49 = vrot.slane %v5728_v10, 1  ;;  %v5730_v33 = vrot.slane %v3737_v6, 1  ;;  %v3826_v22 = vld [vmem:[%s5562_s2] ss:$0 sm:$0xff] }
  0xd8   : > { %v2373_v30 = vsel %vm1242_vm1, %v2371_v36, %v5727_v32  ;;  %v298_v14 = vmul.f32 %v3826_v22, %v3805_v21  ;;  %v3831_v34 = vmul.f32 %v3062_v57, %v799_v37  ;;  %v3834_v29 = vmul.f32 %v3072_v0, %v799_v37 }
  0xd9   : > { %v2477_v25 = vadd.f32 %v2373_v30, %v2232_v44  ;;  %v3821_v39 = vsel %vm996_vm0, %v5730_v33, %v5729_v49  ;;  %v3837_v31 = vmul.f32 %v3089_v7, %v799_v37  ;;  %v5731_v53 = vrot.slane %v3706_v1, 2 }
  0xda   : > { %v3844_v40 = vmul.f32 %v3094_v8, %v799_v37  ;;  %v3847_v36 = vmul.f32 %v3213_v15, %v799_v37  ;;  %v3850_v45 = vmul.f32 %v3062_v57, %v789_v23  ;;  %v3853_v52 = vmul.f32 %v3221_v16, %v799_v37 }
  0xdb   : > { %v1265_v4 = vsel %vm1242_vm1, %v1263_v62, %v5731_v53  ;;  %v2669_v42 = vadd.f32 %v3655_v46, %v2477_v25  ;;  %v842_v12 = vmul.f32 %v3124_v18, %v789_v23  ;;  %v1401_v1 = vmul.f32 %v3188_v58, %v789_v23 }
  0xdc   : > { %v3858_v62 = vmul.f32 %v3089_v7, %v789_v23  ;;  %v1023_v46 = vrot.slane %v3850_v45, 1  ;;  %v1958_v55 = vmul.f32 %v3441_v47, %v789_v23  ;;  %v3865_v57 = vmul.f32 %v3213_v15, %v789_v23 }
  0xdd   : > { %2702 = vst.msk [vmem:[%s3510_s21 + $0x20] sm:$0xff] %vm2697_vm2, %v2669_v42  ;;  %v3868_v37 = vmul.f32 %v3221_v16, %v789_v23  ;;  %v3873_v7 = vmul.f32 %v3072_v0, %v789_v23  ;;  %v3877_v9 = vmul.f32 %v3094_v8, %v789_v23  ;;  %v3887_v0 = vld [vmem:[%s5563_s3] ss:$0 sm:$0xff]  ;;  %v3891_v8 = vld [vmem:[%s3008_s20 + $0xe8] sm:$0x3]  ;;  %v3894_v23 = vld [vmem:[%s3008_s20 + $0x98] sm:$0xff]  ;;  %v1433_v53 = vadd.f32 %v1401_v1, %v1364_v13 }
  0xde   : > { %v1578_v26 = vrot.slane %v3858_v62, 1  ;;  %v1990_v41 = vadd.f32 %v1958_v55, %v1921_v60  ;;  %v2132_v44 = vrot.slane %v3865_v57, 1  ;;  %v356_v10 = vadd.f32 %v3887_v0, %v298_v14  ;;  %5732 = vst [vmem:[#allocation3_spill] sm:$0xff] %v3891_v8  ;;  %v581_v14 = vpop.permute.xlu0 %580 }
  0xdf   : > { %v5596_v35 = vrot.slane %v3868_v37, 2  ;;  %v5733_v49 = vrot.slane %v3411_v48, 1  ;;  %v5734_v42 = vrot.slane %v3448_v59, 1  ;;  %v5598_v30 = vrot.slane %v3873_v7, 2 }
  0xe0   : > { %v5735_v56 = vrot.slane %v3422_v5, 1  ;;  %v410_v32 = vmax.f32 %v356_v10, 0.0  ;;  %v5736_v13 = vrot.slane %v3461_v63, 2  ;;  %v312_v1 = vmul.f32 %v3826_v22, %v3891_v8  ;;  %v5752_v8 = vld [vmem:[#allocation6_spill] sm:$0xff] }
  0xe1   : > { %v1026_v33 = vsel %vm996_vm0, %v1023_v46, %v5733_v49  ;;  %v2135_v55 = vsel %vm996_vm0, %v2132_v44, %v5734_v42  ;;  %v302_v5 = vmul.f32 %v3826_v22, %v3894_v23  ;;  %v1363_v63 = vadd.f32 %v1265_v4, %v1117_v24  ;;  %v3940_v24 = vld [vmem:[%s5564_s4 + $0x4] ss:$0 sm:$0xff] }
  0xe2   : > { %v1581_v48 = vsel %vm996_vm0, %v1578_v26, %v5735_v56  ;;  %v2235_v60 = vadd.f32 %v2135_v55, %v1990_v41  ;;  %v2380_v59 = vsel %vm1242_vm1, %v5596_v35, %v5736_v13  ;;  %v1120_v42 = vadd.f32 %v1026_v33, %v842_v12  ;;  %v3931_v35 = vld [vmem:[%s5564_s4 + $0x1] ss:$0 sm:$0xff] }
  0xe3   : > { %v788_v25 = vmul.f32 %v581_v14, %v410_v32  ;;  %v5737_v56 = vrot.slane %v3725_v50, 2  ;;  %v1678_v10 = vadd.f32 %v1581_v48, %v1433_v53  ;;  %v2573_v49 = vrot.slane %v3805_v21, 1  ;;  %v3957_v53 = vld [vmem:[%s5564_s4 + $0x2] ss:$0 sm:$0xff] }
  0xe4   : > { %v2480_v18 = vadd.f32 %v2380_v59, %v2235_v60  ;;  %v370_v32 = vadd.f32 %v3887_v0, %v312_v1  ;;  %v3970_v1 = vld [vmem:[%s5564_s4 + $0x5] ss:$0 sm:$0xff]  ;;  %v5750_v50 = vrot.slane %v3555_v3, 1 }
  0xe5   : > { %v1819_v41 = vsel %vm1242_vm1, %v1817_v51, %v5737_v56  ;;  %v915_v12 = vmul.f32 %v3931_v35, %v788_v25  ;;  %v1400_v51 = vmul.f32 %v3188_v58, %v788_v25  ;;  %v1957_v21 = vmul.f32 %v3441_v47, %v788_v25 }
  0xe6   : > { %v1920_v55 = vadd.f32 %v1819_v41, %v1675_v38  ;;  %v2672_v13 = vadd.f32 %v3767_v61, %v2480_v18  ;;  %v1473_v61 = vmul.f32 %v3940_v24, %v788_v25  ;;  %v360_v38 = vadd.f32 %v3887_v0, %v302_v5 }
  0xe7   : > { %v1022_v4 = vrot.slane %v915_v12, 1  ;;  %v2029_v18 = vmul.f32 %v3213_v15, %v788_v25  ;;  %v2274_v60 = vmul.f32 %v3221_v16, %v788_v25  ;;  %v5738_v58 = vrot.slane %v3419_v20, 2  ;;  %v651_v20 = vpop.permute.xlu2 %650  ;;  %v601_v12 = vpop.permute.xlu1 %600 }
  0xe8   : > { %2705 = vst.msk [vmem:[%s3510_s21 + $0x38] sm:$0xff] %vm2697_vm2, %v2672_v13  ;;  %v3960_v14 = vmul.f32 %v3957_v53, %v788_v25  ;;  %v1577_v48 = vrot.slane %v1473_v61, 1  ;;  %v1989_v59 = vadd.f32 %v1957_v21, %v1920_v55  ;;  %v5739_v15 = vrot.slane %v3737_v6, 1  ;;  %v3982_v21 = vld [vmem:[%s5564_s4] ss:$0 sm:$0xff] }
  0xe9   : > { %v1272_v33 = vsel %vm1242_vm1, %v5598_v30, %v5738_v58  ;;  %v3973_v5 = vmul.f32 %v3970_v1, %v788_v25  ;;  %v2131_v56 = vrot.slane %v2029_v18, 1  ;;  %v2376_v41 = vrot.slane %v2274_v60, 2  ;;  %v4083_v30 = vld [vmem:[%s3008_s20 + $0x100] sm:$0x3] }
  0xea   : > { %v3965_v16 = vsel %vm996_vm0, %v2573_v49, %v5739_v15  ;;  %v424_v13 = vmax.f32 %v370_v32, 0.0  ;;  %v1024_v6 = vsel %vm996_vm0, %v1022_v4, %v1023_v46  ;;  %v1432_v49 = vadd.f32 %v1400_v51, %v1363_v63  ;;  %v3997_v15 = vld [vmem:[%s3008_s20 + $0x90] sm:$0xff]  ;;  %5747 = vst [vmem:[#allocation14_spill] sm:$0xff] %v4083_v30 }
  0xeb   : > { %v414_v55 = vmax.f32 %v360_v38, 0.0  ;;  %v5597_v61 = vrot.slane %v3894_v23, 1  ;;  %v841_v58 = vmul.f32 %v3982_v21, %v788_v25  ;;  %v1579_v32 = vsel %vm996_vm0, %v1577_v48, %v1578_v26 }
  0xec   : > { %v2133_v45 = vsel %vm996_vm0, %v2131_v56, %v2132_v44  ;;  %v802_v46 = vmul.f32 %v651_v20, %v424_v13  ;;  %v1366_v38 = vadd.f32 %v1272_v33, %v1120_v42  ;;  %v5740_v4 = vrot.slane %v3430_v28, 2  ;;  %v4031_v56 = vld [vmem:[%s5564_s4 + $0x7] ss:$0 sm:$0xff] }
  0xed   : > { %v2234_v63 = vadd.f32 %v2133_v45, %v1989_v59  ;;  %v792_v51 = vmul.f32 %v601_v12, %v414_v55  ;;  %v5741_v18 = vrot.slane %v3877_v9, 2  ;;  %v3999_v25 = vadd.f32 %v1024_v6, %v841_v58  ;;  %v4042_v12 = vld [vmem:[%s5564_s4 + $0x8] ss:$0 sm:$0xff] }
  0xee   : > { %v1268_v62 = vrot.slane %v3960_v14, 2  ;;  %v1822_v57 = vrot.slane %v3973_v5, 2  ;;  %v5742_v26 = vrot.slane %v3868_v37, 2  ;;  %v1677_v48 = vadd.f32 %v1579_v32, %v1432_v49  ;;  %v4051_v49 = vld [vmem:[%s5564_s4 + $0x3] ss:$0 sm:$0xff]  ;;  %v4086_v32 = vld [vmem:[%s3008_s20 + $0xb0] sm:$0xff] }
  0xef   : > { %v1826_v60 = vsel %vm1242_vm1, %v5741_v18, %v5740_v4  ;;  %v5743_v28 = vrot.slane %v3310_v43, 1  ;;  %v4014_v20 = vmul.f32 %v3931_v35, %v802_v46  ;;  %v4017_v14 = vmul.f32 %v3957_v53, %v802_v46  ;;  %v596_v4 = vpop.permute.xlu0 %595 }
  0xf0   : > { %v2378_v44 = vsel %vm1242_vm1, %v2376_v41, %v5742_v26  ;;  %v1923_v33 = vadd.f32 %v1826_v60, %v1678_v10  ;;  %v4020_v37 = vmul.f32 %v3940_v24, %v802_v46  ;;  %v301_v10 = vmul.f32 %v3826_v22, %v3997_v15 }
  0xf1   : > { %v2479_v42 = vadd.f32 %v2378_v44, %v2234_v63  ;;  %v4011_v59 = vsel %vm996_vm0, %v5597_v61, %v5743_v28  ;;  %5744 = vst [vmem:[#allocation9_spill] sm:$0xff] %v4017_v14  ;;  %v4026_v5 = vmul.f32 %v3970_v1, %v802_v46  ;;  %v4034_v41 = vmul.f32 %v4031_v56, %v802_v46 }
  0xf2   : > { %v4037_v13 = vmul.f32 %v3931_v35, %v792_v51  ;;  %v844_v6 = vmul.f32 %v3982_v21, %v792_v51  ;;  %v1403_v55 = vmul.f32 %v4051_v49, %v792_v51  ;;  %v4055_v58 = vmul.f32 %v3940_v24, %v792_v51 }
  0xf3   : > { %v2671_v43 = vadd.f32 %v3810_v2, %v2479_v42  ;;  %5745 = vst [vmem:[#allocation2_spill] sm:$0xff] %v4026_v5  ;;  %v4045_v2 = vmul.f32 %v4042_v12, %v802_v46  ;;  %v1960_v45 = vmul.f32 %v3441_v47, %v792_v51  ;;  %v4062_v46 = vmul.f32 %v4031_v56, %v792_v51 }
  0xf4   : > { %v4065_v63 = vmul.f32 %v4042_v12, %v792_v51  ;;  %v4070_v60 = vmul.f32 %v3957_v53, %v792_v51  ;;  %v1583_v26 = vrot.slane %v4055_v58, 1  ;;  %v4074_v44 = vmul.f32 %v3970_v1, %v792_v51 }
  0xf5   : > { %5746 = vst [vmem:[#allocation17_spill] sm:$0xff] %v4045_v2  ;;  %v1992_v42 = vadd.f32 %v1960_v45, %v1923_v33  ;;  %v2137_v28 = vrot.slane %v4062_v46, 1  ;;  %v359_v18 = vadd.f32 %v3887_v0, %v301_v10  ;;  %v5748_v33 = vrot.slane %v3536_v17, 1 }
  0xf6   : > { %2704 = vst.msk [vmem:[%s3510_s21 + $0x30] sm:$0xff] %vm2697_vm2, %v2671_v43  ;;  %v5749_v58 = vrot.slane %v4037_v13, 1  ;;  %v1435_v46 = vadd.f32 %v1403_v55, %v1366_v38  ;;  %v5751_v43 = vrot.slane %v3542_v54, 1  ;;  %v5753_v2 = vrot.slane %v5752_v8, 2 }
  0xf7   : > { %v2140_v61 = vsel %vm996_vm0, %v2137_v28, %v5750_v50  ;;  %v413_v51 = vmax.f32 %v359_v18, 0.0  ;;  %v315_v3 = vmul.f32 %v3826_v22, %v4083_v30  ;;  %v305_v50 = vmul.f32 %v3826_v22, %v4086_v32  ;;  %v5762_v30 = vld [vmem:[#allocation19_spill] sm:$0xff] }
  0xf8   : > { %v1031_v45 = vsel %vm996_vm0, %v5749_v58, %v5748_v33  ;;  %v1586_v5 = vsel %vm996_vm0, %v1583_v26, %v5751_v43  ;;  %v2237_v14 = vadd.f32 %v2140_v61, %v1992_v42  ;;  %v5754_v33 = vrot.slane %v4065_v63, 2 }
  0xf9   : > { %v1122_v55 = vadd.f32 %v1031_v45, %v844_v6  ;;  %v791_v43 = vmul.f32 %v596_v4, %v413_v51  ;;  %v5755_v61 = vrot.slane %v3877_v9, 2  ;;  %v1680_v42 = vadd.f32 %v1586_v5, %v1435_v46 }
  0xfa   : > { %v2385_v38 = vsel %vm1242_vm1, %v5754_v33, %v5753_v2  ;;  %v5756_v8 = vrot.slane %v3873_v7, 2  ;;  %v2578_v33 = vrot.slane %v3997_v15, 1  ;;  %v363_v7 = vadd.f32 %v3887_v0, %v305_v50 }
  0xfb   : > { %v2482_v54 = vadd.f32 %v2385_v38, %v2237_v14  ;;  %v1824_v18 = vsel %vm1242_vm1, %v1822_v57, %v5755_v61  ;;  %v918_v10 = vmul.f32 %v3931_v35, %v791_v43  ;;  %v373_v14 = vadd.f32 %v3887_v0, %v315_v3  ;;  %v666_v38 = vpop.permute.xlu2 %665 }
  0xfc   : > { %v1270_v58 = vsel %vm1242_vm1, %v1268_v62, %v5756_v8  ;;  %v1922_v2 = vadd.f32 %v1824_v18, %v1677_v48  ;;  %v1402_v9 = vmul.f32 %v4051_v49, %v791_v43  ;;  %v1476_v57 = vmul.f32 %v3940_v24, %v791_v43 }
  0xfd   : > { %v2674_v17 = vadd.f32 %v3821_v39, %v2482_v54  ;;  %v1365_v6 = vadd.f32 %v1270_v58, %v3999_v25  ;;  %v1959_v5 = vmul.f32 %v3441_v47, %v791_v43  ;;  %v1027_v62 = vrot.slane %v918_v10, 1  ;;  %v616_v54 = vpop.permute.xlu1 %615 }
  0xfe   : > { %v2032_v15 = vmul.f32 %v4031_v56, %v791_v43  ;;  %v2277_v39 = vmul.f32 %v4042_v12, %v791_v43  ;;  %v4132_v25 = vmul.f32 %v3957_v53, %v791_v43  ;;  %v1582_v4 = vrot.slane %v1476_v57, 1 }
  0xff   : > { %2707 = vst.msk [vmem:[%s3510_s21 + $0x48] sm:$0xff] %vm2697_vm2, %v2674_v17  ;;  %v1991_v51 = vadd.f32 %v1959_v5, %v1922_v2  ;;  %v5757_v45 = vrot.slane %v3894_v23, 1  ;;  %v4140_v17 = vmul.f32 %v3970_v1, %v791_v43  ;;  %v427_v50 = vmax.f32 %v373_v14, 0.0  ;;  %v5759_v2 = vld [vmem:[#allocation18_spill] sm:$0xff] }
 0x100   : > { %v2136_v10 = vrot.slane %v2032_v15, 1  ;;  %v2381_v3 = vrot.slane %v2277_v39, 2  ;;  %v5758_v61 = vrot.slane %v4037_v13, 1  ;;  %v1434_v8 = vadd.f32 %v1402_v9, %v1365_v6 }
 0x101   : > { %v4137_v46 = vsel %vm996_vm0, %v2578_v33, %v5757_v45  ;;  %v417_v58 = vmax.f32 %v363_v7, 0.0  ;;  %v5760_v23 = vrot.slane %v5759_v2, 2  ;;  %v5761_v33 = vrot.slane %v4070_v60, 2  ;;  %v4159_v7 = vld [vmem:[%s3008_s20 + $0xa8] sm:$0xff] }
 0x102   : > { %v1029_v18 = vsel %vm996_vm0, %v1027_v62, %v5758_v61  ;;  %v843_v5 = vmul.f32 %v3982_v21, %v791_v43  ;;  %v1584_v15 = vsel %vm996_vm0, %v1582_v4, %v1583_v26  ;;  %v2138_v39 = vsel %vm996_vm0, %v2136_v10, %v2137_v28 }
 0x103   : > { %v1277_v57 = vsel %vm1242_vm1, %v5761_v33, %v5760_v23  ;;  %v805_v14 = vmul.f32 %v666_v38, %v427_v50  ;;  %v2236_v45 = vadd.f32 %v2138_v39, %v1991_v51  ;;  %v795_v48 = vmul.f32 %v616_v54, %v417_v58 }
 0x104   : > { %v1368_v13 = vadd.f32 %v1277_v57, %v1122_v55  ;;  %v5763_v62 = vrot.slane %v5762_v30, 2  ;;  %v5764_v6 = vrot.slane %v4074_v44, 2  ;;  %v1121_v61 = vadd.f32 %v1029_v18, %v843_v5  ;;  %v5772_v30 = vld [vmem:[#allocation7_spill] sm:$0xff] }
 0x105   : > { %v1273_v2 = vrot.slane %v4132_v25, 2  ;;  %v1827_v43 = vrot.slane %v4140_v17, 2  ;;  %v5765_v26 = vrot.slane %v4065_v63, 2  ;;  %v1679_v4 = vadd.f32 %v1584_v15, %v1434_v8  ;;  %v4226_v15 = vld [vmem:[%s3008_s20 + $0x118] sm:$0x3] }
 0x106   : > { %v1831_v9 = vsel %vm1242_vm1, %v5764_v6, %v5763_v62  ;;  %v4168_v38 = vmul.f32 %v3931_v35, %v805_v14  ;;  %v4171_v10 = vmul.f32 %v3957_v53, %v805_v14  ;;  %v4174_v25 = vmul.f32 %v3940_v24, %v805_v14  ;;  %5769 = vst [vmem:[#allocation15_spill] sm:$0xff] %v4226_v15 }
 0x107   : > { %v2383_v28 = vsel %vm1242_vm1, %v2381_v3, %v5765_v26  ;;  %v1925_v51 = vadd.f32 %v1831_v9, %v1680_v42  ;;  %v304_v63 = vmul.f32 %v3826_v22, %v4159_v7  ;;  %v4180_v3 = vmul.f32 %v3970_v1, %v805_v14  ;;  %v611_v9 = vpop.permute.xlu0 %610 }
 0x108   : > { %v2481_v55 = vadd.f32 %v2383_v28, %v2236_v45  ;;  %5766 = vst [vmem:[#allocation8_spill] sm:$0xff] %v4171_v10  ;;  %v4183_v42 = vmul.f32 %v4031_v56, %v805_v14  ;;  %v4186_v50 = vmul.f32 %v3931_v35, %v795_v48  ;;  %v4189_v54 = vmul.f32 %v4042_v12, %v805_v14  ;;  %v631_v10 = vpop.permute.xlu1 %630 }
 0x109   : > { %5767 = vst [vmem:[#allocation10_spill] sm:$0xff] %v4180_v3  ;;  %v846_v18 = vmul.f32 %v3982_v21, %v795_v48  ;;  %v1405_v8 = vmul.f32 %v4051_v49, %v795_v48  ;;  %v4194_v58 = vmul.f32 %v3940_v24, %v795_v48  ;;  %v1962_v23 = vmul.f32 %v3441_v47, %v795_v48 }
 0x10a   : > { %v2673_v17 = vadd.f32 %v3965_v16, %v2481_v55  ;;  %v5604_v16 = vrot.slane %v4186_v50, 1  ;;  %v4201_v33 = vmul.f32 %v4031_v56, %v795_v48  ;;  %v4204_v57 = vmul.f32 %v4042_v12, %v795_v48 }
 0x10b   : > { %v4209_v39 = vmul.f32 %v3957_v53, %v795_v48  ;;  %v5606_v14 = vrot.slane %v4194_v58, 1  ;;  %v4213_v45 = vmul.f32 %v3970_v1, %v795_v48  ;;  %v1994_v62 = vadd.f32 %v1962_v23, %v1925_v51 }
 0x10c   : > { %2706 = vst.msk [vmem:[%s3510_s21 + $0x40] sm:$0xff] %vm2697_vm2, %v2673_v17  ;;  %v2142_v47 = vrot.slane %v4201_v33, 1  ;;  %v5605_v6 = vrot.slane %v4204_v57, 2  ;;  %v5768_v28 = vrot.slane %v3678_v19, 1  ;;  %v362_v17 = vadd.f32 %v3887_v0, %v304_v63 }
 0x10d   : > { %v1437_v23 = vadd.f32 %v1405_v8, %v1368_v13  ;;  %v5770_v33 = vrot.slane %v3694_v27, 1  ;;  %v5771_v5 = vrot.slane %v3684_v11, 1  ;;  %v5773_v13 = vrot.slane %v5772_v30, 2 }
 0x10e   : > { %v1036_v55 = vsel %vm996_vm0, %v5604_v16, %v5768_v28  ;;  %v416_v16 = vmax.f32 %v362_v17, 0.0  ;;  %v318_v8 = vmul.f32 %v3826_v22, %v4226_v15  ;;  %v5774_v19 = vrot.slane %v4070_v60, 2 }
 0x10f   : > { %v2145_v26 = vsel %vm996_vm0, %v2142_v47, %v5770_v33  ;;  %v1591_v63 = vsel %vm996_vm0, %v5606_v14, %v5771_v5  ;;  %v1124_v48 = vadd.f32 %v1036_v55, %v846_v18  ;;  %v2390_v27 = vsel %vm1242_vm1, %v5605_v6, %v5773_v13  ;;  %v5776_v55 = vld [vmem:[#allocation16_spill] sm:$0xff] }
 0x110   : > { %v2239_v28 = vadd.f32 %v2145_v26, %v1994_v62  ;;  %v794_v11 = vmul.f32 %v611_v9, %v416_v16  ;;  %v1275_v5 = vsel %vm1242_vm1, %v1273_v2, %v5774_v19  ;;  %v5775_v62 = vrot.slane %v4074_v44, 2  ;;  %v4254_v26 = vld [vmem:[%s3008_s20 + $0xc8] sm:$0xff] }
 0x111   : > { %v1682_v30 = vadd.f32 %v1591_v63, %v1437_v23  ;;  %v5777_v17 = vrot.slane %v5776_v55, 1  ;;  %v5778_v13 = vrot.slane %v4086_v32, 1  ;;  %v1367_v16 = vadd.f32 %v1275_v5, %v1121_v61  ;;  %v4271_v23 = vld [vmem:[%s5564_s4 + $0x6] ss:$0 sm:$0xff] }
 0x112   : > { %v2484_v33 = vadd.f32 %v2390_v27, %v2239_v28  ;;  %v1829_v18 = vsel %vm1242_vm1, %v1827_v43, %v5775_v62  ;;  %v921_v2 = vmul.f32 %v3931_v35, %v794_v11  ;;  %v2583_v44 = vrot.slane %v4159_v7, 1  ;;  %v681_v62 = vpop.permute.xlu2 %680 }
 0x113   : > { %v4261_v6 = vsel %vm996_vm0, %v5778_v13, %v5777_v17  ;;  %v1924_v9 = vadd.f32 %v1829_v18, %v1679_v4  ;;  %v376_v43 = vadd.f32 %v3887_v0, %v318_v8  ;;  %v1479_v19 = vmul.f32 %v3940_v24, %v794_v11  ;;  %v5779_v18 = vld [vmem:[#allocation13_spill] sm:$0xff] }
 0x114   : > { %v2676_v60 = vadd.f32 %v4011_v59, %v2484_v33  ;;  %v1961_v63 = vmul.f32 %v4271_v23, %v794_v11  ;;  %v308_v59 = vmul.f32 %v3826_v22, %v4254_v26  ;;  %v1032_v4 = vrot.slane %v921_v2, 1 }
 0x115   : > { %v1404_v7 = vmul.f32 %v4051_v49, %v794_v11  ;;  %v2035_v28 = vmul.f32 %v4031_v56, %v794_v11  ;;  %v2280_v27 = vmul.f32 %v4042_v12, %v794_v11  ;;  %v4283_v8 = vmul.f32 %v3957_v53, %v794_v11 }
 0x116   : > { %2709 = vst.msk [vmem:[%s3510_s21 + $0x58] sm:$0xff] %vm2697_vm2, %v2676_v60  ;;  %v1587_v33 = vrot.slane %v1479_v19, 1  ;;  %v1993_v5 = vadd.f32 %v1961_v63, %v1924_v9  ;;  %v5780_v55 = vrot.slane %v5779_v18, 2  ;;  %v5781_v17 = vrot.slane %v4209_v39, 2  ;;  %v5783_v63 = vld [vmem:[#allocation11_spill] sm:$0xff] }
 0x117   : > { %v4291_v60 = vmul.f32 %v3970_v1, %v794_v11  ;;  %v2141_v2 = vrot.slane %v2035_v28, 1  ;;  %v2386_v61 = vrot.slane %v2280_v27, 2  ;;  %v430_v14 = vmax.f32 %v376_v43, 0.0 }
 0x118   : > { %v1282_v13 = vsel %vm1242_vm1, %v5781_v17, %v5780_v55  ;;  %v5782_v51 = vrot.slane %v4086_v32, 1  ;;  %v366_v9 = vadd.f32 %v3887_v0, %v308_v59  ;;  %v5784_v18 = vrot.slane %v5783_v63, 2  ;;  %v4313_v63 = vld [vmem:[%s3008_s20 + $0xc0] sm:$0xff] }
 0x119   : > { %v1370_v19 = vadd.f32 %v1282_v13, %v1124_v48  ;;  %v5785_v3 = vrot.slane %v4213_v45, 2  ;;  %v5786_v17 = vrot.slane %v4186_v50, 1  ;;  %v1436_v27 = vadd.f32 %v1404_v7, %v1367_v16 }
 0x11a   : > { %v4296_v15 = vsel %vm996_vm0, %v2583_v44, %v5782_v51  ;;  %v2143_v43 = vsel %vm996_vm0, %v2141_v2, %v2142_v47  ;;  %v808_v32 = vmul.f32 %v681_v62, %v430_v14  ;;  %v845_v51 = vmul.f32 %v3982_v21, %v794_v11 }
 0x11b   : > { %v1836_v55 = vsel %vm1242_vm1, %v5785_v3, %v5784_v18  ;;  %v1034_v28 = vsel %vm996_vm0, %v1032_v4, %v5786_v17  ;;  %v5787_v44 = vrot.slane %v4194_v58, 1  ;;  %v2238_v59 = vadd.f32 %v2143_v43, %v1993_v5 }
 0x11c   : > { %v420_v13 = vmax.f32 %v366_v9, 0.0  ;;  %v1278_v3 = vrot.slane %v4283_v8, 2  ;;  %v1832_v50 = vrot.slane %v4291_v60, 2  ;;  %v5788_v16 = vrot.slane %v4204_v57, 2  ;;  %v626_v8 = vpop.permute.xlu0 %625 }
 0x11d   : > { %v1589_v48 = vsel %vm996_vm0, %v1587_v33, %v5787_v44  ;;  %v4321_v14 = vmul.f32 %v3931_v35, %v808_v32  ;;  %v1123_v11 = vadd.f32 %v1034_v28, %v845_v51  ;;  %v1927_v7 = vadd.f32 %v1836_v55, %v1682_v30 }
 0x11e   : > { %v2388_v47 = vsel %vm1242_vm1, %v2386_v61, %v5788_v16  ;;  %v798_v4 = vmul.f32 %v631_v10, %v420_v13  ;;  %v1681_v33 = vadd.f32 %v1589_v48, %v1436_v27  ;;  %v4324_v5 = vmul.f32 %v3957_v53, %v808_v32 }
 0x11f   : > { %v2483_v58 = vadd.f32 %v2388_v47, %v2238_v59  ;;  %v307_v62 = vmul.f32 %v3826_v22, %v4313_v63  ;;  %v4331_v61 = vmul.f32 %v3940_v24, %v808_v32  ;;  %v4334_v60 = vmul.f32 %v3970_v1, %v808_v32 }
 0x120   : > { %v4337_v10 = vmul.f32 %v4031_v56, %v808_v32  ;;  %v4341_v2 = vmul.f32 %v4042_v12, %v808_v32  ;;  %v4344_v9 = vmul.f32 %v3931_v35, %v798_v4  ;;  %v4347_v18 = vmul.f32 %v3940_v24, %v798_v4 }
 0x121   : > { %v2675_v57 = vadd.f32 %v4137_v46, %v2483_v58  ;;  %5789 = vst [vmem:[#allocation4_spill] sm:$0xff] %v4334_v60  ;;  %v1407_v46 = vmul.f32 %v4051_v49, %v798_v4  ;;  %v1964_v55 = vmul.f32 %v4271_v23, %v798_v4  ;;  %v4354_v17 = vmul.f32 %v4031_v56, %v798_v4 }
 0x122   : > { %v4357_v28 = vmul.f32 %v4042_v12, %v798_v4  ;;  %v1038_v43 = vrot.slane %v4344_v9, 1  ;;  %v4362_v32 = vmul.f32 %v3957_v53, %v798_v4  ;;  %v5611_v51 = vrot.slane %v4347_v18, 1  ;;  %v4375_v9 = vld [vmem:[%s3008_s20 + $0x130] sm:$0x3] }
 0x123   : > { %2708 = vst.msk [vmem:[%s3510_s21 + $0x50] sm:$0xff] %vm2697_vm2, %v2675_v57  ;;  %v4366_v44 = vmul.f32 %v3970_v1, %v798_v4  ;;  %v1996_v48 = vadd.f32 %v1964_v55, %v1927_v7  ;;  %v2147_v59 = vrot.slane %v4354_v17, 1  ;;  %v365_v57 = vadd.f32 %v3887_v0, %v307_v62 }
 0x124   : > { %5790 = vst [vmem:[#allocation5_spill] sm:$0xff] %v4375_v9  ;;  %v848_v30 = vmul.f32 %v3982_v21, %v798_v4  ;;  %v1439_v7 = vadd.f32 %v1407_v46, %v1370_v19  ;;  %v5791_v55 = vrot.slane %v3847_v36, 1  ;;  %v5792_v16 = vrot.slane %v3831_v34, 1 }
 0x125   : > { %v5793_v58 = vrot.slane %v3837_v31, 1  ;;  %v419_v13 = vmax.f32 %v365_v57, 0.0  ;;  %v5612_v4 = vrot.slane %v4362_v32, 2  ;;  %v5794_v36 = vrot.slane %v3853_v52, 2 }
 0x126   : > { %v2150_v17 = vsel %vm996_vm0, %v2147_v59, %v5791_v55  ;;  %v1041_v47 = vsel %vm996_vm0, %v1038_v43, %v5792_v16  ;;  %v5795_v46 = vrot.slane %v4357_v28, 2  ;;  %v321_v16 = vmul.f32 %v3826_v22, %v4375_v9  ;;  %v5796_v55 = vld [vmem:[#allocation12_spill] sm:$0xff] }
 0x127   : > { %v1596_v62 = vsel %vm996_vm0, %v5611_v51, %v5793_v58  ;;  %v2241_v27 = vadd.f32 %v2150_v17, %v1996_v48  ;;  %v5797_v60 = vrot.slane %v5796_v55, 1  ;;  %v5798_v58 = vrot.slane %v4254_v26, 1  ;;  %v4410_v51 = vld [vmem:[%s3008_s20 + $0xe0] sm:$0xff] }
 0x128   : > { %v2395_v34 = vsel %vm1242_vm1, %v5795_v46, %v5794_v36  ;;  %v797_v57 = vmul.f32 %v626_v8, %v419_v13  ;;  %v5799_v17 = vrot.slane %v4213_v45, 2  ;;  %v1126_v36 = vadd.f32 %v1041_v47, %v848_v30 }
 0x129   : > { %v2486_v31 = vadd.f32 %v2395_v34, %v2241_v27  ;;  %v4404_v48 = vsel %vm996_vm0, %v5798_v58, %v5797_v60  ;;  %v1684_v46 = vadd.f32 %v1596_v62, %v1439_v7  ;;  %v5800_v19 = vrot.slane %v4209_v39, 2  ;;  %v696_v62 = vpop.permute.xlu2 %695 }
 0x12a   : > { %v1834_v52 = vsel %vm1242_vm1, %v1832_v50, %v5799_v17  ;;  %v924_v60 = vmul.f32 %v3931_v35, %v797_v57  ;;  %v379_v8 = vadd.f32 %v3887_v0, %v321_v16  ;;  %v1482_v45 = vmul.f32 %v3940_v24, %v797_v57 }
 0x12b   : > { %v1280_v27 = vsel %vm1242_vm1, %v1278_v3, %v5800_v19  ;;  %v1926_v34 = vadd.f32 %v1834_v52, %v1681_v33  ;;  %v2678_v55 = vadd.f32 %v4261_v6, %v2486_v31  ;;  %v1963_v50 = vmul.f32 %v4271_v23, %v797_v57 }
 0x12c   : > { %v1369_v58 = vadd.f32 %v1280_v27, %v1123_v11  ;;  %v2588_v13 = vrot.slane %v4313_v63, 1  ;;  %v311_v30 = vmul.f32 %v3826_v22, %v4410_v51  ;;  %v1037_v39 = vrot.slane %v924_v60, 1 }
 0x12d   : > { %2711 = vst.msk [vmem:[%s3510_s21 + $0x68] sm:$0xff] %vm2697_vm2, %v2678_v55  ;;  %v1406_v3 = vmul.f32 %v4051_v49, %v797_v57  ;;  %v2038_v6 = vmul.f32 %v4031_v56, %v797_v57  ;;  %v2283_v11 = vmul.f32 %v4042_v12, %v797_v57  ;;  %v4429_v33 = vmul.f32 %v3957_v53, %v797_v57 }
 0x12e   : > { %v1592_v47 = vrot.slane %v1482_v45, 1  ;;  %v1995_v7 = vadd.f32 %v1963_v50, %v1926_v34  ;;  %v4433_v19 = vmul.f32 %v3970_v1, %v797_v57  ;;  %v433_v17 = vmax.f32 %v379_v8, 0.0 }
 0x12f   : > { %v2146_v16 = vrot.slane %v2038_v6, 1  ;;  %v2391_v31 = vrot.slane %v2283_v11, 2  ;;  %v5801_v52 = vrot.slane %v4254_v26, 1  ;;  %v369_v55 = vadd.f32 %v3887_v0, %v311_v30 }
 0x130   : > { %v5802_v60 = vrot.slane %v3834_v29, 2  ;;  %v5803_v45 = vrot.slane %v3844_v40, 2  ;;  %v5804_v50 = vrot.slane %v4366_v44, 2  ;;  %v1039_v8 = vsel %vm996_vm0, %v1037_v39, %v1038_v43 }
 0x131   : > { %v4438_v27 = vsel %vm996_vm0, %v2588_v13, %v5801_v52  ;;  %v1438_v26 = vadd.f32 %v1406_v3, %v1369_v58  ;;  %v2148_v13 = vsel %vm996_vm0, %v2146_v16, %v2147_v59  ;;  %v811_v11 = vmul.f32 %v696_v62, %v433_v17  ;;  %v646_v52 = vpop.permute.xlu1 %645 }
 0x132   : > { %v1287_v34 = vsel %vm1242_vm1, %v5612_v4, %v5802_v60  ;;  %v1841_v6 = vsel %vm1242_vm1, %v5804_v50, %v5803_v45  ;;  %v847_v30 = vmul.f32 %v3982_v21, %v797_v57  ;;  %v5805_v29 = vrot.slane %v4347_v18, 1  ;;  %v252_v50 = vld [vmem:[%s3008_s20 + $0xd8] sm:$0xff] }
 0x133   : > { %v2240_v60 = vadd.f32 %v2148_v13, %v1995_v7  ;;  %v423_v4 = vmax.f32 %v369_v55, 0.0  ;;  %v5806_v45 = vrot.slane %v4357_v28, 2  ;;  %v4463_v59 = vmul.f32 %v3931_v35, %v811_v11 }
 0x134   : > { %v1594_v63 = vsel %vm996_vm0, %v1592_v47, %v5805_v29  ;;  %v1125_v58 = vadd.f32 %v1039_v8, %v847_v30  ;;  %v1372_v18 = vadd.f32 %v1287_v34, %v1126_v36  ;;  %v4466_v47 = vmul.f32 %v3957_v53, %v811_v11  ;;  %v4526_v36 = vld [vmem:[%s3008_s20 + $0xf8] sm:$0xff] }
 0x135   : > { %v2393_v43 = vsel %vm1242_vm1, %v2391_v31, %v5806_v45  ;;  %v801_v39 = vmul.f32 %v646_v52, %v423_v4  ;;  %v1683_v3 = vadd.f32 %v1594_v63, %v1438_v26  ;;  %v4469_v7 = vmul.f32 %v3940_v24, %v811_v11 }
 0x136   : > { %v2485_v57 = vadd.f32 %v2393_v43, %v2240_v60  ;;  %v1929_v62 = vadd.f32 %v1841_v6, %v1684_v46  ;;  %v4473_v16 = vmul.f32 %v3970_v1, %v811_v11  ;;  %v4476_v31 = vmul.f32 %v4031_v56, %v811_v11 }
 0x137   : > { %v2594_v4 = vrot.slane %v4410_v51, 1  ;;  %v4481_v63 = vmul.f32 %v4042_v12, %v811_v11  ;;  %v4484_v17 = vmul.f32 %v3931_v35, %v801_v39  ;;  %v4487_v46 = vmul.f32 %v3940_v24, %v801_v39 }
 0x138   : > { %v2677_v28 = vadd.f32 %v4296_v15, %v2485_v57  ;;  %5807 = vst [vmem:[#allocation6_spill] sm:$0xff] %v4473_v16  ;;  %v1409_v15 = vmul.f32 %v4051_v49, %v801_v39  ;;  %v1966_v55 = vmul.f32 %v4271_v23, %v801_v39  ;;  %v4494_v51 = vmul.f32 %v4031_v56, %v801_v39 }
 0x139   : > { %v4497_v34 = vmul.f32 %v4042_v12, %v801_v39  ;;  %v5617_v26 = vrot.slane %v4484_v17, 1  ;;  %v5616_v13 = vrot.slane %v4487_v46, 1  ;;  %v4505_v11 = vmul.f32 %v3957_v53, %v801_v39 }
 0x13a   : > { %2710 = vst.msk [vmem:[%s3510_s21 + $0x60] sm:$0xff] %vm2697_vm2, %v2677_v28  ;;  %v1998_v52 = vadd.f32 %v1966_v55, %v1929_v62  ;;  %v5614_v30 = vrot.slane %v4494_v51, 1  ;;  %v4512_v43 = vmul.f32 %v3970_v1, %v801_v39  ;;  %v310_v57 = vmul.f32 %v3826_v22, %v252_v50  ;;  %v4516_v28 = vld [vmem:[%s3008_s20 + $0x148] sm:$0x3] }
 0x13b   : > { %v5618_v29 = vrot.slane %v4497_v34, 2  ;;  %5808 = vst [vmem:[#allocation18_spill] sm:$0xff] %v4516_v28  ;;  %v850_v8 = vmul.f32 %v3982_v21, %v801_v39  ;;  %v1441_v62 = vadd.f32 %v1409_v15, %v1372_v18  ;;  %v5809_v55 = vrot.slane %v4034_v41, 1 }
 0x13c   : > { %v5810_v45 = vrot.slane %v4014_v20, 1  ;;  %v5811_v40 = vrot.slane %v4020_v37, 1  ;;  %v368_v41 = vadd.f32 %v3887_v0, %v310_v57  ;;  %v2593_v16 = vrot.slane %v252_v50, 1 }
 0x13d   : > { %v2155_v60 = vsel %vm996_vm0, %v5614_v30, %v5809_v55  ;;  %v5812_v55 = vld [vmem:[#allocation17_spill] sm:$0xff]  ;;  %v641_v30 = vpop.permute.xlu0 %640  ;;  %v324_v37 = vmul.f32 %v3826_v22, %v4516_v28  ;;  %v4597_v28 = vld [vmem:[%s3008_s20 + $0xf0] sm:$0xff] }
 0x13e   : > { %v1046_v9 = vsel %vm996_vm0, %v5617_v26, %v5810_v45  ;;  %v1601_v39 = vsel %vm996_vm0, %v5616_v13, %v5811_v40  ;;  %v2243_v18 = vadd.f32 %v2155_v60, %v1998_v52  ;;  %v5813_v6 = vrot.slane %v5812_v55, 2  ;;  %v5814_v55 = vld [vmem:[#allocation3_spill] sm:$0xff] }
 0x13f   : > { %v422_v52 = vmax.f32 %v368_v41, 0.0  ;;  %v314_v60 = vmul.f32 %v3826_v22, %v4526_v36  ;;  %v1128_v57 = vadd.f32 %v1046_v9, %v850_v8  ;;  %v1686_v13 = vadd.f32 %v1601_v39, %v1441_v62 }
 0x140   : > { %v2400_v20 = vsel %vm1242_vm1, %v5618_v29, %v5813_v6  ;;  %v5815_v26 = vrot.slane %v5814_v55, 1  ;;  %v382_v50 = vadd.f32 %v3887_v0, %v324_v37  ;;  %v5816_v45 = vrot.slane %v4362_v32, 2  ;;  %v5820_v37 = vld [vmem:[#allocation9_spill] sm:$0xff] }
 0x141   : > { %v2488_v40 = vadd.f32 %v2400_v20, %v2243_v18  ;;  %v800_v29 = vmul.f32 %v641_v30, %v422_v52  ;;  %v5817_v18 = vrot.slane %v4429_v33, 2  ;;  %v5818_v20 = vrot.slane %v4366_v44, 2 }
 0x142   : > { %v4553_v15 = vsel %vm996_vm0, %v2594_v4, %v5815_v26  ;;  %v5819_v9 = vrot.slane %v4433_v19, 2  ;;  %v4568_v39 = vsel %vm996_vm0, %v2593_v16, %v2594_v4  ;;  %v436_v33 = vmax.f32 %v382_v50, 0.0  ;;  %v5823_v50 = vld [vmem:[#allocation2_spill] sm:$0xff] }
 0x143   : > { %v2680_v6 = vadd.f32 %v4404_v48, %v2488_v40  ;;  %v1285_v41 = vsel %vm1242_vm1, %v5817_v18, %v5816_v45  ;;  %v927_v32 = vmul.f32 %v3931_v35, %v800_v29  ;;  %v372_v30 = vadd.f32 %v3887_v0, %v314_v60  ;;  %v711_v40 = vpop.permute.xlu2 %710 }
 0x144   : > { %v1839_v8 = vsel %vm1242_vm1, %v5819_v9, %v5818_v20  ;;  %v1371_v62 = vadd.f32 %v1285_v41, %v1125_v58  ;;  %v5821_v44 = vrot.slane %v5820_v37, 2  ;;  %v5822_v19 = vrot.slane %v4505_v11, 2 }
 0x145   : > { %v1928_v26 = vadd.f32 %v1839_v8, %v1683_v3  ;;  %2713 = vst.msk [vmem:[%s3510_s21 + $0x78] sm:$0xff] %vm2697_vm2, %v2680_v6  ;;  %v1408_v58 = vmul.f32 %v4051_v49, %v800_v29  ;;  %v1485_v3 = vmul.f32 %v3940_v24, %v800_v29  ;;  %v1965_v16 = vmul.f32 %v4271_v23, %v800_v29 }
 0x146   : > { %v1292_v45 = vsel %vm1242_vm1, %v5822_v19, %v5821_v44  ;;  %v2041_v4 = vmul.f32 %v4031_v56, %v800_v29  ;;  %v1042_v52 = vrot.slane %v927_v32, 1  ;;  %v2286_v55 = vmul.f32 %v4042_v12, %v800_v29 }
 0x147   : > { %v1374_v60 = vadd.f32 %v1292_v45, %v1128_v57  ;;  %v5824_v6 = vrot.slane %v5823_v50, 2  ;;  %v5825_v18 = vrot.slane %v4512_v43, 2  ;;  %v4591_v20 = vmul.f32 %v3957_v53, %v800_v29 }
 0x148   : > { %v1597_v9 = vrot.slane %v1485_v3, 1  ;;  %v1997_v8 = vadd.f32 %v1965_v16, %v1928_v26  ;;  %v2151_v37 = vrot.slane %v2041_v4, 1  ;;  %v4594_v44 = vmul.f32 %v3970_v1, %v800_v29  ;;  %v661_v3 = vpop.permute.xlu1 %660 }
 0x149   : > { %v1846_v41 = vsel %vm1242_vm1, %v5825_v18, %v5824_v6  ;;  %v2396_v19 = vrot.slane %v2286_v55, 2  ;;  %v814_v32 = vmul.f32 %v711_v40, %v436_v33  ;;  %v426_v48 = vmax.f32 %v372_v30, 0.0 }
 0x14a   : > { %v5826_v57 = vrot.slane %v4484_v17, 1  ;;  %v1440_v50 = vadd.f32 %v1408_v58, %v1371_v62  ;;  %v5827_v6 = vrot.slane %v4494_v51, 1  ;;  %v5620_v26 = vrot.slane %v4526_v36, 1 }
 0x14b   : > { %v849_v16 = vmul.f32 %v3982_v21, %v800_v29  ;;  %v5828_v4 = vrot.slane %v4487_v46, 1  ;;  %v1931_v40 = vadd.f32 %v1846_v41, %v1686_v13  ;;  %v1288_v17 = vrot.slane %v4591_v20, 2  ;;  %v5832_v41 = vld [vmem:[#allocation14_spill] sm:$0xff] }
 0x14c   : > { %v1044_v45 = vsel %vm996_vm0, %v1042_v52, %v5826_v57  ;;  %v2153_v18 = vsel %vm996_vm0, %v2151_v37, %v5827_v6  ;;  %v5829_v52 = vrot.slane %v4497_v34, 2  ;;  %v4615_v51 = vmul.f32 %v3931_v35, %v814_v32  ;;  %v4677_v57 = vld [vmem:[%s3008_s20 + $0x160] sm:$0x3] }
 0x14d   : > { %v1599_v33 = vsel %vm996_vm0, %v1597_v9, %v5828_v4  ;;  %v2242_v30 = vadd.f32 %v2153_v18, %v1997_v8  ;;  %v313_v58 = vmul.f32 %v3826_v22, %v4597_v28  ;;  %v1127_v55 = vadd.f32 %v1044_v45, %v849_v16 }
 0x14e   : > { %v2398_v62 = vsel %vm1242_vm1, %v2396_v19, %v5829_v52  ;;  %v1842_v46 = vrot.slane %v4594_v44, 2  ;;  %v804_v9 = vmul.f32 %v661_v3, %v426_v48  ;;  %v1685_v8 = vadd.f32 %v1599_v33, %v1440_v50 }
 0x14f   : > { %v2487_v29 = vadd.f32 %v2398_v62, %v2242_v30  ;;  %v4621_v13 = vmul.f32 %v3957_v53, %v814_v32  ;;  %v4624_v34 = vmul.f32 %v3940_v24, %v814_v32  ;;  %v5833_v20 = vrot.slane %v5832_v41, 1 }
 0x150   : > { %v4635_v44 = vmul.f32 %v3970_v1, %v814_v32  ;;  %v4638_v48 = vmul.f32 %v4031_v56, %v814_v32  ;;  %v4641_v19 = vmul.f32 %v3931_v35, %v804_v9  ;;  %v4645_v45 = vmul.f32 %v4042_v12, %v814_v32  ;;  %v656_v32 = vpop.permute.xlu0 %655 }
 0x151   : > { %5830 = vst [vmem:[#allocation19_spill] sm:$0xff] %v4621_v13  ;;  %v4631_v37 = vsel %vm996_vm0, %v5620_v26, %v5833_v20  ;;  %v2679_v22 = vadd.f32 %v4438_v27, %v2487_v29  ;;  %v1411_v50 = vmul.f32 %v4051_v49, %v804_v9  ;;  %v4649_v6 = vmul.f32 %v3940_v24, %v804_v9  ;;  %v4680_v26 = vld [vmem:[%s3008_s20 + $0x110] sm:$0xff] }
 0x152   : > { %5831 = vst [vmem:[#allocation7_spill] sm:$0xff] %v4624_v34  ;;  %v5624_v27 = vrot.slane %v4641_v19, 1  ;;  %v1968_v18 = vmul.f32 %v4271_v23, %v804_v9  ;;  %v4656_v3 = vmul.f32 %v4031_v56, %v804_v9  ;;  %v4659_v16 = vmul.f32 %v4042_v12, %v804_v9 }
 0x153   : > { %5834 = vst [vmem:[#allocation16_spill] sm:$0xff] %v4635_v44  ;;  %v4664_v33 = vmul.f32 %v3957_v53, %v804_v9  ;;  %v4668_v52 = vmul.f32 %v3970_v1, %v804_v9  ;;  %v371_v4 = vadd.f32 %v3887_v0, %v313_v58  ;;  %v852_v30 = vmul.f32 %v3982_v21, %v804_v9 }
 0x154   : > { %5835 = vst [vmem:[#allocation13_spill] sm:$0xff] %v4645_v45  ;;  %v2000_v62 = vadd.f32 %v1968_v18, %v1931_v40  ;;  %v2157_v29 = vrot.slane %v4656_v3, 1  ;;  %v5836_v40 = vrot.slane %v4168_v38, 1  ;;  %v1443_v3 = vadd.f32 %v1411_v50, %v1374_v60  ;;  %v4706_v50 = vld [vmem:[%s5562_s2] ss:$0 sm:$0xff] }
 0x155   : > { %2712 = vst.msk [vmem:[%s3510_s21 + $0x70] sm:$0xff] %vm2697_vm2, %v2679_v22  ;;  %v5837_v20 = vrot.slane %v4183_v42, 1  ;;  %v5838_v41 = vrot.slane %v4174_v25, 1  ;;  %v5839_v44 = vrot.slane %v4649_v6, 1  ;;  %v425_v38 = vmax.f32 %v371_v4, 0.0 }
 0x156   : > { %v1051_v18 = vsel %vm996_vm0, %v5624_v27, %v5836_v40  ;;  %v5840_v40 = vrot.slane %v4189_v54, 2  ;;  %v5841_v60 = vrot.slane %v4659_v16, 2  ;;  %v327_v25 = vmul.f32 %v4706_v50, %v4677_v57 }
 0x157   : > { %v2160_v22 = vsel %vm996_vm0, %v2157_v29, %v5837_v20  ;;  %v1606_v9 = vsel %vm996_vm0, %v5839_v44, %v5838_v41  ;;  %v317_v44 = vmul.f32 %v4706_v50, %v4680_v26  ;;  %v1130_v4 = vadd.f32 %v1051_v18, %v852_v30 }
 0x158   : > { %v2245_v13 = vadd.f32 %v2160_v22, %v2000_v62  ;;  %v2405_v42 = vsel %vm1242_vm1, %v5841_v60, %v5840_v40  ;;  %v803_v41 = vmul.f32 %v656_v32, %v425_v38  ;;  %v5842_v54 = vrot.slane %v4512_v43, 2 }
 0x159   : > { %v1688_v22 = vadd.f32 %v1606_v9, %v1443_v3  ;;  %v5843_v40 = vrot.slane %v4505_v11, 2  ;;  %v2598_v58 = vrot.slane %v4597_v28, 1  ;;  %v4728_v11 = vld [vmem:[%s5563_s3] ss:$0 sm:$0xff]  ;;  %v5844_v18 = vrot.slane %v4526_v36, 1  ;;  %v726_v9 = vpop.permute.xlu2 %725 }
 0x15a   : > { %v2490_v62 = vadd.f32 %v2405_v42, %v2245_v13  ;;  %v1844_v20 = vsel %vm1242_vm1, %v1842_v46, %v5842_v54  ;;  %v930_v34 = vmul.f32 %v3931_v35, %v803_v41  ;;  %v385_v13 = vadd.f32 %v3887_v0, %v327_v25  ;;  %v676_v25 = vpop.permute.xlu1 %675  ;;  %v5846_v54 = vld [vmem:[#allocation8_spill] sm:$0xff] }
 0x15b   : > { %v1290_v60 = vsel %vm1242_vm1, %v1288_v17, %v5843_v40  ;;  %v1930_v45 = vadd.f32 %v1844_v20, %v1685_v8  ;;  %v1410_v32 = vmul.f32 %v4051_v49, %v803_v41  ;;  %v1488_v43 = vmul.f32 %v3940_v24, %v803_v41 }
 0x15c   : > { %v2682_v27 = vadd.f32 %v4553_v15, %v2490_v62  ;;  %v1373_v30 = vadd.f32 %v1290_v60, %v1127_v55  ;;  %v1967_v46 = vmul.f32 %v4271_v23, %v803_v41  ;;  %v375_v28 = vadd.f32 %v4728_v11, %v317_v44 }
 0x15d   : > { %v1047_v15 = vrot.slane %v930_v34, 1  ;;  %v2044_v35 = vmul.f32 %v4031_v56, %v803_v41  ;;  %v2289_v0 = vmul.f32 %v4042_v12, %v803_v41  ;;  %v4737_v24 = vmul.f32 %v3957_v53, %v803_v41 }
 0x15e   : > { %2715 = vst.msk [vmem:[%s3510_s21 + $0x88] sm:$0xff] %vm2697_vm2, %v2682_v27  ;;  %v1602_v55 = vrot.slane %v1488_v43, 1  ;;  %v1999_v8 = vadd.f32 %v1967_v46, %v1930_v45  ;;  %v4742_v3 = vsel %vm996_vm0, %v2598_v58, %v5844_v18  ;;  %v4745_v27 = vmul.f32 %v3970_v1, %v803_v41 }
 0x15f   : > { %v2156_v34 = vrot.slane %v2044_v35, 1  ;;  %v2401_v38 = vrot.slane %v2289_v0, 2  ;;  %v439_v42 = vmax.f32 %v385_v13, 0.0  ;;  %v5845_v44 = vrot.slane %v4641_v19, 1  ;;  %v4766_v0 = vld [vmem:[%s3008_s20 + $0x108] sm:$0xff] }
 0x160   : > { %v1442_v62 = vadd.f32 %v1410_v32, %v1373_v30  ;;  %v429_v45 = vmax.f32 %v375_v28, 0.0  ;;  %v5847_v36 = vrot.slane %v5846_v54, 2  ;;  %v5848_v58 = vrot.slane %v4664_v33, 2  ;;  %v5850_v30 = vld [vmem:[#allocation10_spill] sm:$0xff] }
 0x161   : > { %v1049_v53 = vsel %vm996_vm0, %v1047_v15, %v5845_v44  ;;  %v851_v1 = vmul.f32 %v3982_v21, %v803_v41  ;;  %v5849_v40 = vrot.slane %v4649_v6, 1  ;;  %v2158_v13 = vsel %vm996_vm0, %v2156_v34, %v2157_v29 }
 0x162   : > { %v1297_v20 = vsel %vm1242_vm1, %v5848_v58, %v5847_v36  ;;  %v817_v43 = vmul.f32 %v726_v9, %v439_v42  ;;  %v2244_v19 = vadd.f32 %v2158_v13, %v1999_v8  ;;  %v807_v46 = vmul.f32 %v676_v25, %v429_v45  ;;  %v4779_v42 = vld [vmem:[%s5564_s4 + $0x1] ss:$0 sm:$0xff] }
 0x163   : > { %v1604_v60 = vsel %vm996_vm0, %v1602_v55, %v5849_v40  ;;  %v1376_v15 = vadd.f32 %v1297_v20, %v1130_v4  ;;  %v5851_v32 = vrot.slane %v5850_v30, 2  ;;  %v5852_v28 = vrot.slane %v4668_v52, 2 }
 0x164   : > { %v4768_v18 = vadd.f32 %v1049_v53, %v851_v1  ;;  %v1293_v6 = vrot.slane %v4737_v24, 2  ;;  %v1847_v41 = vrot.slane %v4745_v27, 2  ;;  %v5853_v29 = vrot.slane %v4659_v16, 2  ;;  %v4787_v16 = vld [vmem:[%s5564_s4 + $0x2] ss:$0 sm:$0xff] }
 0x165   : > { %v1851_v35 = vsel %vm1242_vm1, %v5852_v28, %v5851_v32  ;;  %v1687_v8 = vadd.f32 %v1604_v60, %v1442_v62  ;;  %v2604_v34 = vrot.slane %v4680_v26, 1  ;;  %v4782_v25 = vmul.f32 %v4779_v42, %v817_v43  ;;  %v4806_v53 = vld [vmem:[%s5564_s4 + $0x5] ss:$0 sm:$0xff] }
 0x166   : > { %v2403_v55 = vsel %vm1242_vm1, %v2401_v38, %v5853_v29  ;;  %v1933_v9 = vadd.f32 %v1851_v35, %v1688_v22  ;;  %v4790_v24 = vmul.f32 %v4787_v16, %v817_v43  ;;  %v4795_v22 = vld [vmem:[%s5564_s4 + $0x4] ss:$0 sm:$0xff]  ;;  %v316_v38 = vmul.f32 %v4706_v50, %v4766_v0 }
 0x167   : > { %v2489_v4 = vadd.f32 %v2403_v55, %v2244_v19  ;;  %v4798_v27 = vmul.f32 %v4795_v22, %v817_v43  ;;  %v4809_v62 = vmul.f32 %v4806_v53, %v817_v43  ;;  %v4812_v45 = vmul.f32 %v4031_v56, %v817_v43 }
 0x168   : > { %v4815_v54 = vmul.f32 %v4779_v42, %v807_v46  ;;  %v4818_v36 = vmul.f32 %v4042_v12, %v817_v43  ;;  %v854_v58 = vmul.f32 %v3982_v21, %v807_v46  ;;  %v4823_v20 = vmul.f32 %v4795_v22, %v807_v46  ;;  %v671_v21 = vpop.permute.xlu0 %670 }
 0x169   : > { %v2681_v44 = vadd.f32 %v4568_v39, %v2489_v4  ;;  %v1413_v39 = vmul.f32 %v4051_v49, %v807_v46  ;;  %v1970_v40 = vmul.f32 %v4271_v23, %v807_v46  ;;  %v4830_v60 = vmul.f32 %v4031_v56, %v807_v46 }
 0x16a   : > { %v5628_v1 = vrot.slane %v4815_v54, 1  ;;  %v4833_v13 = vmul.f32 %v4042_v12, %v807_v46  ;;  %v4838_v43 = vmul.f32 %v4787_v16, %v807_v46  ;;  %v5627_v19 = vrot.slane %v4823_v20, 1 }
 0x16b   : > { %2714 = vst.msk [vmem:[%s3510_s21 + $0x80] sm:$0xff] %vm2697_vm2, %v2681_v44  ;;  %v4842_v30 = vmul.f32 %v4806_v53, %v807_v46  ;;  %v2002_v32 = vadd.f32 %v1970_v40, %v1933_v9  ;;  %v2162_v28 = vrot.slane %v4830_v60, 1  ;;  %v5854_v29 = vrot.slane %v4321_v14, 1  ;;  %v4855_v44 = vld [vmem:[%s3008_s20 + $0x178] sm:$0x3] }
 0x16c   : > { %v5626_v56 = vrot.slane %v4833_v13, 2  ;;  %v374_v4 = vadd.f32 %v4728_v11, %v316_v38  ;;  %5855 = vst [vmem:[#allocation11_spill] sm:$0xff] %v4855_v44  ;;  %v1445_v40 = vadd.f32 %v1413_v39, %v1376_v15  ;;  %v5856_v60 = vrot.slane %v4337_v10, 1 }
 0x16d   : > { %v1056_v55 = vsel %vm996_vm0, %v5628_v1, %v5854_v29  ;;  %v5629_v14 = vrot.slane %v4838_v43, 2  ;;  %v5857_v17 = vrot.slane %v4331_v61, 1  ;;  %v5631_v9 = vrot.slane %v4842_v30, 2 }
 0x16e   : > { %v2165_v49 = vsel %vm996_vm0, %v2162_v28, %v5856_v60  ;;  %v428_v35 = vmax.f32 %v374_v4, 0.0  ;;  %v1132_v46 = vadd.f32 %v1056_v55, %v854_v58  ;;  %v5858_v15 = vrot.slane %v4341_v2, 2  ;;  %v5861_v55 = vld [vmem:[#allocation15_spill] sm:$0xff] }
 0x16f   : > { %v1611_v38 = vsel %vm996_vm0, %v5627_v19, %v5857_v17  ;;  %v2247_v29 = vadd.f32 %v2165_v49, %v2002_v32  ;;  %v330_v39 = vmul.f32 %v4706_v50, %v4855_v44  ;;  %v5859_v12 = vrot.slane %v4664_v33, 2  ;;  %v4883_v32 = vld [vmem:[%s3008_s20 + $0x128] sm:$0xff]  ;;  %v691_v44 = vpop.permute.xlu1 %690 }
 0x170   : > { %v2410_v10 = vsel %vm1242_vm1, %v5626_v56, %v5858_v15  ;;  %v806_v61 = vmul.f32 %v671_v21, %v428_v35  ;;  %v5860_v58 = vrot.slane %v4668_v52, 2  ;;  %v1690_v2 = vadd.f32 %v1611_v38, %v1445_v40 }
 0x171   : > { %v2492_v60 = vadd.f32 %v2410_v10, %v2247_v29  ;;  %v1295_v17 = vsel %vm1242_vm1, %v1293_v6, %v5859_v12  ;;  %v5862_v4 = vrot.slane %v5861_v55, 1  ;;  %v2603_v52 = vrot.slane %v4766_v0, 1  ;;  %v741_v55 = vpop.permute.xlu2 %740 }
 0x172   : > { %v1849_v49 = vsel %vm1242_vm1, %v1847_v41, %v5860_v58  ;;  %v1375_v21 = vadd.f32 %v1295_v17, %v4768_v18  ;;  %v933_v6 = vmul.f32 %v4779_v42, %v806_v61  ;;  %v388_v41 = vadd.f32 %v4728_v11, %v330_v39  ;;  %v4919_v39 = vld [vmem:[%s5564_s4 + $0x8] ss:$0 sm:$0xff] }
 0x173   : > { %v4890_v15 = vsel %vm996_vm0, %v2604_v34, %v5862_v4  ;;  %v1932_v33 = vadd.f32 %v1849_v49, %v1687_v8  ;;  %v2684_v35 = vadd.f32 %v4631_v37, %v2492_v60  ;;  %v1491_v12 = vmul.f32 %v4795_v22, %v806_v61  ;;  %v4907_v37 = vld [vmem:[%s5564_s4 + $0x3] ss:$0 sm:$0xff]  ;;  %v4913_v8 = vld [vmem:[%s5564_s4 + $0x7] ss:$0 sm:$0xff] }
 0x174   : > { %v1969_v40 = vmul.f32 %v4271_v23, %v806_v61  ;;  %v320_v29 = vmul.f32 %v4706_v50, %v4883_v32  ;;  %v1052_v18 = vrot.slane %v933_v6, 1  ;;  %v1412_v0 = vmul.f32 %v4907_v37, %v806_v61 }
 0x175   : > { %2717 = vst.msk [vmem:[%s3510_s21 + $0x98] sm:$0xff] %vm2697_vm2, %v2684_v35  ;;  %v2047_v10 = vmul.f32 %v4913_v8, %v806_v61  ;;  %v2292_v60 = vmul.f32 %v4919_v39, %v806_v61  ;;  %v4923_v17 = vmul.f32 %v4787_v16, %v806_v61  ;;  %v1607_v58 = vrot.slane %v1491_v12, 1 }
 0x176   : > { %v2001_v49 = vadd.f32 %v1969_v40, %v1932_v33  ;;  %v5863_v4 = vrot.slane %v4324_v5, 2  ;;  %v4931_v6 = vmul.f32 %v4806_v53, %v806_v61  ;;  %v442_v19 = vmax.f32 %v388_v41, 0.0  ;;  %v5864_v5 = vld [vmem:[#allocation4_spill] sm:$0xff] }
 0x177   : > { %v2161_v38 = vrot.slane %v2047_v10, 1  ;;  %v2406_v56 = vrot.slane %v2292_v60, 2  ;;  %v4936_v1 = vsel %vm996_vm0, %v2603_v52, %v2604_v34  ;;  %v378_v33 = vadd.f32 %v4728_v11, %v320_v29  ;;  %v4951_v34 = vld [vmem:[%s5564_s4] ss:$0 sm:$0xff] }
 0x178   : > { %v1302_v35 = vsel %vm1242_vm1, %v5629_v14, %v5863_v4  ;;  %v5865_v40 = vrot.slane %v5864_v5, 2  ;;  %v5866_v14 = vrot.slane %v4815_v54, 1  ;;  %v1444_v60 = vadd.f32 %v1412_v0, %v1375_v21  ;;  %v4958_v5 = vld [vmem:[%s3008_s20 + $0x120] sm:$0xff] }
 0x179   : > { %v1378_v12 = vadd.f32 %v1302_v35, %v1132_v46  ;;  %v2163_v41 = vsel %vm996_vm0, %v2161_v38, %v2162_v28  ;;  %v820_v26 = vmul.f32 %v741_v55, %v442_v19  ;;  %v853_v46 = vmul.f32 %v4951_v34, %v806_v61 }
 0x17a   : > { %v1856_v4 = vsel %vm1242_vm1, %v5631_v9, %v5865_v40  ;;  %v1054_v10 = vsel %vm996_vm0, %v1052_v18, %v5866_v14  ;;  %v5867_v52 = vrot.slane %v4823_v20, 1  ;;  %v2246_v35 = vadd.f32 %v2163_v41, %v2001_v49 }
 0x17b   : > { %v432_v54 = vmax.f32 %v378_v33, 0.0  ;;  %v1298_v14 = vrot.slane %v4923_v17, 2  ;;  %v1852_v19 = vrot.slane %v4931_v6, 2  ;;  %v5868_v28 = vrot.slane %v4833_v13, 2 }
 0x17c   : > { %v1609_v29 = vsel %vm996_vm0, %v1607_v58, %v5867_v52  ;;  %v4966_v38 = vmul.f32 %v4779_v42, %v820_v26  ;;  %v1131_v61 = vadd.f32 %v1054_v10, %v853_v46  ;;  %v1935_v0 = vadd.f32 %v1856_v4, %v1690_v2  ;;  %v5020_v2 = vld [vmem:[%s3008_s20 + $0x190] sm:$0x3] }
 0x17d   : > { %v2408_v21 = vsel %vm1242_vm1, %v2406_v56, %v5868_v28  ;;  %v810_v18 = vmul.f32 %v691_v44, %v432_v54  ;;  %v1689_v58 = vadd.f32 %v1609_v29, %v1444_v60  ;;  %v4969_v49 = vmul.f32 %v4787_v16, %v820_v26  ;;  %5871 = vst [vmem:[#allocation3_spill] sm:$0xff] %v5020_v2 }
 0x17e   : > { %5869 = vst [vmem:[#allocation12_spill] sm:$0xff] %v4966_v38  ;;  %v2491_v20 = vadd.f32 %v2408_v21, %v2246_v35  ;;  %v319_v55 = vmul.f32 %v4706_v50, %v4958_v5  ;;  %v4976_v56 = vmul.f32 %v4795_v22, %v820_v26  ;;  %v4979_v6 = vmul.f32 %v4806_v53, %v820_v26  ;;  %v686_v21 = vpop.permute.xlu0 %685 }
 0x17f   : > { %5870 = vst [vmem:[#allocation17_spill] sm:$0xff] %v4969_v49  ;;  %v4982_v44 = vmul.f32 %v4913_v8, %v820_v26  ;;  %v4986_v33 = vmul.f32 %v4919_v39, %v820_v26  ;;  %v4989_v40 = vmul.f32 %v4779_v42, %v810_v18  ;;  %v4992_v4 = vmul.f32 %v4795_v22, %v810_v18 }
 0x180   : > { %v2683_v13 = vadd.f32 %v4742_v3, %v2491_v20  ;;  %v1415_v3 = vmul.f32 %v4907_v37, %v810_v18  ;;  %v1972_v10 = vmul.f32 %v4271_v23, %v810_v18  ;;  %v4999_v60 = vmul.f32 %v4913_v8, %v810_v18 }
 0x181   : > { %v5002_v41 = vmul.f32 %v4919_v39, %v810_v18  ;;  %v1058_v46 = vrot.slane %v4989_v40, 1  ;;  %v5007_v52 = vmul.f32 %v4787_v16, %v810_v18  ;;  %v5634_v29 = vrot.slane %v4992_v4, 1 }
 0x182   : > { %2716 = vst.msk [vmem:[%s3510_s21 + $0x90] sm:$0xff] %vm2697_vm2, %v2683_v13  ;;  %v5011_v35 = vmul.f32 %v4806_v53, %v810_v18  ;;  %v2004_v54 = vadd.f32 %v1972_v10, %v1935_v0  ;;  %v2167_v28 = vrot.slane %v4999_v60, 1  ;;  %v377_v40 = vadd.f32 %v4728_v11, %v319_v55 }
 0x183   : > { %v856_v17 = vmul.f32 %v4951_v34, %v810_v18  ;;  %v1447_v0 = vadd.f32 %v1415_v3, %v1378_v12  ;;  %v5872_v10 = vrot.slane %v4476_v31, 1  ;;  %v5873_v20 = vrot.slane %v4463_v59, 1 }
 0x184   : > { %v5874_v26 = vrot.slane %v4469_v7, 1  ;;  %v431_v49 = vmax.f32 %v377_v40, 0.0  ;;  %v5635_v18 = vrot.slane %v5007_v52, 2  ;;  %v5875_v31 = vrot.slane %v4481_v63, 2 }
 0x185   : > { %v2170_v60 = vsel %vm996_vm0, %v2167_v28, %v5872_v10  ;;  %v1061_v13 = vsel %vm996_vm0, %v1058_v46, %v5873_v20  ;;  %v5876_v3 = vrot.slane %v5002_v41, 2  ;;  %v333_v20 = vmul.f32 %v4706_v50, %v5020_v2  ;;  %v5877_v10 = vld [vmem:[#allocation5_spill] sm:$0xff] }
 0x186   : > { %v1616_v55 = vsel %vm996_vm0, %v5634_v29, %v5874_v26  ;;  %v2249_v9 = vadd.f32 %v2170_v60, %v2004_v54  ;;  %v5878_v38 = vrot.slane %v5877_v10, 1  ;;  %v5879_v26 = vrot.slane %v4883_v32, 1  ;;  %v5055_v29 = vld [vmem:[%s3008_s20 + $0x140] sm:$0xff] }
 0x187   : > { %v2415_v59 = vsel %vm1242_vm1, %v5876_v3, %v5875_v31  ;;  %v809_v40 = vmul.f32 %v686_v21, %v431_v49  ;;  %v5880_v60 = vrot.slane %v4842_v30, 2  ;;  %v1134_v31 = vadd.f32 %v1061_v13, %v856_v17 }
 0x188   : > { %v2494_v7 = vadd.f32 %v2415_v59, %v2249_v9  ;;  %v5049_v54 = vsel %vm996_vm0, %v5879_v26, %v5878_v38  ;;  %v1692_v3 = vadd.f32 %v1616_v55, %v1447_v0  ;;  %v5881_v12 = vrot.slane %v4838_v43, 2 }
 0x189   : > { %v1854_v63 = vsel %vm1242_vm1, %v1852_v19, %v5880_v60  ;;  %v936_v38 = vmul.f32 %v4779_v42, %v809_v40  ;;  %v391_v49 = vadd.f32 %v4728_v11, %v333_v20  ;;  %v1494_v30 = vmul.f32 %v4795_v22, %v809_v40 }
 0x18a   : > { %v1300_v9 = vsel %vm1242_vm1, %v1298_v14, %v5881_v12  ;;  %v1934_v59 = vadd.f32 %v1854_v63, %v1689_v58  ;;  %v2686_v10 = vadd.f32 %v4890_v15, %v2494_v7  ;;  %v1971_v19 = vmul.f32 %v4271_v23, %v809_v40  ;;  %v756_v23 = vpop.permute.xlu2 %755 }
 0x18b   : > { %v1377_v26 = vadd.f32 %v1300_v9, %v1131_v61  ;;  %v2608_v21 = vrot.slane %v4958_v5, 1  ;;  %v323_v17 = vmul.f32 %v4706_v50, %v5055_v29  ;;  %v1057_v43 = vrot.slane %v936_v38, 1  ;;  %v5884_v38 = vld [vmem:[#allocation6_spill] sm:$0xff] }
 0x18c   : > { %2719 = vst.msk [vmem:[%s3510_s21 + $0xa8] sm:$0xff] %vm2697_vm2, %v2686_v10  ;;  %v1414_v14 = vmul.f32 %v4907_v37, %v809_v40  ;;  %v2050_v15 = vmul.f32 %v4913_v8, %v809_v40  ;;  %v2295_v61 = vmul.f32 %v4919_v39, %v809_v40  ;;  %v5074_v58 = vmul.f32 %v4787_v16, %v809_v40 }
 0x18d   : > { %v1612_v13 = vrot.slane %v1494_v30, 1  ;;  %v2003_v0 = vadd.f32 %v1971_v19, %v1934_v59  ;;  %v5078_v55 = vmul.f32 %v4806_v53, %v809_v40  ;;  %v445_v7 = vmax.f32 %v391_v49, 0.0 }
 0x18e   : > { %v2166_v12 = vrot.slane %v2050_v15, 1  ;;  %v2411_v20 = vrot.slane %v2295_v61, 2  ;;  %v5882_v60 = vrot.slane %v4883_v32, 1  ;;  %v381_v9 = vadd.f32 %v4728_v11, %v323_v17  ;;  %v706_v17 = vpop.permute.xlu1 %705 }
 0x18f   : > { %v5883_v10 = vrot.slane %v4466_v47, 2  ;;  %v5885_v30 = vrot.slane %v5884_v38, 2  ;;  %v5886_v19 = vrot.slane %v5011_v35, 2  ;;  %v1059_v32 = vsel %vm996_vm0, %v1057_v43, %v1058_v46 }
 0x190   : > { %v5083_v63 = vsel %vm996_vm0, %v2608_v21, %v5882_v60  ;;  %v1446_v15 = vadd.f32 %v1414_v14, %v1377_v26  ;;  %v2168_v21 = vsel %vm996_vm0, %v2166_v12, %v2167_v28  ;;  %v823_v61 = vmul.f32 %v756_v23, %v445_v7  ;;  %v5109_v26 = vld [vmem:[%s3008_s20 + $0x138] sm:$0xff] }
 0x191   : > { %v1307_v59 = vsel %vm1242_vm1, %v5635_v18, %v5883_v10  ;;  %v1861_v49 = vsel %vm1242_vm1, %v5886_v19, %v5885_v30  ;;  %v855_v47 = vmul.f32 %v4951_v34, %v809_v40  ;;  %v5887_v60 = vrot.slane %v4992_v4, 1 }
 0x192   : > { %v2248_v10 = vadd.f32 %v2168_v21, %v2003_v0  ;;  %v435_v18 = vmax.f32 %v381_v9, 0.0  ;;  %v1303_v38 = vrot.slane %v5074_v58, 2  ;;  %v1857_v2 = vrot.slane %v5078_v55, 2 }
 0x193   : > { %v1614_v5 = vsel %vm996_vm0, %v1612_v13, %v5887_v60  ;;  %v5888_v30 = vrot.slane %v5002_v41, 2  ;;  %v5637_v28 = vrot.slane %v5055_v29, 1  ;;  %v1133_v43 = vadd.f32 %v1059_v32, %v855_v47 }
 0x194   : > { %v813_v4 = vmul.f32 %v706_v17, %v435_v18  ;;  %v1380_v14 = vadd.f32 %v1307_v59, %v1134_v31  ;;  %v1691_v13 = vadd.f32 %v1614_v5, %v1446_v15  ;;  %v5112_v0 = vmul.f32 %v4795_v22, %v823_v61 }
 0x195   : > { %v2413_v46 = vsel %vm1242_vm1, %v2411_v20, %v5888_v30  ;;  %v5115_v58 = vmul.f32 %v4806_v53, %v823_v61  ;;  %v1937_v23 = vadd.f32 %v1861_v49, %v1692_v3  ;;  %v5119_v55 = vmul.f32 %v4913_v8, %v823_v61  ;;  %v5135_v3 = vld [vmem:[%s5564_s4 + $0x6] ss:$0 sm:$0xff] }
 0x196   : > { %v2493_v40 = vadd.f32 %v2413_v46, %v2248_v10  ;;  %5889 = vst [vmem:[#allocation9_spill] sm:$0xff] %v5112_v0  ;;  %v5122_v12 = vmul.f32 %v4779_v42, %v813_v4  ;;  %v322_v18 = vmul.f32 %v4706_v50, %v5109_v26  ;;  %v5127_v31 = vmul.f32 %v4919_v39, %v823_v61  ;;  %v5891_v20 = vld [vmem:[#allocation18_spill] sm:$0xff] }
 0x197   : > { %5890 = vst [vmem:[#allocation2_spill] sm:$0xff] %v5115_v58  ;;  %v5130_v5 = vmul.f32 %v4795_v22, %v813_v4  ;;  %v5892_v7 = vrot.slane %v5891_v20, 1  ;;  %v1417_v19 = vmul.f32 %v4907_v37, %v813_v4  ;;  %v5150_v49 = vmul.f32 %v4913_v8, %v813_v4  ;;  %v5187_v58 = vld [vmem:[%s3008_s20 + $0x158] sm:$0xff] }
 0x198   : > { %v2685_v41 = vadd.f32 %v4936_v1, %v2493_v40  ;;  %v1974_v1 = vmul.f32 %v5135_v3, %v813_v4  ;;  %v5638_v59 = vrot.slane %v5122_v12, 1  ;;  %v5153_v32 = vmul.f32 %v4919_v39, %v813_v4  ;;  %v5895_v40 = vld [vmem:[#allocation7_spill] sm:$0xff] }
 0x199   : > { %v5143_v9 = vsel %vm996_vm0, %v5637_v28, %v5892_v7  ;;  %v5156_v15 = vmul.f32 %v4787_v16, %v813_v4  ;;  %v5641_v21 = vrot.slane %v5130_v5, 1  ;;  %v5160_v61 = vmul.f32 %v4806_v53, %v813_v4 }
 0x19a   : > { %2718 = vst.msk [vmem:[%s3510_s21 + $0xa0] sm:$0xff] %vm2697_vm2, %v2685_v41  ;;  %v2006_v17 = vadd.f32 %v1974_v1, %v1937_v23  ;;  %v2172_v60 = vrot.slane %v5150_v49, 1  ;;  %v2417_v10 = vrot.slane %v5153_v32, 2  ;;  %v380_v30 = vadd.f32 %v4728_v11, %v322_v18  ;;  %v701_v1 = vpop.permute.xlu0 %700 }
 0x19b   : > { %v5893_v20 = vrot.slane %v4615_v51, 1  ;;  %v858_v7 = vmul.f32 %v4951_v34, %v813_v4  ;;  %v1449_v49 = vadd.f32 %v1417_v19, %v1380_v14  ;;  %v5894_v32 = vrot.slane %v4638_v48, 1  ;;  %v5897_v14 = vld [vmem:[#allocation13_spill] sm:$0xff] }
 0x19c   : > { %v434_v47 = vmax.f32 %v380_v30, 0.0  ;;  %v5896_v28 = vrot.slane %v5895_v40, 1  ;;  %v5642_v41 = vrot.slane %v5160_v61, 2  ;;  %v5898_v48 = vrot.slane %v5897_v14, 2 }
 0x19d   : > { %v1066_v23 = vsel %vm996_vm0, %v5638_v59, %v5893_v20  ;;  %v2175_v18 = vsel %vm996_vm0, %v2172_v60, %v5894_v32  ;;  %v278_v59 = vld [vmem:[%s3008_s20 + $0x1a8] sm:$0x3]  ;;  %v5899_v32 = vrot.slane %v5011_v35, 2  ;;  %v5900_v0 = vrot.slane %v5007_v52, 2 }
 0x19e   : > { %v1621_v51 = vsel %vm996_vm0, %v5641_v21, %v5896_v28  ;;  %v2251_v20 = vadd.f32 %v2175_v18, %v2006_v17  ;;  %v1136_v4 = vadd.f32 %v1066_v23, %v858_v7  ;;  %v2420_v19 = vsel %vm1242_vm1, %v2417_v10, %v5898_v48 }
 0x19f   : > { %v812_v30 = vmul.f32 %v701_v1, %v434_v47  ;;  %v1859_v40 = vsel %vm1242_vm1, %v1857_v2, %v5899_v32  ;;  %v1305_v28 = vsel %vm1242_vm1, %v1303_v38, %v5900_v0  ;;  %v2613_v18 = vrot.slane %v5109_v26, 1  ;;  %v5901_v0 = vld [vmem:[#allocation19_spill] sm:$0xff] }
 0x1a0   : > { %v2496_v46 = vadd.f32 %v2420_v19, %v2251_v20  ;;  %v1936_v17 = vadd.f32 %v1859_v40, %v1691_v13  ;;  %v1694_v21 = vadd.f32 %v1621_v51, %v1449_v49  ;;  %v336_v7 = vmul.f32 %v4706_v50, %v278_v59 }
 0x1a1   : > { %v939_v23 = vmul.f32 %v4779_v42, %v812_v30  ;;  %v326_v47 = vmul.f32 %v4706_v50, %v5187_v58  ;;  %v1379_v2 = vadd.f32 %v1305_v28, %v1133_v43  ;;  %v1497_v52 = vmul.f32 %v4795_v22, %v812_v30  ;;  %v5225_v28 = vld [vmem:[%s3008_s20 + $0x150] sm:$0xff] }
 0x1a2   : > { %v2688_v35 = vadd.f32 %v5049_v54, %v2496_v46  ;;  %v1973_v1 = vmul.f32 %v5135_v3, %v812_v30  ;;  %v1416_v13 = vmul.f32 %v4907_v37, %v812_v30  ;;  %v2053_v26 = vmul.f32 %v4913_v8, %v812_v30 }
 0x1a3   : > { %v1062_v38 = vrot.slane %v939_v23, 1  ;;  %v5902_v49 = vrot.slane %v5901_v0, 2  ;;  %v5903_v59 = vrot.slane %v5156_v15, 2  ;;  %v1617_v54 = vrot.slane %v1497_v52, 1 }
 0x1a4   : > { %2721 = vst.msk [vmem:[%s3510_s21 + $0xb8] sm:$0xff] %vm2697_vm2, %v2688_v35  ;;  %v2005_v43 = vadd.f32 %v1973_v1, %v1936_v17  ;;  %v2298_v46 = vmul.f32 %v4919_v39, %v812_v30  ;;  %v5904_v20 = vrot.slane %v5055_v29, 1  ;;  %v1185_v48 = vmul.f32 %v4787_v16, %v812_v30  ;;  %v721_v17 = vpop.permute.xlu1 %720  ;;  %v5905_v1 = vld [vmem:[#allocation16_spill] sm:$0xff] }
 0x1a5   : > { %v1312_v51 = vsel %vm1242_vm1, %v5903_v59, %v5902_v49  ;;  %v2171_v19 = vrot.slane %v2053_v26, 1  ;;  %v394_v32 = vadd.f32 %v4728_v11, %v336_v7  ;;  %v384_v40 = vadd.f32 %v4728_v11, %v326_v47 }
 0x1a6   : > { %v5219_v14 = vsel %vm996_vm0, %v2613_v18, %v5904_v20  ;;  %v1742_v23 = vmul.f32 %v4806_v53, %v812_v30  ;;  %v2416_v35 = vrot.slane %v2298_v46, 2  ;;  %v1382_v52 = vadd.f32 %v1312_v51, %v1136_v4 }
 0x1a7   : > { %v5906_v0 = vrot.slane %v5905_v1, 2  ;;  %v5907_v18 = vrot.slane %v5122_v12, 1  ;;  %v1448_v7 = vadd.f32 %v1416_v13, %v1379_v2  ;;  %v2173_v47 = vsel %vm996_vm0, %v2171_v19, %v2172_v60 }
 0x1a8   : > { %v438_v49 = vmax.f32 %v384_v40, 0.0  ;;  %v857_v59 = vmul.f32 %v4951_v34, %v812_v30  ;;  %v5908_v46 = vrot.slane %v5130_v5, 1  ;;  %v2250_v51 = vadd.f32 %v2173_v47, %v2005_v43  ;;  %v771_v30 = vpop.permute.xlu2 %770  ;;  %v716_v47 = vpop.permute.xlu0 %715 }
 0x1a9   : > { %v1866_v29 = vsel %vm1242_vm1, %v5642_v41, %v5906_v0  ;;  %v1064_v26 = vsel %vm996_vm0, %v1062_v38, %v5907_v18  ;;  %v325_v20 = vmul.f32 %v4706_v50, %v5225_v28  ;;  %v1308_v1 = vrot.slane %v1185_v48, 2 }
 0x1aa   : > { %v1619_v4 = vsel %vm996_vm0, %v1617_v54, %v5908_v46  ;;  %v2418_v0 = vsel %vm1242_vm1, %v2416_v35, %v2417_v10  ;;  %v448_v12 = vmax.f32 %v394_v32, 0.0  ;;  %v5244_v41 = vmul.f32 %v721_v17, %v438_v49 }
 0x1ab   : > { %v1135_v2 = vadd.f32 %v1064_v26, %v857_v59  ;;  %v1862_v38 = vrot.slane %v1742_v23, 2  ;;  %v2495_v60 = vadd.f32 %v2418_v0, %v2250_v51  ;;  %v1939_v13 = vadd.f32 %v1866_v29, %v1694_v21  ;;  %v5264_v29 = vld [vmem:[%s3008_s20 + $0x170] sm:$0xff] }
 0x1ac   : > { %v1693_v5 = vadd.f32 %v1619_v4, %v1448_v7  ;;  %v1419_v54 = vmul.f32 %v4907_v37, %v5244_v41  ;;  %v1501_v43 = vmul.f32 %v4795_v22, %v5244_v41  ;;  %v383_v48 = vadd.f32 %v4728_v11, %v325_v20 }
 0x1ad   : > { %v2687_v10 = vadd.f32 %v5083_v63, %v2495_v60  ;;  %v5254_v19 = vmul.f32 %v4806_v53, %v5244_v41  ;;  %v1976_v32 = vmul.f32 %v5135_v3, %v5244_v41  ;;  %v2057_v21 = vmul.f32 %v4913_v8, %v5244_v41 }
 0x1ae   : > { %v5260_v40 = vmul.f32 %v771_v30, %v448_v12  ;;  %v1451_v23 = vadd.f32 %v1419_v54, %v1382_v52  ;;  %v1623_v35 = vrot.slane %v1501_v43, 1  ;;  %v2619_v17 = vrot.slane %v5187_v58, 1 }
 0x1af   : > { %2720 = vst.msk [vmem:[%s3510_s21 + $0xb0] sm:$0xff] %vm2697_vm2, %v2687_v10  ;;  %v1868_v63 = vrot.slane %v5254_v19, 2  ;;  %v2008_v18 = vadd.f32 %v1976_v32, %v1939_v13  ;;  %v2177_v26 = vrot.slane %v2057_v21, 1  ;;  %v2302_v7 = vmul.f32 %v4919_v39, %v5244_v41 }
 0x1b0   : > { %v5909_v49 = vrot.slane %v4798_v27, 1  ;;  %v437_v52 = vmax.f32 %v383_v48, 0.0  ;;  %v5910_v46 = vrot.slane %v5156_v15, 2  ;;  %v5911_v51 = vrot.slane %v5160_v61, 2 }
 0x1b1   : > { %v5912_v12 = vrot.slane %v4812_v45, 1  ;;  %v2422_v30 = vrot.slane %v2302_v7, 2  ;;  %v329_v27 = vmul.f32 %v4706_v50, %v5264_v29  ;;  %v5307_v7 = vld [vmem:[%s3008_s20 + $0x168] sm:$0xff] }
 0x1b2   : > { %v1626_v59 = vsel %vm996_vm0, %v1623_v35, %v5909_v49  ;;  %v1310_v4 = vsel %vm1242_vm1, %v1308_v1, %v5910_v46  ;;  %v1864_v20 = vsel %vm1242_vm1, %v1862_v38, %v5911_v51  ;;  %v5285_v54 = vmul.f32 %v716_v47, %v437_v52 }
 0x1b3   : > { %v1696_v0 = vadd.f32 %v1626_v59, %v1451_v23  ;;  %v2180_v60 = vsel %vm996_vm0, %v2177_v26, %v5912_v12  ;;  %v1381_v15 = vadd.f32 %v1310_v4, %v1135_v2  ;;  %v5913_v1 = vrot.slane %v4809_v62, 2  ;;  %v736_v2 = vpop.permute.xlu1 %735 }
 0x1b4   : > { %v2253_v13 = vadd.f32 %v2180_v60, %v2008_v18  ;;  %v5914_v38 = vrot.slane %v4818_v36, 2  ;;  %v1938_v45 = vadd.f32 %v1864_v20, %v1693_v5  ;;  %v387_v48 = vadd.f32 %v4728_v11, %v329_v27 }
 0x1b5   : > { %v1871_v61 = vsel %vm1242_vm1, %v1868_v63, %v5913_v1  ;;  %v1418_v32 = vmul.f32 %v4907_v37, %v5285_v54  ;;  %v1500_v21 = vmul.f32 %v4795_v22, %v5285_v54  ;;  %v1745_v62 = vmul.f32 %v4806_v53, %v5285_v54 }
 0x1b6   : > { %v2425_v43 = vsel %vm1242_vm1, %v2422_v30, %v5914_v38  ;;  %v1941_v10 = vadd.f32 %v1871_v61, %v1696_v0  ;;  %v1975_v36 = vmul.f32 %v5135_v3, %v5285_v54  ;;  %v2056_v5 = vmul.f32 %v4913_v8, %v5285_v54 }
 0x1b7   : > { %v2498_v19 = vadd.f32 %v2425_v43, %v2253_v13  ;;  %v2301_v23 = vmul.f32 %v4919_v39, %v5285_v54  ;;  %v441_v18 = vmax.f32 %v387_v48, 0.0  ;;  %v1450_v49 = vadd.f32 %v1418_v32, %v1381_v15  ;;  %v5327_v13 = vld [vmem:[%s3008_s20 + $0x188] sm:$0xff]  ;;  %v731_v32 = vpop.permute.xlu0 %730 }
 0x1b8   : > { %v1622_v59 = vrot.slane %v1500_v21, 1  ;;  %v1867_v52 = vrot.slane %v1745_v62, 2  ;;  %v2007_v46 = vadd.f32 %v1975_v36, %v1938_v45  ;;  %v2176_v4 = vrot.slane %v2056_v5, 1 }
 0x1b9   : > { %v2690_v47 = vadd.f32 %v5143_v9, %v2498_v19  ;;  %v2421_v51 = vrot.slane %v2301_v23, 2  ;;  %v5310_v20 = vmul.f32 %v736_v2, %v441_v18  ;;  %v5314_v0 = vmul.f32 %v4913_v8, %v5260_v40 }
 0x1ba   : > { %v5915_v12 = vrot.slane %v4677_v57, 1  ;;  %v1624_v9 = vsel %vm996_vm0, %v1622_v59, %v1623_v35  ;;  %v328_v27 = vmul.f32 %v4706_v50, %v5307_v7  ;;  %v2178_v1 = vsel %vm996_vm0, %v2176_v4, %v2177_v26 }
 0x1bb   : > { %2723 = vst.msk [vmem:[%s3510_s21 + $0xc8] sm:$0xff] %vm2697_vm2, %v2690_v47  ;;  %v1695_v15 = vadd.f32 %v1624_v9, %v1450_v49  ;;  %v2618_v61 = vrot.slane %v5225_v28, 1  ;;  %v1978_v57 = vmul.f32 %v5135_v3, %v5310_v20  ;;  %v2252_v38 = vadd.f32 %v2178_v1, %v2007_v46  ;;  %v751_v46 = vpop.permute.xlu1 %750 }
 0x1bc   : > { %v2622_v60 = vsel %vm996_vm0, %v2619_v17, %v5915_v12  ;;  %v2060_v43 = vmul.f32 %v4913_v8, %v5310_v20  ;;  %v2305_v35 = vmul.f32 %v4919_v39, %v5310_v20  ;;  %v386_v45 = vadd.f32 %v4728_v11, %v328_v27 }
 0x1bd   : > { %v2423_v48 = vsel %vm1242_vm1, %v2421_v51, %v2422_v30  ;;  %v2010_v19 = vadd.f32 %v1978_v57, %v1941_v10  ;;  %v1869_v26 = vsel %vm1242_vm1, %v1867_v52, %v1868_v63  ;;  %v332_v28 = vmul.f32 %v4706_v50, %v5327_v13 }
 0x1be   : > { %v2497_v21 = vadd.f32 %v2423_v48, %v2252_v38  ;;  %v2182_v62 = vrot.slane %v2060_v43, 1  ;;  %v2427_v2 = vrot.slane %v2305_v35, 2  ;;  %v440_v36 = vmax.f32 %v386_v45, 0.0 }
 0x1bf   : > { %v1940_v5 = vadd.f32 %v1869_v26, %v1695_v15  ;;  %v390_v23 = vadd.f32 %v4728_v11, %v332_v28  ;;  %v860_v18 = vmul.f32 %v4951_v34, %v5244_v41  ;;  %v5347_v30 = vmul.f32 %v4779_v42, %v5244_v41 }
 0x1c0   : > { %v2689_v63 = vadd.f32 %v5219_v14, %v2497_v21  ;;  %v5916_v10 = vrot.slane %v4982_v44, 1  ;;  %v5917_v49 = vrot.slane %v4986_v33, 2  ;;  %v5356_v52 = vmul.f32 %v731_v32, %v440_v36  ;;  %v5389_v21 = vld [vmem:[%s3008_s20 + $0x180] sm:$0xff] }
 0x1c1   : > { %v444_v51 = vmax.f32 %v390_v23, 0.0  ;;  %v1068_v12 = vrot.slane %v5347_v30, 1  ;;  %v5361_v9 = vmul.f32 %v4787_v16, %v5244_v41  ;;  %v1421_v27 = vmul.f32 %v4907_v37, %v5310_v20 }
 0x1c2   : > { %v2185_v47 = vsel %vm996_vm0, %v2182_v62, %v5916_v10  ;;  %v2430_v59 = vsel %vm1242_vm1, %v2427_v2, %v5917_v49  ;;  %2722 = vst.msk [vmem:[%s3510_s21 + $0xc0] sm:$0xff] %vm2697_vm2, %v2689_v63  ;;  %v1977_v44 = vmul.f32 %v5135_v3, %v5356_v52  ;;  %v2059_v33 = vmul.f32 %v4913_v8, %v5356_v52 }
 0x1c3   : > { %v2255_v4 = vadd.f32 %v2185_v47, %v2010_v19  ;;  %v2304_v14 = vmul.f32 %v4919_v39, %v5356_v52  ;;  %v5373_v1 = vmul.f32 %v751_v46, %v444_v51  ;;  %v5918_v41 = vrot.slane %v4782_v25, 1  ;;  %v5921_v51 = vld [vmem:[#allocation11_spill] sm:$0xff] }
 0x1c4   : > { %v1314_v38 = vrot.slane %v5361_v9, 2  ;;  %v2009_v43 = vadd.f32 %v1977_v44, %v1940_v5  ;;  %v2181_v35 = vrot.slane %v2059_v33, 1  ;;  %v5919_v32 = vrot.slane %v4790_v24, 2 }
 0x1c5   : > { %v2500_v15 = vadd.f32 %v2430_v59, %v2255_v4  ;;  %v1071_v57 = vsel %vm996_vm0, %v1068_v12, %v5918_v41  ;;  %v2426_v45 = vrot.slane %v2304_v14, 2  ;;  %v1504_v28 = vmul.f32 %v4795_v22, %v5310_v20 }
 0x1c6   : > { %v1138_v48 = vadd.f32 %v1071_v57, %v860_v18  ;;  %v1317_v26 = vsel %vm1242_vm1, %v1314_v38, %v5919_v32  ;;  %v5386_v25 = vmul.f32 %v4806_v53, %v5310_v20  ;;  %v5393_v36 = vmul.f32 %v4919_v39, %v5260_v40 }
 0x1c7   : > { %v2692_v19 = vadd.f32 %v2622_v60, %v2500_v15  ;;  %v2624_v5 = vrot.slane %v5264_v29, 1  ;;  %v2183_v60 = vsel %vm996_vm0, %v2181_v35, %v2182_v62  ;;  %v1628_v18 = vrot.slane %v1504_v28, 1 }
 0x1c8   : > { %v1384_v24 = vadd.f32 %v1317_v26, %v1138_v48  ;;  %v2254_v23 = vadd.f32 %v2183_v60, %v2009_v43  ;;  %v1873_v30 = vrot.slane %v5386_v25, 2  ;;  %v5402_v63 = vmul.f32 %v4913_v8, %v5373_v1 }
 0x1c9   : > { %2725 = vst.msk [vmem:[%s3510_s21 + $0xd8] sm:$0xff] %vm2697_vm2, %v2692_v19  ;;  %v2620_v40 = vsel %vm996_vm0, %v2618_v61, %v2619_v17  ;;  %v2428_v10 = vsel %vm1242_vm1, %v2426_v45, %v2427_v2  ;;  %v331_v62 = vmul.f32 %v4706_v50, %v5389_v21  ;;  %v5920_v49 = vrot.slane %v4976_v56, 1  ;;  %v277_v45 = vld [vmem:[%s3008_s20 + $0x1a0] sm:$0xff] }
 0x1ca   : > { %v1453_v29 = vadd.f32 %v1421_v27, %v1384_v24  ;;  %v2499_v47 = vadd.f32 %v2428_v10, %v2254_v23  ;;  %v2187_v46 = vrot.slane %v5402_v63, 1  ;;  %v5416_v58 = vmul.f32 %v4919_v39, %v5373_v1  ;;  %v746_v27 = vpop.permute.xlu0 %745 }
 0x1cb   : > { %v1631_v59 = vsel %vm996_vm0, %v1628_v18, %v5920_v49  ;;  %v2194_v17 = vrot.slane %v5314_v0, 1  ;;  %v1980_v2 = vmul.f32 %v5135_v3, %v5373_v1  ;;  %v389_v4 = vadd.f32 %v4728_v11, %v331_v62  ;;  %v5934_v0 = vld [vmem:[#allocation3_spill] sm:$0xff] }
 0x1cc   : > { %v1698_v61 = vadd.f32 %v1631_v59, %v1453_v29  ;;  %v5922_v56 = vrot.slane %v5921_v51, 1  ;;  %v2691_v44 = vadd.f32 %v2620_v40, %v2499_v47  ;;  %v5923_v33 = vrot.slane %v4979_v6, 2 }
 0x1cd   : > { %v942_v15 = vmul.f32 %v4779_v42, %v5285_v54  ;;  %v2623_v41 = vrot.slane %v5307_v7, 1  ;;  %v443_v43 = vmax.f32 %v389_v4, 0.0  ;;  %v1188_v35 = vmul.f32 %v4787_v16, %v5285_v54 }
 0x1ce   : > { %v2627_v9 = vsel %vm996_vm0, %v2624_v5, %v5922_v56  ;;  %v1876_v14 = vsel %vm1242_vm1, %v1873_v30, %v5923_v33  ;;  %2724 = vst.msk [vmem:[%s3510_s21 + $0xd0] sm:$0xff] %vm2697_vm2, %v2691_v44  ;;  %v5924_v6 = vrot.slane %v5119_v55, 1  ;;  %v2432_v19 = vrot.slane %v5416_v58, 2  ;;  %v766_v56 = vpop.permute.xlu1 %765 }
 0x1cf   : > { %v1943_v57 = vadd.f32 %v1876_v14, %v1698_v61  ;;  %v1067_v32 = vrot.slane %v942_v15, 1  ;;  %v1503_v7 = vmul.f32 %v4795_v22, %v5356_v52  ;;  %v5446_v28 = vmul.f32 %v746_v27, %v443_v43 }
 0x1d0   : > { %v2190_v48 = vsel %vm996_vm0, %v2187_v46, %v5924_v6  ;;  %v859_v60 = vmul.f32 %v4951_v34, %v5285_v54  ;;  %v1313_v24 = vrot.slane %v1188_v35, 2  ;;  %v1748_v40 = vmul.f32 %v4806_v53, %v5356_v52 }
 0x1d1   : > { %v2012_v26 = vadd.f32 %v1980_v2, %v1943_v57  ;;  %v1069_v23 = vsel %vm996_vm0, %v1067_v32, %v1068_v12  ;;  %v1627_v55 = vrot.slane %v1503_v7, 1  ;;  %v335_v10 = vmul.f32 %v4706_v50, %v277_v45  ;;  %v5926_v32 = vld [vmem:[#allocation12_spill] sm:$0xff] }
 0x1d2   : > { %v5455_v29 = vsel %vm996_vm0, %v2623_v41, %v2624_v5  ;;  %v1137_v47 = vadd.f32 %v1069_v23, %v859_v60  ;;  %v1420_v49 = vmul.f32 %v4907_v37, %v5356_v52  ;;  %v5925_v59 = vrot.slane %v5127_v31, 2  ;;  %v276_v41 = vld [vmem:[%s3008_s20 + $0x198] sm:$0xff]  ;;  %v2850_v60 = vld [vmem:[%s5562_s2] ss:$0 sm:$0xff] }
 0x1d3   : > { %v2257_v62 = vadd.f32 %v2190_v48, %v2012_v26  ;;  %v1315_v12 = vsel %vm1242_vm1, %v1313_v24, %v1314_v38  ;;  %v2062_v58 = vmul.f32 %v4913_v8, %v5446_v28  ;;  %v2307_v50 = vmul.f32 %v4919_v39, %v5446_v28 }
 0x1d4   : > { %v2435_v54 = vsel %vm1242_vm1, %v2432_v19, %v5925_v59  ;;  %v2629_v61 = vrot.slane %v5327_v13, 1  ;;  %v1383_v2 = vadd.f32 %v1315_v12, %v1137_v47  ;;  %v393_v4 = vadd.f32 %v4728_v11, %v335_v10  ;;  %v5928_v10 = vld [vmem:[#allocation17_spill] sm:$0xff] }
 0x1d5   : > { %v2502_v5 = vadd.f32 %v2435_v54, %v2257_v62  ;;  %v1629_v31 = vsel %vm996_vm0, %v1627_v55, %v1628_v18  ;;  %v1872_v51 = vrot.slane %v1748_v40, 2  ;;  %v1979_v38 = vmul.f32 %v5135_v3, %v5446_v28 }
 0x1d6   : > { %v946_v44 = vmul.f32 %v4779_v42, %v5310_v20  ;;  %v1452_v14 = vadd.f32 %v1420_v49, %v1383_v2  ;;  %v447_v27 = vmax.f32 %v393_v4, 0.0  ;;  %v1192_v15 = vmul.f32 %v4787_v16, %v5310_v20  ;;  %v761_v4 = vpop.permute.xlu0 %760 }
 0x1d7   : > { %v2694_v33 = vadd.f32 %v2627_v9, %v2502_v5  ;;  %v2186_v57 = vrot.slane %v2062_v58, 1  ;;  %v2431_v43 = vrot.slane %v2307_v50, 2  ;;  %v862_v11 = vmul.f32 %v4951_v34, %v5310_v20  ;;  %v5930_v5 = vld [vmem:[#allocation9_spill] sm:$0xff] }
 0x1d8   : > { %v1073_v18 = vrot.slane %v946_v44, 1  ;;  %v1697_v35 = vadd.f32 %v1629_v31, %v1452_v14  ;;  %v825_v45 = vmul.f32 %v766_v56, %v447_v27  ;;  %v1319_v6 = vrot.slane %v1192_v15, 2 }
 0x1d9   : > { %2727 = vst.msk [vmem:[%s3510_s21 + $0xe8] sm:$0xff] %vm2697_vm2, %v2694_v33  ;;  %v1507_v9 = vmul.f32 %v4795_v22, %v5373_v1  ;;  %v1874_v48 = vsel %vm1242_vm1, %v1872_v51, %v1873_v30  ;;  %v5927_v7 = vrot.slane %v5926_v32, 1  ;;  %v1752_v20 = vmul.f32 %v4806_v53, %v5373_v1  ;;  %v5932_v33 = vld [vmem:[#allocation2_spill] sm:$0xff] }
 0x1da   : > { %v334_v24 = vmul.f32 %v2850_v60, %v276_v41  ;;  %v1942_v23 = vadd.f32 %v1874_v48, %v1697_v35  ;;  %v1423_v40 = vmul.f32 %v4907_v37, %v5373_v1  ;;  %v2188_v30 = vsel %vm996_vm0, %v2186_v57, %v2187_v46  ;;  %v2851_v1 = vld [vmem:[%s5563_s3] ss:$0 sm:$0xff] }
 0x1db   : > { %v1076_v26 = vsel %vm996_vm0, %v1073_v18, %v5927_v7  ;;  %v1633_v25 = vrot.slane %v1507_v9, 1  ;;  %v5929_v62 = vrot.slane %v5928_v10, 2  ;;  %v1878_v49 = vrot.slane %v1752_v20, 2 }
 0x1dc   : > { %v1140_v55 = vadd.f32 %v1076_v26, %v862_v11  ;;  %v2066_v59 = vmul.f32 %v4913_v8, %v825_v45  ;;  %v2011_v54 = vadd.f32 %v1979_v38, %v1942_v23  ;;  %v2433_v12 = vsel %vm1242_vm1, %v2431_v43, %v2432_v19 }
 0x1dd   : > { %v1322_v47 = vsel %vm1242_vm1, %v1319_v6, %v5929_v62  ;;  %v392_v50 = vadd.f32 %v2851_v1, %v334_v24  ;;  %v5931_v63 = vrot.slane %v5930_v5, 1  ;;  %v2311_v2 = vmul.f32 %v4919_v39, %v825_v45 }
 0x1de   : > { %v1386_v58 = vadd.f32 %v1322_v47, %v1140_v55  ;;  %v861_v31 = vmul.f32 %v4951_v34, %v5356_v52  ;;  %v945_v51 = vmul.f32 %v4779_v42, %v5356_v52  ;;  %v2256_v19 = vadd.f32 %v2188_v30, %v2011_v54 }
 0x1df   : > { %v1636_v46 = vsel %vm996_vm0, %v1633_v25, %v5931_v63  ;;  %v446_v56 = vmax.f32 %v392_v50, 0.0  ;;  %v1191_v44 = vmul.f32 %v4787_v16, %v5356_v52  ;;  %v5933_v14 = vrot.slane %v5932_v33, 2 }
 0x1e0   : > { %v1455_v38 = vadd.f32 %v1423_v40, %v1386_v58  ;;  %v1982_v15 = vmul.f32 %v5135_v3, %v825_v45  ;;  %v2192_v41 = vrot.slane %v2066_v59, 1  ;;  %v1072_v57 = vrot.slane %v945_v51, 1 }
 0x1e1   : > { %v1881_v27 = vsel %vm1242_vm1, %v1878_v49, %v5933_v14  ;;  %v2501_v43 = vadd.f32 %v2433_v12, %v2256_v19  ;;  %v824_v11 = vmul.f32 %v761_v4, %v446_v56  ;;  %v1318_v35 = vrot.slane %v1191_v44, 2 }
 0x1e2   : > { %v1700_v34 = vadd.f32 %v1636_v46, %v1455_v38  ;;  %v2437_v42 = vrot.slane %v2311_v2, 2  ;;  %v1074_v9 = vsel %vm996_vm0, %v1072_v57, %v1073_v18  ;;  %v1506_v48 = vmul.f32 %v4795_v22, %v5446_v28 }
 0x1e3   : > { %v1751_v16 = vmul.f32 %v4806_v53, %v5446_v28  ;;  %v2693_v52 = vadd.f32 %v5455_v29, %v2501_v43  ;;  %v1139_v45 = vadd.f32 %v1074_v9, %v861_v31  ;;  %v1422_v7 = vmul.f32 %v4907_v37, %v5446_v28 }
 0x1e4   : > { %v1945_v32 = vadd.f32 %v1881_v27, %v1700_v34  ;;  %v2195_v26 = vsel %vm996_vm0, %v2192_v41, %v2194_v17  ;;  %v1320_v20 = vsel %vm1242_vm1, %v1318_v35, %v1319_v6  ;;  %v1632_v18 = vrot.slane %v1506_v48, 1 }
 0x1e5   : > { %v2065_v60 = vmul.f32 %v4913_v8, %v824_v11  ;;  %2726 = vst.msk [vmem:[%s3510_s21 + $0xe0] sm:$0xff] %vm2697_vm2, %v2693_v52  ;;  %v1385_v53 = vadd.f32 %v1320_v20, %v1139_v45  ;;  %v2439_v29 = vrot.slane %v5393_v36, 2  ;;  %v1877_v23 = vrot.slane %v1751_v16, 2 }
 0x1e6   : > { %v2014_v22 = vadd.f32 %v1982_v15, %v1945_v32  ;;  %v1634_v24 = vsel %vm996_vm0, %v1632_v18, %v1633_v25  ;;  %v5935_v55 = vrot.slane %v5934_v0, 1  ;;  %v2310_v40 = vmul.f32 %v4919_v39, %v824_v11 }
 0x1e7   : > { %v1454_v28 = vadd.f32 %v1422_v7, %v1385_v53  ;;  %v2440_v8 = vsel %vm1242_vm1, %v2437_v42, %v2439_v29  ;;  %v2191_v6 = vrot.slane %v2065_v60, 1  ;;  %v1981_v25 = vmul.f32 %v5135_v3, %v824_v11 }
 0x1e8   : > { %v2259_v37 = vadd.f32 %v2195_v26, %v2014_v22  ;;  %v2632_v17 = vsel %vm996_vm0, %v2629_v61, %v5935_v55  ;;  %v1879_v10 = vsel %vm1242_vm1, %v1877_v23, %v1878_v49  ;;  %v2628_v59 = vrot.slane %v5389_v21, 1 }
 0x1e9   : > { %v1699_v36 = vadd.f32 %v1634_v24, %v1454_v28  ;;  %v2193_v54 = vsel %vm996_vm0, %v2191_v6, %v2192_v41  ;;  %v2436_v12 = vrot.slane %v2310_v40, 2 }
 0x1ea   : > { %v2504_v30 = vadd.f32 %v2440_v8, %v2259_v37  ;;  %v2630_v39 = vsel %vm996_vm0, %v2628_v59, %v2629_v61 }
 0x1eb   : > { %v1944_v47 = vadd.f32 %v1879_v10, %v1699_v36  ;;  %v2438_v50 = vsel %vm1242_vm1, %v2436_v12, %v2437_v42 }
 0x1ec   : > { %v2696_v62 = vadd.f32 %v2632_v17, %v2504_v30 }
 0x1ed   : > { %v2013_v58 = vadd.f32 %v1981_v25, %v1944_v47 }
 0x1ee   : > { %2729 = vst.msk [vmem:[%s3510_s21 + $0xf8] sm:$0xff] %vm2697_vm2, %v2696_v62 }
 0x1ef   : > { %v2258_v1 = vadd.f32 %v2193_v54, %v2013_v58 }
 0x1f1   : > { %v2503_v3 = vadd.f32 %v2438_v50, %v2258_v1 }
 0x1f3   : > { %v2695_v5 = vadd.f32 %v2630_v39, %v2503_v3 }
 0x1f5   : > { %2728 = vst.msk [vmem:[%s3510_s21 + $0xf0] sm:$0xff] %vm2697_vm2, %v2695_v5 }
 0x1f6 PF: > { %s15_s18 = sadd.s32 1, %s2858_s18  }
 0x1f7   : > { %p12_p4 = scmp.ge.s32.totalorder %s15_s18, 4  }
 0x1f9   :  { %14 = sbr.rel (!%p12_p4) target bundleno = 1 (0x1), region = 78 }

// kernel: transition_forward.6
= control target key start
LH: loop header
LB: loop body
LE: loop exit
PB: predicated region body
PF: predicated region fallthrough
CT: control target
= control target key end

     0   :  { %s778_s21 = smov 0   ;;  %s949_s0 = inlined_call_operand.vmem [shape: f32[2,64,256], index: 0, kind: input, shape index: {}]   ;;  %s950_s1 = inlined_call_operand.vmem [shape: f32[64,1], index: 1, kind: input, shape index: {}]   ;;  %s951_s2 = inlined_call_operand.vmem [shape: f32[64,1], index: 2, kind: input, shape index: {}]   ;;  %s952_s3 = inlined_call_operand.vmem [shape: f32[48,64], index: 3, kind: input, shape index: {}]   ;;  %s953_s4 = inlined_call_operand.vmem [shape: f32[48,1], index: 4, kind: input, shape index: {}]   ;;  %s954_s5 = inlined_call_operand.vmem [shape: f32[48,1], index: 5, kind: input, shape index: {}]   ;;  %s955_s6 = inlined_call_operand.vmem [shape: f32[2,48,256], index: 6, kind: output, shape index: {}]  }
   0x1 LB: > { %s682_s22 = sadd.s32 4294967295, %s740_s21   ;;  %p686_p0 = scmp.ge.s32.totalorder %s740_s21, 1  ;;  %s740_s21 = sphi %s778_s21, %s16_s21  }
   0x2   : > { %p212_p1 = scmp.lt.s32.totalorder %s740_s21, 3 }
   0x4   : > { %p213_p2 = pnand %p686_p0, %p212_p1 }
   0x5   : > { %p242_p3 = scmp.lt.s32.totalorder (!%p213_p2), %s682_s22, 1 }
   0x6   : > { %216 = sbr.rel (%p213_p2) target bundleno = 331 (0x14b), region = 44 }
   0xb   : > { %v338_v0 = vld [vmem:[%s951_s2 + $0x30] sm:$0xff]  ;;  %v339_v1 = vld [vmem:[%s951_s2 + $0x38] sm:$0xff]  ;;  %v742_v3 = vmov 0   ;;  %v272_v4 = vld [vmem:[%s950_s1 + $0x20] sm:$0xff]  ;;  %s957_s22 = smov (!%p242_p3, %s682_s22), 1  ;;  %vm418_vm0 = vcmask 523264  }
   0xc   : > { %v275_v2 = vld [vmem:[%s950_s1 + $0x38] sm:$0xff]  ;;  %733 = vset.pattern.permute.xlu2 %v742_v3  ;;  %732 = vset.pattern.permute.xlu1 %v742_v3  ;;  %v274_v5 = vld [vmem:[%s950_s1 + $0x30] sm:$0xff]  ;;  %v273_v6 = vld [vmem:[%s950_s1 + $0x28] sm:$0xff]  ;;  %s704_s11 = sshll.u32 %s957_s22, 7  ;;  %s721_s29 = smul.u32 96, %s957_s22 }
   0xd   : > { %731 = vset.pattern.permute.xlu0 %v742_v3  ;;  %372 = vperm.xlu2 %733, %v338_v0   ;;  %v336_v7 = vld [vmem:[%s951_s2 + $0x20] sm:$0xff]  ;;  %v337_v8 = vld [vmem:[%s951_s2 + $0x28] sm:$0xff]  ;;  %v271_v9 = vld [vmem:[%s950_s1 + $0x18] sm:$0xff]  ;;  %s880_s14 = scalar_lea.vmem %s949_s0, %s704_s11 }
   0xe   : > { %377 = vperm.xlu1 %732, %v339_v1   ;;  %313 = vperm.xlu0 %731, %v275_v2   ;;  %v269_v10 = vld [vmem:[%s950_s1 + $0x8] sm:$0xff]  ;;  %v335_v11 = vld [vmem:[%s951_s2 + $0x18] sm:$0xff]  ;;  %v270_v12 = vld [vmem:[%s950_s1 + $0x10] sm:$0xff]  ;;  %s932_s8 = scalar_lea.vmem %s955_s6, %s721_s29 }
   0xf   : > { %v333_v13 = vld [vmem:[%s951_s2 + $0x8] sm:$0xff]  ;;  %v334_v14 = vld [vmem:[%s951_s2 + $0x10] sm:$0xff]  ;;  %v268_v15 = vld [vmem:[%s950_s1] sm:$0xff] }
  0x10   : > { %v508_v16 = vld [vmem:[%s953_s4 + $0x8] sm:$0xff]  ;;  %v332_v17 = vld [vmem:[%s951_s2] sm:$0xff]  ;;  %v509_v20 = vld [vmem:[%s953_s4 + $0x10] sm:$0xff] }
  0x11   : > { %v507_v18 = vld [vmem:[%s953_s4] sm:$0xff]  ;;  %v510_v21 = vld [vmem:[%s953_s4 + $0x18] sm:$0xff]  ;;  %v556_v22 = vld [vmem:[%s954_s5 + $0x8] sm:$0xff] }
  0x12   : > { %v511_v19 = vld [vmem:[%s953_s4 + $0x20] sm:$0xff]  ;;  %v512_v23 = vld [vmem:[%s953_s4 + $0x28] sm:$0xff]  ;;  %v557_v26 = vld [vmem:[%s954_s5 + $0x10] sm:$0xff] }
  0x13   : > { %v555_v24 = vld [vmem:[%s954_s5] sm:$0xff]  ;;  %v558_v27 = vld [vmem:[%s954_s5 + $0x18] sm:$0xff]  ;;  %v560_v28 = vld [vmem:[%s954_s5 + $0x28] sm:$0xff] }
  0x14   : > { %v559_v25 = vld [vmem:[%s954_s5 + $0x20] sm:$0xff]  ;;  %v266_v30 = vld [vmem:[%s880_s14 + $0x70] sm:$0xff]  ;;  %v267_v31 = vld [vmem:[%s880_s14 + $0x78] sm:$0xff] }
  0x15   : > { %298 = vperm.xlu2 %733, %v272_v4   ;;  %v264_v41 = vld [vmem:[%s880_s14 + $0x60] sm:$0xff]  ;;  %v265_v42 = vld [vmem:[%s880_s14 + $0x68] sm:$0xff]  ;;  %v262_v52 = vld [vmem:[%s880_s14 + $0x50] sm:$0xff] }
  0x16   : > { %308 = vperm.xlu0 %731, %v274_v5   ;;  %303 = vperm.xlu1 %732, %v273_v6   ;;  %v260_v47 = vld [vmem:[%s880_s14 + $0x40] sm:$0xff]  ;;  %v261_v49 = vld [vmem:[%s880_s14 + $0x48] sm:$0xff]  ;;  %v263_v53 = vld [vmem:[%s880_s14 + $0x58] sm:$0xff] }
  0x17   : > { %v258_v5 = vld [vmem:[%s880_s14 + $0x30] sm:$0xff]  ;;  %v259_v6 = vld [vmem:[%s880_s14 + $0x38] sm:$0xff] }
  0x1d   : > { %362 = vperm.xlu2 %733, %v336_v7  }
  0x1e   : > { %367 = vperm.xlu0 %731, %v337_v8   ;;  %293 = vperm.xlu1 %732, %v271_v9  }
  0x25   : > { %283 = vperm.xlu2 %733, %v269_v10  }
  0x26   : > { %357 = vperm.xlu1 %732, %v335_v11   ;;  %288 = vperm.xlu0 %731, %v270_v12  }
  0x2d   : > { %347 = vperm.xlu2 %733, %v333_v13  }
  0x2e   : > { %352 = vperm.xlu0 %731, %v334_v14   ;;  %278 = vperm.xlu1 %732, %v268_v15   ;;  %v254_v15 = vld [vmem:[%s880_s14 + $0x10] sm:$0xff] }
  0x35   : > { %520 = vperm.xlu2 %733, %v508_v16   ;;  %v255_v16 = vld [vmem:[%s880_s14 + $0x18] sm:$0xff] }
  0x36   : > { %342 = vperm.xlu0 %731, %v332_v17   ;;  %515 = vperm.xlu1 %732, %v507_v18  }
  0x3d   : > { %535 = vperm.xlu2 %733, %v511_v19   ;;  %v256_v19 = vld [vmem:[%s880_s14 + $0x20] sm:$0xff] }
  0x3e   : > { %525 = vperm.xlu0 %731, %v509_v20   ;;  %530 = vperm.xlu1 %732, %v510_v21   ;;  %v257_v20 = vld [vmem:[%s880_s14 + $0x28] sm:$0xff] }
  0x45   : > { %568 = vperm.xlu2 %733, %v556_v22  }
  0x46   : > { %540 = vperm.xlu0 %731, %v512_v23   ;;  %563 = vperm.xlu1 %732, %v555_v24  }
  0x4d   : > { %583 = vperm.xlu2 %733, %v559_v25  }
  0x4e   : > { %573 = vperm.xlu0 %731, %v557_v26   ;;  %578 = vperm.xlu1 %732, %v558_v27  }
  0x56   : > { %588 = vperm.xlu0 %731, %v560_v28  }
  0x67   : > { %v373_v29 = vpop.permute.xlu2 %372 }
  0x6f   : > { %v299_v32 = vpop.permute.xlu2 %298 }
  0x70   : > { %v324_v54 = vmul.f32 %v299_v32, %v260_v47  ;;  %v325_v57 = vmul.f32 %v299_v32, %v261_v49  ;;  %v413_v47 = vld [vmem:[%s952_s3 + $0x8] sm:$0xff]  ;;  %v414_v49 = vld [vmem:[%s952_s3 + $0x10] sm:$0xff] }
  0x77   : > { %v363_v48 = vpop.permute.xlu2 %362 }
  0x78   : > { %v388_v62 = vadd.f32 %v363_v48, %v324_v54  ;;  %v389_v1 = vadd.f32 %v363_v48, %v325_v57  ;;  %v416_v48 = vld [vmem:[%s952_s3 + $0x20] sm:$0xff] }
  0x7a   : > { %v404_v7 = vmax.f32 %v388_v62, 0.0  ;;  %v405_v8 = vmax.f32 %v389_v1, 0.0 }
  0x7f   : > { %v284_v4 = vpop.permute.xlu2 %283 }
  0x80   : > { %v378_v33 = vpop.permute.xlu1 %377  ;;  %v314_v34 = vpop.permute.xlu0 %313  ;;  %v318_v21 = vmul.f32 %v284_v4, %v254_v15  ;;  %v319_v22 = vmul.f32 %v284_v4, %v255_v16 }
  0x81   : > { %v330_v35 = vmul.f32 %v314_v34, %v266_v30  ;;  %v331_v36 = vmul.f32 %v314_v34, %v267_v31  ;;  %v252_v34 = vld [vmem:[%s880_s14] sm:$0xff] }
  0x83   : > { %v394_v37 = vadd.f32 %v378_v33, %v330_v35  ;;  %v395_v38 = vadd.f32 %v378_v33, %v331_v36  ;;  %v253_v35 = vld [vmem:[%s880_s14 + $0x8] sm:$0xff] }
  0x85   : > { %v410_v39 = vmax.f32 %v394_v37, 0.0  ;;  %v411_v40 = vmax.f32 %v395_v38, 0.0 }
  0x87   : > { %445 = vmatpush.msra.mxu0 %v410_v39  ;;  %705 = vmatpush.msra.mxu2 %v410_v39  ;;  %v348_v23 = vpop.permute.xlu2 %347 }
  0x88   : > { %480 = vmatpush.msra.mxu1 %v411_v40  ;;  %713 = vmatpush.msra.mxu3 %v411_v40  ;;  %v309_v43 = vpop.permute.xlu0 %308  ;;  %v304_v44 = vpop.permute.xlu1 %303  ;;  %v382_v27 = vadd.f32 %v348_v23, %v318_v21  ;;  %v383_v30 = vadd.f32 %v348_v23, %v319_v22 }
  0x89   : > { %v328_v45 = vmul.f32 %v309_v43, %v264_v41  ;;  %v329_v46 = vmul.f32 %v309_v43, %v265_v42  ;;  %v326_v58 = vmul.f32 %v304_v44, %v262_v52  ;;  %v327_v59 = vmul.f32 %v304_v44, %v263_v53 }
  0x8a   : > { %v398_v36 = vmax.f32 %v382_v27, 0.0  ;;  %v399_v37 = vmax.f32 %v383_v30, 0.0 }
  0x8b   : > { %v392_v50 = vadd.f32 %v373_v29, %v328_v45  ;;  %v393_v51 = vadd.f32 %v373_v29, %v329_v46  ;;  %v412_v45 = vld [vmem:[%s952_s3] sm:$0xff]  ;;  %v415_v46 = vld [vmem:[%s952_s3 + $0x18] sm:$0xff] }
  0x8d   : > { %v408_v55 = vmax.f32 %v392_v50, 0.0  ;;  %v409_v56 = vmax.f32 %v393_v51, 0.0  ;;  %v417_v50 = vld [vmem:[%s952_s3 + $0x28] sm:$0xff] }
  0x8f   : > { %446 = vmatpush.msra.mxu0 %v408_v55  ;;  %706 = vmatpush.msra.mxu2 %v408_v55  ;;  %v521_v52 = vpop.permute.xlu2 %520 }
  0x90   : > { %481 = vmatpush.msra.mxu1 %v409_v56  ;;  %714 = vmatpush.msra.mxu3 %v409_v56  ;;  %v368_v60 = vpop.permute.xlu0 %367  ;;  %v294_v61 = vpop.permute.xlu1 %293 }
  0x91   : > { %v390_v63 = vadd.f32 %v368_v60, %v326_v58  ;;  %v391_v0 = vadd.f32 %v368_v60, %v327_v59  ;;  %v322_v9 = vmul.f32 %v294_v61, %v258_v5  ;;  %v323_v10 = vmul.f32 %v294_v61, %v259_v6 }
  0x93   : > { %v406_v2 = vmax.f32 %v390_v63, 0.0  ;;  %v407_v3 = vmax.f32 %v391_v0, 0.0 }
  0x95   : > { %447 = vmatpush.msra.mxu0 %v406_v2  ;;  %707 = vmatpush.msra.mxu2 %v406_v2 }
  0x96   : > { %482 = vmatpush.msra.mxu1 %v407_v3  ;;  %715 = vmatpush.msra.mxu3 %v407_v3 }
  0x97   : > { %448 = vmatpush.msra.mxu0 %v404_v7  ;;  %708 = vmatpush.msra.mxu2 %v404_v7  ;;  %v536_v55 = vpop.permute.xlu2 %535 }
  0x98   : > { %483 = vmatpush.msra.mxu1 %v405_v8  ;;  %716 = vmatpush.msra.mxu3 %v405_v8  ;;  %v358_v11 = vpop.permute.xlu1 %357  ;;  %v289_v12 = vpop.permute.xlu0 %288 }
  0x99   : > { %v386_v13 = vadd.f32 %v358_v11, %v322_v9  ;;  %v387_v14 = vadd.f32 %v358_v11, %v323_v10  ;;  %v320_v24 = vmul.f32 %v289_v12, %v256_v19  ;;  %v321_v25 = vmul.f32 %v289_v12, %v257_v20 }
  0x9b   : > { %v402_v17 = vmax.f32 %v386_v13, 0.0  ;;  %v403_v18 = vmax.f32 %v387_v14, 0.0 }
  0x9d   : > { %449 = vmatpush.msra.mxu0 %v402_v17  ;;  %709 = vmatpush.msra.mxu2 %v402_v17 }
  0x9e   : > { %484 = vmatpush.msra.mxu1 %v403_v18  ;;  %717 = vmatpush.msra.mxu3 %v403_v18 }
  0x9f   : > { %v569_v1 = vpop.permute.xlu2 %568 }
  0xa0   : > { %v353_v26 = vpop.permute.xlu0 %352  ;;  %v279_v33 = vpop.permute.xlu1 %278 }
  0xa1   : > { %v384_v28 = vadd.f32 %v353_v26, %v320_v24  ;;  %v385_v29 = vadd.f32 %v353_v26, %v321_v25  ;;  %v316_v38 = vmul.f32 %v279_v33, %v252_v34  ;;  %v317_v39 = vmul.f32 %v279_v33, %v253_v35 }
  0xa3   : > { %v400_v31 = vmax.f32 %v384_v28, 0.0  ;;  %v401_v32 = vmax.f32 %v385_v29, 0.0 }
  0xa5   : > { %450 = vmatpush.msra.mxu0 %v400_v31  ;;  %710 = vmatpush.msra.mxu2 %v400_v31 }
  0xa6   : > { %485 = vmatpush.msra.mxu1 %v401_v32  ;;  %718 = vmatpush.msra.mxu3 %v401_v32 }
  0xa7   : > { %451 = vmatpush.msra.mxu0 %v398_v36  ;;  %711 = vmatpush.msra.mxu2 %v398_v36  ;;  %v584_v24 = vpop.permute.xlu2 %583 }
  0xa8   : > { %486 = vmatpush.msra.mxu1 %v399_v37  ;;  %719 = vmatpush.msra.mxu3 %v399_v37  ;;  %v343_v40 = vpop.permute.xlu0 %342  ;;  %v516_v51 = vpop.permute.xlu1 %515 }
  0xa9   : > { %v380_v41 = vadd.f32 %v343_v40, %v316_v38  ;;  %v381_v42 = vadd.f32 %v343_v40, %v317_v39 }
  0xab   : > { %v396_v43 = vmax.f32 %v380_v41, 0.0  ;;  %v397_v44 = vmax.f32 %v381_v42, 0.0 }
  0xad   : > { %452 = vmatpush.msra.mxu0 %v396_v43  ;;  %712 = vmatpush.msra.mxu2 %v396_v43 }
  0xae   : > { %487 = vmatpush.msra.mxu1 %v397_v44  ;;  %720 = vmatpush.msra.mxu3 %v397_v44 }
  0xaf   : > { %690 = vmatmul.msk.f32.vlgmr.msra.gmra.mxu0 %vm418_vm0, %v412_v45  ;;  %693 = vmatmul.msk.f32.vlgmr.msra.gmra.mxu2 %vm418_vm0, %v415_v46 }
  0xb0   : > { %696 = vmatmul.msk.f32.vlgmr.msra.gmra.mxu1 %vm418_vm0, %v412_v45  ;;  %699 = vmatmul.msk.f32.vlgmr.msra.gmra.mxu3 %vm418_vm0, %v415_v46  ;;  %v531_v53 = vpop.permute.xlu1 %530  ;;  %v526_v54 = vpop.permute.xlu0 %525 }
  0xb7   : > { %691 = vmatmul.msk.f32.gmra.mxu0 %vm418_vm0, %v413_v47  ;;  %694 = vmatmul.msk.f32.gmra.mxu2 %vm418_vm0, %v416_v48 }
  0xb8   : > { %697 = vmatmul.msk.f32.gmra.mxu1 %vm418_vm0, %v413_v47  ;;  %700 = vmatmul.msk.f32.gmra.mxu3 %vm418_vm0, %v416_v48  ;;  %v564_v56 = vpop.permute.xlu1 %563  ;;  %v541_v62 = vpop.permute.xlu0 %540 }
  0xbf   : > { %692 = vmatmul.msk.f32.gmra.mxu0 %vm418_vm0, %v414_v49  ;;  %695 = vmatmul.msk.f32.gmra.mxu2 %vm418_vm0, %v417_v50 }
  0xc0   : > { %698 = vmatmul.msk.f32.gmra.mxu1 %vm418_vm0, %v414_v49  ;;  %701 = vmatmul.msk.f32.gmra.mxu3 %vm418_vm0, %v417_v50  ;;  %v579_v6 = vpop.permute.xlu1 %578  ;;  %v574_v19 = vpop.permute.xlu0 %573 }
  0xc8   : > { %v589_v41 = vpop.permute.xlu0 %588 }
 0x12c   : > { %v454_v57 = vpop.f32.mrf.mxu0 }
 0x12d   : > { %v543_v58 = vmul.f32 %v516_v51, %v454_v57  ;;  %v489_v59 = vpop.f32.mrf.mxu1 }
 0x12e   : > { %v544_v60 = vmul.f32 %v516_v51, %v489_v59 }
 0x12f   : > { %v591_v61 = vadd.f32 %v564_v56, %v543_v58 }
 0x130   : > { %v592_v63 = vadd.f32 %v564_v56, %v544_v60 }
 0x131   : > { %v603_v0 = vmax.f32 %v591_v61, 0.0 }
 0x132   : > { %v604_v2 = vmax.f32 %v592_v63, 0.0  ;;  %v463_v3 = vpop.f32.mrf.mxu2 }
 0x133   : > { %615 = vst [vmem:[%s932_s8] sm:$0xff] %v603_v0  ;;  %v549_v4 = vmul.f32 %v531_v53, %v463_v3  ;;  %v498_v5 = vpop.f32.mrf.mxu3 }
 0x134   : > { %616 = vst [vmem:[%s932_s8 + $0x8] sm:$0xff] %v604_v2  ;;  %v550_v7 = vmul.f32 %v531_v53, %v498_v5  ;;  %v457_v8 = vpop.f32.mrf.mxu0 }
 0x135   : > { %v597_v9 = vadd.f32 %v579_v6, %v549_v4  ;;  %v545_v10 = vmul.f32 %v521_v52, %v457_v8  ;;  %v492_v11 = vpop.f32.mrf.mxu1 }
 0x136   : > { %v598_v12 = vadd.f32 %v579_v6, %v550_v7  ;;  %v546_v13 = vmul.f32 %v521_v52, %v492_v11 }
 0x137   : > { %v609_v14 = vmax.f32 %v597_v9, 0.0  ;;  %v593_v15 = vadd.f32 %v569_v1, %v545_v10 }
 0x138   : > { %v610_v16 = vmax.f32 %v598_v12, 0.0  ;;  %v594_v17 = vadd.f32 %v569_v1, %v546_v13 }
 0x139   : > { %621 = vst [vmem:[%s932_s8 + $0x30] sm:$0xff] %v609_v14  ;;  %v605_v18 = vmax.f32 %v593_v15, 0.0 }
 0x13a   : > { %622 = vst [vmem:[%s932_s8 + $0x38] sm:$0xff] %v610_v16  ;;  %v606_v20 = vmax.f32 %v594_v17, 0.0  ;;  %v466_v21 = vpop.f32.mrf.mxu2 }
 0x13b   : > { %617 = vst [vmem:[%s932_s8 + $0x10] sm:$0xff] %v605_v18  ;;  %v551_v22 = vmul.f32 %v536_v55, %v466_v21  ;;  %v501_v23 = vpop.f32.mrf.mxu3 }
 0x13c   : > { %618 = vst [vmem:[%s932_s8 + $0x18] sm:$0xff] %v606_v20  ;;  %v552_v25 = vmul.f32 %v536_v55, %v501_v23  ;;  %v460_v26 = vpop.f32.mrf.mxu0 }
 0x13d   : > { %v599_v27 = vadd.f32 %v584_v24, %v551_v22  ;;  %v547_v28 = vmul.f32 %v526_v54, %v460_v26  ;;  %v495_v29 = vpop.f32.mrf.mxu1 }
 0x13e   : > { %v600_v30 = vadd.f32 %v584_v24, %v552_v25  ;;  %v548_v31 = vmul.f32 %v526_v54, %v495_v29 }
 0x13f   : > { %v611_v32 = vmax.f32 %v599_v27, 0.0  ;;  %v595_v33 = vadd.f32 %v574_v19, %v547_v28 }
 0x140   : > { %v612_v34 = vmax.f32 %v600_v30, 0.0  ;;  %v596_v35 = vadd.f32 %v574_v19, %v548_v31 }
 0x141   : > { %623 = vst [vmem:[%s932_s8 + $0x40] sm:$0xff] %v611_v32  ;;  %v607_v36 = vmax.f32 %v595_v33, 0.0 }
 0x142   : > { %624 = vst [vmem:[%s932_s8 + $0x48] sm:$0xff] %v612_v34  ;;  %v608_v37 = vmax.f32 %v596_v35, 0.0  ;;  %v469_v38 = vpop.f32.mrf.mxu2 }
 0x143   : > { %619 = vst [vmem:[%s932_s8 + $0x20] sm:$0xff] %v607_v36  ;;  %v553_v39 = vmul.f32 %v541_v62, %v469_v38  ;;  %v504_v40 = vpop.f32.mrf.mxu3 }
 0x144   : > { %620 = vst [vmem:[%s932_s8 + $0x28] sm:$0xff] %v608_v37  ;;  %v554_v42 = vmul.f32 %v541_v62, %v504_v40 }
 0x145   : > { %v601_v43 = vadd.f32 %v589_v41, %v553_v39 }
 0x146   : > { %v602_v44 = vadd.f32 %v589_v41, %v554_v42 }
 0x147   : > { %v613_v45 = vmax.f32 %v601_v43, 0.0 }
 0x148   : > { %v614_v46 = vmax.f32 %v602_v44, 0.0 }
 0x149   : > { %625 = vst [vmem:[%s932_s8 + $0x50] sm:$0xff] %v613_v45 }
 0x14a   : > { %626 = vst [vmem:[%s932_s8 + $0x58] sm:$0xff] %v614_v46 }
 0x14b PF: > { %s16_s21 = sadd.s32 1, %s740_s21  }
 0x14c   : > { %p13_p4 = scmp.ge.s32.totalorder %s16_s21, 4  }
 0x14e   :  { %15 = sbr.rel (!%p13_p4) target bundleno = 1 (0x1), region = 74 }

// kernel: transition_forward.9
= control target key start
LH: loop header
LB: loop body
LE: loop exit
PB: predicated region body
PF: predicated region fallthrough
CT: control target
= control target key end

     0   :  { %s889_s24 = smov 0   ;;  %s1095_s0 = inlined_call_operand.vmem [shape: f32[2,432,64], index: 0, kind: input, shape index: {}]   ;;  %s1096_s1 = inlined_call_operand.vmem [shape: f32[32,432], index: 1, kind: input, shape index: {}]   ;;  %s1097_s2 = inlined_call_operand.vmem [shape: f32[2,32,64], index: 2, kind: input, shape index: {}]   ;;  %s1098_s3 = inlined_call_operand.vmem [shape: f32[8,32], index: 3, kind: input, shape index: {}]   ;;  %s1099_s4 = inlined_call_operand.vmem [shape: f32[8,1], index: 4, kind: input, shape index: {}]   ;;  %s1100_s5 = inlined_call_operand.vmem [shape: f32[32,8], index: 5, kind: input, shape index: {}]   ;;  %s1101_s6 = inlined_call_operand.vmem [shape: f32[32,1], index: 6, kind: input, shape index: {}]   ;;  %s1102_s7 = inlined_call_operand.vmem [shape: f32[2,32,64], index: 7, kind: output, shape index: {}]  }
   0x1 LB: > { %s778_s25 = sadd.s32 4294967295, %s845_s24   ;;  %p782_p0 = scmp.ge.s32.totalorder %s845_s24, 1  ;;  %s845_s24 = sphi %s889_s24, %s17_s24  }
   0x2   : > { %p247_p1 = scmp.lt.s32.totalorder %s845_s24, 3 }
   0x4   : > { %p248_p2 = pnand %p782_p0, %p247_p1 }
   0x5   : > { %p284_p3 = scmp.lt.s32.totalorder (!%p248_p2), %s778_s25, 1 }
   0x6   : > { %251 = sbr.rel (%p248_p2) target bundleno = 779 (0x30b), region = 48 }
   0xb   : > { %s1104_s25 = smov (!%p284_p3, %s778_s25), 1  ;;  %v306_v48 = vld [vmem:[%s1096_s1 + $0x38] sm:$0xff]  ;;  %vm373_vm0 = vcmask 392192   ;;  %v299_v54 = vld [vmem:[%s1096_s1] sm:$0xff]  ;;  %v301_v55 = vld [vmem:[%s1096_s1 + $0x10] sm:$0xff]  ;;  %vm502_vm1 = vcmask 523264  }
   0xc   : > { %s807_s26 = smul.u32 432, %s1104_s25  ;;  %v300_v57 = vld [vmem:[%s1096_s1 + $0x8] sm:$0xff]  ;;  %v310_v58 = vld [vmem:[%s1096_s1 + $0x58] sm:$0xff]  ;;  %v303_v59 = vld [vmem:[%s1096_s1 + $0x20] sm:$0xff]  ;;  %s799_s18 = sshll.u32 %s1104_s25, 5  ;;  %vm528_vm3 = vcmask 261120  }
   0xd   : > { %v305_v60 = vld [vmem:[%s1096_s1 + $0x30] sm:$0xff]  ;;  %v304_v61 = vld [vmem:[%s1096_s1 + $0x28] sm:$0xff]  ;;  %v314_v62 = vld [vmem:[%s1096_s1 + $0x78] sm:$0xff]  ;;  %s293_s21 = scalar_lea.vmem %s1097_s2, %s799_s18  ;;  %vm561_vm4 = vcmask 64512  }
   0xe   : > { %s903_s29 = scalar_lea.vmem %s1095_s0, %s807_s26  ;;  %v307_v63 = vld [vmem:[%s1096_s1 + $0x40] sm:$0xff]  ;;  %s298_s26 = scalar_lea.vmem %s1102_s7, %s799_s18 }
   0xf   : > { %v330_v0 = vld [vmem:[%s903_s29 + $0x78] sm:$0xff]  ;;  %v329_v2 = vld [vmem:[%s903_s29 + $0x70] sm:$0xff]  ;;  %v328_v5 = vld [vmem:[%s903_s29 + $0x68] sm:$0xff] }
  0x10   : > { %v362_v1 = vld [vmem:[%s903_s29 + $0x178] sm:$0xff]  ;;  %386 = vmatpush.msra.mxu0 %v330_v0  ;;  %v361_v3 = vld [vmem:[%s903_s29 + $0x170] sm:$0xff]  ;;  %v360_v6 = vld [vmem:[%s903_s29 + $0x168] sm:$0xff] }
  0x11   : > { %444 = vmatpush.msra.mxu2 %v362_v1  ;;  %v346_v4 = vld [vmem:[%s903_s29 + $0xf8] sm:$0xff]  ;;  %v345_v7 = vld [vmem:[%s903_s29 + $0xf0] sm:$0xff]  ;;  %v344_v8 = vld [vmem:[%s903_s29 + $0xe8] sm:$0xff] }
  0x12   : > { %415 = vmatpush.msra.mxu1 %v346_v4  ;;  %387 = vmatpush.msra.mxu0 %v329_v2  ;;  %v327_v9 = vld [vmem:[%s903_s29 + $0x60] sm:$0xff]  ;;  %v326_v12 = vld [vmem:[%s903_s29 + $0x58] sm:$0xff]  ;;  %v325_v15 = vld [vmem:[%s903_s29 + $0x50] sm:$0xff] }
  0x13   : > { %445 = vmatpush.msra.mxu2 %v361_v3  ;;  %v359_v10 = vld [vmem:[%s903_s29 + $0x160] sm:$0xff]  ;;  %v358_v13 = vld [vmem:[%s903_s29 + $0x158] sm:$0xff]  ;;  %v357_v16 = vld [vmem:[%s903_s29 + $0x150] sm:$0xff] }
  0x14   : > { %416 = vmatpush.msra.mxu1 %v345_v7  ;;  %388 = vmatpush.msra.mxu0 %v328_v5  ;;  %v343_v11 = vld [vmem:[%s903_s29 + $0xe0] sm:$0xff]  ;;  %v342_v14 = vld [vmem:[%s903_s29 + $0xd8] sm:$0xff]  ;;  %v341_v17 = vld [vmem:[%s903_s29 + $0xd0] sm:$0xff] }
  0x15   : > { %446 = vmatpush.msra.mxu2 %v360_v6  ;;  %v324_v18 = vld [vmem:[%s903_s29 + $0x48] sm:$0xff]  ;;  %v323_v21 = vld [vmem:[%s903_s29 + $0x40] sm:$0xff]  ;;  %v322_v24 = vld [vmem:[%s903_s29 + $0x38] sm:$0xff] }
  0x16   : > { %417 = vmatpush.msra.mxu1 %v344_v8  ;;  %389 = vmatpush.msra.mxu0 %v327_v9  ;;  %v356_v19 = vld [vmem:[%s903_s29 + $0x148] sm:$0xff]  ;;  %v355_v22 = vld [vmem:[%s903_s29 + $0x140] sm:$0xff]  ;;  %v354_v25 = vld [vmem:[%s903_s29 + $0x138] sm:$0xff] }
  0x17   : > { %447 = vmatpush.msra.mxu2 %v359_v10  ;;  %v340_v20 = vld [vmem:[%s903_s29 + $0xc8] sm:$0xff]  ;;  %v339_v23 = vld [vmem:[%s903_s29 + $0xc0] sm:$0xff]  ;;  %v338_v26 = vld [vmem:[%s903_s29 + $0xb8] sm:$0xff] }
  0x18   : > { %418 = vmatpush.msra.mxu1 %v343_v11  ;;  %390 = vmatpush.msra.mxu0 %v326_v12  ;;  %v933_v27 = vld [vmem:[%s903_s29 + $0x1a8] sm:$0xff]  ;;  %v321_v28 = vld [vmem:[%s903_s29 + $0x30] sm:$0xff]  ;;  %v939_v30 = vld [vmem:[%s903_s29 + $0x1a0] sm:$0xff] }
  0x19   : > { %448 = vmatpush.msra.mxu2 %v358_v13  ;;  %v353_v29 = vld [vmem:[%s903_s29 + $0x130] sm:$0xff]  ;;  %801 = vmatpush.msra.mxu3 %v933_v27  ;;  %v943_v32 = vld [vmem:[%s903_s29 + $0x198] sm:$0xff]  ;;  %v320_v33 = vld [vmem:[%s903_s29 + $0x28] sm:$0xff] }
  0x1a   : > { %419 = vmatpush.msra.mxu1 %v342_v14  ;;  %391 = vmatpush.msra.mxu0 %v325_v15  ;;  %v337_v31 = vld [vmem:[%s903_s29 + $0xb0] sm:$0xff]  ;;  %v352_v34 = vld [vmem:[%s903_s29 + $0x128] sm:$0xff]  ;;  %v319_v37 = vld [vmem:[%s903_s29 + $0x20] sm:$0xff] }
  0x1b   : > { %449 = vmatpush.msra.mxu2 %v357_v16  ;;  %802 = vmatpush.msra.mxu3 %v939_v30  ;;  %v336_v35 = vld [vmem:[%s903_s29 + $0xa8] sm:$0xff]  ;;  %v365_v36 = vld [vmem:[%s903_s29 + $0x190] sm:$0xff]  ;;  %v351_v38 = vld [vmem:[%s903_s29 + $0x120] sm:$0xff] }
  0x1c   : > { %420 = vmatpush.msra.mxu1 %v341_v17  ;;  %392 = vmatpush.msra.mxu0 %v324_v18  ;;  %v335_v39 = vld [vmem:[%s903_s29 + $0xa0] sm:$0xff]  ;;  %v364_v40 = vld [vmem:[%s903_s29 + $0x188] sm:$0xff]  ;;  %v318_v41 = vld [vmem:[%s903_s29 + $0x18] sm:$0xff] }
  0x1d   : > { %450 = vmatpush.msra.mxu2 %v356_v19  ;;  %803 = vmatpush.msra.mxu3 %v943_v32  ;;  %v350_v42 = vld [vmem:[%s903_s29 + $0x118] sm:$0xff]  ;;  %v363_v44 = vld [vmem:[%s903_s29 + $0x180] sm:$0xff]  ;;  %v317_v45 = vld [vmem:[%s903_s29 + $0x10] sm:$0xff] }
  0x1e   : > { %421 = vmatpush.msra.mxu1 %v340_v20  ;;  %393 = vmatpush.msra.mxu0 %v323_v21  ;;  %v334_v43 = vld [vmem:[%s903_s29 + $0x98] sm:$0xff]  ;;  %v349_v46 = vld [vmem:[%s903_s29 + $0x110] sm:$0xff]  ;;  %v316_v49 = vld [vmem:[%s903_s29 + $0x8] sm:$0xff] }
  0x1f   : > { %451 = vmatpush.msra.mxu2 %v355_v22  ;;  %804 = vmatpush.msra.mxu3 %v365_v36  ;;  %v333_v47 = vld [vmem:[%s903_s29 + $0x90] sm:$0xff]  ;;  %v348_v50 = vld [vmem:[%s903_s29 + $0x108] sm:$0xff]  ;;  %v315_v52 = vld [vmem:[%s903_s29] sm:$0xff] }
  0x20   : > { %422 = vmatpush.msra.mxu1 %v339_v23  ;;  %394 = vmatpush.msra.mxu0 %v322_v24  ;;  %v332_v51 = vld [vmem:[%s903_s29 + $0x88] sm:$0xff]  ;;  %v347_v53 = vld [vmem:[%s903_s29 + $0x100] sm:$0xff]  ;;  %v309_v0 = vld [vmem:[%s1096_s1 + $0x50] sm:$0xff] }
  0x21   : > { %452 = vmatpush.msra.mxu2 %v354_v25  ;;  %805 = vmatpush.msra.mxu3 %v364_v40  ;;  %v331_v56 = vld [vmem:[%s903_s29 + $0x80] sm:$0xff]  ;;  %v308_v1 = vld [vmem:[%s1096_s1 + $0x48] sm:$0xff]  ;;  %v313_v3 = vld [vmem:[%s1096_s1 + $0x70] sm:$0xff] }
  0x22   : > { %423 = vmatpush.msra.mxu1 %v338_v26  ;;  %395 = vmatpush.msra.mxu0 %v321_v28  ;;  %v311_v2 = vld [vmem:[%s1096_s1 + $0x60] sm:$0xff]  ;;  %v312_v4 = vld [vmem:[%s1096_s1 + $0x68] sm:$0xff]  ;;  %v302_v5 = vld [vmem:[%s1096_s1 + $0x18] sm:$0xff] }
  0x23   : > { %453 = vmatpush.msra.mxu2 %v353_v29  ;;  %806 = vmatpush.msra.mxu3 %v363_v44  ;;  %v370_v9 = vld [vmem:[%s293_s21 + $0x8] sm:$0xff]  ;;  %v369_v21 = vld [vmem:[%s293_s21] sm:$0xff]  ;;  %v372_v24 = vld [vmem:[%s293_s21 + $0x18] sm:$0xff] }
  0x24   : > { %424 = vmatpush.msra.mxu1 %v337_v31  ;;  %396 = vmatpush.msra.mxu0 %v320_v33  ;;  %v371_v26 = vld [vmem:[%s293_s21 + $0x10] sm:$0xff] }
  0x25   : > { %454 = vmatpush.msra.mxu2 %v352_v34  ;;  %789 = vmatmul.msk.f32.vlgmr.msra.gmra.mxu3 %vm373_vm0, %v306_v48 }
  0x26   : > { %425 = vmatpush.msra.mxu1 %v336_v35  ;;  %397 = vmatpush.msra.mxu0 %v319_v37 }
  0x27   : > { %455 = vmatpush.msra.mxu2 %v351_v38 }
  0x28   : > { %426 = vmatpush.msra.mxu1 %v335_v39  ;;  %398 = vmatpush.msra.mxu0 %v318_v41 }
  0x29   : > { %456 = vmatpush.msra.mxu2 %v350_v42 }
  0x2a   : > { %427 = vmatpush.msra.mxu1 %v334_v43  ;;  %399 = vmatpush.msra.mxu0 %v317_v45 }
  0x2b   : > { %457 = vmatpush.msra.mxu2 %v349_v46  ;;  %v847_v46 = vmov 64.0  }
  0x2c   : > { %428 = vmatpush.msra.mxu1 %v333_v47  ;;  %400 = vmatpush.msra.mxu0 %v316_v49  ;;  %821 = vrcp.f32 %v847_v46 }
  0x2d   : > { %458 = vmatpush.msra.mxu2 %v348_v50  ;;  %790 = vmatmul.msk.f32.gmra.mxu3 %vm373_vm0, %v310_v58 }
  0x2e   : > { %429 = vmatpush.msra.mxu1 %v332_v51  ;;  %401 = vmatpush.msra.mxu0 %v315_v52 }
  0x2f   : > { %459 = vmatpush.msra.mxu2 %v347_v53  ;;  %402 = vmatmul.f32.vlgmr.msra.gmra.mxu0 %v299_v54 }
  0x30   : > { %460 = vmatmul.f32.vlgmr.msra.gmra.mxu2 %v301_v55  ;;  %430 = vmatpush.msra.mxu1 %v331_v56 }
  0x31   : > { %483 = vmatpush.msrb.mxu0 %v933_v27  ;;  %431 = vmatmul.f32.vlgmr.msra.gmra.mxu1 %v300_v57 }
  0x32   : > { %v822_v47 = vpop.eup %821 }
  0x33   : > { %484 = vmatpush.msrb.mxu0 %v939_v30  ;;  %v516_v48 = vmul.f32 64.0, %v822_v47  ;;  %vm520_vm2 = vweird.f32 %v822_v47 }
  0x35   : > { %485 = vmatpush.msrb.mxu0 %v943_v32  ;;  %791 = vmatmul.msk.f32.gmra.mxu3 %vm373_vm0, %v314_v62  ;;  %v517_v49 = vsub.f32 1.0, %v516_v48  ;;  %v527_v62 = vld [vmem:[%s1099_s4] sm:$0xff] }
  0x37   : > { %486 = vmatpush.msrb.mxu0 %v365_v36  ;;  %v518_v50 = vmul.f32 %v822_v47, %v517_v49 }
  0x38   : > { %405 = vmatmul.f32.gmra.mxu0 %v303_v59  ;;  %463 = vmatmul.f32.gmra.mxu2 %v305_v60 }
  0x39   : > { %487 = vmatpush.msrb.mxu0 %v364_v40  ;;  %434 = vmatmul.f32.gmra.mxu1 %v304_v61  ;;  %v519_v51 = vadd.f32 %v822_v47, %v518_v50  ;;  %v526_v61 = vld [vmem:[%s1098_s3] sm:$0xff] }
  0x3b   : > { %488 = vmatpush.msrb.mxu0 %v363_v44  ;;  %v521_v52 = vsel %vm520_vm2, %v822_v47, %v519_v51 }
  0x40   : > { %408 = vmatmul.f32.gmra.mxu0 %v307_v63  ;;  %466 = vmatmul.f32.gmra.mxu2 %v309_v0 }
  0x41   : > { %437 = vmatmul.f32.gmra.mxu1 %v308_v1 }
  0x48   : > { %411 = vmatmul.f32.gmra.mxu0 %v311_v2  ;;  %469 = vmatmul.f32.gmra.mxu2 %v313_v3  ;;  %v553_v2 = vld [vmem:[%s1100_s5] sm:$0xff]  ;;  %v554_v3 = vld [vmem:[%s1100_s5 + $0x8] sm:$0xff] }
  0x49   : > { %440 = vmatmul.f32.gmra.mxu1 %v312_v4  ;;  %v555_v4 = vld [vmem:[%s1100_s5 + $0x10] sm:$0xff] }
  0x50   : > { %788 = vmatmul.msk.f32.vlgmr.msrb.gmra.mxu0 %vm373_vm0, %v302_v5  ;;  %v556_v5 = vld [vmem:[%s1100_s5 + $0x18] sm:$0xff] }
  0xa8   : > { %v493_v13 = vpop.f32.mrf.mxu3 }
  0xac   : > { %v403_v6 = vpop.f32.mrf.mxu0 }
  0xad   : > { %v404_v25 = vadd.f32 %v403_v6, %v369_v21  ;;  %v557_v6 = vld [vmem:[%s1101_s6] sm:$0xff] }
  0xae   : > { %v432_v7 = vpop.f32.mrf.mxu1 }
  0xaf   : > { %v433_v30 = vadd.f32 %v432_v7, %v404_v25 }
  0xb0   : > { %v496_v22 = vpop.f32.mrf.mxu3 }
  0xb3   : > { %v461_v8 = vpop.f32.mrf.mxu2 }
  0xb4   : > { %v462_v35 = vadd.f32 %v461_v8, %v433_v30  ;;  %v848_v8 = vmov 0  }
  0xb5   : > { %v406_v10 = vpop.f32.mrf.mxu0  ;;  %818 = vset.pattern.permute.xlu2 %v848_v8  ;;  %819 = vset.pattern.permute.xlu0 %v848_v8 }
  0xb6   : > { %v407_v11 = vadd.f32 %v406_v10, %v370_v9  ;;  %v435_v12 = vpop.f32.mrf.mxu1  ;;  %820 = vset.pattern.permute.xlu1 %v848_v8 }
  0xb8   : > { %v436_v14 = vadd.f32 %v435_v12, %v407_v11  ;;  %v499_v34 = vpop.f32.mrf.mxu3  ;;  %v558_v12 = vld [vmem:[%s1101_s6 + $0x8] sm:$0xff] }
  0xbb   : > { %v464_v15 = vpop.f32.mrf.mxu2 }
  0xbc   : > { %v465_v16 = vadd.f32 %v464_v15, %v436_v14 }
  0xbd   : > { %v409_v17 = vpop.f32.mrf.mxu0 }
  0xbe   : > { %v1029_v18 = vadd.f32 %v493_v13, %v465_v16  ;;  %v438_v19 = vpop.f32.mrf.mxu1  ;;  %v410_v31 = vadd.f32 %v409_v17, %v371_v26 }
  0xc0   : > { %v506_v20 = vsel %vm502_vm1, %v1029_v18, 0.0  ;;  %v439_v36 = vadd.f32 %v438_v19, %v410_v31 }
  0xc1   : > { %507 = vadd.xlane.f32.xlu1 %v506_v20  ;;  %v559_v20 = vld [vmem:[%s1101_s6 + $0x10] sm:$0xff] }
  0xc3   : > { %v467_v23 = vpop.f32.mrf.mxu2 }
  0xc4   : > { %v468_v41 = vadd.f32 %v467_v23, %v439_v36 }
  0xc5   : > { %v412_v27 = vpop.f32.mrf.mxu0 }
  0xc6   : > { %v413_v28 = vadd.f32 %v412_v27, %v372_v24  ;;  %v441_v29 = vpop.f32.mrf.mxu1  ;;  %v1041_v44 = vadd.f32 %v496_v22, %v468_v41 }
  0xc8   : > { %v442_v32 = vadd.f32 %v441_v29, %v413_v28  ;;  %v509_v45 = vsel %vm502_vm1, %v1041_v44, 0.0  ;;  %v560_v28 = vld [vmem:[%s1101_s6 + $0x18] sm:$0xff] }
  0xcb   : > { %v470_v33 = vpop.f32.mrf.mxu2 }
  0xcc   : > { %v471_v37 = vadd.f32 %v470_v33, %v442_v32 }
  0xcd   : > { %v490_v38 = vpop.f32.mrf.mxu0 }
  0xce   : > { %v1033_v39 = vadd.f32 %v490_v38, %v462_v35  ;;  %v1035_v40 = vadd.f32 %v499_v34, %v471_v37 }
  0xd0   : > { %v512_v42 = vsel %vm502_vm1, %v1035_v40, 0.0  ;;  %v503_v43 = vsel %vm502_vm1, %v1033_v39, 0.0 }
  0xd1   : > { %513 = vadd.xlane.f32.xlu0 %v512_v42  ;;  %504 = vadd.xlane.f32.xlu1 %v503_v43 }
  0xd9   : > { %510 = vadd.xlane.f32.xlu0 %v509_v45 }
 0x134   : > { %v508_v55 = vpop.xlane.xlu1 %507 }
 0x135   : > { %v523_v59 = vmul.f32 %v521_v52, %v508_v55 }
 0x144   : > { %v514_v53 = vpop.xlane.xlu0 %513  ;;  %v505_v58 = vpop.xlane.xlu1 %504 }
 0x145   : > { %v525_v54 = vmul.f32 %v521_v52, %v514_v53  ;;  %v522_v60 = vmul.f32 %v521_v52, %v505_v58 }
 0x147   : > { %544 = vmatpush.msrb.mxu1 %v525_v54 }
 0x14c   : > { %v511_v56 = vpop.xlane.xlu0 %510 }
 0x14d   : > { %v524_v57 = vmul.f32 %v521_v52, %v511_v56 }
 0x14f   : > { %545 = vmatpush.msrb.mxu1 %v524_v57 }
 0x151   : > { %546 = vmatpush.msrb.mxu1 %v523_v59 }
 0x153   : > { %547 = vmatpush.msrb.mxu1 %v522_v60 }
 0x154   : > { %792 = vmatmul.msk.f32.vlgmr.msrb.gmra.mxu1 %vm528_vm3, %v526_v61 }
 0x1d1   : > { %v549_v63 = vpop.f32.mrf.mxu1 }
 0x1d2   : > { %v550_v0 = vadd.f32 %v549_v63, %v527_v62 }
 0x1d4   : > { %v552_v1 = vmax.f32 %v550_v0, 0.0 }
 0x1d6   : > { %589 = vmatpush.msrb.mxu3 %v552_v1 }
 0x1d7   : > { %793 = vmatmul.msk.f32.vlgmr.msrb.gmra.mxu3 %vm561_vm4, %v553_v2 }
 0x1df   : > { %794 = vmatmul.msk.f32.gmra.mxu3 %vm561_vm4, %v554_v3 }
 0x1e7   : > { %795 = vmatmul.msk.f32.gmra.mxu3 %vm561_vm4, %v555_v4 }
 0x1ef   : > { %796 = vmatmul.msk.f32.gmra.mxu3 %vm561_vm4, %v556_v5 }
 0x25a   : > { %v591_v7 = vpop.f32.mrf.mxu3 }
 0x25b   : > { %v592_v9 = vadd.f32 %v591_v7, %v557_v6 }
 0x25d   : > { %v603_v10 = vsub.f32 0.0, %v592_v9 }
 0x25f   : > { %v607_v11 = vmul.f32 1.442695, %v603_v10 }
 0x261   : > { %823 = vpow2.f32 %v607_v11 }
 0x262   : > { %v594_v13 = vpop.f32.mrf.mxu3 }
 0x263   : > { %v595_v14 = vadd.f32 %v594_v13, %v558_v12 }
 0x265   : > { %v604_v15 = vsub.f32 0.0, %v595_v14 }
 0x267   : > { %v824_v16 = vpop.eup %823  ;;  %v609_v17 = vmul.f32 1.442695, %v604_v15 }
 0x268   : > { %v615_v19 = vadd.f32 1.0, %v824_v16 }
 0x269   : > { %825 = vpow2.f32 %v609_v17 }
 0x26a   : > { %827 = vrcp.f32 %v615_v19  ;;  %v597_v21 = vpop.f32.mrf.mxu3  ;;  %v630_v33 = vand.u32 2147483648, %v615_v19  ;;  %v628_v36 = vand.u32 2147483647, %v615_v19  ;;  %vm624_vm6 = vweird.f32 %v615_v19 }
 0x26b   : > { %v598_v22 = vadd.f32 %v597_v21, %v559_v20 }
 0x26c   : > { %v631_v45 = vor.u32 1.1754944e-38, %v630_v33  ;;  %vm629_vm8 = vcmp.eq.f32.partialorder %v628_v36, 8.507059e+37 }
 0x26d   : > { %v605_v23 = vsub.f32 0.0, %v598_v22 }
 0x26f   : > { %v826_v24 = vpop.eup %825  ;;  %v611_v25 = vmul.f32 1.442695, %v605_v23 }
 0x270   : > { %v828_v26 = vpop.eup %827  ;;  %v616_v27 = vadd.f32 1.0, %v826_v24 }
 0x271   : > { %829 = vpow2.f32 %v611_v25  ;;  %v620_v29 = vmul.f32 %v828_v26, %v615_v19  ;;  %vm625_vm5 = vweird.f32 %v828_v26 }
 0x272   : > { %831 = vrcp.f32 %v616_v27  ;;  %v600_v30 = vpop.f32.mrf.mxu3  ;;  %vm626_vm7 = vmor %vm624_vm6, %vm625_vm5  ;;  %v645_v50 = vand.u32 2147483648, %v616_v27  ;;  %v643_v52 = vand.u32 2147483647, %v616_v27  ;;  %vm639_vm10 = vweird.f32 %v616_v27 }
 0x273   : > { %v601_v31 = vadd.f32 %v600_v30, %v560_v28  ;;  %v621_v32 = vsub.f32 1.0, %v620_v29 }
 0x274   : > { %v646_v57 = vor.u32 1.1754944e-38, %v645_v50  ;;  %vm644_vm12 = vcmp.eq.f32.partialorder %v643_v52, 8.507059e+37 }
 0x275   : > { %v606_v34 = vsub.f32 0.0, %v601_v31  ;;  %v622_v35 = vmul.f32 %v828_v26, %v621_v32 }
 0x277   : > { %v830_v37 = vpop.eup %829  ;;  %v613_v38 = vmul.f32 1.442695, %v606_v34  ;;  %v623_v41 = vadd.f32 %v828_v26, %v622_v35 }
 0x278   : > { %v832_v42 = vpop.eup %831  ;;  %v617_v43 = vadd.f32 1.0, %v830_v37 }
 0x279   : > { %833 = vpow2.f32 %v613_v38  ;;  %v627_v46 = vsel %vm626_vm7, %v828_v26, %v623_v41  ;;  %v635_v47 = vmul.f32 %v832_v42, %v616_v27  ;;  %vm640_vm9 = vweird.f32 %v832_v42 }
 0x27a   : > { %835 = vrcp.f32 %v617_v43  ;;  %v632_v48 = vsel %vm629_vm8, %v631_v45, %v627_v46  ;;  %vm641_vm11 = vmor %vm639_vm10, %vm640_vm9  ;;  %v660_v62 = vand.u32 2147483648, %v617_v43  ;;  %v658_v0 = vand.u32 2147483647, %v617_v43 }
 0x27b   : > { %681 = vperm.xlu2 %818, %v632_v48   ;;  %v636_v49 = vsub.f32 1.0, %v635_v47  ;;  %vm654_vm14 = vweird.f32 %v617_v43 }
 0x27c   : > { %v661_v3 = vor.u32 1.1754944e-38, %v660_v62  ;;  %vm659_vm0 = vcmp.eq.f32.partialorder %v658_v0, 8.507059e+37 }
 0x27d   : > { %v637_v51 = vmul.f32 %v832_v42, %v636_v49 }
 0x27f   : > { %v834_v53 = vpop.eup %833  ;;  %v638_v54 = vadd.f32 %v832_v42, %v637_v51 }
 0x280   : > { %v836_v55 = vpop.eup %835  ;;  %v618_v56 = vadd.f32 1.0, %v834_v53 }
 0x281   : > { %v642_v58 = vsel %vm641_vm11, %v832_v42, %v638_v54  ;;  %v650_v59 = vmul.f32 %v836_v55, %v617_v43  ;;  %vm655_vm13 = vweird.f32 %v836_v55 }
 0x282   : > { %837 = vrcp.f32 %v618_v56  ;;  %v647_v60 = vsel %vm644_vm12, %v646_v57, %v642_v58  ;;  %vm656_vm15 = vmor %vm654_vm14, %vm655_vm13  ;;  %v675_v8 = vand.u32 2147483648, %v618_v56  ;;  %v673_v10 = vand.u32 2147483647, %v618_v56 }
 0x283   : > { %686 = vperm.xlu2 %818, %v647_v60   ;;  %v651_v61 = vsub.f32 1.0, %v650_v59  ;;  %vm669_vm3 = vweird.f32 %v618_v56 }
 0x284   : > { %v676_v12 = vor.u32 1.1754944e-38, %v675_v8  ;;  %vm674_vm5 = vcmp.eq.f32.partialorder %v673_v10, 8.507059e+37 }
 0x285   : > { %v652_v63 = vmul.f32 %v836_v55, %v651_v61 }
 0x287   : > { %v653_v1 = vadd.f32 %v836_v55, %v652_v63 }
 0x288   : > { %v838_v2 = vpop.eup %837 }
 0x289   : > { %v657_v4 = vsel %vm656_vm15, %v836_v55, %v653_v1  ;;  %v665_v5 = vmul.f32 %v838_v2, %v618_v56  ;;  %vm670_vm2 = vweird.f32 %v838_v2 }
 0x28a   : > { %v662_v6 = vsel %vm659_vm0, %v661_v3, %v657_v4  ;;  %vm671_vm4 = vmor %vm669_vm3, %vm670_vm2 }
 0x28b   : > { %691 = vperm.xlu0 %819, %v662_v6   ;;  %v666_v7 = vsub.f32 1.0, %v665_v5 }
 0x28d   : > { %v667_v9 = vmul.f32 %v838_v2, %v666_v7 }
 0x28f   : > { %v668_v11 = vadd.f32 %v838_v2, %v667_v9 }
 0x291   : > { %v672_v13 = vsel %vm671_vm4, %v838_v2, %v668_v11 }
 0x292   : > { %v677_v14 = vsel %vm674_vm5, %v676_v12, %v672_v13 }
 0x293   : > { %696 = vperm.xlu1 %820, %v677_v14  }
 0x2d5   : > { %v682_v15 = vpop.permute.xlu2 %681 }
 0x2d6   : > { %v699_v16 = vmul.f32 %v682_v15, %v1033_v39 }
 0x2d8   : > { %v703_v17 = vadd.f32 %v699_v16, %v1033_v39 }
 0x2da   : > { %707 = vst.msk [vmem:[%s298_s26] sm:$0xff] %vm502_vm1, %v703_v17 }
 0x2dd   : > { %v687_v19 = vpop.permute.xlu2 %686 }
 0x2de   : > { %v700_v20 = vmul.f32 %v687_v19, %v1029_v18 }
 0x2e0   : > { %v704_v21 = vadd.f32 %v700_v20, %v1029_v18 }
 0x2e2   : > { %708 = vst.msk [vmem:[%s298_s26 + $0x8] sm:$0xff] %vm502_vm1, %v704_v21 }
 0x2fd   : > { %v692_v22 = vpop.permute.xlu0 %691 }
 0x2fe   : > { %v701_v23 = vmul.f32 %v692_v22, %v1041_v44 }
 0x300   : > { %v705_v24 = vadd.f32 %v701_v23, %v1041_v44 }
 0x302   : > { %709 = vst.msk [vmem:[%s298_s26 + $0x10] sm:$0xff] %vm502_vm1, %v705_v24 }
 0x305   : > { %v697_v25 = vpop.permute.xlu1 %696 }
 0x306   : > { %v702_v26 = vmul.f32 %v697_v25, %v1035_v40 }
 0x308   : > { %v706_v39 = vadd.f32 %v702_v26, %v1035_v40 }
 0x30a   : > { %710 = vst.msk [vmem:[%s298_s26 + $0x18] sm:$0xff] %vm502_vm1, %v706_v39 }
 0x30b PF: > { %s17_s24 = sadd.s32 1, %s845_s24  }
 0x30c   : > { %p14_p4 = scmp.ge.s32.totalorder %s17_s24, 4  }
 0x30e   :  { %16 = sbr.rel (!%p14_p4) target bundleno = 1 (0x1), region = 81 }

</bundles_post_ra>
